<compile_context>
chip_gen: v6e
topology: v6e:2x2x1
jax: 0.10.0
libtpu: 0.0.40
codegen_flags: <defaults>
</compile_context>

<pallas_src>
import functools
import math

import jax
import jax.numpy as jnp
from jax.experimental import pallas as pl
from jax.experimental.pallas import tpu as pltpu


# ----------------------------------------------------------------------------
# VMEM budgeting (derived from the actual chip generation when available)
# ----------------------------------------------------------------------------
def _vmem_config():
    try:
        cap = int(pltpu.get_tpu_info().vmem_capacity_bytes)
    except Exception:
        cap = 64 * 1024 * 1024  # conservative (v7x-sized) fallback
    limit = min((cap * 3) // 4, 100 * 1024 * 1024)  # explicit scoped-VMEM limit
    return limit // 2, limit                         # (pipelined-data budget, limit)


_VMEM_DATA_BUDGET, _VMEM_LIMIT_BYTES = _vmem_config()


def _round_up(n: int, m: int) -> int:
    return ((n + m - 1) // m) * m


def _row_tiling(rows: int, bytes_per_row: int, resident_bytes: int):
    """Largest row tile (multiple of 8) fitting the VMEM budget, kept to >=2 grid
    steps when possible so both v7x TensorCores get work."""
    avail = max(_VMEM_DATA_BUDGET - resident_bytes, 1 << 20)
    max_rows = max(8, (avail // max(bytes_per_row, 1)) // 8 * 8)
    tile = min(_round_up(rows, 8), max_rows, 2048)
    if rows > 8:
        tile = min(tile, _round_up(pl.cdiv(rows, 2), 8))
    tile = max(8, (tile // 8) * 8)
    return tile, _round_up(rows, tile)


def _resident_spec(block_shape):
    """BlockSpec for an operand that stays resident across the grid (constant
    index_map), single-buffered when the jax version supports pipeline_mode."""
    ndim = len(block_shape)
    index_map = lambda *_: (0,) * ndim
    try:
        return pl.BlockSpec(block_shape, index_map, pipeline_mode=pl.Buffered(1))
    except Exception:  # older BlockSpec without pipeline_mode / Buffered
        return pl.BlockSpec(block_shape, index_map)


def _compiler_params():
    return pltpu.CompilerParams(
        dimension_semantics=("parallel",),
        vmem_limit_bytes=_VMEM_LIMIT_BYTES,
    )


def _pad_rows(x2d, padded_rows):
    rows = x2d.shape[0]
    if padded_rows != rows:
        x2d = jnp.pad(x2d, ((0, padded_rows - rows), (0, 0)))
    return x2d


# ----------------------------------------------------------------------------
# In-kernel LayerNorm (torch semantics: unbiased variance, eps OUTSIDE sqrt)
# ----------------------------------------------------------------------------
def _layernorm_f32(x, g, b, eps, d_model):
    mean = jnp.mean(x, axis=-1, keepdims=True)
    diff = x - mean
    var = jnp.sum(diff * diff, axis=-1, keepdims=True) / (d_model - 1)
    inv = pl.reciprocal(jnp.sqrt(var) + eps, approx=True)   # per-row EUP reciprocal
    return diff * inv * g + b


# ----------------------------------------------------------------------------
# Kernels
# ----------------------------------------------------------------------------
def _ln_qkv_kernel(x_ref, g_ref, b_ref, w_ref, bias_ref, q_ref, kv_ref, *, eps, d_model):
    """LN(x) @ [Wq|Wk|Wv] + b, written as separate q / [k|v] outputs."""
    x = x_ref[...].astype(jnp.float32)
    h = _layernorm_f32(x, g_ref[...], b_ref[...], eps, d_model)
    y = jnp.dot(h.astype(jnp.bfloat16), w_ref[...],
                preferred_element_type=jnp.float32) + bias_ref[...]
    q_ref[...] = y[:, :d_model].astype(q_ref.dtype)
    kv_ref[...] = y[:, d_model:].astype(kv_ref.dtype)


def _ln_matmul_kernel(x_ref, g_ref, b_ref, w_ref, bias_ref, out_ref, *, eps, d_model):
    """LN(x) @ W + b."""
    x = x_ref[...].astype(jnp.float32)
    h = _layernorm_f32(x, g_ref[...], b_ref[...], eps, d_model)
    y = jnp.dot(h.astype(jnp.bfloat16), w_ref[...],
                preferred_element_type=jnp.float32) + bias_ref[...]
    out_ref[...] = y.astype(out_ref.dtype)


def _matmul_kernel(x_ref, w_ref, bias_ref, out_ref):
    """x @ W + b (no LN); used for the cross-attention K/V projection."""
    y = jnp.dot(x_ref[...].astype(jnp.bfloat16), w_ref[...],
                preferred_element_type=jnp.float32) + bias_ref[...]
    out_ref[...] = y.astype(out_ref.dtype)


def _ln_ffn_kernel(x_ref, g_ref, b_ref, w1_ref, b1_ref, w2_ref, b2_ref, out_ref,
                   *, eps, d_model):
    """x + (ReLU(LN(x) @ W1 + b1) @ W2 + b2) — whole FFN sublayer in one call."""
    x = x_ref[...].astype(jnp.float32)
    h = _layernorm_f32(x, g_ref[...], b_ref[...], eps, d_model)
    f = jnp.dot(h.astype(jnp.bfloat16), w1_ref[...],
                preferred_element_type=jnp.float32) + b1_ref[...]
    f = jnp.maximum(f, 0.0)
    y = jnp.dot(f.astype(jnp.bfloat16), w2_ref[...],
                preferred_element_type=jnp.float32) + b2_ref[...]
    out_ref[...] = (x + y).astype(out_ref.dtype)


def _attn_wo_res_kernel(q_ref, kv_ref, *rest, num_heads, d_k, d_model, scale, has_mask):
    """Multi-head attention + output projection + residual add for one batch element.

    q_ref: (Sq, d) bf16; kv_ref: (Sk, 2d) bf16 laid out as [K | V];
    optional additive mask bias (Sq, Sk) f32; residual (Sq, d) f32; Wo (d, d) bf16.
    """
    if has_mask:
        bias_ref, res_ref, wo_ref, bo_ref, out_ref = rest
    else:
        bias_ref = None
        res_ref, wo_ref, bo_ref, out_ref = rest

    q = q_ref[...]
    kv = kv_ref[...]
    heads = []
    for h in range(num_heads):
        lo = h * d_k
        qh = (q[:, lo:lo + d_k] * scale).astype(jnp.bfloat16)          # fold 1/sqrt(d_k)
        kh = kv[:, lo:lo + d_k].astype(jnp.bfloat16)
        vh = kv[:, d_model + lo:d_model + lo + d_k].astype(jnp.bfloat16)
        s = jax.lax.dot_general(qh, kh, (((1,), (1,)), ((), ())),
                                preferred_element_type=jnp.float32)     # (Sq, Sk)
        if has_mask:
            s = s + bias_ref[...]
        m = jnp.max(s, axis=-1, keepdims=True)
        p = jnp.exp(s - m)
        denom = jnp.sum(p, axis=-1, keepdims=True)
        oh = jnp.dot(p.astype(jnp.bfloat16), vh, preferred_element_type=jnp.float32)
        # Deferred softmax normalization: scale the (Sq, d_k) output, not (Sq, Sk) probs.
        heads.append(oh * pl.reciprocal(denom, approx=True))
    o = jnp.concatenate(heads, axis=-1)                                  # (Sq, d)
    y = jnp.dot(o.astype(jnp.bfloat16), wo_ref[...],
                preferred_element_type=jnp.float32) + bo_ref[...]
    out_ref[...] = (res_ref[...].astype(jnp.float32) + y).astype(out_ref.dtype)


# ----------------------------------------------------------------------------
# Wrappers (pallas_call plumbing)
# ----------------------------------------------------------------------------
# TODO(synk): add K/N tiling with an f32 VMEM accumulator for d_model/d_ff too large
# to keep a full weight VMEM-resident (needed on v7x before scaling model size).
def ln_qkv_proj(x, gamma, beta, w_qkv, b_qkv, eps):
    """Fused LN + QKV projection. x: [B, S, d] -> (q [B,S,d], kv [B,S,2d]) in bf16."""
    bsz, s, d = x.shape
    n_out = w_qkv.shape[1]
    rows = bsz * s
    x2 = x.reshape(rows, d)
    resident = 2 * (w_qkv.size * w_qkv.dtype.itemsize + (2 * d + n_out) * 4)
    bpr = 2 * (d * 4 + d * 2 + 2 * d * 2)
    tr, padded = _row_tiling(rows, bpr, resident)
    x2 = _pad_rows(x2, padded)

    kernel = functools.partial(_ln_qkv_kernel, eps=float(eps), d_model=d)
    q2, kv2 = pl.pallas_call(
        kernel,
        out_shape=(jax.ShapeDtypeStruct((padded, d), jnp.bfloat16),
                   jax.ShapeDtypeStruct((padded, 2 * d), jnp.bfloat16)),
        grid_spec=pltpu.PrefetchScalarGridSpec(
            num_scalar_prefetch=0,
            grid=(padded // tr,),
            in_specs=[
                pl.BlockSpec((tr, d), lambda i: (i, 0)),
                _resident_spec((1, d)),
                _resident_spec((1, d)),
                _resident_spec((d, n_out)),
                _resident_spec((1, n_out)),
            ],
            out_specs=(pl.BlockSpec((tr, d), lambda i: (i, 0)),
                       pl.BlockSpec((tr, 2 * d), lambda i: (i, 0))),
        ),
        compiler_params=_compiler_params(),
    )(x2, gamma.astype(jnp.float32).reshape(1, d),
      beta.astype(jnp.float32).reshape(1, d),
      w_qkv, b_qkv.astype(jnp.float32).reshape(1, n_out))
    if padded != rows:
        q2, kv2 = q2[:rows], kv2[:rows]
    return q2.reshape(bsz, s, d), kv2.reshape(bsz, s, 2 * d)


def ln_linear(x, gamma, beta, w, bias, eps):
    """Fused LN + matmul. x: [B, S, d] -> [B, S, n_out] (bf16)."""
    bsz, s, d = x.shape
    n_out = w.shape[1]
    rows = bsz * s
    x2 = x.reshape(rows, d)
    resident = 2 * (w.size * w.dtype.itemsize + (2 * d + n_out) * 4)
    bpr = 2 * (d * 4 + n_out * 2)
    tr, padded = _row_tiling(rows, bpr, resident)
    x2 = _pad_rows(x2, padded)

    kernel = functools.partial(_ln_matmul_kernel, eps=float(eps), d_model=d)
    out = pl.pallas_call(
        kernel,
        out_shape=jax.ShapeDtypeStruct((padded, n_out), jnp.bfloat16),
        grid_spec=pltpu.PrefetchScalarGridSpec(
            num_scalar_prefetch=0,
            grid=(padded // tr,),
            in_specs=[
                pl.BlockSpec((tr, d), lambda i: (i, 0)),
                _resident_spec((1, d)),
                _resident_spec((1, d)),
                _resident_spec((d, n_out)),
                _resident_spec((1, n_out)),
            ],
            out_specs=pl.BlockSpec((tr, n_out), lambda i: (i, 0)),
        ),
        compiler_params=_compiler_params(),
    )(x2, gamma.astype(jnp.float32).reshape(1, d),
      beta.astype(jnp.float32).reshape(1, d),
      w, bias.astype(jnp.float32).reshape(1, n_out))
    if padded != rows:
        out = out[:rows]
    return out.reshape(bsz, s, n_out)


def linear_proj(x, w, bias):
    """Plain x @ W + b (fused [Wk|Wv] projection of the encoder output)."""
    bsz, s, d = x.shape
    n_out = w.shape[1]
    rows = bsz * s
    x2 = x.reshape(rows, d)
    resident = 2 * (w.size * w.dtype.itemsize + n_out * 4)
    bpr = 2 * (d * x.dtype.itemsize + n_out * 2)
    tr, padded = _row_tiling(rows, bpr, resident)
    x2 = _pad_rows(x2, padded)

    out = pl.pallas_call(
        _matmul_kernel,
        out_shape=jax.ShapeDtypeStruct((padded, n_out), jnp.bfloat16),
        grid_spec=pltpu.PrefetchScalarGridSpec(
            num_scalar_prefetch=0,
            grid=(padded // tr,),
            in_specs=[
                pl.BlockSpec((tr, d), lambda i: (i, 0)),
                _resident_spec((d, n_out)),
                _resident_spec((1, n_out)),
            ],
            out_specs=pl.BlockSpec((tr, n_out), lambda i: (i, 0)),
        ),
        compiler_params=_compiler_params(),
    )(x2, w, bias.astype(jnp.float32).reshape(1, n_out))
    if padded != rows:
        out = out[:rows]
    return out.reshape(bsz, s, n_out)


def ln_ffn_residual(x, gamma, beta, w1, b1, w2, b2, eps):
    """x + FFN(LN(x)) fused in one pallas_call."""
    bsz, s, d = x.shape
    d_ff = w1.shape[1]
    rows = bsz * s
    x2 = x.reshape(rows, d)
    resident = 2 * ((w1.size + w2.size) * 2 + (2 * d + d_ff + d) * 4)
    bpr = 2 * (d * 4 + d * 4)
    tr, padded = _row_tiling(rows, bpr, resident)
    x2 = _pad_rows(x2, padded)

    kernel = functools.partial(_ln_ffn_kernel, eps=float(eps), d_model=d)
    out = pl.pallas_call(
        kernel,
        out_shape=jax.ShapeDtypeStruct((padded, d), x.dtype),
        grid_spec=pltpu.PrefetchScalarGridSpec(
            num_scalar_prefetch=0,
            grid=(padded // tr,),
            in_specs=[
                pl.BlockSpec((tr, d), lambda i: (i, 0)),
                _resident_spec((1, d)),
                _resident_spec((1, d)),
                _resident_spec((d, d_ff)),
                _resident_spec((1, d_ff)),
                _resident_spec((d_ff, d)),
                _resident_spec((1, d)),
            ],
            out_specs=pl.BlockSpec((tr, d), lambda i: (i, 0)),
        ),
        compiler_params=_compiler_params(),
    )(x2, gamma.astype(jnp.float32).reshape(1, d),
      beta.astype(jnp.float32).reshape(1, d),
      w1, b1.astype(jnp.float32).reshape(1, d_ff),
      w2, b2.astype(jnp.float32).reshape(1, d))
    if padded != rows:
        out = out[:rows]
    return out.reshape(bsz, s, d)


def attention_block(q, kv, mask_bias, residual, w_o, b_o, num_heads):
    """Fused MHA + Wo + residual. Grid over batch; heads stay packed lane-dense.

    q: [B, Sq, d] bf16; kv: [B, Sk, 2d] bf16 ([K|V]); residual: [B, Sq, d] f32;
    mask_bias: [Sq, Sk] additive (0 / -1e9) or None (cross-attention).
    """
    bsz, sq, d = q.shape
    sk = kv.shape[1]
    d_k = d // num_heads
    has_mask = mask_bias is not None
    kernel = functools.partial(
        _attn_wo_res_kernel, num_heads=num_heads, d_k=d_k, d_model=d,
        scale=1.0 / math.sqrt(d_k), has_mask=has_mask)

    in_specs = [
        pl.BlockSpec((pl.Squeezed(), sq, d), lambda i: (i, 0, 0)),
        pl.BlockSpec((pl.Squeezed(), sk, 2 * d), lambda i: (i, 0, 0)),
    ]
    inputs = [q, kv]
    if has_mask:
        in_specs.append(_resident_spec((sq, sk)))
        inputs.append(mask_bias)
    in_specs += [
        pl.BlockSpec((pl.Squeezed(), sq, d), lambda i: (i, 0, 0)),
        _resident_spec((d, d)),
        _resident_spec((1, d)),
    ]
    inputs += [residual, w_o, b_o.astype(jnp.float32).reshape(1, d)]

    # TODO(synk): for long sequences, switch to a KV-tiled online-softmax (flash)
    # variant (extra "arbitrary" grid axis over KV blocks, m/l/acc VMEM scratch).
    return pl.pallas_call(
        kernel,
        out_shape=jax.ShapeDtypeStruct((bsz, sq, d), residual.dtype),
        grid_spec=pltpu.PrefetchScalarGridSpec(
            num_scalar_prefetch=0,
            grid=(bsz,),
            in_specs=in_specs,
            out_specs=pl.BlockSpec((pl.Squeezed(), sq, d), lambda i: (i, 0, 0)),
        ),
        compiler_params=_compiler_params(),
    )(*inputs)


# ----------------------------------------------------------------------------
# Decoder forward (Pallas path)
# ----------------------------------------------------------------------------
def decoder_forward_pallas(params, tokens, encoder_output, tgt_mask, *, num_heads, eps):
    d_model = params["embedding"].shape[1]
    seq_len = tokens.shape[1]

    # InputEmbedding (gather) + PositionalEncoding — trivial, left to XLA.
    x = jnp.take(params["embedding"], tokens, axis=0) * math.sqrt(d_model)
    x = x + params["pos_encoding"][None, :seq_len, :]

    # masked_fill(mask == 0, -1e9) as an additive bias, computed once per call.
    mask2d = tgt_mask.reshape(tgt_mask.shape[-2], tgt_mask.shape[-1])
    mask_bias = jnp.where(mask2d == 0, -1e9, 0.0).astype(jnp.float32)

    enc_bf16 = encoder_output.astype(jnp.bfloat16)   # hoisted operand cast

    # TODO(synk): all nn.Dropout layers are identity here (eval/inference mode).
    for layer in params["layers"]:
        # --- masked self-attention sublayer ---
        sa = layer["self_attn"]
        w_qkv = jnp.concatenate([sa["wq"], sa["wk"], sa["wv"]], axis=1).astype(jnp.bfloat16)
        b_qkv = jnp.concatenate([sa["bq"], sa["bk"], sa["bv"]])
        q, kv = ln_qkv_proj(x, layer["ln1_g"], layer["ln1_b"], w_qkv, b_qkv, eps)
        x = attention_block(q, kv, mask_bias, x, sa["wo"].astype(jnp.bfloat16),
                            sa["bo"], num_heads)

        # --- cross-attention sublayer (K/V from the *un-normed* encoder output) ---
        ca = layer["cross_attn"]
        q = ln_linear(x, layer["ln2_g"], layer["ln2_b"],
                      ca["wq"].astype(jnp.bfloat16), ca["bq"], eps)
        w_kv = jnp.concatenate([ca["wk"], ca["wv"]], axis=1).astype(jnp.bfloat16)
        b_kv = jnp.concatenate([ca["bk"], ca["bv"]])
        kv_enc = linear_proj(enc_bf16, w_kv, b_kv)
        x = attention_block(q, kv_enc, None, x, ca["wo"].astype(jnp.bfloat16),
                            ca["bo"], num_heads)

        # --- feed-forward sublayer ---
        x = ln_ffn_residual(x, layer["ln3_g"], layer["ln3_b"],
                            layer["ffn_w1"].astype(jnp.bfloat16), layer["ffn_b1"],
                            layer["ffn_w2"].astype(jnp.bfloat16), layer["ffn_b2"], eps)
    return x


# ----------------------------------------------------------------------------
# Pure-JAX reference (torch-equivalent math, f32 HIGHEST precision)
# ----------------------------------------------------------------------------
def _ref_layer_norm(x, gamma, bias, eps):
    mean = jnp.mean(x, axis=-1, keepdims=True)
    var = jnp.sum((x - mean) ** 2, axis=-1, keepdims=True) / (x.shape[-1] - 1)
    return gamma * (x - mean) / (jnp.sqrt(var) + eps) + bias


def _ref_linear(x, w, b):
    return jnp.dot(x, w, precision=jax.lax.Precision.HIGHEST) + b


def _ref_mha(q_in, k_in, v_in, p, num_heads, mask):
    b, sq, d = q_in.shape
    sk = k_in.shape[1]
    d_k = d // num_heads
    q = _ref_linear(q_in, p["wq"], p["bq"]).reshape(b, sq, num_heads, d_k).transpose(0, 2, 1, 3)
    k = _ref_linear(k_in, p["wk"], p["bk"]).reshape(b, sk, num_heads, d_k).transpose(0, 2, 1, 3)
    v = _ref_linear(v_in, p["wv"], p["bv"]).reshape(b, sk, num_heads, d_k).transpose(0, 2, 1, 3)
    s = jnp.einsum("bhqd,bhkd->bhqk", q, k,
                   precision=jax.lax.Precision.HIGHEST) / math.sqrt(d_k)
    if mask is not None:
        s = jnp.where(mask == 0, -1e9, s)
    attn = jax.nn.softmax(s, axis=-1)
    o = jnp.einsum("bhqk,bhkd->bhqd", attn, v, precision=jax.lax.Precision.HIGHEST)
    o = o.transpose(0, 2, 1, 3).reshape(b, sq, d)
    return _ref_linear(o, p["wo"], p["bo"])


def decoder_forward_ref(params, tokens, encoder_output, tgt_mask, *, num_heads, eps):
    d_model = params["embedding"].shape[1]
    seq_len = tokens.shape[1]
    x = jnp.take(params["embedding"], tokens, axis=0) * math.sqrt(d_model)
    x = x + params["pos_encoding"][None, :seq_len, :]
    for layer in params["layers"]:
        h = _ref_layer_norm(x, layer["ln1_g"], layer["ln1_b"], eps)
        x = x + _ref_mha(h, h, h, layer["self_attn"], num_heads, tgt_mask)
        h = _ref_layer_norm(x, layer["ln2_g"], layer["ln2_b"], eps)
        x = x + _ref_mha(h, encoder_output, encoder_output, layer["cross_attn"],
                         num_heads, None)
        h = _ref_layer_norm(x, layer["ln3_g"], layer["ln3_b"], eps)
        f = jnp.maximum(_ref_linear(h, layer["ffn_w1"], layer["ffn_b1"]), 0.0)
        x = x + _ref_linear(f, layer["ffn_w2"], layer["ffn_b2"])
    return x


# ----------------------------------------------------------------------------
# Deterministic parameter init (mirrors the torch module's parameter set)
# ----------------------------------------------------------------------------
def _init_linear(key, din, dout):
    kw, kb = jax.random.split(key)
    w = jax.random.normal(kw, (din, dout), dtype=jnp.float32) / math.sqrt(din)
    b = 0.01 * jax.random.normal(kb, (dout,), dtype=jnp.float32)
    return w, b


def _init_mha(key, d_model):
    ks = jax.random.split(key, 4)
    wq, bq = _init_linear(ks[0], d_model, d_model)
    wk, bk = _init_linear(ks[1], d_model, d_model)
    wv, bv = _init_linear(ks[2], d_model, d_model)
    wo, bo = _init_linear(ks[3], d_model, d_model)
    return {"wq": wq, "bq": bq, "wk": wk, "bk": bk, "wv": wv, "bv": bv, "wo": wo, "bo": bo}


def _init_layer(key, d_model, d_ff):
    ks = jax.random.split(key, 7)
    layer = {
        "self_attn": _init_mha(ks[0], d_model),
        "cross_attn": _init_mha(ks[1], d_model),
    }
    w1, b1 = _init_linear(ks[2], d_model, d_ff)
    w2, b2 = _init_linear(ks[3], d_ff, d_model)
    layer.update({"ffn_w1": w1, "ffn_b1": b1, "ffn_w2": w2, "ffn_b2": b2})
    for name, kk in zip(("ln1", "ln2", "ln3"), ks[4:7]):
        kg, kb = jax.random.split(kk)
        layer[name + "_g"] = 1.0 + 0.02 * jax.random.normal(kg, (d_model,), dtype=jnp.float32)
        layer[name + "_b"] = 0.02 * jax.random.normal(kb, (d_model,), dtype=jnp.float32)
    return layer


def init_decoder_params(key, *, vocab_size, d_model, d_ff, num_layers, max_seq_len):
    k_emb, *k_layers = jax.random.split(key, num_layers + 1)
    pos = jnp.arange(max_seq_len, dtype=jnp.float32)[:, None]
    div_term = jnp.exp(jnp.arange(0, d_model, 2, dtype=jnp.float32)
                       * (-math.log(10000.0) / d_model))
    pe = jnp.zeros((max_seq_len, d_model), dtype=jnp.float32)
    pe = pe.at[:, 0::2].set(jnp.sin(pos * div_term))
    pe = pe.at[:, 1::2].set(jnp.cos(pos * div_term))
    return {
        "embedding": 0.1 * jax.random.normal(k_emb, (vocab_size, d_model), dtype=jnp.float32),
        "pos_encoding": pe,
        "layers": [_init_layer(k, d_model, d_ff) for k in k_layers],
    }


# ----------------------------------------------------------------------------
# Demo / correctness check
# ----------------------------------------------------------------------------
if __name__ == "__main__":
    batch, seq_len = 2, 128
    d_model, num_heads, d_ff = 128, 4, 256   # lane-dense d_model (multiple of 128)
    vocab_size, num_layers, max_seq_len = 1000, 2, 512
    eps = 1e-6

    key = jax.random.PRNGKey(0)
    k_params, k_tok, k_enc = jax.random.split(key, 3)

    params = init_decoder_params(k_params, vocab_size=vocab_size, d_model=d_model,
                                 d_ff=d_ff, num_layers=num_layers, max_seq_len=max_seq_len)
    tokens = jax.random.randint(k_tok, (batch, seq_len), 0, vocab_size)
    encoder_output = jax.random.normal(k_enc, (batch, seq_len, d_model), dtype=jnp.float32)
    tgt_mask = jnp.tril(jnp.ones((seq_len, seq_len), dtype=jnp.float32))[None, None]

    pallas_fwd = jax.jit(functools.partial(decoder_forward_pallas,
                                           num_heads=num_heads, eps=eps))
    out = jax.block_until_ready(pallas_fwd(params, tokens, encoder_output, tgt_mask))

    ref_fwd = jax.jit(functools.partial(decoder_forward_ref,
                                        num_heads=num_heads, eps=eps))
    ref = jax.block_until_ready(ref_fwd(params, tokens, encoder_output, tgt_mask))

    assert out.shape == (batch, seq_len, d_model)
    diff = out.astype(jnp.float32) - ref
    max_err = float(jnp.max(jnp.abs(diff)))
    rel_l2 = float(jnp.sqrt(jnp.sum(diff * diff)) / (jnp.sqrt(jnp.sum(ref * ref)) + 1e-12))
    # Tolerances sized for bf16 MXU operands (per perf guidance) vs. an f32
    # Precision.HIGHEST reference over 2 decoder layers.
    assert rel_l2 < 2e-2, f"relative L2 error too large: {rel_l2}"
    assert jnp.allclose(out, ref, atol=5e-2, rtol=5e-2), (
        f"mismatch vs reference (max abs err {max_err}, rel l2 {rel_l2})")

    print("KERNEL_OK")
</pallas_src>

<mosaic_0001>
module attributes {stable_mosaic.version = 11 : i64} {
  func.func @_ln_qkv_kernel(%arg0: i32, %arg1: memref<128x128xf32, #tpu.memory_space<vmem>>, %arg2: memref<1x128xf32, #tpu.memory_space<vmem>>, %arg3: memref<1x128xf32, #tpu.memory_space<vmem>>, %arg4: memref<128x384xbf16, #tpu.memory_space<vmem>>, %arg5: memref<1x384xf32, #tpu.memory_space<vmem>>, %arg6: memref<128x128xbf16, #tpu.memory_space<vmem>>, %arg7: memref<128x256xbf16, #tpu.memory_space<vmem>>) attributes {dimension_semantics = [#tpu.dimension_semantics<parallel>], iteration_bounds = array<i64: 2>, scalar_prefetch = 0 : i64, scratch_operands = 0 : i64, tpu.core_type = #tpu.core_type<tc>, window_params = [{transform_indices = @transform_0, window_bounds = array<i64: 128, 128>}, {pipeline_mode = #tpu.pipeline_mode<synchronous>, transform_indices = @transform_1, window_bounds = array<i64: 1, 128>}, {pipeline_mode = #tpu.pipeline_mode<synchronous>, transform_indices = @transform_2, window_bounds = array<i64: 1, 128>}, {pipeline_mode = #tpu.pipeline_mode<synchronous>, transform_indices = @transform_3, window_bounds = array<i64: 128, 384>}, {pipeline_mode = #tpu.pipeline_mode<synchronous>, transform_indices = @transform_4, window_bounds = array<i64: 1, 384>}, {transform_indices = @transform_5, window_bounds = array<i64: 128, 128>}, {transform_indices = @transform_6, window_bounds = array<i64: 128, 256>}]} {
    %c0 = arith.constant 0 : index
    %c0_0 = arith.constant 0 : index
    %0 = vector.load %arg1[%c0, %c0_0] : memref<128x128xf32, #tpu.memory_space<vmem>>, vector<128x128xf32>
    %c0_1 = arith.constant 0 : index
    %c0_2 = arith.constant 0 : index
    %1 = vector.load %arg2[%c0_1, %c0_2] : memref<1x128xf32, #tpu.memory_space<vmem>>, vector<1x128xf32>
    %c0_3 = arith.constant 0 : index
    %c0_4 = arith.constant 0 : index
    %2 = vector.load %arg3[%c0_3, %c0_4] : memref<1x128xf32, #tpu.memory_space<vmem>>, vector<1x128xf32>
    %cst = arith.constant dense<0.000000e+00> : vector<128xf32>
    %3 = vector.multi_reduction <add>, %0, %cst [1] : vector<128x128xf32> to vector<128xf32>
    %4 = vector.shape_cast %3 : vector<128xf32> to vector<128x1xf32>
    %cst_5 = arith.constant 1.280000e+02 : f32
    %5 = vector.broadcast %cst_5 : f32 to vector<128x1xf32>
    %6 = arith.divf %4, %5 : vector<128x1xf32>
    %7 = vector.broadcast %6 : vector<128x1xf32> to vector<128x128xf32>
    %8 = arith.subf %0, %7 : vector<128x128xf32>
    %9 = arith.mulf %8, %8 : vector<128x128xf32>
    %cst_6 = arith.constant dense<0.000000e+00> : vector<128xf32>
    %10 = vector.multi_reduction <add>, %9, %cst_6 [1] : vector<128x128xf32> to vector<128xf32>
    %11 = vector.shape_cast %10 : vector<128xf32> to vector<128x1xf32>
    %cst_7 = arith.constant 1.270000e+02 : f32
    %12 = vector.broadcast %cst_7 : f32 to vector<128x1xf32>
    %13 = arith.divf %11, %12 : vector<128x1xf32>
    %14 = math.sqrt %13 : vector<128x1xf32>
    %cst_8 = arith.constant 9.99999997E-7 : f32
    %15 = vector.broadcast %cst_8 : f32 to vector<128x1xf32>
    %16 = arith.addf %14, %15 : vector<128x1xf32>
    %17 = tpu.reciprocal %16 {approx = true} : vector<128x1xf32> -> vector<128x1xf32>
    %18 = vector.broadcast %17 : vector<128x1xf32> to vector<128x128xf32>
    %19 = arith.mulf %8, %18 : vector<128x128xf32>
    %20 = vector.broadcast %1 : vector<1x128xf32> to vector<128x128xf32>
    %21 = arith.mulf %19, %20 : vector<128x128xf32>
    %22 = vector.broadcast %2 : vector<1x128xf32> to vector<128x128xf32>
    %23 = arith.addf %21, %22 : vector<128x128xf32>
    %24 = arith.truncf %23 : vector<128x128xf32> to vector<128x128xbf16>
    %c0_9 = arith.constant 0 : index
    %c0_10 = arith.constant 0 : index
    %25 = vector.load %arg4[%c0_9, %c0_10] : memref<128x384xbf16, #tpu.memory_space<vmem>>, vector<128x384xbf16>
    %cst_11 = arith.constant dense<0.000000e+00> : vector<128x384xf32>
    %26 = tpu.matmul %24, %25, %cst_11 {dimension_numbers = #tpu.dot_dimension_numbers<[1], [0], [0], [1], [0, 0, 1, 1], [], []>} : vector<128x128xbf16>, vector<128x384xbf16>, vector<128x384xf32> -> vector<128x384xf32>
    %c0_12 = arith.constant 0 : index
    %c0_13 = arith.constant 0 : index
    %27 = vector.load %arg5[%c0_12, %c0_13] : memref<1x384xf32, #tpu.memory_space<vmem>>, vector<1x384xf32>
    %28 = vector.broadcast %27 : vector<1x384xf32> to vector<128x384xf32>
    %29 = arith.addf %26, %28 : vector<128x384xf32>
    %30 = vector.extract_strided_slice %29 {offsets = [0, 0], sizes = [128, 128], strides = [1, 1]} : vector<128x384xf32> to vector<128x128xf32>
    %31 = arith.truncf %30 : vector<128x128xf32> to vector<128x128xbf16>
    %c0_14 = arith.constant 0 : index
    %c0_15 = arith.constant 0 : index
    %32 = vector.load %arg6[%c0_14, %c0_15] : memref<128x128xbf16, #tpu.memory_space<vmem>>, vector<128x128xbf16>
    tpu.vector_store %arg6[%c0_14, %c0_15], %31 {strides = array<i32>} : memref<128x128xbf16, #tpu.memory_space<vmem>>, vector<128x128xbf16>,
    %33 = vector.extract_strided_slice %29 {offsets = [0, 128], sizes = [128, 256], strides = [1, 1]} : vector<128x384xf32> to vector<128x256xf32>
    %34 = arith.truncf %33 : vector<128x256xf32> to vector<128x256xbf16>
    %c0_16 = arith.constant 0 : index
    %c0_17 = arith.constant 0 : index
    %35 = vector.load %arg7[%c0_16, %c0_17] : memref<128x256xbf16, #tpu.memory_space<vmem>>, vector<128x256xbf16>
    tpu.vector_store %arg7[%c0_16, %c0_17], %34 {strides = array<i32>} : memref<128x256xbf16, #tpu.memory_space<vmem>>, vector<128x256xbf16>,
    return
  }
  func.func @transform_0(%arg0: i32) -> (i32, i32) {
    %c0_i32 = arith.constant 0 : i32
    %c0_i32_0 = arith.constant 0 : i32
    return %arg0, %c0_i32 : i32, i32
  }
  func.func @transform_1(%arg0: i32) -> (i32, i32) {
    %c0_i32 = arith.constant 0 : i32
    %c0_i32_0 = arith.constant 0 : i32
    %c0_i32_1 = arith.constant 0 : i32
    return %c0_i32, %c0_i32_0 : i32, i32
  }
  func.func @transform_2(%arg0: i32) -> (i32, i32) {
    %c0_i32 = arith.constant 0 : i32
    %c0_i32_0 = arith.constant 0 : i32
    %c0_i32_1 = arith.constant 0 : i32
    return %c0_i32, %c0_i32_0 : i32, i32
  }
  func.func @transform_3(%arg0: i32) -> (i32, i32) {
    %c0_i32 = arith.constant 0 : i32
    %c0_i32_0 = arith.constant 0 : i32
    %c0_i32_1 = arith.constant 0 : i32
    return %c0_i32, %c0_i32_0 : i32, i32
  }
  func.func @transform_4(%arg0: i32) -> (i32, i32) {
    %c0_i32 = arith.constant 0 : i32
    %c0_i32_0 = arith.constant 0 : i32
    %c0_i32_1 = arith.constant 0 : i32
    return %c0_i32, %c0_i32_0 : i32, i32
  }
  func.func @transform_5(%arg0: i32) -> (i32, i32) {
    %c0_i32 = arith.constant 0 : i32
    %c0_i32_0 = arith.constant 0 : i32
    return %arg0, %c0_i32 : i32, i32
  }
  func.func @transform_6(%arg0: i32) -> (i32, i32) {
    %c0_i32 = arith.constant 0 : i32
    %c0_i32_0 = arith.constant 0 : i32
    return %arg0, %c0_i32 : i32, i32
  }
}

module attributes {stable_mosaic.version = 11 : i64} {
  func.func @_attn_wo_res_kernel(%arg0: i32, %arg1: memref<1x128x128xbf16, #tpu.memory_space<vmem>>, %arg2: memref<1x128x256xbf16, #tpu.memory_space<vmem>>, %arg3: memref<128x128xf32, #tpu.memory_space<vmem>>, %arg4: memref<1x128x128xf32, #tpu.memory_space<vmem>>, %arg5: memref<128x128xbf16, #tpu.memory_space<vmem>>, %arg6: memref<1x128xf32, #tpu.memory_space<vmem>>, %arg7: memref<1x128x128xf32, #tpu.memory_space<vmem>>) attributes {dimension_semantics = [#tpu.dimension_semantics<parallel>], iteration_bounds = array<i64: 2>, scalar_prefetch = 0 : i64, scratch_operands = 0 : i64, tpu.core_type = #tpu.core_type<tc>, window_params = [{transform_indices = @transform_0, window_bounds = array<i64: 1, 128, 128>}, {transform_indices = @transform_1, window_bounds = array<i64: 1, 128, 256>}, {pipeline_mode = #tpu.pipeline_mode<synchronous>, transform_indices = @transform_2, window_bounds = array<i64: 128, 128>}, {transform_indices = @transform_3, window_bounds = array<i64: 1, 128, 128>}, {pipeline_mode = #tpu.pipeline_mode<synchronous>, transform_indices = @transform_4, window_bounds = array<i64: 128, 128>}, {pipeline_mode = #tpu.pipeline_mode<synchronous>, transform_indices = @transform_5, window_bounds = array<i64: 1, 128>}, {transform_indices = @transform_6, window_bounds = array<i64: 1, 128, 128>}]} {
    %c0 = arith.constant 0 : index
    %c0_0 = arith.constant 0 : index
    %c0_1 = arith.constant 0 : index
    %0 = vector.load %arg1[%c0, %c0_0, %c0_1] : memref<1x128x128xbf16, #tpu.memory_space<vmem>>, vector<1x128x128xbf16>
    %1 = vector.shape_cast %0 : vector<1x128x128xbf16> to vector<128x128xbf16>
    %c0_2 = arith.constant 0 : index
    %c0_3 = arith.constant 0 : index
    %c0_4 = arith.constant 0 : index
    %2 = vector.load %arg2[%c0_2, %c0_3, %c0_4] : memref<1x128x256xbf16, #tpu.memory_space<vmem>>, vector<1x128x256xbf16>
    %3 = vector.shape_cast %2 : vector<1x128x256xbf16> to vector<128x256xbf16>
    %4 = vector.extract_strided_slice %1 {offsets = [0, 0], sizes = [128, 32], strides = [1, 1]} : vector<128x128xbf16> to vector<128x32xbf16>
    %cst = arith.constant 1.767580e-01 : bf16
    %5 = vector.broadcast %cst : bf16 to vector<128x32xbf16>
    %6 = arith.mulf %4, %5 : vector<128x32xbf16>
    %7 = vector.extract_strided_slice %3 {offsets = [0, 0], sizes = [128, 32], strides = [1, 1]} : vector<128x256xbf16> to vector<128x32xbf16>
    %8 = vector.extract_strided_slice %3 {offsets = [0, 128], sizes = [128, 32], strides = [1, 1]} : vector<128x256xbf16> to vector<128x32xbf16>
    %cst_5 = arith.constant dense<0.000000e+00> : vector<128x128xf32>
    %9 = tpu.matmul %6, %7, %cst_5 {dimension_numbers = #tpu.dot_dimension_numbers<[1], [1], [0], [0], [0, 0, 1, 0], [], []>} : vector<128x32xbf16>, vector<128x32xbf16>, vector<128x128xf32> -> vector<128x128xf32>
    %c0_6 = arith.constant 0 : index
    %c0_7 = arith.constant 0 : index
    %10 = vector.load %arg3[%c0_6, %c0_7] : memref<128x128xf32, #tpu.memory_space<vmem>>, vector<128x128xf32>
    %11 = arith.addf %9, %10 : vector<128x128xf32>
    %cst_8 = arith.constant dense<0xFF800000> : vector<128xf32>
    %12 = vector.multi_reduction <maximumf>, %11, %cst_8 [1] : vector<128x128xf32> to vector<128xf32>
    %13 = vector.shape_cast %12 : vector<128xf32> to vector<128x1xf32>
    %14 = vector.broadcast %13 : vector<128x1xf32> to vector<128x128xf32>
    %15 = arith.subf %11, %14 : vector<128x128xf32>
    %16 = math.exp %15 : vector<128x128xf32>
    %cst_9 = arith.constant dense<0.000000e+00> : vector<128xf32>
    %17 = vector.multi_reduction <add>, %16, %cst_9 [1] : vector<128x128xf32> to vector<128xf32>
    %18 = vector.shape_cast %17 : vector<128xf32> to vector<128x1xf32>
    %19 = arith.truncf %16 : vector<128x128xf32> to vector<128x128xbf16>
    %cst_10 = arith.constant dense<0.000000e+00> : vector<128x32xf32>
    %20 = tpu.matmul %19, %8, %cst_10 {dimension_numbers = #tpu.dot_dimension_numbers<[1], [0], [0], [1], [0, 0, 1, 1], [], []>} : vector<128x128xbf16>, vector<128x32xbf16>, vector<128x32xf32> -> vector<128x32xf32>
    %21 = tpu.reciprocal %18 {approx = true} : vector<128x1xf32> -> vector<128x1xf32>
    %22 = vector.broadcast %21 : vector<128x1xf32> to vector<128x32xf32>
    %23 = arith.mulf %20, %22 : vector<128x32xf32>
    %24 = vector.extract_strided_slice %1 {offsets = [0, 32], sizes = [128, 32], strides = [1, 1]} : vector<128x128xbf16> to vector<128x32xbf16>
    %cst_11 = arith.constant 1.767580e-01 : bf16
    %25 = vector.broadcast %cst_11 : bf16 to vector<128x32xbf16>
    %26 = arith.mulf %24, %25 : vector<128x32xbf16>
    %27 = vector.extract_strided_slice %3 {offsets = [0, 32], sizes = [128, 32], strides = [1, 1]} : vector<128x256xbf16> to vector<128x32xbf16>
    %28 = vector.extract_strided_slice %3 {offsets = [0, 160], sizes = [128, 32], strides = [1, 1]} : vector<128x256xbf16> to vector<128x32xbf16>
    %cst_12 = arith.constant dense<0.000000e+00> : vector<128x128xf32>
    %29 = tpu.matmul %26, %27, %cst_12 {dimension_numbers = #tpu.dot_dimension_numbers<[1], [1], [0], [0], [0, 0, 1, 0], [], []>} : vector<128x32xbf16>, vector<128x32xbf16>, vector<128x128xf32> -> vector<128x128xf32>
    %c0_13 = arith.constant 0 : index
    %c0_14 = arith.constant 0 : index
    %30 = vector.load %arg3[%c0_13, %c0_14] : memref<128x128xf32, #tpu.memory_space<vmem>>, vector<128x128xf32>
    %31 = arith.addf %29, %30 : vector<128x128xf32>
    %cst_15 = arith.constant dense<0xFF800000> : vector<128xf32>
    %32 = vector.multi_reduction <maximumf>, %31, %cst_15 [1] : vector<128x128xf32> to vector<128xf32>
    %33 = vector.shape_cast %32 : vector<128xf32> to vector<128x1xf32>
    %34 = vector.broadcast %33 : vector<128x1xf32> to vector<128x128xf32>
    %35 = arith.subf %31, %34 : vector<128x128xf32>
    %36 = math.exp %35 : vector<128x128xf32>
    %cst_16 = arith.constant dense<0.000000e+00> : vector<128xf32>
    %37 = vector.multi_reduction <add>, %36, %cst_16 [1] : vector<128x128xf32> to vector<128xf32>
    %38 = vector.shape_cast %37 : vector<128xf32> to vector<128x1xf32>
    %39 = arith.truncf %36 : vector<128x128xf32> to vector<128x128xbf16>
    %cst_17 = arith.constant dense<0.000000e+00> : vector<128x32xf32>
    %40 = tpu.matmul %39, %28, %cst_17 {dimension_numbers = #tpu.dot_dimension_numbers<[1], [0], [0], [1], [0, 0, 1, 1], [], []>} : vector<128x128xbf16>, vector<128x32xbf16>, vector<128x32xf32> -> vector<128x32xf32>
    %41 = tpu.reciprocal %38 {approx = true} : vector<128x1xf32> -> vector<128x1xf32>
    %42 = vector.broadcast %41 : vector<128x1xf32> to vector<128x32xf32>
    %43 = arith.mulf %40, %42 : vector<128x32xf32>
    %44 = vector.extract_strided_slice %1 {offsets = [0, 64], sizes = [128, 32], strides = [1, 1]} : vector<128x128xbf16> to vector<128x32xbf16>
    %cst_18 = arith.constant 1.767580e-01 : bf16
    %45 = vector.broadcast %cst_18 : bf16 to vector<128x32xbf16>
    %46 = arith.mulf %44, %45 : vector<128x32xbf16>
    %47 = vector.extract_strided_slice %3 {offsets = [0, 64], sizes = [128, 32], strides = [1, 1]} : vector<128x256xbf16> to vector<128x32xbf16>
    %48 = vector.extract_strided_slice %3 {offsets = [0, 192], sizes = [128, 32], strides = [1, 1]} : vector<128x256xbf16> to vector<128x32xbf16>
    %cst_19 = arith.constant dense<0.000000e+00> : vector<128x128xf32>
    %49 = tpu.matmul %46, %47, %cst_19 {dimension_numbers = #tpu.dot_dimension_numbers<[1], [1], [0], [0], [0, 0, 1, 0], [], []>} : vector<128x32xbf16>, vector<128x32xbf16>, vector<128x128xf32> -> vector<128x128xf32>
    %c0_20 = arith.constant 0 : index
    %c0_21 = arith.constant 0 : index
    %50 = vector.load %arg3[%c0_20, %c0_21] : memref<128x128xf32, #tpu.memory_space<vmem>>, vector<128x128xf32>
    %51 = arith.addf %49, %50 : vector<128x128xf32>
    %cst_22 = arith.constant dense<0xFF800000> : vector<128xf32>
    %52 = vector.multi_reduction <maximumf>, %51, %cst_22 [1] : vector<128x128xf32> to vector<128xf32>
    %53 = vector.shape_cast %52 : vector<128xf32> to vector<128x1xf32>
    %54 = vector.broadcast %53 : vector<128x1xf32> to vector<128x128xf32>
    %55 = arith.subf %51, %54 : vector<128x128xf32>
    %56 = math.exp %55 : vector<128x128xf32>
    %cst_23 = arith.constant dense<0.000000e+00> : vector<128xf32>
    %57 = vector.multi_reduction <add>, %56, %cst_23 [1] : vector<128x128xf32> to vector<128xf32>
    %58 = vector.shape_cast %57 : vector<128xf32> to vector<128x1xf32>
    %59 = arith.truncf %56 : vector<128x128xf32> to vector<128x128xbf16>
    %cst_24 = arith.constant dense<0.000000e+00> : vector<128x32xf32>
    %60 = tpu.matmul %59, %48, %cst_24 {dimension_numbers = #tpu.dot_dimension_numbers<[1], [0], [0], [1], [0, 0, 1, 1], [], []>} : vector<128x128xbf16>, vector<128x32xbf16>, vector<128x32xf32> -> vector<128x32xf32>
    %61 = tpu.reciprocal %58 {approx = true} : vector<128x1xf32> -> vector<128x1xf32>
    %62 = vector.broadcast %61 : vector<128x1xf32> to vector<128x32xf32>
    %63 = arith.mulf %60, %62 : vector<128x32xf32>
    %64 = vector.extract_strided_slice %1 {offsets = [0, 96], sizes = [128, 32], strides = [1, 1]} : vector<128x128xbf16> to vector<128x32xbf16>
    %cst_25 = arith.constant 1.767580e-01 : bf16
    %65 = vector.broadcast %cst_25 : bf16 to vector<128x32xbf16>
    %66 = arith.mulf %64, %65 : vector<128x32xbf16>
    %67 = vector.extract_strided_slice %3 {offsets = [0, 96], sizes = [128, 32], strides = [1, 1]} : vector<128x256xbf16> to vector<128x32xbf16>
    %68 = vector.extract_strided_slice %3 {offsets = [0, 224], sizes = [128, 32], strides = [1, 1]} : vector<128x256xbf16> to vector<128x32xbf16>
    %cst_26 = arith.constant dense<0.000000e+00> : vector<128x128xf32>
    %69 = tpu.matmul %66, %67, %cst_26 {dimension_numbers = #tpu.dot_dimension_numbers<[1], [1], [0], [0], [0, 0, 1, 0], [], []>} : vector<128x32xbf16>, vector<128x32xbf16>, vector<128x128xf32> -> vector<128x128xf32>
    %c0_27 = arith.constant 0 : index
    %c0_28 = arith.constant 0 : index
    %70 = vector.load %arg3[%c0_27, %c0_28] : memref<128x128xf32, #tpu.memory_space<vmem>>, vector<128x128xf32>
    %71 = arith.addf %69, %70 : vector<128x128xf32>
    %cst_29 = arith.constant dense<0xFF800000> : vector<128xf32>
    %72 = vector.multi_reduction <maximumf>, %71, %cst_29 [1] : vector<128x128xf32> to vector<128xf32>
    %73 = vector.shape_cast %72 : vector<128xf32> to vector<128x1xf32>
    %74 = vector.broadcast %73 : vector<128x1xf32> to vector<128x128xf32>
    %75 = arith.subf %71, %74 : vector<128x128xf32>
    %76 = math.exp %75 : vector<128x128xf32>
    %cst_30 = arith.constant dense<0.000000e+00> : vector<128xf32>
    %77 = vector.multi_reduction <add>, %76, %cst_30 [1] : vector<128x128xf32> to vector<128xf32>
    %78 = vector.shape_cast %77 : vector<128xf32> to vector<128x1xf32>
    %79 = arith.truncf %76 : vector<128x128xf32> to vector<128x128xbf16>
    %cst_31 = arith.constant dense<0.000000e+00> : vector<128x32xf32>
    %80 = tpu.matmul %79, %68, %cst_31 {dimension_numbers = #tpu.dot_dimension_numbers<[1], [0], [0], [1], [0, 0, 1, 1], [], []>} : vector<128x128xbf16>, vector<128x32xbf16>, vector<128x32xf32> -> vector<128x32xf32>
    %81 = tpu.reciprocal %78 {approx = true} : vector<128x1xf32> -> vector<128x1xf32>
    %82 = vector.broadcast %81 : vector<128x1xf32> to vector<128x32xf32>
    %83 = arith.mulf %80, %82 : vector<128x32xf32>
    %84 = tpu.concatenate %23, %43, %63, %83 in 1 : vector<128x32xf32>, vector<128x32xf32>, vector<128x32xf32>, vector<128x32xf32> -> vector<128x128xf32>
    %85 = arith.truncf %84 : vector<128x128xf32> to vector<128x128xbf16>
    %c0_32 = arith.constant 0 : index
    %c0_33 = arith.constant 0 : index
    %86 = vector.load %arg5[%c0_32, %c0_33] : memref<128x128xbf16, #tpu.memory_space<vmem>>, vector<128x128xbf16>
    %cst_34 = arith.constant dense<0.000000e+00> : vector<128x128xf32>
    %87 = tpu.matmul %85, %86, %cst_34 {dimension_numbers = #tpu.dot_dimension_numbers<[1], [0], [0], [1], [0, 0, 1, 1], [], []>} : vector<128x128xbf16>, vector<128x128xbf16>, vector<128x128xf32> -> vector<128x128xf32>
    %c0_35 = arith.constant 0 : index
    %c0_36 = arith.constant 0 : index
    %88 = vector.load %arg6[%c0_35, %c0_36] : memref<1x128xf32, #tpu.memory_space<vmem>>, vector<1x128xf32>
    %89 = vector.broadcast %88 : vector<1x128xf32> to vector<128x128xf32>
    %90 = arith.addf %87, %89 : vector<128x128xf32>
    %c0_37 = arith.constant 0 : index
    %c0_38 = arith.constant 0 : index
    %c0_39 = arith.constant 0 : index
    %91 = vector.load %arg4[%c0_37, %c0_38, %c0_39] : memref<1x128x128xf32, #tpu.memory_space<vmem>>, vector<1x128x128xf32>
    %92 = vector.shape_cast %91 : vector<1x128x128xf32> to vector<128x128xf32>
    %93 = arith.addf %92, %90 : vector<128x128xf32>
    %c0_40 = arith.constant 0 : index
    %c0_41 = arith.constant 0 : index
    %c0_42 = arith.constant 0 : index
    %94 = vector.load %arg7[%c0_40, %c0_41, %c0_42] : memref<1x128x128xf32, #tpu.memory_space<vmem>>, vector<1x128x128xf32>
    %95 = vector.shape_cast %94 : vector<1x128x128xf32> to vector<128x128xf32>
    %96 = vector.shape_cast %93 : vector<128x128xf32> to vector<1x128x128xf32>
    tpu.vector_store %arg7[%c0_40, %c0_41, %c0_42], %96 {strides = array<i32>} : memref<1x128x128xf32, #tpu.memory_space<vmem>>, vector<1x128x128xf32>,
    return
  }
  func.func @transform_0(%arg0: i32) -> (i32, i32, i32) {
    %c0_i32 = arith.constant 0 : i32
    %c0_i32_0 = arith.constant 0 : i32
    %c0_i32_1 = arith.constant 0 : i32
    return %arg0, %c0_i32, %c0_i32_0 : i32, i32, i32
  }
  func.func @transform_1(%arg0: i32) -> (i32, i32, i32) {
    %c0_i32 = arith.constant 0 : i32
    %c0_i32_0 = arith.constant 0 : i32
    %c0_i32_1 = arith.constant 0 : i32
    return %arg0, %c0_i32, %c0_i32_0 : i32, i32, i32
  }
  func.func @transform_2(%arg0: i32) -> (i32, i32) {
    %c0_i32 = arith.constant 0 : i32
    %c0_i32_0 = arith.constant 0 : i32
    %c0_i32_1 = arith.constant 0 : i32
    return %c0_i32, %c0_i32_0 : i32, i32
  }
  func.func @transform_3(%arg0: i32) -> (i32, i32, i32) {
    %c0_i32 = arith.constant 0 : i32
    %c0_i32_0 = arith.constant 0 : i32
    %c0_i32_1 = arith.constant 0 : i32
    return %arg0, %c0_i32, %c0_i32_0 : i32, i32, i32
  }
  func.func @transform_4(%arg0: i32) -> (i32, i32) {
    %c0_i32 = arith.constant 0 : i32
    %c0_i32_0 = arith.constant 0 : i32
    %c0_i32_1 = arith.constant 0 : i32
    return %c0_i32, %c0_i32_0 : i32, i32
  }
  func.func @transform_5(%arg0: i32) -> (i32, i32) {
    %c0_i32 = arith.constant 0 : i32
    %c0_i32_0 = arith.constant 0 : i32
    %c0_i32_1 = arith.constant 0 : i32
    return %c0_i32, %c0_i32_0 : i32, i32
  }
  func.func @transform_6(%arg0: i32) -> (i32, i32, i32) {
    %c0_i32 = arith.constant 0 : i32
    %c0_i32_0 = arith.constant 0 : i32
    %c0_i32_1 = arith.constant 0 : i32
    return %arg0, %c0_i32, %c0_i32_0 : i32, i32, i32
  }
}

module attributes {stable_mosaic.version = 11 : i64} {
  func.func @_ln_matmul_kernel(%arg0: i32, %arg1: memref<128x128xf32, #tpu.memory_space<vmem>>, %arg2: memref<1x128xf32, #tpu.memory_space<vmem>>, %arg3: memref<1x128xf32, #tpu.memory_space<vmem>>, %arg4: memref<128x128xbf16, #tpu.memory_space<vmem>>, %arg5: memref<1x128xf32, #tpu.memory_space<vmem>>, %arg6: memref<128x128xbf16, #tpu.memory_space<vmem>>) attributes {dimension_semantics = [#tpu.dimension_semantics<parallel>], iteration_bounds = array<i64: 2>, scalar_prefetch = 0 : i64, scratch_operands = 0 : i64, tpu.core_type = #tpu.core_type<tc>, window_params = [{transform_indices = @transform_0, window_bounds = array<i64: 128, 128>}, {pipeline_mode = #tpu.pipeline_mode<synchronous>, transform_indices = @transform_1, window_bounds = array<i64: 1, 128>}, {pipeline_mode = #tpu.pipeline_mode<synchronous>, transform_indices = @transform_2, window_bounds = array<i64: 1, 128>}, {pipeline_mode = #tpu.pipeline_mode<synchronous>, transform_indices = @transform_3, window_bounds = array<i64: 128, 128>}, {pipeline_mode = #tpu.pipeline_mode<synchronous>, transform_indices = @transform_4, window_bounds = array<i64: 1, 128>}, {transform_indices = @transform_5, window_bounds = array<i64: 128, 128>}]} {
    %c0 = arith.constant 0 : index
    %c0_0 = arith.constant 0 : index
    %0 = vector.load %arg1[%c0, %c0_0] : memref<128x128xf32, #tpu.memory_space<vmem>>, vector<128x128xf32>
    %c0_1 = arith.constant 0 : index
    %c0_2 = arith.constant 0 : index
    %1 = vector.load %arg2[%c0_1, %c0_2] : memref<1x128xf32, #tpu.memory_space<vmem>>, vector<1x128xf32>
    %c0_3 = arith.constant 0 : index
    %c0_4 = arith.constant 0 : index
    %2 = vector.load %arg3[%c0_3, %c0_4] : memref<1x128xf32, #tpu.memory_space<vmem>>, vector<1x128xf32>
    %cst = arith.constant dense<0.000000e+00> : vector<128xf32>
    %3 = vector.multi_reduction <add>, %0, %cst [1] : vector<128x128xf32> to vector<128xf32>
    %4 = vector.shape_cast %3 : vector<128xf32> to vector<128x1xf32>
    %cst_5 = arith.constant 1.280000e+02 : f32
    %5 = vector.broadcast %cst_5 : f32 to vector<128x1xf32>
    %6 = arith.divf %4, %5 : vector<128x1xf32>
    %7 = vector.broadcast %6 : vector<128x1xf32> to vector<128x128xf32>
    %8 = arith.subf %0, %7 : vector<128x128xf32>
    %9 = arith.mulf %8, %8 : vector<128x128xf32>
    %cst_6 = arith.constant dense<0.000000e+00> : vector<128xf32>
    %10 = vector.multi_reduction <add>, %9, %cst_6 [1] : vector<128x128xf32> to vector<128xf32>
    %11 = vector.shape_cast %10 : vector<128xf32> to vector<128x1xf32>
    %cst_7 = arith.constant 1.270000e+02 : f32
    %12 = vector.broadcast %cst_7 : f32 to vector<128x1xf32>
    %13 = arith.divf %11, %12 : vector<128x1xf32>
    %14 = math.sqrt %13 : vector<128x1xf32>
    %cst_8 = arith.constant 9.99999997E-7 : f32
    %15 = vector.broadcast %cst_8 : f32 to vector<128x1xf32>
    %16 = arith.addf %14, %15 : vector<128x1xf32>
    %17 = tpu.reciprocal %16 {approx = true} : vector<128x1xf32> -> vector<128x1xf32>
    %18 = vector.broadcast %17 : vector<128x1xf32> to vector<128x128xf32>
    %19 = arith.mulf %8, %18 : vector<128x128xf32>
    %20 = vector.broadcast %1 : vector<1x128xf32> to vector<128x128xf32>
    %21 = arith.mulf %19, %20 : vector<128x128xf32>
    %22 = vector.broadcast %2 : vector<1x128xf32> to vector<128x128xf32>
    %23 = arith.addf %21, %22 : vector<128x128xf32>
    %24 = arith.truncf %23 : vector<128x128xf32> to vector<128x128xbf16>
    %c0_9 = arith.constant 0 : index
    %c0_10 = arith.constant 0 : index
    %25 = vector.load %arg4[%c0_9, %c0_10] : memref<128x128xbf16, #tpu.memory_space<vmem>>, vector<128x128xbf16>
    %cst_11 = arith.constant dense<0.000000e+00> : vector<128x128xf32>
    %26 = tpu.matmul %24, %25, %cst_11 {dimension_numbers = #tpu.dot_dimension_numbers<[1], [0], [0], [1], [0, 0, 1, 1], [], []>} : vector<128x128xbf16>, vector<128x128xbf16>, vector<128x128xf32> -> vector<128x128xf32>
    %c0_12 = arith.constant 0 : index
    %c0_13 = arith.constant 0 : index
    %27 = vector.load %arg5[%c0_12, %c0_13] : memref<1x128xf32, #tpu.memory_space<vmem>>, vector<1x128xf32>
    %28 = vector.broadcast %27 : vector<1x128xf32> to vector<128x128xf32>
    %29 = arith.addf %26, %28 : vector<128x128xf32>
    %30 = arith.truncf %29 : vector<128x128xf32> to vector<128x128xbf16>
    %c0_14 = arith.constant 0 : index
    %c0_15 = arith.constant 0 : index
    %31 = vector.load %arg6[%c0_14, %c0_15] : memref<128x128xbf16, #tpu.memory_space<vmem>>, vector<128x128xbf16>
    tpu.vector_store %arg6[%c0_14, %c0_15], %30 {strides = array<i32>} : memref<128x128xbf16, #tpu.memory_space<vmem>>, vector<128x128xbf16>,
    return
  }
  func.func @transform_0(%arg0: i32) -> (i32, i32) {
    %c0_i32 = arith.constant 0 : i32
    %c0_i32_0 = arith.constant 0 : i32
    return %arg0, %c0_i32 : i32, i32
  }
  func.func @transform_1(%arg0: i32) -> (i32, i32) {
    %c0_i32 = arith.constant 0 : i32
    %c0_i32_0 = arith.constant 0 : i32
    %c0_i32_1 = arith.constant 0 : i32
    return %c0_i32, %c0_i32_0 : i32, i32
  }
  func.func @transform_2(%arg0: i32) -> (i32, i32) {
    %c0_i32 = arith.constant 0 : i32
    %c0_i32_0 = arith.constant 0 : i32
    %c0_i32_1 = arith.constant 0 : i32
    return %c0_i32, %c0_i32_0 : i32, i32
  }
  func.func @transform_3(%arg0: i32) -> (i32, i32) {
    %c0_i32 = arith.constant 0 : i32
    %c0_i32_0 = arith.constant 0 : i32
    %c0_i32_1 = arith.constant 0 : i32
    return %c0_i32, %c0_i32_0 : i32, i32
  }
  func.func @transform_4(%arg0: i32) -> (i32, i32) {
    %c0_i32 = arith.constant 0 : i32
    %c0_i32_0 = arith.constant 0 : i32
    %c0_i32_1 = arith.constant 0 : i32
    return %c0_i32, %c0_i32_0 : i32, i32
  }
  func.func @transform_5(%arg0: i32) -> (i32, i32) {
    %c0_i32 = arith.constant 0 : i32
    %c0_i32_0 = arith.constant 0 : i32
    return %arg0, %c0_i32 : i32, i32
  }
}

module attributes {stable_mosaic.version = 11 : i64} {
  func.func @_matmul_kernel(%arg0: i32, %arg1: memref<128x128xbf16, #tpu.memory_space<vmem>>, %arg2: memref<128x256xbf16, #tpu.memory_space<vmem>>, %arg3: memref<1x256xf32, #tpu.memory_space<vmem>>, %arg4: memref<128x256xbf16, #tpu.memory_space<vmem>>) attributes {dimension_semantics = [#tpu.dimension_semantics<parallel>], iteration_bounds = array<i64: 2>, scalar_prefetch = 0 : i64, scratch_operands = 0 : i64, tpu.core_type = #tpu.core_type<tc>, window_params = [{transform_indices = @transform_0, window_bounds = array<i64: 128, 128>}, {pipeline_mode = #tpu.pipeline_mode<synchronous>, transform_indices = @transform_1, window_bounds = array<i64: 128, 256>}, {pipeline_mode = #tpu.pipeline_mode<synchronous>, transform_indices = @transform_2, window_bounds = array<i64: 1, 256>}, {transform_indices = @transform_3, window_bounds = array<i64: 128, 256>}]} {
    %c0 = arith.constant 0 : index
    %c0_0 = arith.constant 0 : index
    %0 = vector.load %arg1[%c0, %c0_0] : memref<128x128xbf16, #tpu.memory_space<vmem>>, vector<128x128xbf16>
    %c0_1 = arith.constant 0 : index
    %c0_2 = arith.constant 0 : index
    %1 = vector.load %arg2[%c0_1, %c0_2] : memref<128x256xbf16, #tpu.memory_space<vmem>>, vector<128x256xbf16>
    %cst = arith.constant dense<0.000000e+00> : vector<128x256xf32>
    %2 = tpu.matmul %0, %1, %cst {dimension_numbers = #tpu.dot_dimension_numbers<[1], [0], [0], [1], [0, 0, 1, 1], [], []>} : vector<128x128xbf16>, vector<128x256xbf16>, vector<128x256xf32> -> vector<128x256xf32>
    %c0_3 = arith.constant 0 : index
    %c0_4 = arith.constant 0 : index
    %3 = vector.load %arg3[%c0_3, %c0_4] : memref<1x256xf32, #tpu.memory_space<vmem>>, vector<1x256xf32>
    %4 = vector.broadcast %3 : vector<1x256xf32> to vector<128x256xf32>
    %5 = arith.addf %2, %4 : vector<128x256xf32>
    %6 = arith.truncf %5 : vector<128x256xf32> to vector<128x256xbf16>
    %c0_5 = arith.constant 0 : index
    %c0_6 = arith.constant 0 : index
    %7 = vector.load %arg4[%c0_5, %c0_6] : memref<128x256xbf16, #tpu.memory_space<vmem>>, vector<128x256xbf16>
    tpu.vector_store %arg4[%c0_5, %c0_6], %6 {strides = array<i32>} : memref<128x256xbf16, #tpu.memory_space<vmem>>, vector<128x256xbf16>,
    return
  }
  func.func @transform_0(%arg0: i32) -> (i32, i32) {
    %c0_i32 = arith.constant 0 : i32
    %c0_i32_0 = arith.constant 0 : i32
    return %arg0, %c0_i32 : i32, i32
  }
  func.func @transform_1(%arg0: i32) -> (i32, i32) {
    %c0_i32 = arith.constant 0 : i32
    %c0_i32_0 = arith.constant 0 : i32
    %c0_i32_1 = arith.constant 0 : i32
    return %c0_i32, %c0_i32_0 : i32, i32
  }
  func.func @transform_2(%arg0: i32) -> (i32, i32) {
    %c0_i32 = arith.constant 0 : i32
    %c0_i32_0 = arith.constant 0 : i32
    %c0_i32_1 = arith.constant 0 : i32
    return %c0_i32, %c0_i32_0 : i32, i32
  }
  func.func @transform_3(%arg0: i32) -> (i32, i32) {
    %c0_i32 = arith.constant 0 : i32
    %c0_i32_0 = arith.constant 0 : i32
    return %arg0, %c0_i32 : i32, i32
  }
}

module attributes {stable_mosaic.version = 11 : i64} {
  func.func @_attn_wo_res_kernel(%arg0: i32, %arg1: memref<1x128x128xbf16, #tpu.memory_space<vmem>>, %arg2: memref<1x128x256xbf16, #tpu.memory_space<vmem>>, %arg3: memref<1x128x128xf32, #tpu.memory_space<vmem>>, %arg4: memref<128x128xbf16, #tpu.memory_space<vmem>>, %arg5: memref<1x128xf32, #tpu.memory_space<vmem>>, %arg6: memref<1x128x128xf32, #tpu.memory_space<vmem>>) attributes {dimension_semantics = [#tpu.dimension_semantics<parallel>], iteration_bounds = array<i64: 2>, scalar_prefetch = 0 : i64, scratch_operands = 0 : i64, tpu.core_type = #tpu.core_type<tc>, window_params = [{transform_indices = @transform_0, window_bounds = array<i64: 1, 128, 128>}, {transform_indices = @transform_1, window_bounds = array<i64: 1, 128, 256>}, {transform_indices = @transform_2, window_bounds = array<i64: 1, 128, 128>}, {pipeline_mode = #tpu.pipeline_mode<synchronous>, transform_indices = @transform_3, window_bounds = array<i64: 128, 128>}, {pipeline_mode = #tpu.pipeline_mode<synchronous>, transform_indices = @transform_4, window_bounds = array<i64: 1, 128>}, {transform_indices = @transform_5, window_bounds = array<i64: 1, 128, 128>}]} {
    %c0 = arith.constant 0 : index
    %c0_0 = arith.constant 0 : index
    %c0_1 = arith.constant 0 : index
    %0 = vector.load %arg1[%c0, %c0_0, %c0_1] : memref<1x128x128xbf16, #tpu.memory_space<vmem>>, vector<1x128x128xbf16>
    %1 = vector.shape_cast %0 : vector<1x128x128xbf16> to vector<128x128xbf16>
    %c0_2 = arith.constant 0 : index
    %c0_3 = arith.constant 0 : index
    %c0_4 = arith.constant 0 : index
    %2 = vector.load %arg2[%c0_2, %c0_3, %c0_4] : memref<1x128x256xbf16, #tpu.memory_space<vmem>>, vector<1x128x256xbf16>
    %3 = vector.shape_cast %2 : vector<1x128x256xbf16> to vector<128x256xbf16>
    %4 = vector.extract_strided_slice %1 {offsets = [0, 0], sizes = [128, 32], strides = [1, 1]} : vector<128x128xbf16> to vector<128x32xbf16>
    %cst = arith.constant 1.767580e-01 : bf16
    %5 = vector.broadcast %cst : bf16 to vector<128x32xbf16>
    %6 = arith.mulf %4, %5 : vector<128x32xbf16>
    %7 = vector.extract_strided_slice %3 {offsets = [0, 0], sizes = [128, 32], strides = [1, 1]} : vector<128x256xbf16> to vector<128x32xbf16>
    %8 = vector.extract_strided_slice %3 {offsets = [0, 128], sizes = [128, 32], strides = [1, 1]} : vector<128x256xbf16> to vector<128x32xbf16>
    %cst_5 = arith.constant dense<0.000000e+00> : vector<128x128xf32>
    %9 = tpu.matmul %6, %7, %cst_5 {dimension_numbers = #tpu.dot_dimension_numbers<[1], [1], [0], [0], [0, 0, 1, 0], [], []>} : vector<128x32xbf16>, vector<128x32xbf16>, vector<128x128xf32> -> vector<128x128xf32>
    %cst_6 = arith.constant dense<0xFF800000> : vector<128xf32>
    %10 = vector.multi_reduction <maximumf>, %9, %cst_6 [1] : vector<128x128xf32> to vector<128xf32>
    %11 = vector.shape_cast %10 : vector<128xf32> to vector<128x1xf32>
    %12 = vector.broadcast %11 : vector<128x1xf32> to vector<128x128xf32>
    %13 = arith.subf %9, %12 : vector<128x128xf32>
    %14 = math.exp %13 : vector<128x128xf32>
    %cst_7 = arith.constant dense<0.000000e+00> : vector<128xf32>
    %15 = vector.multi_reduction <add>, %14, %cst_7 [1] : vector<128x128xf32> to vector<128xf32>
    %16 = vector.shape_cast %15 : vector<128xf32> to vector<128x1xf32>
    %17 = arith.truncf %14 : vector<128x128xf32> to vector<128x128xbf16>
    %cst_8 = arith.constant dense<0.000000e+00> : vector<128x32xf32>
    %18 = tpu.matmul %17, %8, %cst_8 {dimension_numbers = #tpu.dot_dimension_numbers<[1], [0], [0], [1], [0, 0, 1, 1], [], []>} : vector<128x128xbf16>, vector<128x32xbf16>, vector<128x32xf32> -> vector<128x32xf32>
    %19 = tpu.reciprocal %16 {approx = true} : vector<128x1xf32> -> vector<128x1xf32>
    %20 = vector.broadcast %19 : vector<128x1xf32> to vector<128x32xf32>
    %21 = arith.mulf %18, %20 : vector<128x32xf32>
    %22 = vector.extract_strided_slice %1 {offsets = [0, 32], sizes = [128, 32], strides = [1, 1]} : vector<128x128xbf16> to vector<128x32xbf16>
    %cst_9 = arith.constant 1.767580e-01 : bf16
    %23 = vector.broadcast %cst_9 : bf16 to vector<128x32xbf16>
    %24 = arith.mulf %22, %23 : vector<128x32xbf16>
    %25 = vector.extract_strided_slice %3 {offsets = [0, 32], sizes = [128, 32], strides = [1, 1]} : vector<128x256xbf16> to vector<128x32xbf16>
    %26 = vector.extract_strided_slice %3 {offsets = [0, 160], sizes = [128, 32], strides = [1, 1]} : vector<128x256xbf16> to vector<128x32xbf16>
    %cst_10 = arith.constant dense<0.000000e+00> : vector<128x128xf32>
    %27 = tpu.matmul %24, %25, %cst_10 {dimension_numbers = #tpu.dot_dimension_numbers<[1], [1], [0], [0], [0, 0, 1, 0], [], []>} : vector<128x32xbf16>, vector<128x32xbf16>, vector<128x128xf32> -> vector<128x128xf32>
    %cst_11 = arith.constant dense<0xFF800000> : vector<128xf32>
    %28 = vector.multi_reduction <maximumf>, %27, %cst_11 [1] : vector<128x128xf32> to vector<128xf32>
    %29 = vector.shape_cast %28 : vector<128xf32> to vector<128x1xf32>
    %30 = vector.broadcast %29 : vector<128x1xf32> to vector<128x128xf32>
    %31 = arith.subf %27, %30 : vector<128x128xf32>
    %32 = math.exp %31 : vector<128x128xf32>
    %cst_12 = arith.constant dense<0.000000e+00> : vector<128xf32>
    %33 = vector.multi_reduction <add>, %32, %cst_12 [1] : vector<128x128xf32> to vector<128xf32>
    %34 = vector.shape_cast %33 : vector<128xf32> to vector<128x1xf32>
    %35 = arith.truncf %32 : vector<128x128xf32> to vector<128x128xbf16>
    %cst_13 = arith.constant dense<0.000000e+00> : vector<128x32xf32>
    %36 = tpu.matmul %35, %26, %cst_13 {dimension_numbers = #tpu.dot_dimension_numbers<[1], [0], [0], [1], [0, 0, 1, 1], [], []>} : vector<128x128xbf16>, vector<128x32xbf16>, vector<128x32xf32> -> vector<128x32xf32>
    %37 = tpu.reciprocal %34 {approx = true} : vector<128x1xf32> -> vector<128x1xf32>
    %38 = vector.broadcast %37 : vector<128x1xf32> to vector<128x32xf32>
    %39 = arith.mulf %36, %38 : vector<128x32xf32>
    %40 = vector.extract_strided_slice %1 {offsets = [0, 64], sizes = [128, 32], strides = [1, 1]} : vector<128x128xbf16> to vector<128x32xbf16>
    %cst_14 = arith.constant 1.767580e-01 : bf16
    %41 = vector.broadcast %cst_14 : bf16 to vector<128x32xbf16>
    %42 = arith.mulf %40, %41 : vector<128x32xbf16>
    %43 = vector.extract_strided_slice %3 {offsets = [0, 64], sizes = [128, 32], strides = [1, 1]} : vector<128x256xbf16> to vector<128x32xbf16>
    %44 = vector.extract_strided_slice %3 {offsets = [0, 192], sizes = [128, 32], strides = [1, 1]} : vector<128x256xbf16> to vector<128x32xbf16>
    %cst_15 = arith.constant dense<0.000000e+00> : vector<128x128xf32>
    %45 = tpu.matmul %42, %43, %cst_15 {dimension_numbers = #tpu.dot_dimension_numbers<[1], [1], [0], [0], [0, 0, 1, 0], [], []>} : vector<128x32xbf16>, vector<128x32xbf16>, vector<128x128xf32> -> vector<128x128xf32>
    %cst_16 = arith.constant dense<0xFF800000> : vector<128xf32>
    %46 = vector.multi_reduction <maximumf>, %45, %cst_16 [1] : vector<128x128xf32> to vector<128xf32>
    %47 = vector.shape_cast %46 : vector<128xf32> to vector<128x1xf32>
    %48 = vector.broadcast %47 : vector<128x1xf32> to vector<128x128xf32>
    %49 = arith.subf %45, %48 : vector<128x128xf32>
    %50 = math.exp %49 : vector<128x128xf32>
    %cst_17 = arith.constant dense<0.000000e+00> : vector<128xf32>
    %51 = vector.multi_reduction <add>, %50, %cst_17 [1] : vector<128x128xf32> to vector<128xf32>
    %52 = vector.shape_cast %51 : vector<128xf32> to vector<128x1xf32>
    %53 = arith.truncf %50 : vector<128x128xf32> to vector<128x128xbf16>
    %cst_18 = arith.constant dense<0.000000e+00> : vector<128x32xf32>
    %54 = tpu.matmul %53, %44, %cst_18 {dimension_numbers = #tpu.dot_dimension_numbers<[1], [0], [0], [1], [0, 0, 1, 1], [], []>} : vector<128x128xbf16>, vector<128x32xbf16>, vector<128x32xf32> -> vector<128x32xf32>
    %55 = tpu.reciprocal %52 {approx = true} : vector<128x1xf32> -> vector<128x1xf32>
    %56 = vector.broadcast %55 : vector<128x1xf32> to vector<128x32xf32>
    %57 = arith.mulf %54, %56 : vector<128x32xf32>
    %58 = vector.extract_strided_slice %1 {offsets = [0, 96], sizes = [128, 32], strides = [1, 1]} : vector<128x128xbf16> to vector<128x32xbf16>
    %cst_19 = arith.constant 1.767580e-01 : bf16
    %59 = vector.broadcast %cst_19 : bf16 to vector<128x32xbf16>
    %60 = arith.mulf %58, %59 : vector<128x32xbf16>
    %61 = vector.extract_strided_slice %3 {offsets = [0, 96], sizes = [128, 32], strides = [1, 1]} : vector<128x256xbf16> to vector<128x32xbf16>
    %62 = vector.extract_strided_slice %3 {offsets = [0, 224], sizes = [128, 32], strides = [1, 1]} : vector<128x256xbf16> to vector<128x32xbf16>
    %cst_20 = arith.constant dense<0.000000e+00> : vector<128x128xf32>
    %63 = tpu.matmul %60, %61, %cst_20 {dimension_numbers = #tpu.dot_dimension_numbers<[1], [1], [0], [0], [0, 0, 1, 0], [], []>} : vector<128x32xbf16>, vector<128x32xbf16>, vector<128x128xf32> -> vector<128x128xf32>
    %cst_21 = arith.constant dense<0xFF800000> : vector<128xf32>
    %64 = vector.multi_reduction <maximumf>, %63, %cst_21 [1] : vector<128x128xf32> to vector<128xf32>
    %65 = vector.shape_cast %64 : vector<128xf32> to vector<128x1xf32>
    %66 = vector.broadcast %65 : vector<128x1xf32> to vector<128x128xf32>
    %67 = arith.subf %63, %66 : vector<128x128xf32>
    %68 = math.exp %67 : vector<128x128xf32>
    %cst_22 = arith.constant dense<0.000000e+00> : vector<128xf32>
    %69 = vector.multi_reduction <add>, %68, %cst_22 [1] : vector<128x128xf32> to vector<128xf32>
    %70 = vector.shape_cast %69 : vector<128xf32> to vector<128x1xf32>
    %71 = arith.truncf %68 : vector<128x128xf32> to vector<128x128xbf16>
    %cst_23 = arith.constant dense<0.000000e+00> : vector<128x32xf32>
    %72 = tpu.matmul %71, %62, %cst_23 {dimension_numbers = #tpu.dot_dimension_numbers<[1], [0], [0], [1], [0, 0, 1, 1], [], []>} : vector<128x128xbf16>, vector<128x32xbf16>, vector<128x32xf32> -> vector<128x32xf32>
    %73 = tpu.reciprocal %70 {approx = true} : vector<128x1xf32> -> vector<128x1xf32>
    %74 = vector.broadcast %73 : vector<128x1xf32> to vector<128x32xf32>
    %75 = arith.mulf %72, %74 : vector<128x32xf32>
    %76 = tpu.concatenate %21, %39, %57, %75 in 1 : vector<128x32xf32>, vector<128x32xf32>, vector<128x32xf32>, vector<128x32xf32> -> vector<128x128xf32>
    %77 = arith.truncf %76 : vector<128x128xf32> to vector<128x128xbf16>
    %c0_24 = arith.constant 0 : index
    %c0_25 = arith.constant 0 : index
    %78 = vector.load %arg4[%c0_24, %c0_25] : memref<128x128xbf16, #tpu.memory_space<vmem>>, vector<128x128xbf16>
    %cst_26 = arith.constant dense<0.000000e+00> : vector<128x128xf32>
    %79 = tpu.matmul %77, %78, %cst_26 {dimension_numbers = #tpu.dot_dimension_numbers<[1], [0], [0], [1], [0, 0, 1, 1], [], []>} : vector<128x128xbf16>, vector<128x128xbf16>, vector<128x128xf32> -> vector<128x128xf32>
    %c0_27 = arith.constant 0 : index
    %c0_28 = arith.constant 0 : index
    %80 = vector.load %arg5[%c0_27, %c0_28] : memref<1x128xf32, #tpu.memory_space<vmem>>, vector<1x128xf32>
    %81 = vector.broadcast %80 : vector<1x128xf32> to vector<128x128xf32>
    %82 = arith.addf %79, %81 : vector<128x128xf32>
    %c0_29 = arith.constant 0 : index
    %c0_30 = arith.constant 0 : index
    %c0_31 = arith.constant 0 : index
    %83 = vector.load %arg3[%c0_29, %c0_30, %c0_31] : memref<1x128x128xf32, #tpu.memory_space<vmem>>, vector<1x128x128xf32>
    %84 = vector.shape_cast %83 : vector<1x128x128xf32> to vector<128x128xf32>
    %85 = arith.addf %84, %82 : vector<128x128xf32>
    %c0_32 = arith.constant 0 : index
    %c0_33 = arith.constant 0 : index
    %c0_34 = arith.constant 0 : index
    %86 = vector.load %arg6[%c0_32, %c0_33, %c0_34] : memref<1x128x128xf32, #tpu.memory_space<vmem>>, vector<1x128x128xf32>
    %87 = vector.shape_cast %86 : vector<1x128x128xf32> to vector<128x128xf32>
    %88 = vector.shape_cast %85 : vector<128x128xf32> to vector<1x128x128xf32>
    tpu.vector_store %arg6[%c0_32, %c0_33, %c0_34], %88 {strides = array<i32>} : memref<1x128x128xf32, #tpu.memory_space<vmem>>, vector<1x128x128xf32>,
    return
  }
  func.func @transform_0(%arg0: i32) -> (i32, i32, i32) {
    %c0_i32 = arith.constant 0 : i32
    %c0_i32_0 = arith.constant 0 : i32
    %c0_i32_1 = arith.constant 0 : i32
    return %arg0, %c0_i32, %c0_i32_0 : i32, i32, i32
  }
  func.func @transform_1(%arg0: i32) -> (i32, i32, i32) {
    %c0_i32 = arith.constant 0 : i32
    %c0_i32_0 = arith.constant 0 : i32
    %c0_i32_1 = arith.constant 0 : i32
    return %arg0, %c0_i32, %c0_i32_0 : i32, i32, i32
  }
  func.func @transform_2(%arg0: i32) -> (i32, i32, i32) {
    %c0_i32 = arith.constant 0 : i32
    %c0_i32_0 = arith.constant 0 : i32
    %c0_i32_1 = arith.constant 0 : i32
    return %arg0, %c0_i32, %c0_i32_0 : i32, i32, i32
  }
  func.func @transform_3(%arg0: i32) -> (i32, i32) {
    %c0_i32 = arith.constant 0 : i32
    %c0_i32_0 = arith.constant 0 : i32
    %c0_i32_1 = arith.constant 0 : i32
    return %c0_i32, %c0_i32_0 : i32, i32
  }
  func.func @transform_4(%arg0: i32) -> (i32, i32) {
    %c0_i32 = arith.constant 0 : i32
    %c0_i32_0 = arith.constant 0 : i32
    %c0_i32_1 = arith.constant 0 : i32
    return %c0_i32, %c0_i32_0 : i32, i32
  }
  func.func @transform_5(%arg0: i32) -> (i32, i32, i32) {
    %c0_i32 = arith.constant 0 : i32
    %c0_i32_0 = arith.constant 0 : i32
    %c0_i32_1 = arith.constant 0 : i32
    return %arg0, %c0_i32, %c0_i32_0 : i32, i32, i32
  }
}

module attributes {stable_mosaic.version = 11 : i64} {
  func.func @_ln_ffn_kernel(%arg0: i32, %arg1: memref<128x128xf32, #tpu.memory_space<vmem>>, %arg2: memref<1x128xf32, #tpu.memory_space<vmem>>, %arg3: memref<1x128xf32, #tpu.memory_space<vmem>>, %arg4: memref<128x256xbf16, #tpu.memory_space<vmem>>, %arg5: memref<1x256xf32, #tpu.memory_space<vmem>>, %arg6: memref<256x128xbf16, #tpu.memory_space<vmem>>, %arg7: memref<1x128xf32, #tpu.memory_space<vmem>>, %arg8: memref<128x128xf32, #tpu.memory_space<vmem>>) attributes {dimension_semantics = [#tpu.dimension_semantics<parallel>], iteration_bounds = array<i64: 2>, scalar_prefetch = 0 : i64, scratch_operands = 0 : i64, tpu.core_type = #tpu.core_type<tc>, window_params = [{transform_indices = @transform_0, window_bounds = array<i64: 128, 128>}, {pipeline_mode = #tpu.pipeline_mode<synchronous>, transform_indices = @transform_1, window_bounds = array<i64: 1, 128>}, {pipeline_mode = #tpu.pipeline_mode<synchronous>, transform_indices = @transform_2, window_bounds = array<i64: 1, 128>}, {pipeline_mode = #tpu.pipeline_mode<synchronous>, transform_indices = @transform_3, window_bounds = array<i64: 128, 256>}, {pipeline_mode = #tpu.pipeline_mode<synchronous>, transform_indices = @transform_4, window_bounds = array<i64: 1, 256>}, {pipeline_mode = #tpu.pipeline_mode<synchronous>, transform_indices = @transform_5, window_bounds = array<i64: 256, 128>}, {pipeline_mode = #tpu.pipeline_mode<synchronous>, transform_indices = @transform_6, window_bounds = array<i64: 1, 128>}, {transform_indices = @transform_7, window_bounds = array<i64: 128, 128>}]} {
    %c0 = arith.constant 0 : index
    %c0_0 = arith.constant 0 : index
    %0 = vector.load %arg1[%c0, %c0_0] : memref<128x128xf32, #tpu.memory_space<vmem>>, vector<128x128xf32>
    %c0_1 = arith.constant 0 : index
    %c0_2 = arith.constant 0 : index
    %1 = vector.load %arg2[%c0_1, %c0_2] : memref<1x128xf32, #tpu.memory_space<vmem>>, vector<1x128xf32>
    %c0_3 = arith.constant 0 : index
    %c0_4 = arith.constant 0 : index
    %2 = vector.load %arg3[%c0_3, %c0_4] : memref<1x128xf32, #tpu.memory_space<vmem>>, vector<1x128xf32>
    %cst = arith.constant dense<0.000000e+00> : vector<128xf32>
    %3 = vector.multi_reduction <add>, %0, %cst [1] : vector<128x128xf32> to vector<128xf32>
    %4 = vector.shape_cast %3 : vector<128xf32> to vector<128x1xf32>
    %cst_5 = arith.constant 1.280000e+02 : f32
    %5 = vector.broadcast %cst_5 : f32 to vector<128x1xf32>
    %6 = arith.divf %4, %5 : vector<128x1xf32>
    %7 = vector.broadcast %6 : vector<128x1xf32> to vector<128x128xf32>
    %8 = arith.subf %0, %7 : vector<128x128xf32>
    %9 = arith.mulf %8, %8 : vector<128x128xf32>
    %cst_6 = arith.constant dense<0.000000e+00> : vector<128xf32>
    %10 = vector.multi_reduction <add>, %9, %cst_6 [1] : vector<128x128xf32> to vector<128xf32>
    %11 = vector.shape_cast %10 : vector<128xf32> to vector<128x1xf32>
    %cst_7 = arith.constant 1.270000e+02 : f32
    %12 = vector.broadcast %cst_7 : f32 to vector<128x1xf32>
    %13 = arith.divf %11, %12 : vector<128x1xf32>
    %14 = math.sqrt %13 : vector<128x1xf32>
    %cst_8 = arith.constant 9.99999997E-7 : f32
    %15 = vector.broadcast %cst_8 : f32 to vector<128x1xf32>
    %16 = arith.addf %14, %15 : vector<128x1xf32>
    %17 = tpu.reciprocal %16 {approx = true} : vector<128x1xf32> -> vector<128x1xf32>
    %18 = vector.broadcast %17 : vector<128x1xf32> to vector<128x128xf32>
    %19 = arith.mulf %8, %18 : vector<128x128xf32>
    %20 = vector.broadcast %1 : vector<1x128xf32> to vector<128x128xf32>
    %21 = arith.mulf %19, %20 : vector<128x128xf32>
    %22 = vector.broadcast %2 : vector<1x128xf32> to vector<128x128xf32>
    %23 = arith.addf %21, %22 : vector<128x128xf32>
    %24 = arith.truncf %23 : vector<128x128xf32> to vector<128x128xbf16>
    %c0_9 = arith.constant 0 : index
    %c0_10 = arith.constant 0 : index
    %25 = vector.load %arg4[%c0_9, %c0_10] : memref<128x256xbf16, #tpu.memory_space<vmem>>, vector<128x256xbf16>
    %cst_11 = arith.constant dense<0.000000e+00> : vector<128x256xf32>
    %26 = tpu.matmul %24, %25, %cst_11 {dimension_numbers = #tpu.dot_dimension_numbers<[1], [0], [0], [1], [0, 0, 1, 1], [], []>} : vector<128x128xbf16>, vector<128x256xbf16>, vector<128x256xf32> -> vector<128x256xf32>
    %c0_12 = arith.constant 0 : index
    %c0_13 = arith.constant 0 : index
    %27 = vector.load %arg5[%c0_12, %c0_13] : memref<1x256xf32, #tpu.memory_space<vmem>>, vector<1x256xf32>
    %28 = vector.broadcast %27 : vector<1x256xf32> to vector<128x256xf32>
    %29 = arith.addf %26, %28 : vector<128x256xf32>
    %cst_14 = arith.constant 0.000000e+00 : f32
    %30 = vector.broadcast %cst_14 : f32 to vector<128x256xf32>
    %31 = arith.maximumf %29, %30 : vector<128x256xf32>
    %32 = arith.truncf %31 : vector<128x256xf32> to vector<128x256xbf16>
    %c0_15 = arith.constant 0 : index
    %c0_16 = arith.constant 0 : index
    %33 = vector.load %arg6[%c0_15, %c0_16] : memref<256x128xbf16, #tpu.memory_space<vmem>>, vector<256x128xbf16>
    %cst_17 = arith.constant dense<0.000000e+00> : vector<128x128xf32>
    %34 = tpu.matmul %32, %33, %cst_17 {dimension_numbers = #tpu.dot_dimension_numbers<[1], [0], [0], [1], [0, 0, 1, 1], [], []>} : vector<128x256xbf16>, vector<256x128xbf16>, vector<128x128xf32> -> vector<128x128xf32>
    %c0_18 = arith.constant 0 : index
    %c0_19 = arith.constant 0 : index
    %35 = vector.load %arg7[%c0_18, %c0_19] : memref<1x128xf32, #tpu.memory_space<vmem>>, vector<1x128xf32>
    %36 = vector.broadcast %35 : vector<1x128xf32> to vector<128x128xf32>
    %37 = arith.addf %34, %36 : vector<128x128xf32>
    %38 = arith.addf %0, %37 : vector<128x128xf32>
    %c0_20 = arith.constant 0 : index
    %c0_21 = arith.constant 0 : index
    %39 = vector.load %arg8[%c0_20, %c0_21] : memref<128x128xf32, #tpu.memory_space<vmem>>, vector<128x128xf32>
    tpu.vector_store %arg8[%c0_20, %c0_21], %38 {strides = array<i32>} : memref<128x128xf32, #tpu.memory_space<vmem>>, vector<128x128xf32>,
    return
  }
  func.func @transform_0(%arg0: i32) -> (i32, i32) {
    %c0_i32 = arith.constant 0 : i32
    %c0_i32_0 = arith.constant 0 : i32
    return %arg0, %c0_i32 : i32, i32
  }
  func.func @transform_1(%arg0: i32) -> (i32, i32) {
    %c0_i32 = arith.constant 0 : i32
    %c0_i32_0 = arith.constant 0 : i32
    %c0_i32_1 = arith.constant 0 : i32
    return %c0_i32, %c0_i32_0 : i32, i32
  }
  func.func @transform_2(%arg0: i32) -> (i32, i32) {
    %c0_i32 = arith.constant 0 : i32
    %c0_i32_0 = arith.constant 0 : i32
    %c0_i32_1 = arith.constant 0 : i32
    return %c0_i32, %c0_i32_0 : i32, i32
  }
  func.func @transform_3(%arg0: i32) -> (i32, i32) {
    %c0_i32 = arith.constant 0 : i32
    %c0_i32_0 = arith.constant 0 : i32
    %c0_i32_1 = arith.constant 0 : i32
    return %c0_i32, %c0_i32_0 : i32, i32
  }
  func.func @transform_4(%arg0: i32) -> (i32, i32) {
    %c0_i32 = arith.constant 0 : i32
    %c0_i32_0 = arith.constant 0 : i32
    %c0_i32_1 = arith.constant 0 : i32
    return %c0_i32, %c0_i32_0 : i32, i32
  }
  func.func @transform_5(%arg0: i32) -> (i32, i32) {
    %c0_i32 = arith.constant 0 : i32
    %c0_i32_0 = arith.constant 0 : i32
    %c0_i32_1 = arith.constant 0 : i32
    return %c0_i32, %c0_i32_0 : i32, i32
  }
  func.func @transform_6(%arg0: i32) -> (i32, i32) {
    %c0_i32 = arith.constant 0 : i32
    %c0_i32_0 = arith.constant 0 : i32
    %c0_i32_1 = arith.constant 0 : i32
    return %c0_i32, %c0_i32_0 : i32, i32
  }
  func.func @transform_7(%arg0: i32) -> (i32, i32) {
    %c0_i32 = arith.constant 0 : i32
    %c0_i32_0 = arith.constant 0 : i32
    return %arg0, %c0_i32 : i32, i32
  }
}

module attributes {stable_mosaic.version = 11 : i64} {
  func.func @_ln_ffn_kernel(%arg0: i32, %arg1: memref<128x128xf32, #tpu.memory_space<vmem>>, %arg2: memref<1x128xf32, #tpu.memory_space<vmem>>, %arg3: memref<1x128xf32, #tpu.memory_space<vmem>>, %arg4: memref<128x256xbf16, #tpu.memory_space<vmem>>, %arg5: memref<1x256xf32, #tpu.memory_space<vmem>>, %arg6: memref<256x128xbf16, #tpu.memory_space<vmem>>, %arg7: memref<1x128xf32, #tpu.memory_space<vmem>>, %arg8: memref<128x128xf32, #tpu.memory_space<vmem>>) attributes {dimension_semantics = [#tpu.dimension_semantics<parallel>], iteration_bounds = array<i64: 2>, scalar_prefetch = 0 : i64, scratch_operands = 0 : i64, tpu.core_type = #tpu.core_type<tc>, window_params = [{transform_indices = @transform_0, window_bounds = array<i64: 128, 128>}, {pipeline_mode = #tpu.pipeline_mode<synchronous>, transform_indices = @transform_1, window_bounds = array<i64: 1, 128>}, {pipeline_mode = #tpu.pipeline_mode<synchronous>, transform_indices = @transform_2, window_bounds = array<i64: 1, 128>}, {pipeline_mode = #tpu.pipeline_mode<synchronous>, transform_indices = @transform_3, window_bounds = array<i64: 128, 256>}, {pipeline_mode = #tpu.pipeline_mode<synchronous>, transform_indices = @transform_4, window_bounds = array<i64: 1, 256>}, {pipeline_mode = #tpu.pipeline_mode<synchronous>, transform_indices = @transform_5, window_bounds = array<i64: 256, 128>}, {pipeline_mode = #tpu.pipeline_mode<synchronous>, transform_indices = @transform_6, window_bounds = array<i64: 1, 128>}, {transform_indices = @transform_7, window_bounds = array<i64: 128, 128>}]} {
    %c0 = arith.constant 0 : index
    %c0_0 = arith.constant 0 : index
    %0 = vector.load %arg1[%c0, %c0_0] : memref<128x128xf32, #tpu.memory_space<vmem>>, vector<128x128xf32>
    %c0_1 = arith.constant 0 : index
    %c0_2 = arith.constant 0 : index
    %1 = vector.load %arg2[%c0_1, %c0_2] : memref<1x128xf32, #tpu.memory_space<vmem>>, vector<1x128xf32>
    %c0_3 = arith.constant 0 : index
    %c0_4 = arith.constant 0 : index
    %2 = vector.load %arg3[%c0_3, %c0_4] : memref<1x128xf32, #tpu.memory_space<vmem>>, vector<1x128xf32>
    %cst = arith.constant dense<0.000000e+00> : vector<128xf32>
    %3 = vector.multi_reduction <add>, %0, %cst [1] : vector<128x128xf32> to vector<128xf32>
    %4 = vector.shape_cast %3 : vector<128xf32> to vector<128x1xf32>
    %cst_5 = arith.constant 1.280000e+02 : f32
    %5 = vector.broadcast %cst_5 : f32 to vector<128x1xf32>
    %6 = arith.divf %4, %5 : vector<128x1xf32>
    %7 = vector.broadcast %6 : vector<128x1xf32> to vector<128x128xf32>
    %8 = arith.subf %0, %7 : vector<128x128xf32>
    %9 = arith.mulf %8, %8 : vector<128x128xf32>
    %cst_6 = arith.constant dense<0.000000e+00> : vector<128xf32>
    %10 = vector.multi_reduction <add>, %9, %cst_6 [1] : vector<128x128xf32> to vector<128xf32>
    %11 = vector.shape_cast %10 : vector<128xf32> to vector<128x1xf32>
    %cst_7 = arith.constant 1.270000e+02 : f32
    %12 = vector.broadcast %cst_7 : f32 to vector<128x1xf32>
    %13 = arith.divf %11, %12 : vector<128x1xf32>
    %14 = math.sqrt %13 : vector<128x1xf32>
    %cst_8 = arith.constant 9.99999997E-7 : f32
    %15 = vector.broadcast %cst_8 : f32 to vector<128x1xf32>
    %16 = arith.addf %14, %15 : vector<128x1xf32>
    %17 = tpu.reciprocal %16 {approx = true} : vector<128x1xf32> -> vector<128x1xf32>
    %18 = vector.broadcast %17 : vector<128x1xf32> to vector<128x128xf32>
    %19 = arith.mulf %8, %18 : vector<128x128xf32>
    %20 = vector.broadcast %1 : vector<1x128xf32> to vector<128x128xf32>
    %21 = arith.mulf %19, %20 : vector<128x128xf32>
    %22 = vector.broadcast %2 : vector<1x128xf32> to vector<128x128xf32>
    %23 = arith.addf %21, %22 : vector<128x128xf32>
    %24 = arith.truncf %23 : vector<128x128xf32> to vector<128x128xbf16>
    %c0_9 = arith.constant 0 : index
    %c0_10 = arith.constant 0 : index
    %25 = vector.load %arg4[%c0_9, %c0_10] : memref<128x256xbf16, #tpu.memory_space<vmem>>, vector<128x256xbf16>
    %cst_11 = arith.constant dense<0.000000e+00> : vector<128x256xf32>
    %26 = tpu.matmul %24, %25, %cst_11 {dimension_numbers = #tpu.dot_dimension_numbers<[1], [0], [0], [1], [0, 0, 1, 1], [], []>} : vector<128x128xbf16>, vector<128x256xbf16>, vector<128x256xf32> -> vector<128x256xf32>
    %c0_12 = arith.constant 0 : index
    %c0_13 = arith.constant 0 : index
    %27 = vector.load %arg5[%c0_12, %c0_13] : memref<1x256xf32, #tpu.memory_space<vmem>>, vector<1x256xf32>
    %28 = vector.broadcast %27 : vector<1x256xf32> to vector<128x256xf32>
    %29 = arith.addf %26, %28 : vector<128x256xf32>
    %cst_14 = arith.constant 0.000000e+00 : f32
    %30 = vector.broadcast %cst_14 : f32 to vector<128x256xf32>
    %31 = arith.maximumf %29, %30 : vector<128x256xf32>
    %32 = arith.truncf %31 : vector<128x256xf32> to vector<128x256xbf16>
    %c0_15 = arith.constant 0 : index
    %c0_16 = arith.constant 0 : index
    %33 = vector.load %arg6[%c0_15, %c0_16] : memref<256x128xbf16, #tpu.memory_space<vmem>>, vector<256x128xbf16>
    %cst_17 = arith.constant dense<0.000000e+00> : vector<128x128xf32>
    %34 = tpu.matmul %32, %33, %cst_17 {dimension_numbers = #tpu.dot_dimension_numbers<[1], [0], [0], [1], [0, 0, 1, 1], [], []>} : vector<128x256xbf16>, vector<256x128xbf16>, vector<128x128xf32> -> vector<128x128xf32>
    %c0_18 = arith.constant 0 : index
    %c0_19 = arith.constant 0 : index
    %35 = vector.load %arg7[%c0_18, %c0_19] : memref<1x128xf32, #tpu.memory_space<vmem>>, vector<1x128xf32>
    %36 = vector.broadcast %35 : vector<1x128xf32> to vector<128x128xf32>
    %37 = arith.addf %34, %36 : vector<128x128xf32>
    %38 = arith.addf %0, %37 : vector<128x128xf32>
    %c0_20 = arith.constant 0 : index
    %c0_21 = arith.constant 0 : index
    %39 = vector.load %arg8[%c0_20, %c0_21] : memref<128x128xf32, #tpu.memory_space<vmem>>, vector<128x128xf32>
    tpu.vector_store %arg8[%c0_20, %c0_21], %38 {strides = array<i32>} : memref<128x128xf32, #tpu.memory_space<vmem>>, vector<128x128xf32>,
    return
  }
  func.func @transform_0(%arg0: i32) -> (i32, i32) {
    %c0_i32 = arith.constant 0 : i32
    %c0_i32_0 = arith.constant 0 : i32
    return %arg0, %c0_i32 : i32, i32
  }
  func.func @transform_1(%arg0: i32) -> (i32, i32) {
    %c0_i32 = arith.constant 0 : i32
    %c0_i32_0 = arith.constant 0 : i32
    %c0_i32_1 = arith.constant 0 : i32
    return %c0_i32, %c0_i32_0 : i32, i32
  }
  func.func @transform_2(%arg0: i32) -> (i32, i32) {
    %c0_i32 = arith.constant 0 : i32
    %c0_i32_0 = arith.constant 0 : i32
    %c0_i32_1 = arith.constant 0 : i32
    return %c0_i32, %c0_i32_0 : i32, i32
  }
  func.func @transform_3(%arg0: i32) -> (i32, i32) {
    %c0_i32 = arith.constant 0 : i32
    %c0_i32_0 = arith.constant 0 : i32
    %c0_i32_1 = arith.constant 0 : i32
    return %c0_i32, %c0_i32_0 : i32, i32
  }
  func.func @transform_4(%arg0: i32) -> (i32, i32) {
    %c0_i32 = arith.constant 0 : i32
    %c0_i32_0 = arith.constant 0 : i32
    %c0_i32_1 = arith.constant 0 : i32
    return %c0_i32, %c0_i32_0 : i32, i32
  }
  func.func @transform_5(%arg0: i32) -> (i32, i32) {
    %c0_i32 = arith.constant 0 : i32
    %c0_i32_0 = arith.constant 0 : i32
    %c0_i32_1 = arith.constant 0 : i32
    return %c0_i32, %c0_i32_0 : i32, i32
  }
  func.func @transform_6(%arg0: i32) -> (i32, i32) {
    %c0_i32 = arith.constant 0 : i32
    %c0_i32_0 = arith.constant 0 : i32
    %c0_i32_1 = arith.constant 0 : i32
    return %c0_i32, %c0_i32_0 : i32, i32
  }
  func.func @transform_7(%arg0: i32) -> (i32, i32) {
    %c0_i32 = arith.constant 0 : i32
    %c0_i32_0 = arith.constant 0 : i32
    return %arg0, %c0_i32 : i32, i32
  }
}

</mosaic_0001>

<bundles_post_ra>
// kernel: decoder_forward_pallas.14
= control target key start
LH: loop header
LB: loop body
LE: loop exit
PB: predicated region body
PF: predicated region fallthrough
CT: control target
= control target key end

     0   :  { %s1176_s18 = smov 0   ;;  %s1555_s0 = inlined_call_operand.vmem [shape: f32[256,128], index: 0, kind: input, shape index: {}]   ;;  %s1556_s1 = inlined_call_operand.vmem [shape: f32[1,128], index: 1, kind: input, shape index: {}]   ;;  %s1557_s2 = inlined_call_operand.vmem [shape: f32[1,128], index: 2, kind: input, shape index: {}]   ;;  %s1558_s3 = inlined_call_operand.vmem [shape: bf16[128,128], index: 3, kind: input, shape index: {}]   ;;  %s1559_s4 = inlined_call_operand.vmem [shape: f32[1,128], index: 4, kind: input, shape index: {}]   ;;  %s1560_s5 = inlined_call_operand.vmem [shape: bf16[256,128], index: 5, kind: output, shape index: {}]  }
   0x1 LB: > { %s893_s19 = sadd.s32 4294967295, %s1144_s18   ;;  %p897_p0 = scmp.ge.s32.totalorder %s1144_s18, 1  ;;  %s1144_s18 = sphi %s1176_s18, %s15_s18  }
   0x2   : > { %p188_p1 = scmp.lt.s32.totalorder %s1144_s18, 3 }
   0x4   : > { %p189_p2 = pnand %p897_p0, %p188_p1 }
   0x5   : > { %s898_s20 = sshll.u32 (!%p189_p2), %s893_s19, 4 }
   0x6   : > { %192 = sbr.rel (%p189_p2) target bundleno = 583 (0x247), region = 40  ;;  %p217_p3 = scmp.lt.s32.totalorder (!%p189_p2), %s898_s20, 31 }
   0xb   : > { %s1562_s20 = smov (!%p217_p3, %s898_s20), 31 }
   0xc   : > { %s899_s21 = sshll.u32 %s1562_s20, 3 }
   0xd   : > { %s220_s24 = scalar_lea.vmem %s1555_s0, %s899_s21 }
   0xe   : > { %v229_v0 = vld [vmem:[%s220_s24] sm:$0xff]  ;;  %v230_v2 = vld [vmem:[%s220_s24 + $0x8] sm:$0xff]  ;;  %v231_v4 = vld [vmem:[%s220_s24 + $0x10] sm:$0xff] }
   0xf   : > { %v237_v1 = vld [vmem:[%s220_s24 + $0x40] sm:$0xff]  ;;  %247 = vadd.xlane.f32.xlu0 %v229_v0  ;;  %v238_v3 = vld [vmem:[%s220_s24 + $0x48] sm:$0xff]  ;;  %v232_v5 = vld [vmem:[%s220_s24 + $0x18] sm:$0xff] }
  0x10   : > { %263 = vadd.xlane.f32.xlu1 %v237_v1  ;;  %v239_v6 = vld [vmem:[%s220_s24 + $0x50] sm:$0xff]  ;;  %v240_v7 = vld [vmem:[%s220_s24 + $0x58] sm:$0xff]  ;;  %v233_v8 = vld [vmem:[%s220_s24 + $0x20] sm:$0xff] }
  0x11   : > { %v234_v9 = vld [vmem:[%s220_s24 + $0x28] sm:$0xff]  ;;  %v241_v10 = vld [vmem:[%s220_s24 + $0x60] sm:$0xff]  ;;  %v1193_v12 = vld [vmem:[%s220_s24 + $0x30] sm:$0xff] }
  0x12   : > { %v1190_v11 = vld [vmem:[%s220_s24 + $0x68] sm:$0xff]  ;;  %v1195_v13 = vld [vmem:[%s220_s24 + $0x38] sm:$0xff]  ;;  %v1199_v14 = vld [vmem:[%s220_s24 + $0x70] sm:$0xff] }
  0x13   : > { %249 = vadd.xlane.f32.xlu0 %v230_v2  ;;  %v1201_v15 = vld [vmem:[%s220_s24 + $0x78] sm:$0xff]  ;;  %s901_s24 = sshll.u32 %s1562_s20, 2 }
  0x14   : > { %265 = vadd.xlane.f32.xlu1 %v238_v3  ;;  %s1542_s27 = scalar_lea.vmem %s1560_s5, %s901_s24 }
  0x17   : > { %251 = vadd.xlane.f32.xlu0 %v231_v4 }
  0x18   : > { %253 = vadd.xlane.f32.xlu1 %v232_v5 }
  0x1b   : > { %267 = vadd.xlane.f32.xlu0 %v239_v6 }
  0x1c   : > { %269 = vadd.xlane.f32.xlu1 %v240_v7 }
  0x1f   : > { %255 = vadd.xlane.f32.xlu0 %v233_v8 }
  0x20   : > { %257 = vadd.xlane.f32.xlu1 %v234_v9 }
  0x23   : > { %271 = vadd.xlane.f32.xlu0 %v241_v10 }
  0x24   : > { %273 = vadd.xlane.f32.xlu1 %v1190_v11 }
  0x27   : > { %259 = vadd.xlane.f32.xlu0 %v1193_v12 }
  0x28   : > { %261 = vadd.xlane.f32.xlu1 %v1195_v13 }
  0x2b   : > { %275 = vadd.xlane.f32.xlu0 %v1199_v14 }
  0x2c   : > { %277 = vadd.xlane.f32.xlu1 %v1201_v15 }
  0x98   : > { %v248_v16 = vpop.xlane.xlu0 %247 }
  0x99   : > { %v264_v17 = vpop.xlane.xlu1 %263  ;;  %v280_v18 = vmul.f32 0.0078125, %v248_v16 }
  0x9a   : > { %v288_v19 = vmul.f32 0.0078125, %v264_v17 }
  0x9b   : > { %v1205_v20 = vsub.f32 %v229_v0, %v280_v18  ;;  %v1068_v18 = vld [vmem:[%s1558_s3 + $0x28] sm:$0xff]  }
  0x9c   : > { %v1207_v21 = vsub.f32 %v237_v1, %v288_v19  ;;  %v250_v22 = vpop.xlane.xlu0 %249  ;;  %v1069_v19 = vld [vmem:[%s1558_s3 + $0x20] sm:$0xff]  }
  0x9d   : > { %v266_v23 = vpop.xlane.xlu1 %265  ;;  %v281_v24 = vmul.f32 0.0078125, %v250_v22  ;;  %v312_v25 = vmul.f32 %v1205_v20, %v1205_v20  ;;  %v1070_v22 = vld [vmem:[%s1558_s3 + $0x18] sm:$0xff]  }
  0x9e   : > { %v289_v26 = vmul.f32 0.0078125, %v266_v23  ;;  %v320_v29 = vmul.f32 %v1207_v21, %v1207_v21  ;;  %v1071_v23 = vld [vmem:[%s1558_s3 + $0x10] sm:$0xff]  }
  0x9f   : > { %v1211_v27 = vsub.f32 %v230_v2, %v281_v24  ;;  %328 = vadd.xlane.f32.xlu0 %v312_v25  ;;  %v1072_v24 = vld [vmem:[%s1558_s3 + $0x8] sm:$0xff]   ;;  %v1073_v25 = vld [vmem:[%s1558_s3] sm:$0xff]  }
  0xa0   : > { %v1213_v28 = vsub.f32 %v238_v3, %v289_v26  ;;  %v252_v30 = vpop.xlane.xlu0 %251 }
  0xa1   : > { %v254_v31 = vpop.xlane.xlu1 %253  ;;  %v282_v32 = vmul.f32 0.0078125, %v252_v30  ;;  %v313_v33 = vmul.f32 %v1211_v27, %v1211_v27 }
  0xa2   : > { %v283_v34 = vmul.f32 0.0078125, %v254_v31  ;;  %v321_v37 = vmul.f32 %v1213_v28, %v1213_v28 }
  0xa3   : > { %v1219_v35 = vsub.f32 %v231_v4, %v282_v32  ;;  %344 = vadd.xlane.f32.xlu0 %v320_v29  ;;  %330 = vadd.xlane.f32.xlu1 %v313_v33 }
  0xa4   : > { %v1221_v36 = vsub.f32 %v232_v5, %v283_v34  ;;  %v268_v38 = vpop.xlane.xlu0 %267 }
  0xa5   : > { %v270_v39 = vpop.xlane.xlu1 %269  ;;  %v290_v40 = vmul.f32 0.0078125, %v268_v38  ;;  %v314_v41 = vmul.f32 %v1219_v35, %v1219_v35 }
  0xa6   : > { %v291_v42 = vmul.f32 0.0078125, %v270_v39  ;;  %v315_v45 = vmul.f32 %v1221_v36, %v1221_v36 }
  0xa7   : > { %v1227_v43 = vsub.f32 %v239_v6, %v290_v40  ;;  %346 = vadd.xlane.f32.xlu1 %v321_v37  ;;  %332 = vadd.xlane.f32.xlu0 %v314_v41 }
  0xa8   : > { %v1229_v44 = vsub.f32 %v240_v7, %v291_v42  ;;  %v256_v46 = vpop.xlane.xlu0 %255 }
  0xa9   : > { %v258_v47 = vpop.xlane.xlu1 %257  ;;  %v284_v48 = vmul.f32 0.0078125, %v256_v46  ;;  %v322_v49 = vmul.f32 %v1227_v43, %v1227_v43 }
  0xaa   : > { %v285_v50 = vmul.f32 0.0078125, %v258_v47  ;;  %v323_v53 = vmul.f32 %v1229_v44, %v1229_v44 }
  0xab   : > { %v1235_v51 = vsub.f32 %v233_v8, %v284_v48  ;;  %334 = vadd.xlane.f32.xlu1 %v315_v45  ;;  %348 = vadd.xlane.f32.xlu0 %v322_v49 }
  0xac   : > { %v1237_v52 = vsub.f32 %v234_v9, %v285_v50  ;;  %v272_v54 = vpop.xlane.xlu0 %271 }
  0xad   : > { %v274_v55 = vpop.xlane.xlu1 %273  ;;  %v292_v56 = vmul.f32 0.0078125, %v272_v54  ;;  %v316_v57 = vmul.f32 %v1235_v51, %v1235_v51 }
  0xae   : > { %v293_v58 = vmul.f32 0.0078125, %v274_v55  ;;  %v317_v61 = vmul.f32 %v1237_v52, %v1237_v52 }
  0xaf   : > { %v1243_v59 = vsub.f32 %v241_v10, %v292_v56  ;;  %350 = vadd.xlane.f32.xlu1 %v323_v53  ;;  %336 = vadd.xlane.f32.xlu0 %v316_v57 }
  0xb0   : > { %v1246_v60 = vsub.f32 %v1190_v11, %v293_v58  ;;  %v260_v62 = vpop.xlane.xlu0 %259 }
  0xb1   : > { %v262_v63 = vpop.xlane.xlu1 %261  ;;  %v286_v0 = vmul.f32 0.0078125, %v260_v62  ;;  %v324_v1 = vmul.f32 %v1243_v59, %v1243_v59 }
  0xb2   : > { %v287_v2 = vmul.f32 0.0078125, %v262_v63  ;;  %v325_v5 = vmul.f32 %v1246_v60, %v1246_v60 }
  0xb3   : > { %v1253_v3 = vsub.f32 %v1193_v12, %v286_v0  ;;  %338 = vadd.xlane.f32.xlu1 %v317_v61  ;;  %352 = vadd.xlane.f32.xlu0 %v324_v1 }
  0xb4   : > { %v1256_v4 = vsub.f32 %v1195_v13, %v287_v2  ;;  %v276_v6 = vpop.xlane.xlu0 %275 }
  0xb5   : > { %v278_v7 = vpop.xlane.xlu1 %277  ;;  %v294_v8 = vmul.f32 0.0078125, %v276_v6  ;;  %v318_v9 = vmul.f32 %v1253_v3, %v1253_v3 }
  0xb6   : > { %v295_v10 = vmul.f32 0.0078125, %v278_v7  ;;  %v319_v13 = vmul.f32 %v1256_v4, %v1256_v4 }
  0xb7   : > { %v1263_v11 = vsub.f32 %v1199_v14, %v294_v8  ;;  %354 = vadd.xlane.f32.xlu1 %v325_v5  ;;  %340 = vadd.xlane.f32.xlu0 %v318_v9  ;;  %v1066_v14 = vld [vmem:[%s1558_s3 + $0x38] sm:$0xff]  }
  0xb8   : > { %v1266_v12 = vsub.f32 %v1201_v15, %v295_v10  ;;  %1010 = vmatprep.subr.bf16.mxu0 %v1066_v14  ;;  %1042 = vmatprep.subr.bf16.mxu1 %v1066_v14  ;;  %v1067_v15 = vld [vmem:[%s1558_s3 + $0x30] sm:$0xff]  }
  0xb9   : > { %v326_v16 = vmul.f32 %v1263_v11, %v1263_v11  ;;  %1011 = vmatpush3.bf16.msra.mxu0 %v1066_v14  ;;  %1050 = vmatpush3.bf16.msra.mxu1 %v1066_v14 }
  0xba   : > { %v327_v17 = vmul.f32 %v1266_v12, %v1266_v12  ;;  %1012 = vmatprep.subr.bf16.mxu0 %v1067_v15  ;;  %1043 = vmatprep.subr.bf16.mxu1 %v1067_v15 }
  0xbb   : > { %342 = vadd.xlane.f32.xlu1 %v319_v13  ;;  %356 = vadd.xlane.f32.xlu0 %v326_v16 }
  0xbd   : > { %1013 = vmatpush3.bf16.msra.mxu0 %v1067_v15  ;;  %1051 = vmatpush3.bf16.msra.mxu1 %v1067_v15 }
  0xbe   : > { %1014 = vmatprep.subr.bf16.mxu0 %v1068_v18  ;;  %1044 = vmatprep.subr.bf16.mxu1 %v1068_v18 }
  0xbf   : > { %358 = vadd.xlane.f32.xlu1 %v327_v17 }
  0xc1   : > { %1015 = vmatpush3.bf16.msra.mxu0 %v1068_v18  ;;  %1052 = vmatpush3.bf16.msra.mxu1 %v1068_v18 }
  0xc2   : > { %1016 = vmatprep.subr.bf16.mxu0 %v1069_v19  ;;  %1045 = vmatprep.subr.bf16.mxu1 %v1069_v19 }
  0xc5   : > { %1017 = vmatpush3.bf16.msra.mxu0 %v1069_v19  ;;  %1053 = vmatpush3.bf16.msra.mxu1 %v1069_v19 }
  0xc6   : > { %1018 = vmatprep.subr.bf16.mxu0 %v1070_v22  ;;  %1046 = vmatprep.subr.bf16.mxu1 %v1070_v22 }
  0xc9   : > { %1019 = vmatpush3.bf16.msra.mxu0 %v1070_v22  ;;  %1054 = vmatpush3.bf16.msra.mxu1 %v1070_v22 }
  0xca   : > { %1020 = vmatprep.subr.bf16.mxu0 %v1071_v23  ;;  %1047 = vmatprep.subr.bf16.mxu1 %v1071_v23 }
  0xcd   : > { %1021 = vmatpush3.bf16.msra.mxu0 %v1071_v23  ;;  %1055 = vmatpush3.bf16.msra.mxu1 %v1071_v23 }
  0xce   : > { %1022 = vmatprep.subr.bf16.mxu0 %v1072_v24  ;;  %1048 = vmatprep.subr.bf16.mxu1 %v1072_v24 }
  0xd1   : > { %1023 = vmatpush3.bf16.msra.mxu0 %v1072_v24  ;;  %1056 = vmatpush3.bf16.msra.mxu1 %v1072_v24 }
  0xd2   : > { %1024 = vmatprep.subr.bf16.mxu0 %v1073_v25  ;;  %1049 = vmatprep.subr.bf16.mxu1 %v1073_v25 }
  0xd5   : > { %1025 = vmatpush3.bf16.msra.mxu0 %v1073_v25  ;;  %1057 = vmatpush3.bf16.msra.mxu1 %v1073_v25 }
 0x128   : > { %v329_v26 = vpop.xlane.xlu0 %328 }
 0x129   : > { %v361_v29 = vmul.f32 0.007874016, %v329_v26 }
 0x12b   : > { %1074 = vrsqrt.f32 %v361_v29  ;;  %vm379_vm0 = vcmp.eq.f32.partialorder %v361_v29, inf  ;;  %vm381_vm1 = vcmp.eq.f32.partialorder %v361_v29, 0.0  ;;  %v382_v54 = vand.u32 2147483648, %v361_v29 }
 0x12c   : > { %v331_v30 = vpop.xlane.xlu1 %330  ;;  %v345_v31 = vpop.xlane.xlu0 %344 }
 0x12d   : > { %v1298_v32 = vmul.f32 0.007874016, %v331_v30  ;;  %v1300_v33 = vmul.f32 0.007874016, %v345_v31 }
 0x12f   : > { %1076 = vrsqrt.f32 %v1298_v32  ;;  %vm386_vm2 = vcmp.eq.f32.partialorder %v1298_v32, inf  ;;  %v389_v55 = vand.u32 2147483648, %v1298_v32  ;;  %vm435_vm3 = vcmp.eq.f32.partialorder %v1300_v33, inf }
 0x130   : > { %v347_v34 = vpop.xlane.xlu1 %346  ;;  %v333_v37 = vpop.xlane.xlu0 %332  ;;  %1078 = vrsqrt.f32 %v1300_v33  ;;  %vm388_vm4 = vcmp.eq.f32.partialorder %v1298_v32, 0.0  ;;  %v438_v1 = vand.u32 2147483648, %v1300_v33  ;;  %vm437_vm13 = vcmp.eq.f32.partialorder %v1300_v33, 0.0 }
 0x131   : > { %v1304_v38 = vmul.f32 0.007874016, %v333_v37  ;;  %v1306_v39 = vmul.f32 0.007874016, %v347_v34 }
 0x133   : > { %1080 = vrsqrt.f32 %v1304_v38  ;;  %v445_v2 = vand.u32 2147483648, %v1306_v39  ;;  %vm393_vm5 = vcmp.eq.f32.partialorder %v1304_v38, inf  ;;  %vm395_vm6 = vcmp.eq.f32.partialorder %v1304_v38, 0.0 }
 0x134   : > { %v335_v40 = vpop.xlane.xlu1 %334  ;;  %v349_v41 = vpop.xlane.xlu0 %348  ;;  %1082 = vrsqrt.f32 %v1306_v39  ;;  %v396_v5 = vand.u32 2147483648, %v1304_v38  ;;  %vm442_vm11 = vcmp.eq.f32.partialorder %v1306_v39, inf }
 0x135   : > { %v1309_v42 = vmul.f32 0.007874016, %v335_v40  ;;  %v1311_v45 = vmul.f32 0.007874016, %v349_v41 }
 0x137   : > { %1084 = vrsqrt.f32 %v1309_v42  ;;  %vm400_vm7 = vcmp.eq.f32.partialorder %v1309_v42, inf  ;;  %vm402_vm8 = vcmp.eq.f32.partialorder %v1309_v42, 0.0  ;;  %v403_v7 = vand.u32 2147483648, %v1309_v42 }
 0x138   : > { %v1075_v46 = vpop.eup %1074  ;;  %1086 = vrsqrt.f32 %v1311_v45  ;;  %v351_v47 = vpop.xlane.xlu1 %350  ;;  %vm449_vm9 = vcmp.eq.f32.partialorder %v1311_v45, inf  ;;  %vm451_vm10 = vcmp.eq.f32.partialorder %v1311_v45, 0.0  ;;  %v452_v15 = vand.u32 2147483648, %v1311_v45 }
 0x139   : > { %v337_v48 = vpop.xlane.xlu0 %336  ;;  %v378_v49 = vmul.f32 %v1075_v46, %v361_v29  ;;  %v1316_v50 = vmul.f32 0.007874016, %v351_v47 }
 0x13a   : > { %v1318_v53 = vmul.f32 0.007874016, %v337_v48 }
 0x13b   : > { %1088 = vrsqrt.f32 %v1316_v50  ;;  %v380_v61 = vsel %vm379_vm0, %v361_v29, %v378_v49  ;;  %vm456_vm12 = vcmp.eq.f32.partialorder %v1316_v50, inf  ;;  %vm458_vm14 = vcmp.eq.f32.partialorder %v1316_v50, 0.0 }
 0x13c   : > { %1090 = vrsqrt.f32 %v1318_v53  ;;  %v339_v56 = vpop.xlane.xlu1 %338  ;;  %v1077_v58 = vpop.eup %1076  ;;  %v383_v10 = vsel %vm381_vm1, %v382_v54, %v380_v61  ;;  %v459_v22 = vand.u32 2147483648, %v1316_v50  ;;  %vm407_vm15 = vcmp.eq.f32.partialorder %v1318_v53, inf }
 0x13d   : > { %v353_v57 = vpop.xlane.xlu0 %352  ;;  %v1325_v62 = vmul.f32 0.007874016, %v339_v56  ;;  %v1079_v0 = vpop.eup %1078  ;;  %v385_v6 = vmul.f32 %v1077_v58, %v1298_v32  ;;  %v489_v23 = vadd.f32 1e-06, %v383_v10  ;;  %vm409_vm0 = vcmp.eq.f32.partialorder %v1318_v53, 0.0 }
 0x13e   : > { %v1327_v63 = vmul.f32 0.007874016, %v353_v57  ;;  %v434_v16 = vmul.f32 %v1079_v0, %v1300_v33  ;;  %v410_v40 = vand.u32 2147483648, %v1318_v53  ;;  %vm444_vm1 = vcmp.eq.f32.partialorder %v1306_v39, 0.0 }
 0x13f   : > { %1092 = vrsqrt.f32 %v1325_v62  ;;  %v387_v25 = vsel %vm386_vm2, %v1298_v32, %v385_v6  ;;  %vm414_vm2 = vcmp.eq.f32.partialorder %v1325_v62, inf  ;;  %v417_v48 = vand.u32 2147483648, %v1325_v62 }
 0x140   : > { %1094 = vrsqrt.f32 %v1327_v63  ;;  %v355_v8 = vpop.xlane.xlu1 %354  ;;  %v1081_v13 = vpop.eup %1080  ;;  %v436_v31 = vsel %vm435_vm3, %v1300_v33, %v434_v16  ;;  %vm416_vm3 = vcmp.eq.f32.partialorder %v1325_v62, 0.0  ;;  %v390_v56 = vsel %vm388_vm4, %v389_v55, %v387_v25 }
 0x141   : > { %v341_v9 = vpop.xlane.xlu0 %340  ;;  %v1345_v17 = vmul.f32 0.007874016, %v355_v8  ;;  %v392_v14 = vmul.f32 %v1081_v13, %v1304_v38  ;;  %v1083_v19 = vpop.eup %1082 }
 0x142   : > { %v1351_v18 = vmul.f32 0.007874016, %v341_v9  ;;  %v441_v54 = vmul.f32 %v1083_v19, %v1306_v39  ;;  %v490_v9 = vadd.f32 1e-06, %v390_v56  ;;  %v439_v19 = vsel %vm437_vm13, %v438_v1, %v436_v31 }
 0x143   : > { %1096 = vrsqrt.f32 %v1345_v17  ;;  %v394_v26 = vsel %vm393_vm5, %v1304_v38, %v392_v14  ;;  %vm463_vm5 = vcmp.eq.f32.partialorder %v1327_v63, inf  ;;  %vm470_vm4 = vcmp.eq.f32.partialorder %v1345_v17, inf }
 0x144   : > { %v1085_v24 = vpop.eup %1084  ;;  %1098 = vrsqrt.f32 %v1351_v18  ;;  %v343_v29 = vpop.xlane.xlu1 %342  ;;  %v397_v34 = vsel %vm395_vm6, %v396_v5, %v394_v26  ;;  %vm465_vm6 = vcmp.eq.f32.partialorder %v1327_v63, 0.0  ;;  %v443_v10 = vsel %vm442_vm11, %v1306_v39, %v441_v54 }
 0x145   : > { %v1087_v30 = vpop.eup %1086  ;;  %v399_v37 = vmul.f32 %v1085_v24, %v1309_v42  ;;  %v357_v41 = vpop.xlane.xlu0 %356  ;;  %v491_v46 = vadd.f32 1e-06, %v397_v34  ;;  %v1377_v49 = vmul.f32 0.007874016, %v343_v29  ;;  %1100 = vrcp.f32 %v489_v23 }
 0x146   : > { %v448_v47 = vmul.f32 %v1087_v30, %v1311_v45  ;;  %v1395_v0 = vmul.f32 0.007874016, %v357_v41  ;;  %v497_v34 = vadd.f32 1e-06, %v439_v19 }
 0x147   : > { %v401_v38 = vsel %vm400_vm7, %v1309_v42, %v399_v37  ;;  %1102 = vrcp.f32 %v491_v46  ;;  %vm472_vm7 = vcmp.eq.f32.partialorder %v1345_v17, 0.0  ;;  %vm430_vm11 = vcmp.eq.f32.partialorder %v1377_v49, 0.0 }
 0x148   : > { %v1089_v57 = vpop.eup %1088  ;;  %v404_v58 = vsel %vm402_vm8, %v403_v7, %v401_v38  ;;  %v450_v61 = vsel %vm449_vm9, %v1311_v45, %v448_v47  ;;  %1104 = vrsqrt.f32 %v1377_v49  ;;  %v466_v7 = vand.u32 2147483648, %v1327_v63  ;;  %v359_v13 = vpop.xlane.xlu1 %358 }
 0x149   : > { %v1091_v5 = vpop.eup %1090  ;;  %v492_v6 = vadd.f32 1e-06, %v404_v58  ;;  %v453_v32 = vsel %vm451_vm10, %v452_v15, %v450_v61  ;;  %v455_v55 = vmul.f32 %v1089_v57, %v1316_v50  ;;  %v1424_v29 = vmul.f32 0.007874016, %v359_v13 }
 0x14a   : > { %v499_v8 = vadd.f32 1e-06, %v453_v32  ;;  %v406_v42 = vmul.f32 %v1091_v5, %v1318_v53  ;;  %vm421_vm8 = vcmp.eq.f32.partialorder %v1351_v18, inf  ;;  %vm423_vm9 = vcmp.eq.f32.partialorder %v1351_v18, 0.0 }
 0x14b   : > { %1106 = vrcp.f32 %v492_v6  ;;  %v457_v45 = vsel %vm456_vm12, %v1316_v50, %v455_v55  ;;  %vm428_vm10 = vcmp.eq.f32.partialorder %v1377_v49, inf  ;;  %vm477_vm12 = vcmp.eq.f32.partialorder %v1395_v0, inf }
 0x14c   : > { %v1093_v16 = vpop.eup %1092  ;;  %1108 = vrcp.f32 %v499_v8  ;;  %v460_v14 = vsel %vm458_vm14, %v459_v22, %v457_v45  ;;  %v408_v15 = vsel %vm407_vm15, %v1318_v53, %v406_v42  ;;  %v446_v53 = vsel %vm444_vm1, %v445_v2, %v443_v10 }
 0x14d   : > { %v1095_v23 = vpop.eup %1094  ;;  %v500_v24 = vadd.f32 1e-06, %v460_v14  ;;  %v411_v25 = vsel %vm409_vm0, %v410_v40, %v408_v15  ;;  %v413_v26 = vmul.f32 %v1093_v16, %v1325_v62  ;;  %1110 = vrsqrt.f32 %v1395_v0 }
 0x14e   : > { %v493_v50 = vadd.f32 1e-06, %v411_v25  ;;  %v462_v22 = vmul.f32 %v1095_v23, %v1327_v63  ;;  %1112 = vrcp.f32 %v490_v9  ;;  %v473_v2 = vand.u32 2147483648, %v1345_v17  ;;  %v1464_v9 = vld [vmem:[%s1556_s1] ss:$0 sm:$0xff] }
 0x14f   : > { %1114 = vrcp.f32 %v500_v24  ;;  %v415_v33 = vsel %vm414_vm2, %v1325_v62, %v413_v26  ;;  %vm479_vm13 = vcmp.eq.f32.partialorder %v1395_v0, 0.0  ;;  %vm484_vm14 = vcmp.eq.f32.partialorder %v1424_v29, inf }
 0x150   : > { %v1097_v1 = vpop.eup %1096  ;;  %1116 = vrcp.f32 %v493_v50  ;;  %v418_v30 = vsel %vm416_vm3, %v417_v48, %v415_v33  ;;  %v464_v31 = vsel %vm463_vm5, %v1327_v63, %v462_v22  ;;  %v424_v48 = vand.u32 2147483648, %v1351_v18 }
 0x151   : > { %v1099_v37 = vpop.eup %1098  ;;  %v494_v40 = vadd.f32 1e-06, %v418_v30  ;;  %v467_v41 = vsel %vm465_vm6, %v466_v7, %v464_v31  ;;  %v469_v46 = vmul.f32 %v1097_v1, %v1345_v17  ;;  %1118 = vrsqrt.f32 %v1424_v29 }
 0x152   : > { %v501_v39 = vadd.f32 1e-06, %v467_v41  ;;  %v420_v62 = vmul.f32 %v1099_v37, %v1351_v18  ;;  %v498_v63 = vadd.f32 1e-06, %v446_v53  ;;  %v1101_v54 = vpop.eup %1100  ;;  %vm486_vm15 = vcmp.eq.f32.partialorder %v1424_v29, 0.0 }
 0x153   : > { %1120 = vrcp.f32 %v494_v40  ;;  %v471_v47 = vsel %vm470_vm4, %v1345_v17, %v469_v46  ;;  %v431_v17 = vand.u32 2147483648, %v1377_v49  ;;  %v487_v1 = vand.u32 2147483648, %v1424_v29 }
 0x154   : > { %1122 = vrcp.f32 %v501_v39  ;;  %v474_v38 = vsel %vm472_vm7, %v473_v2, %v471_v47  ;;  %v422_v56 = vsel %vm421_vm8, %v1351_v18, %v420_v62  ;;  %v1103_v57 = vpop.eup %1102  ;;  %v521_v18 = vmul.f32 %v1101_v54, %v1205_v20 }
 0x155   : > { %v502_v58 = vadd.f32 1e-06, %v474_v38  ;;  %v425_v61 = vsel %vm423_vm9, %v424_v48, %v422_v56  ;;  %1124 = vrcp.f32 %v497_v34  ;;  %v1105_v5 = vpop.eup %1104  ;;  %v523_v55 = vmul.f32 %v1103_v57, %v1219_v35 }
 0x156   : > { %v495_v6 = vadd.f32 1e-06, %v425_v61  ;;  %1126 = vrcp.f32 %v498_v63  ;;  %v427_v32 = vmul.f32 %v1105_v5, %v1377_v49  ;;  %v480_v20 = vand.u32 2147483648, %v1395_v0 }
 0x157   : > { %1128 = vrcp.f32 %v502_v58  ;;  %v543_v24 = vmul.f32 %v1464_v9, %v521_v18 }
 0x158   : > { %v1107_v8 = vpop.eup %1106  ;;  %1130 = vrcp.f32 %v495_v6  ;;  %v429_v7 = vsel %vm428_vm10, %v1377_v49, %v427_v32  ;;  %v545_v49 = vmul.f32 %v1464_v9, %v523_v55 }
 0x159   : > { %v1109_v42 = vpop.eup %1108  ;;  %v524_v35 = vmul.f32 %v1107_v8, %v1221_v36  ;;  %v432_v45 = vsel %vm430_vm11, %v431_v17, %v429_v7  ;;  %v1478_v36 = vld [vmem:[%s1557_s2] ss:$0 sm:$0xff] }
 0x15a   : > { %v1111_v10 = vpop.eup %1110  ;;  %v496_v16 = vadd.f32 1e-06, %v432_v45  ;;  %v567_v37 = vadd.f32 %v1478_v36, %v545_v49  ;;  %v531_v40 = vmul.f32 %v1109_v42, %v1227_v43 }
 0x15b   : > { %v1113_v13 = vpop.eup %1112  ;;  %v476_v14 = vmul.f32 %v1111_v10, %v1395_v0  ;;  %v546_v15 = vmul.f32 %v1464_v9, %v524_v35 }
 0x15c   : > { %v1115_v19 = vpop.eup %1114  ;;  %v522_v23 = vmul.f32 %v1113_v13, %v1211_v27  ;;  %1132 = vrcp.f32 %v496_v16  ;;  %v553_v58 = vmul.f32 %v1464_v9, %v531_v40 }
 0x15d   : > { %v1117_v25 = vpop.eup %1116  ;;  %v478_v26 = vsel %vm477_vm12, %v1395_v0, %v476_v14  ;;  %v568_v50 = vadd.f32 %v1478_v36, %v546_v15  ;;  %v532_v22 = vmul.f32 %v1115_v19, %v1229_v44  ;;  %v565_v44 = vadd.f32 %v1478_v36, %v543_v24 }
 0x15e   : > { %v1119_v33 = vpop.eup %1118  ;;  %v481_v53 = vsel %vm479_vm13, %v480_v20, %v478_v26  ;;  %v544_v27 = vmul.f32 %v1464_v9, %v522_v23  ;;  %v525_v30 = vmul.f32 %v1117_v25, %v1235_v51  ;;  %v575_v18 = vadd.f32 %v1478_v36, %v553_v58 }
 0x15f   : > { %v503_v31 = vadd.f32 1e-06, %v481_v53  ;;  %v483_v34 = vmul.f32 %v1119_v33, %v1424_v29  ;;  %v554_v0 = vmul.f32 %v1464_v9, %v532_v22  ;;  %v582_v62 = vpack.c.bf16 %v568_v50, %v567_v37 }
 0x160   : > { %v1121_v41 = vpop.eup %1120  ;;  %v566_v46 = vadd.f32 %v1478_v36, %v544_v27  ;;  %v547_v39 = vmul.f32 %v1464_v9, %v525_v30 }
 0x161   : > { %v1123_v2 = vpop.eup %1122  ;;  %1134 = vrcp.f32 %v503_v31  ;;  %v485_v51 = vsel %vm484_vm14, %v1424_v29, %v483_v34  ;;  %v526_v47 = vmul.f32 %v1121_v41, %v1237_v52  ;;  %v576_v52 = vadd.f32 %v1478_v36, %v554_v0 }
 0x162   : > { %v1125_v48 = vpop.eup %1124  ;;  %v488_v43 = vsel %vm486_vm15, %v487_v1, %v485_v51  ;;  %v581_v63 = vpack.c.bf16 %v566_v46, %v565_v44  ;;  %v533_v54 = vmul.f32 %v1123_v2, %v1243_v59  ;;  %v569_v29 = vadd.f32 %v1478_v36, %v547_v39 }
 0x163   : > { %v1127_v38 = vpop.eup %1126  ;;  %v504_v56 = vadd.f32 1e-06, %v488_v43  ;;  %v529_v57 = vmul.f32 %v1125_v48, %v1207_v21  ;;  %v548_v61 = vmul.f32 %v1464_v9, %v526_v47  ;;  %v586_v45 = vpack.c.bf16 %v576_v52, %v575_v18 }
 0x164   : > { %v1129_v5 = vpop.eup %1128  ;;  %1026 = vmatprep.mubr.bf16.mxu0 %v581_v63  ;;  %v530_v6 = vmul.f32 %v1127_v38, %v1213_v28  ;;  %v555_v32 = vmul.f32 %v1464_v9, %v533_v54 }
 0x165   : > { %v1131_v55 = vpop.eup %1130  ;;  %1136 = vrcp.f32 %v504_v56  ;;  %v551_v59 = vmul.f32 %v1464_v9, %v529_v57  ;;  %1027 = vmatmul.mubr.bf16.vlgmr.msra.gmra.mxu0 %v582_v62  ;;  %v570_v21 = vadd.f32 %v1478_v36, %v548_v61  ;;  %v534_v8 = vmul.f32 %v1129_v5, %v1246_v60 }
 0x166   : > { %v552_v17 = vmul.f32 %v1464_v9, %v530_v6  ;;  %v527_v7 = vmul.f32 %v1131_v55, %v1253_v3  ;;  %v577_v20 = vadd.f32 %v1478_v36, %v555_v32 }
 0x167   : > { %v583_v28 = vpack.c.bf16 %v570_v21, %v569_v29  ;;  %v556_v42 = vmul.f32 %v1464_v9, %v534_v8  ;;  %v573_v35 = vadd.f32 %v1478_v36, %v551_v59 }
 0x168   : > { %v574_v10 = vadd.f32 %v1478_v36, %v552_v17  ;;  %v549_v15 = vmul.f32 %v1464_v9, %v527_v7 }
 0x169   : > { %1030 = vmatprep.mubr.bf16.mxu0 %v583_v28  ;;  %v578_v13 = vadd.f32 %v1478_v36, %v556_v42  ;;  %v1133_v60 = vpop.eup %1132 }
 0x16a   : > { %v585_v16 = vpack.c.bf16 %v574_v10, %v573_v35  ;;  %v528_v49 = vmul.f32 %v1133_v60, %v1256_v4  ;;  %v571_v23 = vadd.f32 %v1478_v36, %v549_v15 }
 0x16b   : > { %v587_v14 = vpack.c.bf16 %v578_v13, %v577_v20 }
 0x16c   : > { %1034 = vmatprep.mubr.bf16.mxu1 %v585_v16  ;;  %v550_v3 = vmul.f32 %v1464_v9, %v528_v49 }
 0x16d   : > { %1035 = vmatmul.mubr.bf16.vlgmr.msra.gmra.mxu1 %v586_v45 }
 0x16e   : > { %v1135_v19 = vpop.eup %1134  ;;  %1038 = vmatprep.mubr.bf16.mxu1 %v587_v14  ;;  %v572_v24 = vadd.f32 %v1478_v36, %v550_v3 }
 0x16f   : > { %v535_v25 = vmul.f32 %v1135_v19, %v1263_v11  ;;  %v904_v11 = vld [vmem:[%s1559_s4] ss:$0 sm:$0xff] }
 0x170   : > { %v584_v26 = vpack.c.bf16 %v572_v24, %v571_v23 }
 0x171   : > { %v557_v22 = vmul.f32 %v1464_v9, %v535_v25 }
 0x172   : > { %v1137_v50 = vpop.eup %1136  ;;  %1031 = vmatmul.mubr.bf16.gmra.mxu0 %v584_v26 }
 0x173   : > { %v536_v4 = vmul.f32 %v1137_v50, %v1266_v12  ;;  %v579_v53 = vadd.f32 %v1478_v36, %v557_v22 }
 0x175   : > { %v558_v33 = vmul.f32 %v1464_v9, %v536_v4 }
 0x177   : > { %v580_v1 = vadd.f32 %v1478_v36, %v558_v33 }
 0x179   : > { %v588_v27 = vpack.c.bf16 %v580_v1, %v579_v53 }
 0x17b   : > { %1039 = vmatmul.mubr.bf16.gmra.mxu1 %v588_v27 }
 0x225   : > { %v1028_v30 = vpop.f32.mrf.mxu0 }
 0x226   : > { %v703_v37 = vadd.f32 %v1028_v30, %v904_v11 }
 0x227   : > { %v694_v31 = vpop.f32.mrf.mxu0 }
 0x228   : > { %v695_v36 = vadd.f32 %v904_v11, %v694_v31 }
 0x229   : > { %v1029_v34 = vpop.f32.mrf.mxu0 }
 0x22a   : > { %v706_v12 = vadd.f32 %v1029_v34, %v904_v11 }
 0x22b   : > { %v697_v9 = vpop.f32.mrf.mxu0 }
 0x22c   : > { %v955_v40 = vpack.c.bf16 %v706_v12, %v703_v37  ;;  %v698_v41 = vadd.f32 %v904_v11, %v697_v9 }
 0x22d   : > { %v1036_v44 = vpop.f32.mrf.mxu1 }
 0x22e   : > { %987 = vst [vmem:[%s1542_s27 + $0x8] sm:$0xff] %v955_v40   ;;  %v950_v46 = vpack.c.bf16 %v698_v41, %v695_v36  ;;  %v735_v2 = vadd.f32 %v1036_v44, %v904_v11 }
 0x22f   : > { %v726_v0 = vpop.f32.mrf.mxu1 }
 0x230   : > { %951 = vst [vmem:[%s1542_s27] sm:$0xff] %v950_v46   ;;  %v727_v48 = vadd.f32 %v904_v11, %v726_v0 }
 0x231   : > { %v1037_v39 = vpop.f32.mrf.mxu1 }
 0x232   : > { %v738_v51 = vadd.f32 %v1037_v39, %v904_v11  ;;  %v1032_v47 = vpop.f32.mrf.mxu0 }
 0x233   : > { %v729_v62 = vpop.f32.mrf.mxu1  ;;  %v719_v57 = vadd.f32 %v1032_v47, %v904_v11 }
 0x234   : > { %v975_v43 = vpack.c.bf16 %v738_v51, %v735_v2  ;;  %v730_v63 = vadd.f32 %v904_v11, %v729_v62  ;;  %v710_v54 = vpop.f32.mrf.mxu0 }
 0x235   : > { %v711_v5 = vadd.f32 %v904_v11, %v710_v54 }
 0x236   : > { %991 = vst [vmem:[%s1542_s27 + $0x28] sm:$0xff] %v975_v43   ;;  %v970_v38 = vpack.c.bf16 %v730_v63, %v727_v48  ;;  %v1033_v56 = vpop.f32.mrf.mxu0 }
 0x237   : > { %v722_v58 = vadd.f32 %v1033_v56, %v904_v11 }
 0x238   : > { %990 = vst [vmem:[%s1542_s27 + $0x20] sm:$0xff] %v970_v38   ;;  %v713_v61 = vpop.f32.mrf.mxu0 }
 0x239   : > { %v965_v6 = vpack.c.bf16 %v722_v58, %v719_v57  ;;  %v714_v52 = vadd.f32 %v904_v11, %v713_v61 }
 0x23b   : > { %v1040_v29 = vpop.f32.mrf.mxu1  ;;  %989 = vst [vmem:[%s1542_s27 + $0x18] sm:$0xff] %v965_v6   ;;  %v960_v32 = vpack.c.bf16 %v714_v52, %v711_v5 }
 0x23c   : > { %v751_v21 = vadd.f32 %v1040_v29, %v904_v11 }
 0x23d   : > { %v742_v55 = vpop.f32.mrf.mxu1  ;;  %988 = vst [vmem:[%s1542_s27 + $0x10] sm:$0xff] %v960_v32  }
 0x23e   : > { %v743_v18 = vadd.f32 %v904_v11, %v742_v55 }
 0x23f   : > { %v1041_v59 = vpop.f32.mrf.mxu1 }
 0x240   : > { %v754_v8 = vadd.f32 %v1041_v59, %v904_v11 }
 0x241   : > { %v745_v17 = vpop.f32.mrf.mxu1 }
 0x242   : > { %v985_v28 = vpack.c.bf16 %v754_v8, %v751_v21  ;;  %v746_v42 = vadd.f32 %v904_v11, %v745_v17 }
 0x244   : > { %993 = vst [vmem:[%s1542_s27 + $0x38] sm:$0xff] %v985_v28   ;;  %v980_v7 = vpack.c.bf16 %v746_v42, %v743_v18 }
 0x246   : > { %992 = vst [vmem:[%s1542_s27 + $0x30] sm:$0xff] %v980_v7  }
 0x247 PF: > { %s15_s18 = sadd.s32 1, %s1144_s18  }
 0x248   : > { %p12_p4 = scmp.ge.s32.totalorder %s15_s18, 4  }
 0x24a   :  { %14 = sbr.rel (!%p12_p4) target bundleno = 1 (0x1), region = 70 }

// kernel: decoder_forward_pallas.12
= control target key start
LH: loop header
LB: loop body
LE: loop exit
PB: predicated region body
PF: predicated region fallthrough
CT: control target
= control target key end

     0   :  { %s1652_s21 = smov 0   ;;  %s2157_s0 = inlined_call_operand.vmem [shape: f32[256,128], index: 0, kind: input, shape index: {}]   ;;  %s2158_s1 = inlined_call_operand.vmem [shape: f32[1,128], index: 1, kind: input, shape index: {}]   ;;  %s2159_s2 = inlined_call_operand.vmem [shape: f32[1,128], index: 2, kind: input, shape index: {}]   ;;  %s2160_s3 = inlined_call_operand.vmem [shape: bf16[128,384], index: 3, kind: input, shape index: {}]   ;;  %s2161_s4 = inlined_call_operand.vmem [shape: f32[1,384], index: 4, kind: input, shape index: {}]   ;;  %s2162_s5 = inlined_call_operand.vmem [shape: bf16[256,128], index: 5, kind: output, shape index: {0}]   ;;  %s2163_s6 = inlined_call_operand.vmem [shape: bf16[256,256], index: 6, kind: output, shape index: {1}]  }
   0x1 LB: > { %s1303_s22 = sadd.s32 4294967295, %s1614_s21   ;;  %p1307_p0 = scmp.ge.s32.totalorder %s1614_s21, 1  ;;  %s1614_s21 = sphi %s1652_s21, %s17_s21  }
   0x2   : > { %p216_p1 = scmp.lt.s32.totalorder %s1614_s21, 3 }
   0x4   : > { %p217_p2 = pnand %p1307_p0, %p216_p1 }
   0x5   : > { %s1308_s23 = sshll.u32 (!%p217_p2), %s1303_s22, 4 }
   0x6   : > { %220 = sbr.rel (%p217_p2) target bundleno = 605 (0x25d), region = 40  ;;  %p253_p3 = scmp.lt.s32.totalorder (!%p217_p2), %s1308_s23, 31 }
   0xb   : > { %s2165_s23 = smov (!%p253_p3, %s1308_s23), 31 }
   0xc   : > { %s1309_s24 = sshll.u32 %s2165_s23, 3  ;;  %s1311_s16 = sshll.u32 %s2165_s23, 2 }
   0xd   : > { %s256_s27 = scalar_lea.vmem %s2157_s0, %s1309_s24  ;;  %s2079_s19 = scalar_lea.vmem %s2163_s6, %s1309_s24 }
   0xe   : > { %v272_v0 = vld [vmem:[%s256_s27] sm:$0xff]  ;;  %v274_v1 = vld [vmem:[%s256_s27 + $0x10] sm:$0xff]  ;;  %v273_v2 = vld [vmem:[%s256_s27 + $0x8] sm:$0xff]  ;;  %s2084_s25 = scalar_lea.vmem %s2162_s5, %s1311_s16 }
   0xf   : > { %290 = vadd.xlane.f32.xlu0 %v272_v0  ;;  %294 = vadd.xlane.f32.xlu1 %v274_v1  ;;  %v275_v3 = vld [vmem:[%s256_s27 + $0x18] sm:$0xff]  ;;  %v276_v4 = vld [vmem:[%s256_s27 + $0x20] sm:$0xff]  ;;  %v277_v5 = vld [vmem:[%s256_s27 + $0x28] sm:$0xff] }
  0x10   : > { %v278_v6 = vld [vmem:[%s256_s27 + $0x30] sm:$0xff]  ;;  %v279_v7 = vld [vmem:[%s256_s27 + $0x38] sm:$0xff]  ;;  %v280_v8 = vld [vmem:[%s256_s27 + $0x40] sm:$0xff] }
  0x11   : > { %v281_v9 = vld [vmem:[%s256_s27 + $0x48] sm:$0xff]  ;;  %v282_v10 = vld [vmem:[%s256_s27 + $0x50] sm:$0xff]  ;;  %v1668_v11 = vld [vmem:[%s256_s27 + $0x58] sm:$0xff] }
  0x12   : > { %v1671_v12 = vld [vmem:[%s256_s27 + $0x60] sm:$0xff]  ;;  %v1673_v13 = vld [vmem:[%s256_s27 + $0x68] sm:$0xff]  ;;  %v1677_v14 = vld [vmem:[%s256_s27 + $0x70] sm:$0xff] }
  0x13   : > { %292 = vadd.xlane.f32.xlu0 %v273_v2  ;;  %296 = vadd.xlane.f32.xlu1 %v275_v3  ;;  %v1679_v15 = vld [vmem:[%s256_s27 + $0x78] sm:$0xff] }
  0x17   : > { %298 = vadd.xlane.f32.xlu0 %v276_v4  ;;  %300 = vadd.xlane.f32.xlu1 %v277_v5 }
  0x1b   : > { %302 = vadd.xlane.f32.xlu0 %v278_v6  ;;  %304 = vadd.xlane.f32.xlu1 %v279_v7 }
  0x1f   : > { %306 = vadd.xlane.f32.xlu0 %v280_v8  ;;  %308 = vadd.xlane.f32.xlu1 %v281_v9 }
  0x23   : > { %310 = vadd.xlane.f32.xlu0 %v282_v10  ;;  %312 = vadd.xlane.f32.xlu1 %v1668_v11 }
  0x27   : > { %314 = vadd.xlane.f32.xlu0 %v1671_v12  ;;  %316 = vadd.xlane.f32.xlu1 %v1673_v13 }
  0x2b   : > { %318 = vadd.xlane.f32.xlu0 %v1677_v14  ;;  %320 = vadd.xlane.f32.xlu1 %v1679_v15 }
  0x98   : > { %v291_v16 = vpop.xlane.xlu0 %290  ;;  %v295_v17 = vpop.xlane.xlu1 %294 }
  0x99   : > { %v323_v18 = vmul.f32 0.0078125, %v291_v16  ;;  %v325_v19 = vmul.f32 0.0078125, %v295_v17  ;;  %v1512_v16 = vld [vmem:[%s2160_s3 + $0xac] ss:$12 sps:$4 sm:$0xff]  }
  0x9a   : > { %809 = vmatprep.subr.bf16.mxu0 %v1512_v16 }
  0x9b   : > { %v1683_v20 = vsub.f32 %v272_v0, %v323_v18  ;;  %v1685_v21 = vsub.f32 %v274_v1, %v325_v19  ;;  %v1515_v18 = vld [vmem:[%s2160_s3 + $0x94] ss:$12 sps:$4 sm:$0xff]   ;;  %v1517_v19 = vld [vmem:[%s2160_s3 + $0xb0] ss:$12 sps:$4 sm:$0xff]  }
  0x9c   : > { %v293_v22 = vpop.xlane.xlu0 %292  ;;  %v297_v23 = vpop.xlane.xlu1 %296  ;;  %1471 = vmatprep.subr.bf16.mxu1 %v1517_v19 }
  0x9d   : > { %v324_v24 = vmul.f32 0.0078125, %v293_v22  ;;  %v355_v25 = vmul.f32 %v1683_v20, %v1683_v20  ;;  %v326_v26 = vmul.f32 0.0078125, %v297_v23  ;;  %v357_v29 = vmul.f32 %v1685_v21, %v1685_v21  ;;  %v1518_v22 = vld [vmem:[%s2160_s3 + $0x90] ss:$12 sps:$4 sm:$0xff]   ;;  %1472 = vmatpush3.bf16.msra.mxu1 %v1517_v19 }
  0x9e   : > { %v1519_v23 = vld [vmem:[%s2160_s3 + $0x7c] ss:$12 sps:$4 sm:$0xff]  }
  0x9f   : > { %v1689_v27 = vsub.f32 %v273_v2, %v324_v24  ;;  %371 = vadd.xlane.f32.xlu0 %v355_v25  ;;  %v1691_v28 = vsub.f32 %v275_v3, %v326_v26  ;;  %v1521_v24 = vld [vmem:[%s2160_s3 + $0x98] ss:$12 sps:$4 sm:$0xff]  }
  0xa0   : > { %v299_v30 = vpop.xlane.xlu0 %298  ;;  %v301_v31 = vpop.xlane.xlu1 %300  ;;  %v1522_v25 = vld [vmem:[%s2160_s3 + $0x78] ss:$12 sps:$4 sm:$0xff]   ;;  %1473 = vmatprep.subr.bf16.mxu1 %v1521_v24 }
  0xa1   : > { %v327_v32 = vmul.f32 0.0078125, %v299_v30  ;;  %v356_v33 = vmul.f32 %v1689_v27, %v1689_v27  ;;  %v328_v34 = vmul.f32 0.0078125, %v301_v31  ;;  %v358_v37 = vmul.f32 %v1691_v28, %v1691_v28  ;;  %1474 = vmatpush3.bf16.msra.mxu1 %v1521_v24  ;;  %v1523_v26 = vld [vmem:[%s2160_s3 + $0x64] ss:$12 sps:$4 sm:$0xff]   ;;  %v1526_v30 = vld [vmem:[%s2160_s3 + $0x60] ss:$12 sps:$4 sm:$0xff]  }
  0xa2   : > { %v1527_v31 = vld [vmem:[%s2160_s3 + $0x4c] ss:$12 sps:$4 sm:$0xff]  }
  0xa3   : > { %v1697_v35 = vsub.f32 %v276_v4, %v327_v32  ;;  %375 = vadd.xlane.f32.xlu0 %v357_v29  ;;  %373 = vadd.xlane.f32.xlu1 %v356_v33  ;;  %v1699_v36 = vsub.f32 %v277_v5, %v328_v34  ;;  %v1525_v29 = vld [vmem:[%s2160_s3 + $0x80] ss:$12 sps:$4 sm:$0xff]   ;;  %v1529_v32 = vld [vmem:[%s2160_s3 + $0x68] ss:$12 sps:$4 sm:$0xff]  }
  0xa4   : > { %v303_v38 = vpop.xlane.xlu0 %302  ;;  %v305_v39 = vpop.xlane.xlu1 %304  ;;  %1475 = vmatprep.subr.bf16.mxu1 %v1525_v29  ;;  %v1530_v33 = vld [vmem:[%s2160_s3 + $0x48] ss:$12 sps:$4 sm:$0xff]  }
  0xa5   : > { %v329_v40 = vmul.f32 0.0078125, %v303_v38  ;;  %v359_v41 = vmul.f32 %v1697_v35, %v1697_v35  ;;  %v330_v42 = vmul.f32 0.0078125, %v305_v39  ;;  %v360_v45 = vmul.f32 %v1699_v36, %v1699_v36  ;;  %1476 = vmatpush3.bf16.msra.mxu1 %v1525_v29  ;;  %v1531_v34 = vld [vmem:[%s2160_s3 + $0x34] ss:$12 sps:$4 sm:$0xff]   ;;  %v1534_v38 = vld [vmem:[%s2160_s3 + $0x30] ss:$12 sps:$4 sm:$0xff]  }
  0xa6   : > { %1477 = vmatprep.subr.bf16.mxu1 %v1529_v32  ;;  %v1535_v39 = vld [vmem:[%s2160_s3 + $0x1c] ss:$12 sps:$4 sm:$0xff]  }
  0xa7   : > { %v1705_v43 = vsub.f32 %v278_v6, %v329_v40  ;;  %377 = vadd.xlane.f32.xlu1 %v358_v37  ;;  %379 = vadd.xlane.f32.xlu0 %v359_v41  ;;  %v1707_v44 = vsub.f32 %v279_v7, %v330_v42  ;;  %v1533_v37 = vld [vmem:[%s2160_s3 + $0x50] ss:$12 sps:$4 sm:$0xff]   ;;  %v1537_v40 = vld [vmem:[%s2160_s3 + $0x38] ss:$12 sps:$4 sm:$0xff]  }
  0xa8   : > { %v307_v46 = vpop.xlane.xlu0 %306  ;;  %v309_v47 = vpop.xlane.xlu1 %308  ;;  %v1538_v41 = vld [vmem:[%s2160_s3 + $0x18] ss:$12 sps:$4 sm:$0xff]  }
  0xa9   : > { %v331_v48 = vmul.f32 0.0078125, %v307_v46  ;;  %v361_v49 = vmul.f32 %v1705_v43, %v1705_v43  ;;  %v332_v50 = vmul.f32 0.0078125, %v309_v47  ;;  %v362_v53 = vmul.f32 %v1707_v44, %v1707_v44  ;;  %1478 = vmatpush3.bf16.msra.mxu1 %v1529_v32  ;;  %v1539_v42 = vld [vmem:[%s2160_s3 + $0x4] ss:$12 sps:$4 sm:$0xff]   ;;  %v1542_v46 = vld [vmem:[%s2160_s3] ss:$12 sps:$4 sm:$0xff]  }
  0xaa   : > { %1479 = vmatprep.subr.bf16.mxu1 %v1533_v37  ;;  %v1543_v47 = vld [vmem:[%s2160_s3 + $0x8] ss:$12 sps:$4 sm:$0xff]  }
  0xab   : > { %v1713_v51 = vsub.f32 %v280_v8, %v331_v48  ;;  %381 = vadd.xlane.f32.xlu1 %v360_v45  ;;  %383 = vadd.xlane.f32.xlu0 %v361_v49  ;;  %v1715_v52 = vsub.f32 %v281_v9, %v332_v50  ;;  %v1541_v45 = vld [vmem:[%s2160_s3 + $0x20] ss:$12 sps:$4 sm:$0xff]   ;;  %v1616_v48 = vmov 0  }
  0xac   : > { %v311_v54 = vpop.xlane.xlu0 %310  ;;  %v313_v55 = vpop.xlane.xlu1 %312  ;;  %841 = vmatprep.mubr.bf16.mxu0 %v1616_v48 }
  0xad   : > { %v333_v56 = vmul.f32 0.0078125, %v311_v54  ;;  %v363_v57 = vmul.f32 %v1713_v51, %v1713_v51  ;;  %v334_v58 = vmul.f32 0.0078125, %v313_v55  ;;  %v364_v61 = vmul.f32 %v1715_v52, %v1715_v52  ;;  %1480 = vmatpush3.bf16.msra.mxu1 %v1533_v37 }
  0xae   : > { %1481 = vmatprep.subr.bf16.mxu1 %v1537_v40 }
  0xaf   : > { %v1721_v59 = vsub.f32 %v282_v10, %v333_v56  ;;  %385 = vadd.xlane.f32.xlu1 %v362_v53  ;;  %387 = vadd.xlane.f32.xlu0 %v363_v57  ;;  %v1724_v60 = vsub.f32 %v1668_v11, %v334_v58 }
  0xb0   : > { %v315_v62 = vpop.xlane.xlu0 %314  ;;  %v317_v63 = vpop.xlane.xlu1 %316 }
  0xb1   : > { %v335_v0 = vmul.f32 0.0078125, %v315_v62  ;;  %v365_v1 = vmul.f32 %v1721_v59, %v1721_v59  ;;  %v336_v2 = vmul.f32 0.0078125, %v317_v63  ;;  %v366_v5 = vmul.f32 %v1724_v60, %v1724_v60  ;;  %1482 = vmatpush3.bf16.msra.mxu1 %v1537_v40 }
  0xb2   : > { %1483 = vmatprep.subr.bf16.mxu1 %v1541_v45 }
  0xb3   : > { %v1731_v3 = vsub.f32 %v1671_v12, %v335_v0  ;;  %389 = vadd.xlane.f32.xlu1 %v364_v61  ;;  %391 = vadd.xlane.f32.xlu0 %v365_v1  ;;  %v1734_v4 = vsub.f32 %v1673_v13, %v336_v2 }
  0xb4   : > { %v319_v6 = vpop.xlane.xlu0 %318  ;;  %v321_v7 = vpop.xlane.xlu1 %320 }
  0xb5   : > { %v337_v8 = vmul.f32 0.0078125, %v319_v6  ;;  %v367_v9 = vmul.f32 %v1731_v3, %v1731_v3  ;;  %v338_v10 = vmul.f32 0.0078125, %v321_v7  ;;  %v368_v13 = vmul.f32 %v1734_v4, %v1734_v4  ;;  %1484 = vmatpush3.bf16.msra.mxu1 %v1541_v45 }
  0xb6   : > { %1485 = vmatprep.subr.bf16.mxu1 %v1543_v47 }
  0xb7   : > { %v1741_v11 = vsub.f32 %v1677_v14, %v337_v8  ;;  %393 = vadd.xlane.f32.xlu1 %v366_v5  ;;  %395 = vadd.xlane.f32.xlu0 %v367_v9  ;;  %v1744_v12 = vsub.f32 %v1679_v15, %v338_v10  ;;  %v1514_v14 = vld [vmem:[%s2160_s3 + $0xa8] ss:$12 sps:$4 sm:$0xff]  }
  0xb8   : > { %810 = vmatpush1.bf16.msra.mxu0 %v1514_v14 }
  0xb9   : > { %v369_v17 = vmul.f32 %v1741_v11, %v1741_v11  ;;  %v370_v15 = vmul.f32 %v1744_v12, %v1744_v12  ;;  %811 = vmatprep.subr.bf16.mxu0 %v1515_v18  ;;  %1486 = vmatpush3.bf16.msra.mxu1 %v1543_v47 }
  0xbb   : > { %397 = vadd.xlane.f32.xlu1 %v368_v13  ;;  %399 = vadd.xlane.f32.xlu0 %v369_v17 }
  0xbc   : > { %812 = vmatpush1.bf16.msra.mxu0 %v1518_v22 }
  0xbd   : > { %813 = vmatprep.subr.bf16.mxu0 %v1519_v23 }
  0xbf   : > { %401 = vadd.xlane.f32.xlu1 %v370_v15 }
  0xc0   : > { %814 = vmatpush1.bf16.msra.mxu0 %v1522_v25 }
  0xc1   : > { %815 = vmatprep.subr.bf16.mxu0 %v1523_v26 }
  0xc4   : > { %816 = vmatpush1.bf16.msra.mxu0 %v1526_v30 }
  0xc5   : > { %817 = vmatprep.subr.bf16.mxu0 %v1527_v31 }
  0xc8   : > { %818 = vmatpush1.bf16.msra.mxu0 %v1530_v33 }
  0xc9   : > { %819 = vmatprep.subr.bf16.mxu0 %v1531_v34 }
  0xcc   : > { %820 = vmatpush1.bf16.msra.mxu0 %v1534_v38 }
  0xcd   : > { %821 = vmatprep.subr.bf16.mxu0 %v1535_v39 }
  0xd0   : > { %822 = vmatpush1.bf16.msra.mxu0 %v1538_v41 }
  0xd1   : > { %823 = vmatprep.subr.bf16.mxu0 %v1539_v42 }
  0xd4   : > { %824 = vmatpush1.bf16.msra.mxu0 %v1542_v46 }
 0x128   : > { %v372_v49 = vpop.xlane.xlu0 %371 }
 0x129   : > { %v404_v50 = vmul.f32 0.007874016, %v372_v49 }
 0x12b   : > { %1544 = vrsqrt.f32 %v404_v50  ;;  %vm422_vm0 = vcmp.eq.f32.partialorder %v404_v50, inf  ;;  %vm424_vm1 = vcmp.eq.f32.partialorder %v404_v50, 0.0  ;;  %v425_v6 = vand.u32 2147483648, %v404_v50 }
 0x12c   : > { %v374_v53 = vpop.xlane.xlu1 %373  ;;  %v376_v54 = vpop.xlane.xlu0 %375 }
 0x12d   : > { %v405_v55 = vmul.f32 0.007874016, %v374_v53  ;;  %v1825_v56 = vmul.f32 0.007874016, %v376_v54 }
 0x12f   : > { %1546 = vrsqrt.f32 %v405_v55  ;;  %vm429_vm2 = vcmp.eq.f32.partialorder %v405_v55, inf  ;;  %vm431_vm3 = vcmp.eq.f32.partialorder %v405_v55, 0.0  ;;  %v432_v16 = vand.u32 2147483648, %v405_v55 }
 0x130   : > { %1548 = vrsqrt.f32 %v1825_v56  ;;  %v378_v57 = vpop.xlane.xlu1 %377  ;;  %v380_v58 = vpop.xlane.xlu0 %379  ;;  %vm436_vm4 = vcmp.eq.f32.partialorder %v1825_v56, inf  ;;  %vm438_vm5 = vcmp.eq.f32.partialorder %v1825_v56, 0.0  ;;  %v439_v17 = vand.u32 2147483648, %v1825_v56 }
 0x131   : > { %v1828_v61 = vmul.f32 0.007874016, %v378_v57  ;;  %v1830_v62 = vmul.f32 0.007874016, %v380_v58 }
 0x133   : > { %1550 = vrsqrt.f32 %v1828_v61  ;;  %vm443_vm6 = vcmp.eq.f32.partialorder %v1828_v61, inf  ;;  %vm445_vm7 = vcmp.eq.f32.partialorder %v1828_v61, 0.0  ;;  %v446_v19 = vand.u32 2147483648, %v1828_v61 }
 0x134   : > { %1552 = vrsqrt.f32 %v1830_v62  ;;  %v382_v63 = vpop.xlane.xlu1 %381  ;;  %v384_v0 = vpop.xlane.xlu0 %383  ;;  %vm450_vm8 = vcmp.eq.f32.partialorder %v1830_v62, inf  ;;  %vm452_vm9 = vcmp.eq.f32.partialorder %v1830_v62, 0.0  ;;  %v453_v29 = vand.u32 2147483648, %v1830_v62 }
 0x135   : > { %v1834_v1 = vmul.f32 0.007874016, %v382_v63  ;;  %v1836_v2 = vmul.f32 0.007874016, %v384_v0 }
 0x137   : > { %1554 = vrsqrt.f32 %v1834_v1  ;;  %vm457_vm10 = vcmp.eq.f32.partialorder %v1834_v1, inf  ;;  %vm459_vm11 = vcmp.eq.f32.partialorder %v1834_v1, 0.0  ;;  %v460_v34 = vand.u32 2147483648, %v1834_v1 }
 0x138   : > { %v1545_v5 = vpop.eup %1544  ;;  %1556 = vrsqrt.f32 %v1836_v2  ;;  %v386_v7 = vpop.xlane.xlu1 %385  ;;  %vm464_vm12 = vcmp.eq.f32.partialorder %v1836_v2, inf  ;;  %vm466_vm13 = vcmp.eq.f32.partialorder %v1836_v2, 0.0 }
 0x139   : > { %v388_v8 = vpop.xlane.xlu0 %387  ;;  %v421_v9 = vmul.f32 %v1545_v5, %v404_v50  ;;  %v1840_v10 = vmul.f32 0.007874016, %v386_v7 }
 0x13a   : > { %v1842_v13 = vmul.f32 0.007874016, %v388_v8 }
 0x13b   : > { %v423_v14 = vsel %vm422_vm0, %v404_v50, %v421_v9  ;;  %1558 = vrsqrt.f32 %v1840_v10  ;;  %v467_v50 = vand.u32 2147483648, %v1836_v2  ;;  %vm471_vm14 = vcmp.eq.f32.partialorder %v1840_v10, inf }
 0x13c   : > { %v1547_v15 = vpop.eup %1546  ;;  %v426_v18 = vsel %vm424_vm1, %v425_v6, %v423_v14  ;;  %1560 = vrsqrt.f32 %v1842_v13  ;;  %v390_v22 = vpop.xlane.xlu1 %389  ;;  %vm473_vm15 = vcmp.eq.f32.partialorder %v1840_v10, 0.0  ;;  %v474_v58 = vand.u32 2147483648, %v1840_v10 }
 0x13d   : > { %v392_v23 = vpop.xlane.xlu0 %391  ;;  %v1549_v24 = vpop.eup %1548  ;;  %v532_v25 = vadd.f32 1e-06, %v426_v18  ;;  %v428_v26 = vmul.f32 %v1547_v15, %v405_v55  ;;  %v1859_v31 = vmul.f32 0.007874016, %v390_v22  ;;  %vm478_vm0 = vcmp.eq.f32.partialorder %v1842_v13, inf }
 0x13e   : > { %v435_v30 = vmul.f32 %v1549_v24, %v1825_v56  ;;  %v1861_v32 = vmul.f32 0.007874016, %v392_v23  ;;  %vm480_vm1 = vcmp.eq.f32.partialorder %v1842_v13, 0.0 }
 0x13f   : > { %1562 = vrcp.f32 %v532_v25  ;;  %v430_v33 = vsel %vm429_vm2, %v405_v55, %v428_v26  ;;  %vm485_vm2 = vcmp.eq.f32.partialorder %v1859_v31, inf }
 0x140   : > { %v1551_v37 = vpop.eup %1550  ;;  %v433_v38 = vsel %vm431_vm3, %v432_v16, %v430_v33  ;;  %v437_v39 = vsel %vm436_vm4, %v1825_v56, %v435_v30  ;;  %1564 = vrsqrt.f32 %v1859_v31  ;;  %v394_v40 = vpop.xlane.xlu1 %393  ;;  %vm487_vm3 = vcmp.eq.f32.partialorder %v1859_v31, 0.0 }
 0x141   : > { %v1553_v41 = vpop.eup %1552  ;;  %v533_v42 = vadd.f32 1e-06, %v433_v38  ;;  %v440_v45 = vsel %vm438_vm5, %v439_v17, %v437_v39  ;;  %v442_v46 = vmul.f32 %v1551_v37, %v1828_v61  ;;  %1566 = vrsqrt.f32 %v1861_v32  ;;  %v396_v54 = vpop.xlane.xlu0 %395 }
 0x142   : > { %v534_v47 = vadd.f32 1e-06, %v440_v45  ;;  %v449_v49 = vmul.f32 %v1553_v41, %v1830_v62  ;;  %v1893_v7 = vmul.f32 0.007874016, %v394_v40  ;;  %v1897_v16 = vmul.f32 0.007874016, %v396_v54 }
 0x143   : > { %1568 = vrcp.f32 %v533_v42  ;;  %v444_v53 = vsel %vm443_vm6, %v1828_v61, %v442_v46  ;;  %vm492_vm4 = vcmp.eq.f32.partialorder %v1861_v32, inf  ;;  %vm494_vm5 = vcmp.eq.f32.partialorder %v1861_v32, 0.0 }
 0x144   : > { %v1555_v55 = vpop.eup %1554  ;;  %1570 = vrcp.f32 %v534_v47  ;;  %v447_v56 = vsel %vm445_vm7, %v446_v19, %v444_v53  ;;  %v451_v57 = vsel %vm450_vm8, %v1830_v62, %v449_v49  ;;  %v398_v8 = vpop.xlane.xlu1 %397  ;;  %v481_v62 = vand.u32 2147483648, %v1842_v13 }
 0x145   : > { %v1557_v63 = vpop.eup %1556  ;;  %v535_v0 = vadd.f32 1e-06, %v447_v56  ;;  %v454_v5 = vsel %vm452_vm9, %v453_v29, %v451_v57  ;;  %v456_v6 = vmul.f32 %v1555_v55, %v1834_v1  ;;  %v1909_v19 = vmul.f32 0.007874016, %v398_v8  ;;  %v400_v30 = vpop.xlane.xlu0 %399 }
 0x146   : > { %v536_v9 = vadd.f32 1e-06, %v454_v5  ;;  %v463_v61 = vmul.f32 %v1557_v63, %v1836_v2  ;;  %v495_v45 = vand.u32 2147483648, %v1861_v32  ;;  %v1935_v46 = vmul.f32 0.007874016, %v400_v30 }
 0x147   : > { %1572 = vrcp.f32 %v535_v0  ;;  %v458_v17 = vsel %vm457_vm10, %v1834_v1, %v456_v6  ;;  %vm499_vm6 = vcmp.eq.f32.partialorder %v1893_v7, inf  ;;  %vm501_vm7 = vcmp.eq.f32.partialorder %v1893_v7, 0.0 }
 0x148   : > { %v1559_v14 = vpop.eup %1558  ;;  %1574 = vrcp.f32 %v536_v9  ;;  %v461_v15 = vsel %vm459_vm11, %v460_v34, %v458_v17  ;;  %v465_v18 = vsel %vm464_vm12, %v1836_v2, %v463_v61  ;;  %v488_v2 = vand.u32 2147483648, %v1859_v31  ;;  %v402_v38 = vpop.xlane.xlu1 %401  ;;  %v1969_v9 = vld [vmem:[%s2159_s2] ss:$0 sm:$0xff] }
 0x149   : > { %v1561_v22 = vpop.eup %1560  ;;  %v537_v23 = vadd.f32 1e-06, %v461_v15  ;;  %v468_v24 = vsel %vm466_vm13, %v467_v50, %v465_v18  ;;  %v470_v25 = vmul.f32 %v1559_v14, %v1840_v10  ;;  %1576 = vrsqrt.f32 %v1893_v7 }
 0x14a   : > { %v538_v26 = vadd.f32 1e-06, %v468_v24  ;;  %v477_v29 = vmul.f32 %v1561_v22, %v1842_v13  ;;  %1578 = vrsqrt.f32 %v1897_v16  ;;  %v1939_v49 = vmul.f32 0.007874016, %v402_v38 }
 0x14b   : > { %1580 = vrcp.f32 %v537_v23  ;;  %v472_v1 = vsel %vm471_vm14, %v1840_v10, %v470_v25  ;;  %v502_v57 = vand.u32 2147483648, %v1893_v7  ;;  %vm506_vm8 = vcmp.eq.f32.partialorder %v1897_v16, inf }
 0x14c   : > { %v1563_v33 = vpop.eup %1562  ;;  %1582 = vrcp.f32 %v538_v26  ;;  %v475_v34 = vsel %vm473_vm15, %v474_v58, %v472_v1  ;;  %v479_v37 = vsel %vm478_vm0, %v1842_v13, %v477_v29  ;;  %v1954_v58 = vld [vmem:[%s2158_s1] ss:$0 sm:$0xff]  ;;  %vm508_vm9 = vcmp.eq.f32.partialorder %v1897_v16, 0.0 }
 0x14d   : > { %v1565_v39 = vpop.eup %1564  ;;  %v539_v40 = vadd.f32 1e-06, %v475_v34  ;;  %v482_v41 = vsel %vm480_vm1, %v481_v62, %v479_v37  ;;  %1584 = vrsqrt.f32 %v1909_v19  ;;  %v564_v54 = vmul.f32 %v1563_v33, %v1683_v20 }
 0x14e   : > { %v540_v42 = vadd.f32 1e-06, %v482_v41  ;;  %v484_v10 = vmul.f32 %v1565_v39, %v1859_v31  ;;  %v1567_v47 = vpop.eup %1566  ;;  %v509_v0 = vand.u32 2147483648, %v1897_v16  ;;  %vm513_vm10 = vcmp.eq.f32.partialorder %v1909_v19, inf }
 0x14f   : > { %1586 = vrcp.f32 %v539_v40  ;;  %v491_v53 = vmul.f32 %v1567_v47, %v1861_v32  ;;  %v586_v61 = vmul.f32 %v1954_v58, %v564_v54  ;;  %vm515_vm11 = vcmp.eq.f32.partialorder %v1909_v19, 0.0 }
 0x150   : > { %v1569_v13 = vpop.eup %1568  ;;  %1588 = vrcp.f32 %v540_v42  ;;  %v486_v50 = vsel %vm485_vm2, %v1859_v31, %v484_v10  ;;  %v516_v62 = vand.u32 2147483648, %v1909_v19  ;;  %vm520_vm12 = vcmp.eq.f32.partialorder %v1935_v46, inf }
 0x151   : > { %v1571_v55 = vpop.eup %1570  ;;  %v489_v56 = vsel %vm487_vm3, %v488_v2, %v486_v50  ;;  %1590 = vrsqrt.f32 %v1935_v46  ;;  %v493_v20 = vsel %vm492_vm4, %v1861_v32, %v491_v53  ;;  %v565_v5 = vmul.f32 %v1569_v13, %v1689_v27 }
 0x152   : > { %v541_v63 = vadd.f32 1e-06, %v489_v56  ;;  %1592 = vrsqrt.f32 %v1939_v49  ;;  %v496_v31 = vsel %vm494_vm5, %v495_v45, %v493_v20  ;;  %v566_v17 = vmul.f32 %v1571_v55, %v1685_v21 }
 0x153   : > { %v542_v8 = vadd.f32 1e-06, %v496_v31  ;;  %v587_v14 = vmul.f32 %v1954_v58, %v565_v5  ;;  %v608_v24 = vadd.f32 %v1969_v9, %v586_v61  ;;  %vm522_vm13 = vcmp.eq.f32.partialorder %v1935_v46, 0.0 }
 0x154   : > { %v1573_v6 = vpop.eup %1572  ;;  %1594 = vrcp.f32 %v541_v63  ;;  %v588_v18 = vmul.f32 %v1954_v58, %v566_v17  ;;  %v523_v1 = vand.u32 2147483648, %v1935_v46  ;;  %vm527_vm14 = vcmp.eq.f32.partialorder %v1939_v49, inf }
 0x155   : > { %v1575_v32 = vpop.eup %1574  ;;  %v567_v27 = vmul.f32 %v1573_v6, %v1691_v28  ;;  %1596 = vrcp.f32 %v542_v8  ;;  %v609_v25 = vadd.f32 %v1969_v9, %v587_v14  ;;  %v530_v50 = vand.u32 2147483648, %v1939_v49 }
 0x156   : > { %v1577_v15 = vpop.eup %1576  ;;  %v568_v22 = vmul.f32 %v1575_v32, %v1697_v35  ;;  %v610_v2 = vadd.f32 %v1969_v9, %v588_v18  ;;  %vm529_vm15 = vcmp.eq.f32.partialorder %v1939_v49, 0.0 }
 0x157   : > { %v1579_v23 = vpop.eup %1578  ;;  %v498_v21 = vmul.f32 %v1577_v15, %v1893_v7  ;;  %v589_v26 = vmul.f32 %v1954_v58, %v567_v27  ;;  %v624_v33 = vpack.c.bf16 %v609_v25, %v608_v24 }
 0x158   : > { %v1581_v29 = vpop.eup %1580  ;;  %v505_v28 = vmul.f32 %v1579_v23, %v1897_v16  ;;  %v590_v41 = vmul.f32 %v1954_v58, %v568_v22 }
 0x159   : > { %v1583_v30 = vpop.eup %1582  ;;  %v500_v35 = vsel %vm499_vm6, %v1893_v7, %v498_v21  ;;  %v611_v34 = vadd.f32 %v1969_v9, %v589_v26  ;;  %v569_v37 = vmul.f32 %v1581_v29, %v1699_v36  ;;  %842 = vmatmul.mubr.bf16.vlgmr.msra.gmra.mxu0 %v624_v33  ;;  %1487 = vmatprep.mubr.bf16.mxu1 %v624_v33 }
 0x15a   : > { %v1585_v38 = vpop.eup %1584  ;;  %v503_v39 = vsel %vm501_vm7, %v502_v57, %v500_v35  ;;  %v507_v40 = vsel %vm506_vm8, %v1897_v16, %v505_v28  ;;  %v570_v42 = vmul.f32 %v1583_v30, %v1705_v43  ;;  %851 = vmatprep.mubr.bf16.mxu0 %v1616_v48  ;;  %v612_v63 = vadd.f32 %v1969_v9, %v590_v41 }
 0x15b   : > { %v543_v10 = vadd.f32 1e-06, %v503_v39  ;;  %v510_v45 = vsel %vm508_vm9, %v509_v0, %v507_v40  ;;  %v512_v47 = vmul.f32 %v1585_v38, %v1909_v19  ;;  %v625_v36 = vpack.c.bf16 %v611_v34, %v610_v2 }
 0x15c   : > { %v1587_v13 = vpop.eup %1586  ;;  %v544_v7 = vadd.f32 1e-06, %v510_v45  ;;  %v591_v53 = vmul.f32 %v1954_v58, %v569_v37  ;;  %v592_v55 = vmul.f32 %v1954_v58, %v570_v42 }
 0x15d   : > { %v1589_v43 = vpop.eup %1588  ;;  %1598 = vrcp.f32 %v543_v10  ;;  %v514_v16 = vsel %vm513_vm10, %v1909_v19, %v512_v47  ;;  %1488 = vmatmul.mubr.bf16.vlgmr.msra.gmra.mxu1 %v625_v36  ;;  %v571_v54 = vmul.f32 %v1587_v13, %v1707_v44 }
 0x15e   : > { %v1591_v56 = vpop.eup %1590  ;;  %1600 = vrcp.f32 %v544_v7  ;;  %v517_v57 = vsel %vm515_vm11, %v516_v62, %v514_v16  ;;  %v613_v20 = vadd.f32 %v1969_v9, %v591_v53  ;;  %v572_v8 = vmul.f32 %v1589_v43, %v1713_v51 }
 0x15f   : > { %v1593_v31 = vpop.eup %1592  ;;  %v545_v0 = vadd.f32 1e-06, %v517_v57  ;;  %v519_v5 = vmul.f32 %v1591_v56, %v1935_v46  ;;  %v593_v6 = vmul.f32 %v1954_v58, %v571_v54  ;;  %v614_v32 = vadd.f32 %v1969_v9, %v592_v55 }
 0x160   : > { %v526_v44 = vmul.f32 %v1593_v31, %v1939_v49  ;;  %v626_v61 = vpack.c.bf16 %v613_v20, %v612_v63  ;;  %v594_v15 = vmul.f32 %v1954_v58, %v572_v8 }
 0x161   : > { %v1595_v17 = vpop.eup %1594  ;;  %1602 = vrcp.f32 %v545_v0  ;;  %v521_v19 = vsel %vm520_vm12, %v1935_v46, %v519_v5  ;;  %v615_v62 = vadd.f32 %v1969_v9, %v593_v6  ;;  %852 = vmatmul.mubr.bf16.gmra.mxu0 %v625_v36 }
 0x162   : > { %v524_v14 = vsel %vm522_vm13, %v523_v1, %v521_v19  ;;  %v528_v51 = vsel %vm527_vm14, %v1939_v49, %v526_v44  ;;  %1491 = vmatprep.mubr.bf16.mxu1 %v626_v61  ;;  %v573_v27 = vmul.f32 %v1595_v17, %v1715_v52  ;;  %v1597_v18 = vpop.eup %1596  ;;  %861 = vmatprep.mubr.bf16.mxu0 %v1616_v48 }
 0x163   : > { %v546_v22 = vadd.f32 1e-06, %v524_v14  ;;  %v531_v23 = vsel %vm529_vm15, %v530_v50, %v528_v51  ;;  %v627_v21 = vpack.c.bf16 %v615_v62, %v614_v32  ;;  %v616_v49 = vadd.f32 %v1969_v9, %v594_v15 }
 0x164   : > { %v547_v24 = vadd.f32 1e-06, %v531_v23  ;;  %v595_v46 = vmul.f32 %v1954_v58, %v573_v27  ;;  %v574_v52 = vmul.f32 %v1597_v18, %v1721_v59 }
 0x165   : > { %1604 = vrcp.f32 %v546_v22  ;;  %1492 = vmatmul.mubr.bf16.gmra.mxu1 %v627_v21 }
 0x166   : > { %1606 = vrcp.f32 %v547_v24  ;;  %v617_v25 = vadd.f32 %v1969_v9, %v595_v46  ;;  %v596_v2 = vmul.f32 %v1954_v58, %v574_v52 }
 0x168   : > { %v628_v26 = vpack.c.bf16 %v617_v25, %v616_v49  ;;  %v618_v34 = vadd.f32 %v1969_v9, %v596_v2 }
 0x169   : > { %862 = vmatmul.mubr.bf16.gmra.mxu0 %v626_v61 }
 0x16a   : > { %v1599_v29 = vpop.eup %1598  ;;  %1495 = vmatprep.mubr.bf16.mxu1 %v628_v26  ;;  %871 = vmatprep.mubr.bf16.mxu0 %v1616_v48 }
 0x16b   : > { %v1601_v28 = vpop.eup %1600  ;;  %v575_v1 = vmul.f32 %v1599_v29, %v1724_v60 }
 0x16c   : > { %v576_v30 = vmul.f32 %v1601_v28, %v1731_v3 }
 0x16d   : > { %v597_v35 = vmul.f32 %v1954_v58, %v575_v1 }
 0x16e   : > { %v1603_v33 = vpop.eup %1602  ;;  %v598_v38 = vmul.f32 %v1954_v58, %v576_v30 }
 0x16f   : > { %v619_v59 = vadd.f32 %v1969_v9, %v597_v35  ;;  %v577_v37 = vmul.f32 %v1603_v33, %v1734_v4 }
 0x170   : > { %v620_v3 = vadd.f32 %v1969_v9, %v598_v38 }
 0x171   : > { %v629_v39 = vpack.c.bf16 %v619_v59, %v618_v34  ;;  %v599_v60 = vmul.f32 %v1954_v58, %v577_v37  ;;  %872 = vmatmul.mubr.bf16.gmra.mxu0 %v627_v21 }
 0x172   : > { %v1605_v40 = vpop.eup %1604  ;;  %881 = vmatprep.mubr.bf16.mxu0 %v1616_v48 }
 0x173   : > { %v1607_v41 = vpop.eup %1606  ;;  %1496 = vmatmul.mubr.bf16.gmra.mxu1 %v629_v39  ;;  %v621_v42 = vadd.f32 %v1969_v9, %v599_v60  ;;  %v578_v10 = vmul.f32 %v1605_v40, %v1741_v11  ;;  %v666_v11 = vlaneseq }
 0x174   : > { %v579_v45 = vmul.f32 %v1607_v41, %v1744_v12 }
 0x175   : > { %v630_v4 = vpack.c.bf16 %v621_v42, %v620_v3  ;;  %v600_v47 = vmul.f32 %v1954_v58, %v578_v10  ;;  %v667_v12 = vshrl.u32 %v666_v11, 7 }
 0x176   : > { %v601_v36 = vmul.f32 %v1954_v58, %v579_v45 }
 0x177   : > { %1499 = vmatprep.mubr.bf16.mxu1 %v630_v4  ;;  %v622_v13 = vadd.f32 %v1969_v9, %v600_v47  ;;  %v668_v58 = vsub.s32 0, %v667_v12  ;;  %v672_v53 = vsub.s32 1, %v667_v12  ;;  %v676_v43 = vsub.s32 2, %v667_v12 }
 0x178   : > { %v623_v7 = vadd.f32 %v1969_v9, %v601_v36  ;;  %v664_v9 = vld [vmem:[%s2161_s4] sm:$0x7] }
 0x179   : > { %882 = vmatmul.mubr.bf16.gmra.mxu0 %v628_v26  ;;  %v2063_v54 = vrot.slane %v664_v9, %v668_v58  ;;  %v2065_v55 = vrot.slane %v664_v9, %v672_v53 }
 0x17a   : > { %v631_v50 = vpack.c.bf16 %v623_v7, %v622_v13  ;;  %891 = vmatprep.mubr.bf16.mxu0 %v1616_v48 }
 0x17c   : > { %1500 = vmatmul.mubr.bf16.gmra.mxu1 %v631_v50 }
 0x181   : > { %892 = vmatmul.mubr.bf16.gmra.mxu0 %v629_v39 }
 0x182   : > { %901 = vmatprep.mubr.bf16.mxu0 %v1616_v48 }
 0x189   : > { %902 = vmatmul.mubr.bf16.gmra.mxu0 %v630_v4 }
 0x18a   : > { %911 = vmatprep.mubr.bf16.mxu0 %v1616_v48  ;;  %v2068_v48 = vrot.slane %v664_v9, %v676_v43 }
 0x191   : > { %912 = vmatmul.mubr.bf16.gmra.mxu0 %v631_v50 }
 0x219   : > { %v843_v16 = vpop.f32.mrf.mxu0 }
 0x21a   : > { %v844_v31 = vadd.f32 %v843_v16, %v2063_v54 }
 0x21b   : > { %v845_v56 = vpop.f32.mrf.mxu0 }
 0x21c   : > { %v846_v0 = vadd.f32 %v845_v56, %v2065_v55 }
 0x21d   : > { %v1489_v57 = vpop.f32.mrf.mxu1  ;;  %v847_v63 = vpop.f32.mrf.mxu0 }
 0x21e   : > { %v848_v5 = vadd.f32 %v847_v63, %v2063_v54  ;;  %v965_v15 = vadd.f32 %v1489_v57, %v2068_v48 }
 0x21f   : > { %v956_v20 = vpop.f32.mrf.mxu1  ;;  %v849_v8 = vpop.f32.mrf.mxu0 }
 0x220   : > { %v957_v6 = vadd.f32 %v956_v20, %v2068_v48  ;;  %v1411_v61 = vpack.c.bf16 %v848_v5, %v844_v31  ;;  %v850_v62 = vadd.f32 %v849_v8, %v2065_v55 }
 0x221   : > { %v1490_v44 = vpop.f32.mrf.mxu1  ;;  %v853_v19 = vpop.f32.mrf.mxu0 }
 0x222   : > { %v1392_v17 = vpack.c.bf16 %v957_v6, %v846_v0  ;;  %1412 = vst [vmem:[%s2084_s25] sm:$0xff] %v1411_v61   ;;  %v854_v24 = vadd.f32 %v853_v19, %v2063_v54  ;;  %v968_v52 = vadd.f32 %v1490_v44, %v2068_v48 }
 0x223   : > { %v959_v32 = vpop.f32.mrf.mxu1  ;;  %v855_v51 = vpop.f32.mrf.mxu0 }
 0x224   : > { %1195 = vst [vmem:[%s2079_s19] sm:$0xff] %v1392_v17  ;;  %v960_v14 = vadd.f32 %v959_v32, %v2068_v48  ;;  %v856_v18 = vadd.f32 %v855_v51, %v2065_v55 }
 0x225   : > { %v1493_v27 = vpop.f32.mrf.mxu1  ;;  %v857_v23 = vpop.f32.mrf.mxu0 }
 0x226   : > { %v1393_v22 = vpack.c.bf16 %v960_v14, %v850_v62  ;;  %v1394_v46 = vpack.c.bf16 %v965_v15, %v856_v18  ;;  %v858_v49 = vadd.f32 %v857_v23, %v2063_v54  ;;  %v981_v47 = vadd.f32 %v1493_v27, %v2068_v48 }
 0x227   : > { %v972_v21 = vpop.f32.mrf.mxu1  ;;  %v859_v25 = vpop.f32.mrf.mxu0 }
 0x228   : > { %1196 = vst [vmem:[%s2079_s19 + $0x8] sm:$0xff] %v1393_v22  ;;  %1197 = vst [vmem:[%s2079_s19 + $0x10] sm:$0xff] %v1394_v46  ;;  %v1416_v26 = vpack.c.bf16 %v858_v49, %v854_v24  ;;  %v860_v29 = vadd.f32 %v859_v25, %v2065_v55  ;;  %v973_v35 = vadd.f32 %v972_v21, %v2068_v48 }
 0x229   : > { %v863_v28 = vpop.f32.mrf.mxu0  ;;  %v1494_v1 = vpop.f32.mrf.mxu1 }
 0x22a   : > { %1448 = vst [vmem:[%s2084_s25 + $0x8] sm:$0xff] %v1416_v26   ;;  %v1395_v2 = vpack.c.bf16 %v968_v52, %v860_v29  ;;  %v864_v37 = vadd.f32 %v863_v28, %v2063_v54  ;;  %v984_v53 = vadd.f32 %v1494_v1, %v2068_v48 }
 0x22b   : > { %v865_v30 = vpop.f32.mrf.mxu0  ;;  %v975_v34 = vpop.f32.mrf.mxu1 }
 0x22c   : > { %1198 = vst [vmem:[%s2079_s19 + $0x18] sm:$0xff] %v1395_v2  ;;  %v866_v33 = vadd.f32 %v865_v30, %v2065_v55  ;;  %v976_v40 = vadd.f32 %v975_v34, %v2068_v48 }
 0x22d   : > { %v867_v59 = vpop.f32.mrf.mxu0 }
 0x22e   : > { %v1396_v38 = vpack.c.bf16 %v973_v35, %v866_v33  ;;  %v868_v39 = vadd.f32 %v867_v59, %v2063_v54 }
 0x22f   : > { %v869_v60 = vpop.f32.mrf.mxu0 }
 0x230   : > { %1199 = vst [vmem:[%s2079_s19 + $0x20] sm:$0xff] %v1396_v38  ;;  %v1421_v41 = vpack.c.bf16 %v868_v39, %v864_v37  ;;  %v870_v3 = vadd.f32 %v869_v60, %v2065_v55 }
 0x231   : > { %v873_v10 = vpop.f32.mrf.mxu0 }
 0x232   : > { %1449 = vst [vmem:[%s2084_s25 + $0x10] sm:$0xff] %v1421_v41   ;;  %v1397_v45 = vpack.c.bf16 %v976_v40, %v870_v3  ;;  %v874_v50 = vadd.f32 %v873_v10, %v2063_v54 }
 0x233   : > { %v1497_v42 = vpop.f32.mrf.mxu1  ;;  %v875_v4 = vpop.f32.mrf.mxu0 }
 0x234   : > { %1200 = vst [vmem:[%s2079_s19 + $0x28] sm:$0xff] %v1397_v45  ;;  %v876_v36 = vadd.f32 %v875_v4, %v2065_v55  ;;  %v997_v15 = vadd.f32 %v1497_v42, %v2068_v48 }
 0x235   : > { %v988_v13 = vpop.f32.mrf.mxu1  ;;  %v877_v7 = vpop.f32.mrf.mxu0 }
 0x236   : > { %v1398_v11 = vpack.c.bf16 %v981_v47, %v876_v36  ;;  %v878_v12 = vadd.f32 %v877_v7, %v2063_v54  ;;  %v989_v20 = vadd.f32 %v988_v13, %v2068_v48 }
 0x237   : > { %v879_v58 = vpop.f32.mrf.mxu0  ;;  %v1498_v16 = vpop.f32.mrf.mxu1 }
 0x238   : > { %1201 = vst [vmem:[%s2079_s19 + $0x30] sm:$0xff] %v1398_v11  ;;  %v1426_v9 = vpack.c.bf16 %v878_v12, %v874_v50  ;;  %v880_v43 = vadd.f32 %v879_v58, %v2065_v55  ;;  %v1000_v25 = vadd.f32 %v1498_v16, %v2068_v48 }
 0x239   : > { %v883_v56 = vpop.f32.mrf.mxu0  ;;  %v991_v0 = vpop.f32.mrf.mxu1 }
 0x23a   : > { %1450 = vst [vmem:[%s2084_s25 + $0x18] sm:$0xff] %v1426_v9   ;;  %v1399_v57 = vpack.c.bf16 %v984_v53, %v880_v43  ;;  %v884_v6 = vadd.f32 %v883_v56, %v2063_v54  ;;  %v992_v17 = vadd.f32 %v991_v0, %v2068_v48 }
 0x23b   : > { %v885_v63 = vpop.f32.mrf.mxu0 }
 0x23c   : > { %1202 = vst [vmem:[%s2079_s19 + $0x38] sm:$0xff] %v1399_v57  ;;  %v886_v31 = vadd.f32 %v885_v63, %v2065_v55  ;;  %v1501_v62 = vpop.f32.mrf.mxu1 }
 0x23d   : > { %v887_v5 = vpop.f32.mrf.mxu0  ;;  %v1013_v45 = vadd.f32 %v1501_v62, %v2068_v48 }
 0x23e   : > { %v1400_v8 = vpack.c.bf16 %v989_v20, %v886_v31  ;;  %v888_v44 = vadd.f32 %v887_v5, %v2063_v54  ;;  %v1004_v22 = vpop.f32.mrf.mxu1 }
 0x23f   : > { %v889_v61 = vpop.f32.mrf.mxu0  ;;  %v1005_v30 = vadd.f32 %v1004_v22, %v2068_v48 }
 0x240   : > { %1203 = vst [vmem:[%s2079_s19 + $0x40] sm:$0xff] %v1400_v8  ;;  %v1431_v19 = vpack.c.bf16 %v888_v44, %v884_v6  ;;  %v890_v32 = vadd.f32 %v889_v61, %v2065_v55  ;;  %v1502_v29 = vpop.f32.mrf.mxu1 }
 0x241   : > { %v893_v14 = vpop.f32.mrf.mxu0  ;;  %v1016_v11 = vadd.f32 %v1502_v29, %v2068_v48 }
 0x242   : > { %1451 = vst [vmem:[%s2084_s25 + $0x20] sm:$0xff] %v1431_v19   ;;  %v1401_v51 = vpack.c.bf16 %v992_v17, %v890_v32  ;;  %v894_v21 = vadd.f32 %v893_v14, %v2063_v54  ;;  %v1007_v33 = vpop.f32.mrf.mxu1 }
 0x243   : > { %v895_v27 = vpop.f32.mrf.mxu0  ;;  %v1008_v60 = vadd.f32 %v1007_v33, %v2068_v48 }
 0x244   : > { %1204 = vst [vmem:[%s2079_s19 + $0x48] sm:$0xff] %v1401_v51  ;;  %v896_v18 = vadd.f32 %v895_v27, %v2065_v55 }
 0x245   : > { %v897_v23 = vpop.f32.mrf.mxu0 }
 0x246   : > { %v1402_v24 = vpack.c.bf16 %v997_v15, %v896_v18  ;;  %v898_v46 = vadd.f32 %v897_v23, %v2063_v54 }
 0x247   : > { %v899_v49 = vpop.f32.mrf.mxu0 }
 0x248   : > { %1205 = vst [vmem:[%s2079_s19 + $0x50] sm:$0xff] %v1402_v24  ;;  %v1436_v52 = vpack.c.bf16 %v898_v46, %v894_v21  ;;  %v900_v26 = vadd.f32 %v899_v49, %v2065_v55 }
 0x249   : > { %v903_v28 = vpop.f32.mrf.mxu0 }
 0x24a   : > { %1452 = vst [vmem:[%s2084_s25 + $0x28] sm:$0xff] %v1436_v52   ;;  %v1403_v1 = vpack.c.bf16 %v1000_v25, %v900_v26  ;;  %v904_v59 = vadd.f32 %v903_v28, %v2063_v54 }
 0x24b   : > { %v905_v2 = vpop.f32.mrf.mxu0 }
 0x24c   : > { %1206 = vst [vmem:[%s2079_s19 + $0x58] sm:$0xff] %v1403_v1  ;;  %v906_v35 = vadd.f32 %v905_v2, %v2065_v55 }
 0x24d   : > { %v907_v34 = vpop.f32.mrf.mxu0 }
 0x24e   : > { %v1404_v37 = vpack.c.bf16 %v1005_v30, %v906_v35  ;;  %v908_v38 = vadd.f32 %v907_v34, %v2063_v54 }
 0x24f   : > { %v909_v39 = vpop.f32.mrf.mxu0 }
 0x250   : > { %1207 = vst [vmem:[%s2079_s19 + $0x60] sm:$0xff] %v1404_v37  ;;  %v1441_v40 = vpack.c.bf16 %v908_v38, %v904_v59  ;;  %v910_v41 = vadd.f32 %v909_v39, %v2065_v55 }
 0x251   : > { %v913_v3 = vpop.f32.mrf.mxu0 }
 0x252   : > { %1453 = vst [vmem:[%s2084_s25 + $0x30] sm:$0xff] %v1441_v40   ;;  %v1405_v42 = vpack.c.bf16 %v1008_v60, %v910_v41  ;;  %v914_v36 = vadd.f32 %v913_v3, %v2063_v54 }
 0x253   : > { %v915_v10 = vpop.f32.mrf.mxu0 }
 0x254   : > { %1208 = vst [vmem:[%s2079_s19 + $0x68] sm:$0xff] %v1405_v42  ;;  %v916_v4 = vadd.f32 %v915_v10, %v2065_v55 }
 0x255   : > { %v917_v47 = vpop.f32.mrf.mxu0 }
 0x256   : > { %v1406_v13 = vpack.c.bf16 %v1013_v45, %v916_v4  ;;  %v918_v7 = vadd.f32 %v917_v47, %v2063_v54 }
 0x257   : > { %v919_v50 = vpop.f32.mrf.mxu0 }
 0x258   : > { %1209 = vst [vmem:[%s2079_s19 + $0x70] sm:$0xff] %v1406_v13  ;;  %v1446_v12 = vpack.c.bf16 %v918_v7, %v914_v36  ;;  %v920_v58 = vadd.f32 %v919_v50, %v2065_v55 }
 0x25a   : > { %1454 = vst [vmem:[%s2084_s25 + $0x38] sm:$0xff] %v1446_v12   ;;  %v1407_v53 = vpack.c.bf16 %v1016_v11, %v920_v58 }
 0x25c   : > { %1210 = vst [vmem:[%s2079_s19 + $0x78] sm:$0xff] %v1407_v53 }
 0x25d PF: > { %s17_s21 = sadd.s32 1, %s1614_s21  }
 0x25e   : > { %p14_p4 = scmp.ge.s32.totalorder %s17_s21, 4  }
 0x260   :  { %16 = sbr.rel (!%p14_p4) target bundleno = 1 (0x1), region = 82 }

// kernel: decoder_forward_pallas.15
= control target key start
LH: loop header
LB: loop body
LE: loop exit
PB: predicated region body
PF: predicated region fallthrough
CT: control target
= control target key end

     0   :  { %s787_s12 = smov 0   ;;  %s931_s0 = inlined_call_operand.vmem [shape: bf16[256,128], index: 0, kind: input, shape index: {}]   ;;  %s932_s1 = inlined_call_operand.vmem [shape: bf16[128,256], index: 1, kind: input, shape index: {}]   ;;  %s933_s2 = inlined_call_operand.vmem [shape: f32[1,256], index: 2, kind: input, shape index: {}]   ;;  %s934_s3 = inlined_call_operand.vmem [shape: bf16[256,256], index: 3, kind: output, shape index: {}]  }
   0x1 LB: > { %s632_s13 = sadd.s32 4294967295, %s764_s12   ;;  %p636_p0 = scmp.ge.s32.totalorder %s764_s12, 1  ;;  %s764_s12 = sphi %s787_s12, %s13_s12  }
   0x2   : > { %p138_p1 = scmp.lt.s32.totalorder %s764_s12, 3 }
   0x4   : > { %p139_p2 = pnand %p636_p0, %p138_p1 }
   0x5   : > { %s637_s16 = sshll.u32 (!%p139_p2), %s632_s13, 4 }
   0x6   : > { %142 = sbr.rel (%p139_p2) target bundleno = 273 (0x111), region = 32  ;;  %p164_p3 = scmp.lt.s32.totalorder (!%p139_p2), %s637_s16, 31 }
   0xb   : > { %v726_v0 = vld [vmem:[%s932_s1 + $0x74] ss:$8 sps:$4 sm:$0xff]   ;;  %v728_v1 = vld [vmem:[%s932_s1 + $0x70] ss:$8 sps:$4 sm:$0xff]   ;;  %v766_v2 = vmov 0   ;;  %s936_s16 = smov (!%p164_p3, %s637_s16), 31  ;;  %v211_v25 = vlaneseq }
   0xc   : > { %381 = vmatprep.mubr.bf16.mxu0 %v766_v2  ;;  %421 = vmatprep.mubr.bf16.mxu1 %v766_v2  ;;  %v729_v3 = vld [vmem:[%s932_s1 + $0x64] ss:$8 sps:$4 sm:$0xff]   ;;  %v731_v4 = vld [vmem:[%s932_s1 + $0x60] ss:$8 sps:$4 sm:$0xff]   ;;  %v732_v5 = vld [vmem:[%s932_s1 + $0x54] ss:$8 sps:$4 sm:$0xff]  }
   0xd   : > { %349 = vmatprep.subr.bf16.mxu0 %v726_v0  ;;  %701 = vmatprep.subr.bf16.mxu1 %v726_v0  ;;  %s638_s25 = sshll.u32 %s936_s16, 2  ;;  %v734_v6 = vld [vmem:[%s932_s1 + $0x50] ss:$8 sps:$4 sm:$0xff]   ;;  %v735_v7 = vld [vmem:[%s932_s1 + $0x44] ss:$8 sps:$4 sm:$0xff]   ;;  %v212_v26 = vshrl.u32 %v211_v25, 7 }
   0xe   : > { %350 = vmatpush1.bf16.msra.mxu0 %v728_v1  ;;  %709 = vmatpush1.bf16.msra.mxu1 %v728_v1  ;;  %s824_s5 = scalar_lea.vmem %s931_s0, %s638_s25  ;;  %v737_v8 = vld [vmem:[%s932_s1 + $0x40] ss:$8 sps:$4 sm:$0xff]   ;;  %v738_v9 = vld [vmem:[%s932_s1 + $0x34] ss:$8 sps:$4 sm:$0xff]   ;;  %v740_v10 = vld [vmem:[%s932_s1 + $0x30] ss:$8 sps:$4 sm:$0xff]  }
   0xf   : > { %351 = vmatprep.subr.bf16.mxu0 %v729_v3  ;;  %702 = vmatprep.subr.bf16.mxu1 %v729_v3  ;;  %v741_v11 = vld [vmem:[%s932_s1 + $0x24] ss:$8 sps:$4 sm:$0xff]   ;;  %v743_v12 = vld [vmem:[%s932_s1 + $0x20] ss:$8 sps:$4 sm:$0xff]   ;;  %v744_v13 = vld [vmem:[%s932_s1 + $0x14] ss:$8 sps:$4 sm:$0xff]  }
  0x10   : > { %v746_v14 = vld [vmem:[%s932_s1 + $0x10] ss:$8 sps:$4 sm:$0xff]   ;;  %v747_v15 = vld [vmem:[%s932_s1 + $0x4] ss:$8 sps:$4 sm:$0xff]   ;;  %v749_v16 = vld [vmem:[%s932_s1] ss:$8 sps:$4 sm:$0xff]  }
  0x11   : > { %v750_v17 = vld [vmem:[%s824_s5] sm:$0xff]   ;;  %v752_v19 = vld [vmem:[%s824_s5 + $0x8] sm:$0xff]   ;;  %v754_v21 = vld [vmem:[%s824_s5 + $0x10] sm:$0xff]   ;;  %v213_v27 = vsub.s32 0, %v212_v26  ;;  %v217_v28 = vsub.s32 1, %v212_v26  ;;  %s684_s28 = sshll.u32 %s936_s16, 3 }
  0x12   : > { %352 = vmatpush1.bf16.msra.mxu0 %v731_v4  ;;  %710 = vmatpush1.bf16.msra.mxu1 %v731_v4  ;;  %v751_v18 = vld [vmem:[%s824_s5 + $0x20] sm:$0xff]   ;;  %v753_v20 = vld [vmem:[%s824_s5 + $0x28] sm:$0xff]   ;;  %v755_v22 = vld [vmem:[%s824_s5 + $0x30] sm:$0xff]   ;;  %s882_s4 = scalar_lea.vmem %s934_s3, %s684_s28 }
  0x13   : > { %353 = vmatprep.subr.bf16.mxu0 %v732_v5  ;;  %703 = vmatprep.subr.bf16.mxu1 %v732_v5  ;;  %v756_v23 = vld [vmem:[%s824_s5 + $0x18] sm:$0xff]   ;;  %v209_v29 = vld [vmem:[%s933_s2] sm:$0x3] }
  0x14   : > { %v757_v24 = vld [vmem:[%s824_s5 + $0x38] sm:$0xff]   ;;  %v870_v30 = vrot.slane %v209_v29, %v213_v27  ;;  %v872_v31 = vrot.slane %v209_v29, %v217_v28 }
  0x16   : > { %354 = vmatpush1.bf16.msra.mxu0 %v734_v6  ;;  %711 = vmatpush1.bf16.msra.mxu1 %v734_v6 }
  0x17   : > { %355 = vmatprep.subr.bf16.mxu0 %v735_v7  ;;  %704 = vmatprep.subr.bf16.mxu1 %v735_v7 }
  0x1a   : > { %356 = vmatpush1.bf16.msra.mxu0 %v737_v8  ;;  %712 = vmatpush1.bf16.msra.mxu1 %v737_v8 }
  0x1b   : > { %357 = vmatprep.subr.bf16.mxu0 %v738_v9  ;;  %705 = vmatprep.subr.bf16.mxu1 %v738_v9 }
  0x1e   : > { %358 = vmatpush1.bf16.msra.mxu0 %v740_v10  ;;  %713 = vmatpush1.bf16.msra.mxu1 %v740_v10 }
  0x1f   : > { %359 = vmatprep.subr.bf16.mxu0 %v741_v11  ;;  %706 = vmatprep.subr.bf16.mxu1 %v741_v11 }
  0x22   : > { %360 = vmatpush1.bf16.msra.mxu0 %v743_v12  ;;  %714 = vmatpush1.bf16.msra.mxu1 %v743_v12 }
  0x23   : > { %361 = vmatprep.subr.bf16.mxu0 %v744_v13  ;;  %707 = vmatprep.subr.bf16.mxu1 %v744_v13 }
  0x26   : > { %362 = vmatpush1.bf16.msra.mxu0 %v746_v14  ;;  %715 = vmatpush1.bf16.msra.mxu1 %v746_v14 }
  0x27   : > { %363 = vmatprep.subr.bf16.mxu0 %v747_v15  ;;  %708 = vmatprep.subr.bf16.mxu1 %v747_v15 }
  0x2a   : > { %364 = vmatpush1.bf16.msra.mxu0 %v749_v16  ;;  %716 = vmatpush1.bf16.msra.mxu1 %v749_v16 }
  0x2d   : > { %382 = vmatmul.mubr.bf16.vlgmr.msra.gmra.mxu0 %v750_v17  ;;  %422 = vmatmul.mubr.bf16.vlgmr.msra.gmra.mxu1 %v751_v18 }
  0x2e   : > { %391 = vmatprep.mubr.bf16.mxu0 %v766_v2  ;;  %431 = vmatprep.mubr.bf16.mxu1 %v766_v2 }
  0x35   : > { %392 = vmatmul.mubr.bf16.gmra.mxu0 %v752_v19  ;;  %432 = vmatmul.mubr.bf16.gmra.mxu1 %v753_v20 }
  0x36   : > { %401 = vmatprep.mubr.bf16.mxu0 %v766_v2  ;;  %441 = vmatprep.mubr.bf16.mxu1 %v766_v2 }
  0x3d   : > { %402 = vmatmul.mubr.bf16.gmra.mxu0 %v754_v21  ;;  %442 = vmatmul.mubr.bf16.gmra.mxu1 %v755_v22 }
  0x3e   : > { %411 = vmatprep.mubr.bf16.mxu0 %v766_v2  ;;  %451 = vmatprep.mubr.bf16.mxu1 %v766_v2 }
  0x45   : > { %412 = vmatmul.mubr.bf16.gmra.mxu0 %v756_v23  ;;  %452 = vmatmul.mubr.bf16.gmra.mxu1 %v757_v24 }
  0xed   : > { %v383_v32 = vpop.f32.mrf.mxu0  ;;  %v423_v33 = vpop.f32.mrf.mxu1 }
  0xee   : > { %v384_v36 = vadd.f32 %v383_v32, %v870_v30  ;;  %v424_v37 = vadd.f32 %v423_v33, %v870_v30 }
  0xef   : > { %v385_v34 = vpop.f32.mrf.mxu0  ;;  %v425_v35 = vpop.f32.mrf.mxu1 }
  0xf0   : > { %v386_v38 = vadd.f32 %v385_v34, %v872_v31  ;;  %v426_v39 = vadd.f32 %v425_v35, %v872_v31 }
  0xf1   : > { %v387_v40 = vpop.f32.mrf.mxu0  ;;  %v427_v41 = vpop.f32.mrf.mxu1 }
  0xf2   : > { %v685_v42 = vpack.c.bf16 %v386_v38, %v384_v36  ;;  %v693_v43 = vpack.c.bf16 %v426_v39, %v424_v37  ;;  %v388_v46 = vadd.f32 %v387_v40, %v870_v30  ;;  %v428_v47 = vadd.f32 %v427_v41, %v870_v30 }
  0xf3   : > { %v389_v44 = vpop.f32.mrf.mxu0  ;;  %v429_v45 = vpop.f32.mrf.mxu1 }
  0xf4   : > { %558 = vst [vmem:[%s882_s4] sm:$0xff] %v685_v42  ;;  %566 = vst [vmem:[%s882_s4 + $0x40] sm:$0xff] %v693_v43  ;;  %v390_v48 = vadd.f32 %v389_v44, %v872_v31  ;;  %v430_v49 = vadd.f32 %v429_v45, %v872_v31 }
  0xf5   : > { %v393_v50 = vpop.f32.mrf.mxu0  ;;  %v433_v51 = vpop.f32.mrf.mxu1 }
  0xf6   : > { %v686_v52 = vpack.c.bf16 %v390_v48, %v388_v46  ;;  %v694_v53 = vpack.c.bf16 %v430_v49, %v428_v47  ;;  %v394_v56 = vadd.f32 %v393_v50, %v870_v30  ;;  %v434_v57 = vadd.f32 %v433_v51, %v870_v30 }
  0xf7   : > { %v395_v54 = vpop.f32.mrf.mxu0  ;;  %v435_v55 = vpop.f32.mrf.mxu1 }
  0xf8   : > { %559 = vst [vmem:[%s882_s4 + $0x8] sm:$0xff] %v686_v52  ;;  %567 = vst [vmem:[%s882_s4 + $0x48] sm:$0xff] %v694_v53  ;;  %v396_v58 = vadd.f32 %v395_v54, %v872_v31  ;;  %v436_v59 = vadd.f32 %v435_v55, %v872_v31 }
  0xf9   : > { %v397_v60 = vpop.f32.mrf.mxu0  ;;  %v437_v61 = vpop.f32.mrf.mxu1 }
  0xfa   : > { %v687_v62 = vpack.c.bf16 %v396_v58, %v394_v56  ;;  %v695_v63 = vpack.c.bf16 %v436_v59, %v434_v57  ;;  %v398_v2 = vadd.f32 %v397_v60, %v870_v30  ;;  %v438_v3 = vadd.f32 %v437_v61, %v870_v30 }
  0xfb   : > { %v399_v0 = vpop.f32.mrf.mxu0  ;;  %v439_v1 = vpop.f32.mrf.mxu1 }
  0xfc   : > { %560 = vst [vmem:[%s882_s4 + $0x10] sm:$0xff] %v687_v62  ;;  %568 = vst [vmem:[%s882_s4 + $0x50] sm:$0xff] %v695_v63  ;;  %v400_v4 = vadd.f32 %v399_v0, %v872_v31  ;;  %v440_v5 = vadd.f32 %v439_v1, %v872_v31 }
  0xfd   : > { %v403_v6 = vpop.f32.mrf.mxu0  ;;  %v443_v7 = vpop.f32.mrf.mxu1 }
  0xfe   : > { %v688_v8 = vpack.c.bf16 %v400_v4, %v398_v2  ;;  %v696_v9 = vpack.c.bf16 %v440_v5, %v438_v3  ;;  %v404_v12 = vadd.f32 %v403_v6, %v870_v30  ;;  %v444_v13 = vadd.f32 %v443_v7, %v870_v30 }
  0xff   : > { %v405_v10 = vpop.f32.mrf.mxu0  ;;  %v445_v11 = vpop.f32.mrf.mxu1 }
 0x100   : > { %561 = vst [vmem:[%s882_s4 + $0x18] sm:$0xff] %v688_v8  ;;  %569 = vst [vmem:[%s882_s4 + $0x58] sm:$0xff] %v696_v9  ;;  %v406_v14 = vadd.f32 %v405_v10, %v872_v31  ;;  %v446_v15 = vadd.f32 %v445_v11, %v872_v31 }
 0x101   : > { %v407_v16 = vpop.f32.mrf.mxu0  ;;  %v447_v17 = vpop.f32.mrf.mxu1 }
 0x102   : > { %v689_v18 = vpack.c.bf16 %v406_v14, %v404_v12  ;;  %v697_v19 = vpack.c.bf16 %v446_v15, %v444_v13  ;;  %v408_v22 = vadd.f32 %v407_v16, %v870_v30  ;;  %v448_v23 = vadd.f32 %v447_v17, %v870_v30 }
 0x103   : > { %v409_v20 = vpop.f32.mrf.mxu0  ;;  %v449_v21 = vpop.f32.mrf.mxu1 }
 0x104   : > { %562 = vst [vmem:[%s882_s4 + $0x20] sm:$0xff] %v689_v18  ;;  %570 = vst [vmem:[%s882_s4 + $0x60] sm:$0xff] %v697_v19  ;;  %v410_v24 = vadd.f32 %v409_v20, %v872_v31  ;;  %v450_v25 = vadd.f32 %v449_v21, %v872_v31 }
 0x105   : > { %v413_v26 = vpop.f32.mrf.mxu0  ;;  %v453_v27 = vpop.f32.mrf.mxu1 }
 0x106   : > { %v690_v28 = vpack.c.bf16 %v410_v24, %v408_v22  ;;  %v698_v29 = vpack.c.bf16 %v450_v25, %v448_v23  ;;  %v414_v34 = vadd.f32 %v413_v26, %v870_v30  ;;  %v454_v35 = vadd.f32 %v453_v27, %v870_v30 }
 0x107   : > { %v415_v32 = vpop.f32.mrf.mxu0  ;;  %v455_v33 = vpop.f32.mrf.mxu1 }
 0x108   : > { %563 = vst [vmem:[%s882_s4 + $0x28] sm:$0xff] %v690_v28  ;;  %571 = vst [vmem:[%s882_s4 + $0x68] sm:$0xff] %v698_v29  ;;  %v416_v36 = vadd.f32 %v415_v32, %v872_v31  ;;  %v456_v37 = vadd.f32 %v455_v33, %v872_v31 }
 0x109   : > { %v417_v38 = vpop.f32.mrf.mxu0  ;;  %v457_v39 = vpop.f32.mrf.mxu1 }
 0x10a   : > { %v691_v40 = vpack.c.bf16 %v416_v36, %v414_v34  ;;  %v699_v41 = vpack.c.bf16 %v456_v37, %v454_v35  ;;  %v418_v44 = vadd.f32 %v417_v38, %v870_v30  ;;  %v458_v45 = vadd.f32 %v457_v39, %v870_v30 }
 0x10b   : > { %v419_v42 = vpop.f32.mrf.mxu0  ;;  %v459_v43 = vpop.f32.mrf.mxu1 }
 0x10c   : > { %564 = vst [vmem:[%s882_s4 + $0x30] sm:$0xff] %v691_v40  ;;  %572 = vst [vmem:[%s882_s4 + $0x70] sm:$0xff] %v699_v41  ;;  %v420_v46 = vadd.f32 %v419_v42, %v872_v31  ;;  %v460_v47 = vadd.f32 %v459_v43, %v872_v31 }
 0x10e   : > { %v692_v48 = vpack.c.bf16 %v420_v46, %v418_v44  ;;  %v700_v49 = vpack.c.bf16 %v460_v47, %v458_v45 }
 0x110   : > { %565 = vst [vmem:[%s882_s4 + $0x38] sm:$0xff] %v692_v48  ;;  %573 = vst [vmem:[%s882_s4 + $0x78] sm:$0xff] %v700_v49 }
 0x111 PF: > { %s13_s12 = sadd.s32 1, %s764_s12  }
 0x112   : > { %p10_p4 = scmp.ge.s32.totalorder %s13_s12, 4  }
 0x114   :  { %12 = sbr.rel (!%p10_p4) target bundleno = 1 (0x1), region = 62 }

// kernel: decoder_forward_pallas.13
= control target key start
LH: loop header
LB: loop body
LE: loop exit
PB: predicated region body
PF: predicated region fallthrough
CT: control target
= control target key end

     0   :  { %s3821_s21 = smov 0   ;;  %s5289_s0 = inlined_call_operand.vmem [shape: bf16[2,128,128], index: 0, kind: input, shape index: {}]   ;;  %s5290_s1 = inlined_call_operand.vmem [shape: bf16[2,128,256], index: 1, kind: input, shape index: {}]   ;;  %s5291_s2 = inlined_call_operand.vmem [shape: f32[128,128], index: 2, kind: input, shape index: {}]   ;;  %s5292_s3 = inlined_call_operand.vmem [shape: f32[2,128,128], index: 3, kind: input, shape index: {}]   ;;  %s5293_s4 = inlined_call_operand.vmem [shape: bf16[128,128], index: 4, kind: input, shape index: {}]   ;;  %s5294_s5 = inlined_call_operand.vmem [shape: f32[1,128], index: 5, kind: input, shape index: {}]   ;;  %s5295_s6 = inlined_call_operand.vmem [shape: f32[2,128,128], index: 6, kind: output, shape index: {}]  }
   0x1 LB: > { %s2760_s22 = sadd.s32 4294967295, %s3781_s21   ;;  %p2764_p0 = scmp.ge.s32.totalorder %s3781_s21, 1  ;;  %s3781_s21 = sphi %s3821_s21, %s16_s21  }
   0x2   : > { %p232_p1 = scmp.lt.s32.totalorder %s3781_s21, 3 }
   0x4   : > { %p233_p2 = pnand %p2764_p0, %p232_p1 }
   0x6   : > { %236 = sbr.rel (%p233_p2) target bundleno = 2352 (0x930), region = 44 }
   0xb   : > { %p272_p3 = scmp.lt.s32.totalorder %s2760_s22, 1  ;;  %vm438_vm0 = vcmask 261120   ;;  %s3783_s28 = smov 96   ;;  %vm2423_vm1 = vcmask 523264   ;;  %vm2440_vm2 = vcmask 785408  }
   0xc   : > { %s3784_s20 = smov 64  }
   0xd   : > { %s5458_s22 = smov (!%p272_p3, %s2760_s22), 1 }
   0xe   : > { %s3829_s23 = sshll.u32 %s5458_s22, 7  ;;  %s2840_s27 = sshll.u32 %s5458_s22, 6 }
   0xf   : > { %s3835_s26 = scalar_lea.vmem %s5290_s1, %s3829_s23  ;;  %s3859_s7 = scalar_lea.vmem %s5289_s0, %s2840_s27 }
  0x10   : > { %v3838_v0 = vld [vmem:[%s3835_s26 + $0x70] ss:$8 sps:$4 sm:$0xff]   ;;  %v3841_v1 = vld [vmem:[%s3835_s26 + $0x60] ss:$8 sps:$4 sm:$0xff]   ;;  %v295_v6 = vld [vmem:[%s3859_s7 + $0x4] sm:$0xf]  ;;  %s5225_s12 = scalar_lea.vmem %s5292_s3, %s3829_s23  ;;  %s5238_s16 = scalar_lea.vmem %s5295_s6, %s3829_s23 }
  0x11   : > { %3292 = vmatprep.subr.msk.bf16.mxu0 %vm438_vm0, %v3838_v0  ;;  %v485_v2 = vsel %vm438_vm0, %v3838_v0, 0  ;;  %895 = vrot.lane.b32.xlu0 %v3838_v0, %s3783_s28  ;;  %v3854_v3 = vld [vmem:[%s3835_s26 + $0x50] ss:$8 sps:$4 sm:$0xff]   ;;  %v482_v4 = vsel %vm438_vm0, %v3841_v1, 0  ;;  %v294_v5 = vld [vmem:[%s3859_s7] sm:$0xf] }
  0x12   : > { %2989 = vmatpush3.bf16.xpose.msra.mxu0 %v485_v2  ;;  %893 = vrot.lane.b32.xlu1 %v3841_v1, %s3783_s28  ;;  %v326_v7 = vmul.bf16 1043676725, %v294_v5  ;;  %v327_v8 = vmul.bf16 1043676725, %v295_v6  ;;  %v479_v10 = vsel %vm438_vm0, %v3854_v3, 0  ;;  %v4004_v6 = vld [vmem:[%s5291_s2] sm:$0xff] }
  0x13   : > { %3293 = vmatprep.subr.msk.bf16.mxu0 %vm438_vm0, %v3841_v1  ;;  %v3876_v11 = vld [vmem:[%s3835_s26 + $0x40] ss:$8 sps:$4 sm:$0xff]   ;;  %v3883_v13 = vld [vmem:[%s3835_s26 + $0x30] ss:$8 sps:$4 sm:$0xff]   ;;  %v297_v21 = vld [vmem:[%s3859_s7 + $0xc] sm:$0xf] }
  0x14   : > { %v3867_v9 = vcombine.low %v326_v7, %v327_v8  ;;  %v476_v12 = vsel %vm438_vm0, %v3876_v11, 0  ;;  %v473_v14 = vsel %vm438_vm0, %v3883_v13, 0  ;;  %v3890_v15 = vld [vmem:[%s3835_s26 + $0x20] ss:$8 sps:$4 sm:$0xff]   ;;  %v3897_v17 = vld [vmem:[%s3835_s26 + $0x10] ss:$8 sps:$4 sm:$0xff]  }
  0x15   : > { %891 = vrot.lane.b32.xlu0 %v3854_v3, %s3783_s28  ;;  %v470_v16 = vsel %vm438_vm0, %v3890_v15, 0  ;;  %v467_v18 = vsel %vm438_vm0, %v3897_v17, 0  ;;  %v3904_v19 = vld [vmem:[%s3835_s26] ss:$8 sps:$4 sm:$0xff]   ;;  %v298_v23 = vld [vmem:[%s3859_s7 + $0x10] sm:$0xf] }
  0x16   : > { %3004 = vmatprep.mubr.msk.bf16.mxu0 %vm438_vm0, %v3867_v9  ;;  %v296_v20 = vld [vmem:[%s3859_s7 + $0x8] sm:$0xf]  ;;  %v464_v22 = vsel %vm438_vm0, %v3904_v19, 0  ;;  %v299_v24 = vld [vmem:[%s3859_s7 + $0x14] sm:$0xf]  ;;  %s3785_s22 = smov 32  }
  0x17   : > { %v328_v25 = vmul.bf16 1043676725, %v296_v20  ;;  %v329_v26 = vmul.bf16 1043676725, %v297_v21  ;;  %v330_v27 = vmul.bf16 1043676725, %v298_v23 }
  0x18   : > { %v331_v28 = vmul.bf16 1043676725, %v299_v24  ;;  %v300_v31 = vld [vmem:[%s3859_s7 + $0x18] sm:$0xf]  ;;  %v301_v32 = vld [vmem:[%s3859_s7 + $0x1c] sm:$0xf] }
  0x19   : > { %v3914_v29 = vcombine.low %v328_v25, %v329_v26  ;;  %v302_v33 = vld [vmem:[%s3859_s7 + $0x20] sm:$0xf]  ;;  %v303_v34 = vld [vmem:[%s3859_s7 + $0x24] sm:$0xf]  ;;  %v332_v35 = vmul.bf16 1043676725, %v300_v31 }
  0x1a   : > { %2991 = vmatpush3.bf16.xpose.msra.mxu0 %v482_v4  ;;  %v3916_v30 = vcombine.low %v330_v27, %v331_v28  ;;  %v333_v36 = vmul.bf16 1043676725, %v301_v32  ;;  %v334_v37 = vmul.bf16 1043676725, %v302_v33  ;;  %v335_v38 = vmul.bf16 1043676725, %v303_v34 }
  0x1b   : > { %3294 = vmatprep.subr.msk.bf16.mxu0 %vm438_vm0, %v3854_v3  ;;  %5325 = vst [vmem:[#allocation2_spill] sm:$0xff] %v3914_v29  ;;  %v304_v41 = vld [vmem:[%s3859_s7 + $0x28] sm:$0xf]  ;;  %v305_v42 = vld [vmem:[%s3859_s7 + $0x2c] sm:$0xf]  ;;  %v3999_v4 = vld [vmem:[%s5291_s2 + $0x10] sm:$0xff] }
  0x1c   : > { %5326 = vst [vmem:[#allocation3_spill] sm:$0xff] %v3916_v30  ;;  %v3926_v39 = vcombine.low %v332_v35, %v333_v36  ;;  %v3928_v40 = vcombine.low %v334_v37, %v335_v38  ;;  %v306_v43 = vld [vmem:[%s3859_s7 + $0x30] sm:$0xf]  ;;  %v307_v44 = vld [vmem:[%s3859_s7 + $0x34] sm:$0xf]  ;;  %v4039_v24 = vld [vmem:[%s5291_s2 + $0x20] sm:$0xff] }
  0x1d   : > { %v336_v45 = vmul.bf16 1043676725, %v304_v41  ;;  %v337_v46 = vmul.bf16 1043676725, %v305_v42  ;;  %v338_v47 = vmul.bf16 1043676725, %v306_v43 }
  0x1e   : > { %5327 = vst [vmem:[#allocation4_spill] sm:$0xff] %v3928_v40  ;;  %v339_v48 = vmul.bf16 1043676725, %v307_v44  ;;  %v308_v51 = vld [vmem:[%s3859_s7 + $0x38] sm:$0xf]  ;;  %v4030_v21 = vld [vmem:[%s5291_s2 + $0x30] sm:$0xff] }
  0x1f   : > { %v3938_v49 = vcombine.low %v336_v45, %v337_v46  ;;  %v309_v52 = vld [vmem:[%s3859_s7 + $0x3c] sm:$0xf]  ;;  %v340_v53 = vmul.bf16 1043676725, %v308_v51  ;;  %v3956_v57 = vld [vmem:[%s3835_s26 + $0x64] ss:$8 sps:$4 sm:$0xff]  }
  0x20   : > { %v3940_v50 = vcombine.low %v338_v47, %v339_v48  ;;  %v341_v54 = vmul.bf16 1043676725, %v309_v52  ;;  %v3953_v56 = vld [vmem:[%s3835_s26 + $0x74] ss:$8 sps:$4 sm:$0xff]   ;;  %v3968_v59 = vld [vmem:[%s3835_s26 + $0x44] ss:$8 sps:$4 sm:$0xff]  }
  0x21   : > { %5329 = vst [vmem:[#allocation6_spill] sm:$0xff] %v3953_v56  ;;  %3020 = vmatprep.subr.bf16.mxu1 %v3953_v56  ;;  %v3963_v58 = vld [vmem:[%s3835_s26 + $0x54] ss:$8 sps:$4 sm:$0xff]   ;;  %5331 = vst [vmem:[#allocation8_spill] sm:$0xff] %v3968_v59  ;;  %v3976_v61 = vld [vmem:[%s3835_s26 + $0x24] ss:$8 sps:$4 sm:$0xff]  }
  0x22   : > { %2993 = vmatpush3.bf16.xpose.msra.mxu0 %v479_v10  ;;  %5328 = vst [vmem:[#allocation5_spill] sm:$0xff] %v3940_v50  ;;  %v3948_v55 = vcombine.low %v340_v53, %v341_v54  ;;  %3021 = vmatpush3.bf16.msra.mxu1 %v3953_v56  ;;  %5330 = vst [vmem:[#allocation7_spill] sm:$0xff] %v3963_v58  ;;  %v3973_v60 = vld [vmem:[%s3835_s26 + $0x34] ss:$8 sps:$4 sm:$0xff]   ;;  %v3987_v63 = vld [vmem:[%s3835_s26 + $0x4] ss:$8 sps:$4 sm:$0xff]  }
  0x23   : > { %3295 = vmatprep.subr.msk.bf16.mxu0 %vm438_vm0, %v3876_v11  ;;  %3022 = vmatprep.subr.bf16.mxu1 %v3956_v57  ;;  %5332 = vst [vmem:[#allocation9_spill] sm:$0xff] %v3973_v60  ;;  %v3982_v62 = vld [vmem:[%s3835_s26 + $0x14] ss:$8 sps:$4 sm:$0xff]   ;;  %v4061_v34 = vld [vmem:[%s5291_s2 + $0x28] sm:$0xff]  ;;  %v4088_v48 = vld [vmem:[%s5291_s2 + $0x60] sm:$0xff] }
  0x24   : > { %5333 = vst [vmem:[#allocation10_spill] sm:$0xff] %v3982_v62  ;;  %v4012_v10 = vld [vmem:[%s5291_s2 + $0x18] sm:$0xff]  ;;  %v4070_v41 = vld [vmem:[%s5291_s2 + $0x48] sm:$0xff]  ;;  %v4079_v44 = vld [vmem:[%s5291_s2 + $0x70] sm:$0xff] }
  0x25   : > { %v4052_v28 = vld [vmem:[%s5291_s2 + $0x38] sm:$0xff] }
  0x26   : > { %3023 = vmatpush3.bf16.msra.mxu1 %v3956_v57  ;;  %v4099_v52 = vld [vmem:[%s5291_s2 + $0x78] sm:$0xff] }
  0x27   : > { %3024 = vmatprep.subr.bf16.mxu1 %v3963_v58 }
  0x2a   : > { %2995 = vmatpush3.bf16.xpose.msra.mxu0 %v476_v12  ;;  %3025 = vmatpush3.bf16.msra.mxu1 %v3963_v58 }
  0x2b   : > { %3296 = vmatprep.subr.msk.bf16.mxu0 %vm438_vm0, %v3883_v13  ;;  %3026 = vmatprep.subr.bf16.mxu1 %v3968_v59 }
  0x2e   : > { %3027 = vmatpush3.bf16.msra.mxu1 %v3968_v59 }
  0x2f   : > { %3028 = vmatprep.subr.bf16.mxu1 %v3973_v60 }
  0x32   : > { %2997 = vmatpush3.bf16.xpose.msra.mxu0 %v473_v14  ;;  %3029 = vmatpush3.bf16.msra.mxu1 %v3973_v60 }
  0x33   : > { %3297 = vmatprep.subr.msk.bf16.mxu0 %vm438_vm0, %v3890_v15  ;;  %3030 = vmatprep.subr.bf16.mxu1 %v3976_v61 }
  0x36   : > { %3031 = vmatpush3.bf16.msra.mxu1 %v3976_v61 }
  0x37   : > { %3032 = vmatprep.subr.bf16.mxu1 %v3982_v62 }
  0x3a   : > { %2999 = vmatpush3.bf16.xpose.msra.mxu0 %v470_v16  ;;  %3033 = vmatpush3.bf16.msra.mxu1 %v3982_v62  ;;  %v4021_v16 = vld [vmem:[%s5291_s2 + $0x8] sm:$0xff] }
  0x3b   : > { %3298 = vmatprep.subr.msk.bf16.mxu0 %vm438_vm0, %v3897_v17  ;;  %3034 = vmatprep.subr.bf16.mxu1 %v3987_v63 }
  0x3e   : > { %3035 = vmatpush3.bf16.msra.mxu1 %v3987_v63 }
  0x42   : > { %3001 = vmatpush3.bf16.xpose.msra.mxu0 %v467_v18 }
  0x43   : > { %3299 = vmatprep.subr.msk.bf16.mxu0 %vm438_vm0, %v3904_v19 }
  0x4a   : > { %3003 = vmatpush3.bf16.xpose.msra.mxu0 %v464_v22 }
  0x51   : > { %3005 = vmatmul.mubr.msk.bf16.vlgmr.msra.gmra.mxu0 %vm438_vm0, %v3914_v29 }
  0x52   : > { %3008 = vmatprep.mubr.msk.bf16.mxu0 %vm438_vm0, %v3916_v30 }
  0x59   : > { %3009 = vmatmul.mubr.msk.bf16.gmra.mxu0 %vm438_vm0, %v3926_v39 }
  0x5a   : > { %3012 = vmatprep.mubr.msk.bf16.mxu0 %vm438_vm0, %v3928_v40 }
  0x61   : > { %3013 = vmatmul.mubr.msk.bf16.gmra.mxu0 %vm438_vm0, %v3938_v49 }
  0x62   : > { %3016 = vmatprep.mubr.msk.bf16.mxu0 %vm438_vm0, %v3940_v50 }
  0x69   : > { %3017 = vmatmul.mubr.msk.bf16.gmra.mxu0 %vm438_vm0, %v3948_v55 }
  0x83   : > { %v3991_v2 = vpop.permute.xlu0 %895 }
  0x84   : > { %3300 = vmatprep.subr.msk.bf16.mxu1 %vm438_vm0, %v3991_v2 }
 0x111   : > { %v3006_v5 = vpop.f32.mrf.mxu0 }
 0x112   : > { %v4007_v7 = vadd.f32 %v3006_v5, %v3999_v4 }
 0x113   : > { %v521_v8 = vpop.f32.mrf.mxu0 }
 0x114   : > { %v4015_v12 = vadd.f32 %v521_v8, %v4004_v6  ;;  %588 = vmax.xlane.f32.xlu1 %v4007_v7  ;;  %v4108_v8 = vld [vmem:[%s5291_s2 + $0x68] sm:$0xff] }
 0x115   : > { %v3007_v14 = vpop.f32.mrf.mxu0 }
 0x116   : > { %v4024_v18 = vadd.f32 %v3007_v14, %v4012_v10  ;;  %584 = vmax.xlane.f32.xlu0 %v4015_v12 }
 0x117   : > { %v524_v20 = vpop.f32.mrf.mxu0 }
 0x118   : > { %v4033_v22 = vadd.f32 %v524_v20, %v4021_v16  ;;  %590 = vmax.xlane.f32.xlu1 %v4024_v18  ;;  %v4118_v20 = vld [vmem:[%s5291_s2 + $0x50] sm:$0xff] }
 0x119   : > { %v3010_v23 = vpop.f32.mrf.mxu0 }
 0x11a   : > { %v4042_v25 = vadd.f32 %v3010_v23, %v4030_v21  ;;  %586 = vmax.xlane.f32.xlu0 %v4033_v22 }
 0x11b   : > { %v537_v26 = vpop.f32.mrf.mxu0 }
 0x11c   : > { %596 = vmax.xlane.f32.xlu1 %v4042_v25  ;;  %v4047_v27 = vadd.f32 %v537_v26, %v4039_v24  ;;  %v4128_v26 = vld [vmem:[%s5291_s2 + $0x40] sm:$0xff] }
 0x11d   : > { %v3011_v31 = vpop.f32.mrf.mxu0 }
 0x11e   : > { %v4055_v33 = vadd.f32 %v3011_v31, %v4052_v28 }
 0x11f   : > { %v540_v32 = vpop.f32.mrf.mxu0 }
 0x120   : > { %592 = vmax.xlane.f32.xlu1 %v4047_v27  ;;  %v4064_v37 = vadd.f32 %v540_v32, %v4061_v34  ;;  %v4139_v32 = vld [vmem:[%s5291_s2 + $0x58] sm:$0xff] }
 0x121   : > { %v3014_v35 = vpop.f32.mrf.mxu0 }
 0x122   : > { %v4121_v23 = vadd.f32 %v3014_v35, %v4118_v20 }
 0x123   : > { %v553_v36 = vpop.f32.mrf.mxu0 }
 0x124   : > { %598 = vmax.xlane.f32.xlu1 %v4055_v33  ;;  %v4132_v31 = vadd.f32 %v553_v36, %v4128_v26  ;;  %v894_v36 = vpop.permute.xlu1 %893 }
 0x125   : > { %v3015_v38 = vpop.f32.mrf.mxu0 }
 0x126   : > { %v4143_v35 = vadd.f32 %v3015_v38, %v4139_v32  ;;  %v892_v38 = vpop.permute.xlu0 %891 }
 0x127   : > { %v556_v42 = vpop.f32.mrf.mxu0 }
 0x128   : > { %594 = vmax.xlane.f32.xlu1 %v4064_v37  ;;  %v4074_v43 = vadd.f32 %v556_v42, %v4070_v41 }
 0x129   : > { %v3018_v45 = vpop.f32.mrf.mxu0 }
 0x12a   : > { %v4083_v46 = vadd.f32 %v3018_v45, %v4079_v44 }
 0x12b   : > { %v569_v47 = vpop.f32.mrf.mxu0 }
 0x12c   : > { %602 = vmax.xlane.f32.xlu1 %v4074_v43  ;;  %v4094_v51 = vadd.f32 %v569_v47, %v4088_v48 }
 0x12d   : > { %v3019_v53 = vpop.f32.mrf.mxu0 }
 0x12e   : > { %v4103_v54 = vadd.f32 %v3019_v53, %v4099_v52 }
 0x12f   : > { %v572_v5 = vpop.f32.mrf.mxu0 }
 0x130   : > { %612 = vmax.xlane.f32.xlu1 %v4083_v46  ;;  %889 = vrot.lane.b32.xlu0 %v3876_v11, %s3783_s28  ;;  %v4112_v14 = vadd.f32 %v572_v5, %v4108_v8 }
 0x134   : > { %608 = vmax.xlane.f32.xlu1 %v4094_v51 }
 0x138   : > { %614 = vmax.xlane.f32.xlu1 %v4103_v54 }
 0x13c   : > { %610 = vmax.xlane.f32.xlu1 %v4112_v14 }
 0x14d   : > { %887 = vrot.lane.b32.xlu1 %v3883_v13, %s3783_s28 }
 0x14f   : > { %604 = vmax.xlane.f32.xlu0 %v4121_v23 }
 0x151   : > { %867 = vrot.lane.b32.xlu1 %v3914_v29, %s3783_s28 }
 0x153   : > { %600 = vmax.xlane.f32.xlu0 %v4132_v31 }
 0x155   : > { %871 = vrot.lane.b32.xlu1 %v3926_v39, %s3783_s28 }
 0x157   : > { %606 = vmax.xlane.f32.xlu0 %v4143_v35 }
 0x159   : > { %875 = vrot.lane.b32.xlu1 %v3938_v49, %s3783_s28 }
 0x15d   : > { %879 = vrot.lane.b32.xlu1 %v3948_v55, %s3783_s28 }
 0x161   : > { %1174 = vrot.lane.b32.xlu1 %v3956_v57, %s3783_s28 }
 0x165   : > { %1166 = vrot.lane.b32.xlu1 %v3976_v61, %s3783_s28 }
 0x169   : > { %1162 = vrot.lane.b32.xlu1 %v3987_v63, %s3783_s28 }
 0x16d   : > { %885 = vrot.lane.b32.xlu0 %v3890_v15, %s3783_s28  ;;  %1343 = vrot.lane.b32.xlu1 %v3841_v1, %s3784_s20 }
 0x171   : > { %883 = vrot.lane.b32.xlu0 %v3897_v17, %s3783_s28 }
 0x175   : > { %881 = vrot.lane.b32.xlu0 %v3904_v19, %s3783_s28 }
 0x179   : > { %865 = vrot.lane.b32.xlu0 %v3867_v9, %s3783_s28 }
 0x17d   : > { %869 = vrot.lane.b32.xlu0 %v3916_v30, %s3783_s28 }
 0x181   : > { %873 = vrot.lane.b32.xlu0 %v3928_v40, %s3783_s28 }
 0x185   : > { %877 = vrot.lane.b32.xlu0 %v3940_v50, %s3783_s28 }
 0x189   : > { %1176 = vrot.lane.b32.xlu0 %v3953_v56, %s3783_s28 }
 0x18d   : > { %1172 = vrot.lane.b32.xlu0 %v3963_v58, %s3783_s28 }
 0x191   : > { %1170 = vrot.lane.b32.xlu0 %v3968_v59, %s3783_s28 }
 0x195   : > { %1168 = vrot.lane.b32.xlu0 %v3973_v60, %s3783_s28 }
 0x199   : > { %1164 = vrot.lane.b32.xlu0 %v3982_v62, %s3783_s28 }
 0x19d   : > { %v589_v42 = vpop.xlane.xlu1 %588  ;;  %1345 = vrot.lane.b32.xlu0 %v3838_v0, %s3784_s20 }
 0x19e   : > { %v618_v53 = vsub.f32 %v4007_v7, %v589_v42 }
 0x19f   : > { %v585_v45 = vpop.xlane.xlu0 %584 }
 0x1a0   : > { %v616_v47 = vsub.f32 %v4015_v12, %v585_v45  ;;  %v636_v60 = vmul.f32 1.442695, %v618_v53 }
 0x1a1   : > { %v591_v5 = vpop.xlane.xlu1 %590 }
 0x1a2   : > { %v632_v56 = vmul.f32 1.442695, %v616_v47  ;;  %v619_v58 = vsub.f32 %v4024_v18, %v591_v5  ;;  %v940_v5 = vsel %vm438_vm0, %v894_v36, 0 }
 0x1a3   : > { %v587_v50 = vpop.xlane.xlu0 %586 }
 0x1a4   : > { %v638_v59 = vmul.f32 1.442695, %v619_v58  ;;  %v617_v40 = vsub.f32 %v4033_v22, %v587_v50  ;;  %3487 = vpow2.f32 %v632_v56 }
 0x1a5   : > { %v597_v30 = vpop.xlane.xlu1 %596 }
 0x1a6   : > { %v634_v29 = vmul.f32 1.442695, %v617_v40  ;;  %3489 = vpow2.f32 %v638_v59  ;;  %v622_v42 = vsub.f32 %v4042_v25, %v597_v30 }
 0x1a8   : > { %3491 = vpow2.f32 %v634_v29  ;;  %v644_v56 = vmul.f32 1.442695, %v622_v42 }
 0x1a9   : > { %3493 = vpow2.f32 %v636_v60  ;;  %v593_v62 = vpop.xlane.xlu1 %592 }
 0x1aa   : > { %v620_v12 = vsub.f32 %v4047_v27, %v593_v62  ;;  %v943_v27 = vsel %vm438_vm0, %v3991_v2, 0 }
 0x1ac   : > { %v640_v18 = vmul.f32 1.442695, %v620_v12 }
 0x1ad   : > { %v599_v45 = vpop.xlane.xlu1 %598 }
 0x1ae   : > { %v623_v7 = vsub.f32 %v4055_v33, %v599_v45  ;;  %3495 = vpow2.f32 %v640_v18 }
 0x1b0   : > { %v646_v47 = vmul.f32 1.442695, %v623_v7 }
 0x1b1   : > { %v595_v58 = vpop.xlane.xlu1 %594  ;;  %v4190_v22 = vpop.eup %3487 }
 0x1b2   : > { %v621_v50 = vsub.f32 %v4064_v37, %v595_v58  ;;  %5334 = vst [vmem:[#allocation11_spill] sm:$0xff] %v4190_v22  ;;  %3497 = vpow2.f32 %v646_v47  ;;  %v890_v47 = vpop.permute.xlu0 %889 }
 0x1b3   : > { %v4192_v40 = vpop.eup %3489 }
 0x1b4   : > { %5335 = vst [vmem:[#allocation12_spill] sm:$0xff] %v4192_v40  ;;  %v642_v29 = vmul.f32 1.442695, %v621_v50 }
 0x1b5   : > { %v4194_v59 = vpop.eup %3491  ;;  %v603_v60 = vpop.xlane.xlu1 %602 }
 0x1b6   : > { %5336 = vst [vmem:[#allocation13_spill] sm:$0xff] %v4194_v59  ;;  %v4196_v62 = vpop.eup %3493  ;;  %3499 = vpow2.f32 %v642_v29  ;;  %v696_v30 = vpack.c.bf16 %v4194_v59, %v4190_v22 }
 0x1b7   : > { %5337 = vst [vmem:[#allocation14_spill] sm:$0xff] %v4196_v62  ;;  %3501 = vpow2.f32 %v644_v56  ;;  %v697_v25 = vpack.c.bf16 %v4192_v40, %v4196_v62  ;;  %v934_v56 = vsel %vm438_vm0, %v890_v47, 0 }
 0x1b8   : > { %3036 = vmatprep.mubr.bf16.mxu1 %v696_v30  ;;  %v625_v30 = vsub.f32 %v4074_v43, %v603_v60 }
 0x1b9   : > { %3037 = vmatmul.mubr.bf16.vlgmr.msra.gmra.mxu1 %v697_v25  ;;  %v613_v33 = vpop.xlane.xlu1 %612 }
 0x1ba   : > { %3053 = vmatpush3.bf16.xpose.msra.mxu1 %v943_v27 }
 0x1bb   : > { %3301 = vmatprep.subr.msk.bf16.mxu1 %vm438_vm0, %v894_v36  ;;  %v4205_v53 = vpop.eup %3495  ;;  %v937_v36 = vsel %vm438_vm0, %v892_v38, 0 }
 0x1bc   : > { %5338 = vst [vmem:[#allocation15_spill] sm:$0xff] %v4205_v53 }
 0x1bd   : > { %v609_v37 = vpop.xlane.xlu1 %608 }
 0x1bf   : > { %v4208_v12 = vpop.eup %3497 }
 0x1c0   : > { %5339 = vst [vmem:[#allocation16_spill] sm:$0xff] %v4208_v12 }
 0x1c1   : > { %v615_v18 = vpop.xlane.xlu1 %614 }
 0x1c2   : > { %3055 = vmatpush3.bf16.xpose.msra.mxu1 %v940_v5 }
 0x1c3   : > { %v4210_v45 = vpop.eup %3499  ;;  %3302 = vmatprep.subr.msk.bf16.mxu1 %vm438_vm0, %v892_v38  ;;  %v650_v38 = vmul.f32 1.442695, %v625_v30 }
 0x1c4   : > { %5340 = vst [vmem:[#allocation17_spill] sm:$0xff] %v4210_v45  ;;  %v4213_v7 = vpop.eup %3501  ;;  %v698_v2 = vpack.c.bf16 %v4210_v45, %v4205_v53 }
 0x1c5   : > { %5341 = vst [vmem:[#allocation18_spill] sm:$0xff] %v4213_v7  ;;  %v699_v42 = vpack.c.bf16 %v4208_v12, %v4213_v7  ;;  %v611_v58 = vpop.xlane.xlu1 %610  ;;  %3503 = vpow2.f32 %v650_v38 }
 0x1c6   : > { %3040 = vmatprep.mubr.bf16.mxu1 %v698_v2  ;;  %v629_v27 = vsub.f32 %v4112_v14, %v611_v58  ;;  %v630_v58 = vsub.f32 %v4083_v46, %v613_v33 }
 0x1c7   : > { %3041 = vmatmul.mubr.bf16.gmra.mxu1 %v699_v42 }
 0x1c9   : > { %v888_v50 = vpop.permute.xlu1 %887 }
 0x1ca   : > { %3057 = vmatpush3.bf16.xpose.msra.mxu1 %v937_v36  ;;  %v931_v29 = vsel %vm438_vm0, %v888_v50, 0  ;;  %v628_v36 = vsub.f32 %v4094_v51, %v609_v37 }
 0x1cb   : > { %3303 = vmatprep.subr.msk.bf16.mxu1 %vm438_vm0, %v890_v47  ;;  %v658_v47 = vmul.f32 1.442695, %v629_v27 }
 0x1cc   : > { %v656_v60 = vmul.f32 1.442695, %v628_v36 }
 0x1d2   : > { %3059 = vmatpush3.bf16.xpose.msra.mxu1 %v934_v56 }
 0x1d3   : > { %3304 = vmatprep.subr.msk.bf16.mxu1 %vm438_vm0, %v888_v50  ;;  %v631_v50 = vsub.f32 %v4103_v54, %v615_v18 }
 0x1d8   : > { %v605_v25 = vpop.xlane.xlu0 %604 }
 0x1d9   : > { %v626_v5 = vsub.f32 %v4121_v23, %v605_v25 }
 0x1da   : > { %3061 = vmatpush3.bf16.xpose.msra.mxu1 %v931_v29  ;;  %v660_v29 = vmul.f32 1.442695, %v630_v58 }
 0x1db   : > { %v652_v12 = vmul.f32 1.442695, %v626_v5 }
 0x1dc   : > { %v601_v2 = vpop.xlane.xlu0 %600 }
 0x1dd   : > { %v624_v42 = vsub.f32 %v4132_v31, %v601_v2  ;;  %v662_v31 = vmul.f32 1.442695, %v631_v50 }
 0x1df   : > { %v648_v56 = vmul.f32 1.442695, %v624_v42 }
 0x1e0   : > { %v607_v7 = vpop.xlane.xlu0 %606 }
 0x1e1   : > { %3505 = vpow2.f32 %v648_v56  ;;  %v627_v43 = vsub.f32 %v4143_v35, %v607_v7  ;;  %v868_v56 = vpop.permute.xlu1 %867 }
 0x1e2   : > { %3507 = vpow2.f32 %v658_v47 }
 0x1e3   : > { %v654_v14 = vmul.f32 1.442695, %v627_v43  ;;  %3509 = vpow2.f32 %v652_v12  ;;  %v4236_v12 = vpop.eup %3503 }
 0x1e4   : > { %v886_v23 = vpop.permute.xlu0 %885  ;;  %5342 = vst [vmem:[#allocation19_spill] sm:$0xff] %v4236_v12 }
 0x1e5   : > { %3511 = vpow2.f32 %v654_v14  ;;  %3305 = vmatprep.subr.msk.bf16.mxu1 %vm438_vm0, %v886_v23  ;;  %v928_v51 = vsel %vm438_vm0, %v886_v23, 0 }
 0x1e6   : > { %3513 = vpow2.f32 %v656_v60  ;;  %3063 = vmatpush3.bf16.xpose.msra.mxu1 %v928_v51  ;;  %v872_v60 = vpop.permute.xlu1 %871 }
 0x1e7   : > { %3515 = vpow2.f32 %v662_v31 }
 0x1e8   : > { %v884_v37 = vpop.permute.xlu0 %883  ;;  %3517 = vpow2.f32 %v660_v29 }
 0x1e9   : > { %3306 = vmatprep.subr.msk.bf16.mxu1 %vm438_vm0, %v884_v37  ;;  %v925_v54 = vsel %vm438_vm0, %v884_v37, 0 }
 0x1ea   : > { %v876_v14 = vpop.permute.xlu1 %875 }
 0x1ec   : > { %v882_v35 = vpop.permute.xlu0 %881 }
 0x1ed   : > { %v922_v38 = vsel %vm438_vm0, %v882_v35, 0 }
 0x1ee   : > { %v4238_v46 = vpop.eup %3505  ;;  %3065 = vmatpush3.bf16.xpose.msra.mxu1 %v925_v54  ;;  %v880_v58 = vpop.permute.xlu1 %879 }
 0x1ef   : > { %5343 = vst [vmem:[#allocation20_spill] sm:$0xff] %v4238_v46  ;;  %v700_v33 = vpack.c.bf16 %v4236_v12, %v4238_v46  ;;  %3307 = vmatprep.subr.msk.bf16.mxu1 %vm438_vm0, %v882_v35  ;;  %v4243_v7 = vpop.eup %3507 }
 0x1f0   : > { %5344 = vst [vmem:[#allocation21_spill] sm:$0xff] %v4243_v7  ;;  %v4245_v18 = vpop.eup %3509  ;;  %v866_v47 = vpop.permute.xlu0 %865 }
 0x1f1   : > { %5345 = vst [vmem:[#allocation22_spill] sm:$0xff] %v4245_v18  ;;  %3044 = vmatprep.mubr.bf16.mxu1 %v700_v33 }
 0x1f2   : > { %v4247_v30 = vpop.eup %3511  ;;  %v1175_v31 = vpop.permute.xlu1 %1174 }
 0x1f3   : > { %5346 = vst [vmem:[#allocation23_spill] sm:$0xff] %v4247_v30  ;;  %v4249_v25 = vpop.eup %3513  ;;  %v701_v27 = vpack.c.bf16 %v4247_v30, %v4245_v18  ;;  %v3762_v30 = vld [vmem:[%s3835_s26 + $0x10] ss:$8 sps:$4 sm:$0xff]  }
 0x1f4   : > { %5347 = vst [vmem:[#allocation24_spill] sm:$0xff] %v4249_v25  ;;  %v702_v5 = vpack.c.bf16 %v4243_v7, %v4249_v25  ;;  %v4256_v2 = vpop.eup %3515  ;;  %v870_v43 = vpop.permute.xlu0 %869 }
 0x1f5   : > { %3045 = vmatmul.mubr.bf16.gmra.mxu1 %v701_v27  ;;  %5348 = vst [vmem:[#allocation25_spill] sm:$0xff] %v4256_v2  ;;  %v4258_v42 = vpop.eup %3517 }
 0x1f6   : > { %3048 = vmatprep.mubr.bf16.mxu1 %v702_v5  ;;  %3067 = vmatpush3.bf16.xpose.msra.mxu1 %v922_v38  ;;  %5349 = vst [vmem:[#allocation26_spill] sm:$0xff] %v4258_v42  ;;  %v703_v36 = vpack.c.bf16 %v4256_v2, %v4258_v42  ;;  %v1167_v29 = vpop.permute.xlu1 %1166 }
 0x1f8   : > { %v874_v50 = vpop.permute.xlu0 %873 }
 0x1fa   : > { %v1163_v35 = vpop.permute.xlu1 %1162 }
 0x1fc   : > { %v878_v23 = vpop.permute.xlu0 %877 }
 0x1fd   : > { %3049 = vmatmul.mubr.bf16.gmra.mxu1 %v703_v36 }
 0x1fe   : > { %3068 = vmatprep.mubr.msk.bf16.mxu1 %vm438_vm0, %v866_v47 }
 0x200   : > { %v1177_v51 = vpop.permute.xlu0 %1176 }
 0x201   : > { %3084 = vmatprep.subr.bf16.mxu0 %v1177_v51 }
 0x202   : > { %3085 = vmatpush3.bf16.msra.mxu0 %v1177_v51 }
 0x203   : > { %3086 = vmatprep.subr.bf16.mxu0 %v1175_v31 }
 0x204   : > { %v1173_v37 = vpop.permute.xlu0 %1172 }
 0x205   : > { %3069 = vmatmul.mubr.msk.bf16.vlgmr.msra.gmra.mxu1 %vm438_vm0, %v868_v56 }
 0x206   : > { %3072 = vmatprep.mubr.msk.bf16.mxu1 %vm438_vm0, %v870_v43  ;;  %3087 = vmatpush3.bf16.msra.mxu0 %v1175_v31 }
 0x207   : > { %3088 = vmatprep.subr.bf16.mxu0 %v1173_v37 }
 0x208   : > { %v1171_v1 = vpop.permute.xlu0 %1170 }
 0x20a   : > { %3089 = vmatpush3.bf16.msra.mxu0 %v1173_v37 }
 0x20b   : > { %3090 = vmatprep.subr.bf16.mxu0 %v1171_v1 }
 0x20c   : > { %v1169_v0 = vpop.permute.xlu0 %1168 }
 0x20d   : > { %3073 = vmatmul.mubr.msk.bf16.gmra.mxu1 %vm438_vm0, %v872_v60 }
 0x20e   : > { %3076 = vmatprep.mubr.msk.bf16.mxu1 %vm438_vm0, %v874_v50  ;;  %3091 = vmatpush3.bf16.msra.mxu0 %v1171_v1 }
 0x20f   : > { %3092 = vmatprep.subr.bf16.mxu0 %v1169_v0 }
 0x210   : > { %v1165_v54 = vpop.permute.xlu0 %1164 }
 0x212   : > { %3093 = vmatpush3.bf16.msra.mxu0 %v1169_v0 }
 0x213   : > { %3094 = vmatprep.subr.bf16.mxu0 %v1167_v29 }
 0x214   : > { %v4276_v27 = vpop.permute.xlu0 %1345 }
 0x215   : > { %3077 = vmatmul.mubr.msk.bf16.gmra.mxu1 %vm438_vm0, %v876_v14 }
 0x216   : > { %3080 = vmatprep.mubr.msk.bf16.mxu1 %vm438_vm0, %v878_v23  ;;  %3095 = vmatpush3.bf16.msra.mxu0 %v1167_v29 }
 0x217   : > { %3096 = vmatprep.subr.bf16.mxu0 %v1165_v54 }
 0x21a   : > { %3097 = vmatpush3.bf16.msra.mxu0 %v1165_v54 }
 0x21b   : > { %3098 = vmatprep.subr.bf16.mxu0 %v1163_v35 }
 0x21d   : > { %3081 = vmatmul.mubr.msk.bf16.gmra.mxu1 %vm438_vm0, %v880_v58 }
 0x21e   : > { %3099 = vmatpush3.bf16.msra.mxu0 %v1163_v35 }
 0x21f   : > { %3308 = vmatprep.subr.msk.bf16.mxu0 %vm438_vm0, %v4276_v27 }
 0x279   : > { %v4274_v33 = vpop.f32.mrf.mxu1 }
 0x27a   : > { %5350 = vst [vmem:[#allocation27_spill] sm:$0xff] %v4274_v33 }
 0x27b   : > { %v4278_v38 = vpop.f32.mrf.mxu1 }
 0x27c   : > { %5351 = vst [vmem:[#allocation28_spill] sm:$0xff] %v4278_v38 }
 0x27d   : > { %v4282_v5 = vpop.f32.mrf.mxu1 }
 0x27e   : > { %5352 = vst [vmem:[#allocation29_spill] sm:$0xff] %v4282_v5  ;;  %v4561_v5 = vld [vmem:[%s5291_s2] sm:$0xff] }
 0x27f   : > { %v4284_v36 = vpop.f32.mrf.mxu1 }
 0x280   : > { %5353 = vst [vmem:[#allocation30_spill] sm:$0xff] %v4284_v36 }
 0x287   : > { %v4286_v47 = vpop.f32.mrf.mxu1 }
 0x288   : > { %5354 = vst [vmem:[#allocation31_spill] sm:$0xff] %v4286_v47 }
 0x289   : > { %v4288_v56 = vpop.f32.mrf.mxu1 }
 0x28a   : > { %5355 = vst [vmem:[#allocation32_spill] sm:$0xff] %v4288_v56 }
 0x28b   : > { %v4290_v43 = vpop.f32.mrf.mxu1 }
 0x28c   : > { %5356 = vst [vmem:[#allocation33_spill] sm:$0xff] %v4290_v43 }
 0x28d   : > { %v4292_v60 = vpop.f32.mrf.mxu1 }
 0x28e   : > { %5357 = vst [vmem:[#allocation34_spill] sm:$0xff] %v4292_v60 }
 0x2b5   : > { %v4294_v50 = vpop.f32.mrf.mxu1 }
 0x2b6   : > { %5358 = vst [vmem:[#allocation35_spill] sm:$0xff] %v4294_v50 }
 0x2b7   : > { %v4296_v14 = vpop.f32.mrf.mxu1 }
 0x2b8   : > { %5359 = vst [vmem:[#allocation36_spill] sm:$0xff] %v4296_v14  ;;  %v4553_v14 = vld [vmem:[%s5291_s2 + $0x10] sm:$0xff] }
 0x2b9   : > { %v4298_v23 = vpop.f32.mrf.mxu1 }
 0x2ba   : > { %5360 = vst [vmem:[#allocation37_spill] sm:$0xff] %v4298_v23 }
 0x2bb   : > { %v4300_v58 = vpop.f32.mrf.mxu1 }
 0x2bc   : > { %5361 = vst [vmem:[#allocation38_spill] sm:$0xff] %v4300_v58 }
 0x2bd   : > { %v4302_v51 = vpop.f32.mrf.mxu1 }
 0x2be   : > { %5362 = vst [vmem:[#allocation39_spill] sm:$0xff] %v4302_v51 }
 0x2bf   : > { %v4304_v31 = vpop.f32.mrf.mxu1 }
 0x2c0   : > { %5363 = vst [vmem:[#allocation40_spill] sm:$0xff] %v4304_v31 }
 0x2c1   : > { %v4306_v37 = vpop.f32.mrf.mxu1 }
 0x2c2   : > { %5364 = vst [vmem:[#allocation41_spill] sm:$0xff] %v4306_v37 }
 0x2c3   : > { %v4308_v1 = vpop.f32.mrf.mxu1 }
 0x2c4   : > { %5365 = vst [vmem:[#allocation42_spill] sm:$0xff] %v4308_v1 }
 0x2c5   : > { %v3070_v0 = vpop.f32.mrf.mxu1 }
 0x2c6   : > { %v4311_v29 = vadd.f32 %v3070_v0, %v3999_v4 }
 0x2c7   : > { %v979_v54 = vpop.f32.mrf.mxu1 }
 0x2c8   : > { %v4314_v35 = vadd.f32 %v979_v54, %v4004_v6  ;;  %1046 = vmax.xlane.f32.xlu1 %v4311_v29 }
 0x2c9   : > { %v3071_v43 = vpop.f32.mrf.mxu1 }
 0x2ca   : > { %v4318_v47 = vadd.f32 %v3071_v43, %v4012_v10  ;;  %1042 = vmax.xlane.f32.xlu0 %v4314_v35 }
 0x2cb   : > { %v982_v51 = vpop.f32.mrf.mxu1 }
 0x2cc   : > { %1048 = vmax.xlane.f32.xlu1 %v4318_v47  ;;  %v4323_v37 = vadd.f32 %v982_v51, %v4021_v16 }
 0x2cd   : > { %v3074_v4 = vpop.f32.mrf.mxu1 }
 0x2ce   : > { %v4333_v56 = vadd.f32 %v3074_v4, %v4030_v21 }
 0x2cf   : > { %v995_v0 = vpop.f32.mrf.mxu1 }
 0x2d0   : > { %1044 = vmax.xlane.f32.xlu1 %v4323_v37 }
 0x2d1   : > { %v3075_v6 = vpop.f32.mrf.mxu1 }
 0x2d3   : > { %v998_v10 = vpop.f32.mrf.mxu1 }
 0x2d4   : > { %v4348_v50 = vadd.f32 %v998_v10, %v4061_v34 }
 0x2d5   : > { %v3078_v43 = vpop.f32.mrf.mxu1 }
 0x2d6   : > { %v4352_v21 = vadd.f32 %v3078_v43, %v4118_v20 }
 0x2d7   : > { %v1011_v54 = vpop.f32.mrf.mxu1 }
 0x2d9   : > { %v3079_v1 = vpop.f32.mrf.mxu1 }
 0x2db   : > { %v1014_v16 = vpop.f32.mrf.mxu1 }
 0x2dc   : > { %v4365_v34 = vadd.f32 %v1014_v16, %v4070_v41  ;;  %v5366_v41 = vld [vmem:[#allocation2_spill] sm:$0xff] }
 0x2dd   : > { %v3082_v51 = vpop.f32.mrf.mxu1 }
 0x2df   : > { %v1027_v31 = vpop.f32.mrf.mxu1 }
 0x2e0   : > { %1339 = vrot.lane.b32.xlu0 %v3876_v11, %s3784_s20  ;;  %v4336_v11 = vadd.f32 %v995_v0, %v4039_v24  ;;  %v4357_v24 = vadd.f32 %v1011_v54, %v4128_v26 }
 0x2e1   : > { %1341 = vrot.lane.b32.xlu1 %v3854_v3, %s3784_s20  ;;  %v3083_v60 = vpop.f32.mrf.mxu1  ;;  %v4340_v3 = vadd.f32 %v3075_v6, %v4052_v28  ;;  %v4361_v28 = vadd.f32 %v3079_v1, %v4139_v32  ;;  %v5370_v6 = vld [vmem:[#allocation6_spill] sm:$0xff] }
 0x2e3   : > { %v1030_v23 = vpop.f32.mrf.mxu1 }
 0x2e4   : > { %1337 = vrot.lane.b32.xlu0 %v3883_v13, %s3784_s20  ;;  %v4344_v13 = vadd.f32 %v1030_v23, %v4108_v8  ;;  %v4370_v8 = vadd.f32 %v3082_v51, %v4079_v44  ;;  %v4377_v23 = vadd.f32 %v1027_v31, %v4088_v48  ;;  %v1344_v44 = vpop.permute.xlu1 %1343  ;;  %v5368_v48 = vld [vmem:[#allocation4_spill] sm:$0xff]  ;;  %v5374_v51 = vld [vmem:[#allocation10_spill] sm:$0xff] }
 0x303   : > { %1054 = vmax.xlane.f32.xlu0 %v4333_v56 }
 0x305   : > { %1050 = vmax.xlane.f32.xlu1 %v4336_v11 }
 0x307   : > { %1056 = vmax.xlane.f32.xlu0 %v4340_v3 }
 0x309   : > { %1068 = vmax.xlane.f32.xlu1 %v4344_v13 }
 0x30b   : > { %1052 = vmax.xlane.f32.xlu0 %v4348_v50 }
 0x30f   : > { %1062 = vmax.xlane.f32.xlu0 %v4352_v21 }
 0x313   : > { %1058 = vmax.xlane.f32.xlu0 %v4357_v24 }
 0x317   : > { %1064 = vmax.xlane.f32.xlu0 %v4361_v28 }
 0x31a   : > { %1335 = vrot.lane.b32.xlu1 %v3890_v15, %s3784_s20  ;;  %v4383_v15 = vadd.f32 %v3083_v60, %v4099_v52 }
 0x31b   : > { %1060 = vmax.xlane.f32.xlu0 %v4365_v34 }
 0x31e   : > { %1321 = vrot.lane.b32.xlu1 %v3926_v39, %s3784_s20 }
 0x31f   : > { %1070 = vmax.xlane.f32.xlu0 %v4370_v8 }
 0x322   : > { %1325 = vrot.lane.b32.xlu1 %v3938_v49, %s3784_s20 }
 0x323   : > { %1066 = vmax.xlane.f32.xlu0 %v4377_v23 }
 0x326   : > { %1329 = vrot.lane.b32.xlu1 %v3948_v55, %s3784_s20 }
 0x327   : > { %1072 = vmax.xlane.f32.xlu0 %v4383_v15 }
 0x32a   : > { %1624 = vrot.lane.b32.xlu1 %v3956_v57, %s3784_s20  ;;  %v5367_v57 = vld [vmem:[#allocation3_spill] sm:$0xff] }
 0x32e   : > { %1616 = vrot.lane.b32.xlu1 %v3976_v61, %s3784_s20 }
 0x332   : > { %1612 = vrot.lane.b32.xlu1 %v3987_v63, %s3784_s20 }
 0x33d   : > { %1333 = vrot.lane.b32.xlu0 %v3897_v17, %s3784_s20 }
 0x341   : > { %1331 = vrot.lane.b32.xlu0 %v3904_v19, %s3784_s20  ;;  %v5369_v19 = vld [vmem:[#allocation5_spill] sm:$0xff] }
 0x345   : > { %1315 = vrot.lane.b32.xlu0 %v3867_v9, %s3784_s20 }
 0x349   : > { %1317 = vrot.lane.b32.xlu0 %v5366_v41, %s3784_s20 }
 0x34d   : > { %1319 = vrot.lane.b32.xlu0 %v5367_v57, %s3784_s20 }
 0x351   : > { %v1047_v61 = vpop.xlane.xlu1 %1046  ;;  %1323 = vrot.lane.b32.xlu0 %v5368_v48, %s3784_s20 }
 0x352   : > { %v1076_v31 = vsub.f32 %v4311_v29, %v1047_v61  ;;  %v5373_v29 = vld [vmem:[#allocation9_spill] sm:$0xff] }
 0x353   : > { %v1043_v63 = vpop.xlane.xlu0 %1042 }
 0x354   : > { %v1074_v17 = vsub.f32 %v4314_v35, %v1043_v63  ;;  %v1094_v43 = vmul.f32 1.442695, %v1076_v31  ;;  %v5371_v35 = vld [vmem:[#allocation7_spill] sm:$0xff]  ;;  %v1390_v31 = vsel %vm438_vm0, %v1344_v44, 0 }
 0x355   : > { %v1049_v52 = vpop.xlane.xlu1 %1048  ;;  %1327 = vrot.lane.b32.xlu0 %v5369_v19, %s3784_s20 }
 0x356   : > { %v1077_v60 = vsub.f32 %v4318_v47, %v1049_v52  ;;  %v1090_v1 = vmul.f32 1.442695, %v1074_v17  ;;  %v5372_v47 = vld [vmem:[#allocation8_spill] sm:$0xff] }
 0x358   : > { %v1096_v4 = vmul.f32 1.442695, %v1077_v60  ;;  %3519 = vpow2.f32 %v1090_v1  ;;  %v1393_v60 = vsel %vm438_vm0, %v4276_v27, 0 }
 0x359   : > { %v1045_v0 = vpop.xlane.xlu1 %1044  ;;  %1626 = vrot.lane.b32.xlu0 %v5370_v6, %s3784_s20 }
 0x35a   : > { %v1075_v10 = vsub.f32 %v4323_v37, %v1045_v0  ;;  %3521 = vpow2.f32 %v1096_v4  ;;  %v1340_v0 = vpop.permute.xlu0 %1339 }
 0x35b   : > { %v1384_v6 = vsel %vm438_vm0, %v1340_v0, 0 }
 0x35c   : > { %v1092_v54 = vmul.f32 1.442695, %v1075_v10 }
 0x35d   : > { %1622 = vrot.lane.b32.xlu0 %v5371_v35, %s3784_s20  ;;  %v1342_v1 = vpop.permute.xlu1 %1341 }
 0x35e   : > { %3523 = vpow2.f32 %v1092_v54  ;;  %v1387_v4 = vsel %vm438_vm0, %v1342_v1, 0  ;;  %v1338_v10 = vpop.permute.xlu0 %1337 }
 0x35f   : > { %3525 = vpow2.f32 %v1094_v43  ;;  %v1381_v54 = vsel %vm438_vm0, %v1338_v10, 0 }
 0x361   : > { %1620 = vrot.lane.b32.xlu0 %v5372_v47, %s3784_s20 }
 0x365   : > { %1618 = vrot.lane.b32.xlu0 %v5373_v29, %s3784_s20  ;;  %v4420_v16 = vpop.eup %3519 }
 0x367   : > { %v4424_v37 = vpop.eup %3521 }
 0x369   : > { %1614 = vrot.lane.b32.xlu0 %v5374_v51, %s3784_s20 }
 0x36b   : > { %v4426_v61 = vpop.eup %3523 }
 0x36c   : > { %v4428_v63 = vpop.eup %3525  ;;  %v1154_v17 = vpack.c.bf16 %v4426_v61, %v4420_v16 }
 0x36d   : > { %v1155_v52 = vpack.c.bf16 %v4424_v37, %v4428_v63 }
 0x36e   : > { %3100 = vmatprep.mubr.bf16.mxu0 %v1154_v17 }
 0x36f   : > { %3101 = vmatmul.mubr.bf16.vlgmr.msra.gmra.mxu0 %v1155_v52 }
 0x370   : > { %3117 = vmatpush3.bf16.xpose.msra.mxu0 %v1393_v60 }
 0x371   : > { %3309 = vmatprep.subr.msk.bf16.mxu0 %vm438_vm0, %v1344_v44 }
 0x378   : > { %3119 = vmatpush3.bf16.xpose.msra.mxu0 %v1390_v31 }
 0x379   : > { %3310 = vmatprep.subr.msk.bf16.mxu0 %vm438_vm0, %v1342_v1 }
 0x380   : > { %3121 = vmatpush3.bf16.xpose.msra.mxu0 %v1387_v4 }
 0x381   : > { %3311 = vmatprep.subr.msk.bf16.mxu0 %vm438_vm0, %v1340_v0 }
 0x388   : > { %3123 = vmatpush3.bf16.xpose.msra.mxu0 %v1384_v6 }
 0x389   : > { %3312 = vmatprep.subr.msk.bf16.mxu0 %vm438_vm0, %v1338_v10 }
 0x38c   : > { %v1055_v27 = vpop.xlane.xlu0 %1054 }
 0x38d   : > { %v1080_v29 = vsub.f32 %v4333_v56, %v1055_v27 }
 0x38e   : > { %v1051_v43 = vpop.xlane.xlu1 %1050 }
 0x38f   : > { %v1078_v44 = vsub.f32 %v4336_v11, %v1051_v43  ;;  %v1102_v1 = vmul.f32 1.442695, %v1080_v29 }
 0x390   : > { %3125 = vmatpush3.bf16.xpose.msra.mxu0 %v1381_v54  ;;  %v1057_v35 = vpop.xlane.xlu0 %1056 }
 0x391   : > { %v1081_v47 = vsub.f32 %v4340_v3, %v1057_v35  ;;  %v1098_v17 = vmul.f32 1.442695, %v1078_v44 }
 0x392   : > { %v1069_v51 = vpop.xlane.xlu1 %1068 }
 0x393   : > { %v1104_v52 = vmul.f32 1.442695, %v1081_v47  ;;  %3527 = vpow2.f32 %v1098_v17 }
 0x394   : > { %v1053_v60 = vpop.xlane.xlu0 %1052 }
 0x395   : > { %v1079_v31 = vsub.f32 %v4348_v50, %v1053_v60  ;;  %3529 = vpow2.f32 %v1104_v52 }
 0x396   : > { %v1336_v4 = vpop.permute.xlu1 %1335 }
 0x397   : > { %v1100_v0 = vmul.f32 1.442695, %v1079_v31  ;;  %3313 = vmatprep.subr.msk.bf16.mxu0 %vm438_vm0, %v1336_v4  ;;  %v1378_v11 = vsel %vm438_vm0, %v1336_v4, 0 }
 0x398   : > { %v1063_v6 = vpop.xlane.xlu0 %1062  ;;  %3127 = vmatpush3.bf16.xpose.msra.mxu0 %v1378_v11 }
 0x399   : > { %3531 = vpow2.f32 %v1100_v0  ;;  %v1084_v50 = vsub.f32 %v4352_v21, %v1063_v6  ;;  %v1087_v21 = vsub.f32 %v4344_v13, %v1069_v51 }
 0x39a   : > { %3533 = vpow2.f32 %v1102_v1 }
 0x39b   : > { %v1110_v52 = vmul.f32 1.442695, %v1084_v50 }
 0x39c   : > { %v1059_v56 = vpop.xlane.xlu0 %1058 }
 0x39d   : > { %v1082_v3 = vsub.f32 %v4357_v24, %v1059_v56 }
 0x39f   : > { %v1106_v43 = vmul.f32 1.442695, %v1082_v3 }
 0x3a0   : > { %v1065_v10 = vpop.xlane.xlu0 %1064  ;;  %v4453_v44 = vpop.eup %3527 }
 0x3a1   : > { %v1085_v27 = vsub.f32 %v4361_v28, %v1065_v10  ;;  %3535 = vpow2.f32 %v1106_v43 }
 0x3a2   : > { %v4455_v47 = vpop.eup %3529 }
 0x3a3   : > { %v1112_v54 = vmul.f32 1.442695, %v1085_v27 }
 0x3a4   : > { %v1061_v35 = vpop.xlane.xlu0 %1060 }
 0x3a5   : > { %v1083_v29 = vsub.f32 %v4365_v34, %v1061_v35  ;;  %3537 = vpow2.f32 %v1112_v54  ;;  %v1116_v34 = vmul.f32 1.442695, %v1087_v21 }
 0x3a6   : > { %v4458_v17 = vpop.eup %3531 }
 0x3a7   : > { %v4460_v60 = vpop.eup %3533  ;;  %v1108_v24 = vmul.f32 1.442695, %v1083_v29  ;;  %v1156_v28 = vpack.c.bf16 %v4458_v17, %v4453_v44 }
 0x3a8   : > { %v1071_v31 = vpop.xlane.xlu0 %1070  ;;  %v1157_v1 = vpack.c.bf16 %v4455_v47, %v4460_v60 }
 0x3a9   : > { %3539 = vpow2.f32 %v1108_v24  ;;  %3104 = vmatprep.mubr.bf16.mxu0 %v1156_v28  ;;  %v1088_v4 = vsub.f32 %v4370_v8, %v1071_v31 }
 0x3aa   : > { %3541 = vpow2.f32 %v1110_v52  ;;  %3105 = vmatmul.mubr.bf16.gmra.mxu0 %v1157_v1 }
 0x3ab   : > { %3543 = vpow2.f32 %v1116_v34  ;;  %v1118_v56 = vmul.f32 1.442695, %v1088_v4 }
 0x3ac   : > { %v1067_v0 = vpop.xlane.xlu0 %1066 }
 0x3ad   : > { %v1086_v11 = vsub.f32 %v4377_v23, %v1067_v0 }
 0x3ae   : > { %v4470_v10 = vpop.eup %3535 }
 0x3af   : > { %v1114_v6 = vmul.f32 1.442695, %v1086_v11  ;;  %v1322_v11 = vpop.permute.xlu1 %1321 }
 0x3b0   : > { %v1073_v3 = vpop.xlane.xlu0 %1072 }
 0x3b1   : > { %3545 = vpow2.f32 %v1114_v6  ;;  %v1089_v13 = vsub.f32 %v4383_v15, %v1073_v3 }
 0x3b2   : > { %3547 = vpow2.f32 %v1118_v56  ;;  %v4472_v50 = vpop.eup %3537 }
 0x3b3   : > { %v1120_v51 = vmul.f32 1.442695, %v1089_v13  ;;  %v1326_v56 = vpop.permute.xlu1 %1325 }
 0x3b4   : > { %v1334_v27 = vpop.permute.xlu0 %1333 }
 0x3b5   : > { %3549 = vpow2.f32 %v1120_v51  ;;  %3314 = vmatprep.subr.msk.bf16.mxu0 %vm438_vm0, %v1334_v27  ;;  %v1375_v8 = vsel %vm438_vm0, %v1334_v27, 0  ;;  %v3743_v51 = vld [vmem:[%s3835_s26 + $0x70] ss:$8 sps:$4 sm:$0xff]  }
 0x3b6   : > { %v4476_v23 = vpop.eup %3539  ;;  %3129 = vmatpush3.bf16.xpose.msra.mxu0 %v1375_v8  ;;  %1795 = vrot.lane.b32.xlu0 %v3743_v51, %s3785_s22  ;;  %v3744_v27 = vld [vmem:[%s3835_s26 + $0x50] ss:$8 sps:$4 sm:$0xff]   ;;  %v3745_v8 = vld [vmem:[%s3835_s26 + $0x60] ss:$8 sps:$4 sm:$0xff]  }
 0x3b7   : > { %v4478_v43 = vpop.eup %3541  ;;  %v1158_v15 = vpack.c.bf16 %v4476_v23, %v4470_v10  ;;  %v1330_v13 = vpop.permute.xlu1 %1329  ;;  %1791 = vrot.lane.b32.xlu1 %v3744_v27, %s3785_s22 }
 0x3b8   : > { %v1159_v54 = vpack.c.bf16 %v4472_v50, %v4478_v43  ;;  %v1332_v35 = vpop.permute.xlu0 %1331  ;;  %v4486_v52 = vpop.eup %3543 }
 0x3b9   : > { %3108 = vmatprep.mubr.bf16.mxu0 %v1158_v15  ;;  %3315 = vmatprep.subr.msk.bf16.mxu0 %vm438_vm0, %v1332_v35  ;;  %v1372_v29 = vsel %vm438_vm0, %v1332_v35, 0  ;;  %v3746_v15 = vld [vmem:[%s3835_s26 + $0x40] ss:$8 sps:$4 sm:$0xff]  }
 0x3ba   : > { %3109 = vmatmul.mubr.bf16.gmra.mxu0 %v1159_v54  ;;  %1793 = vrot.lane.b32.xlu0 %v3745_v8, %s3785_s22 }
 0x3bb   : > { %v1625_v35 = vpop.permute.xlu1 %1624 }
 0x3bc   : > { %v1316_v31 = vpop.permute.xlu0 %1315 }
 0x3be   : > { %v4488_v24 = vpop.eup %3545  ;;  %3131 = vmatpush3.bf16.xpose.msra.mxu0 %v1372_v29  ;;  %1789 = vrot.lane.b32.xlu0 %v3746_v15, %s3785_s22 }
 0x3bf   : > { %v1160_v28 = vpack.c.bf16 %v4486_v52, %v4488_v24  ;;  %v4492_v21 = vpop.eup %3547 }
 0x3c0   : > { %v1318_v4 = vpop.permute.xlu0 %1317 }
 0x3c1   : > { %3112 = vmatprep.mubr.bf16.mxu0 %v1160_v28 }
 0x3c2   : > { %v4494_v1 = vpop.eup %3549 }
 0x3c3   : > { %v1161_v34 = vpack.c.bf16 %v4494_v1, %v4492_v21 }
 0x3c4   : > { %v1320_v0 = vpop.permute.xlu0 %1319 }
 0x3c5   : > { %3113 = vmatmul.mubr.bf16.gmra.mxu0 %v1161_v34  ;;  %v1617_v34 = vpop.permute.xlu1 %1616 }
 0x3c6   : > { %3132 = vmatprep.mubr.msk.bf16.mxu0 %vm438_vm0, %v1316_v31 }
 0x3c8   : > { %v1324_v6 = vpop.permute.xlu0 %1323 }
 0x3cc   : > { %v1328_v3 = vpop.permute.xlu0 %1327 }
 0x3cd   : > { %3133 = vmatmul.mubr.msk.bf16.vlgmr.msra.gmra.mxu0 %vm438_vm0, %v1318_v4 }
 0x3ce   : > { %3136 = vmatprep.mubr.msk.bf16.mxu0 %vm438_vm0, %v1320_v0  ;;  %v1613_v0 = vpop.permute.xlu1 %1612 }
 0x3d0   : > { %v1627_v54 = vpop.permute.xlu0 %1626 }
 0x3d1   : > { %3148 = vmatprep.subr.bf16.mxu1 %v1627_v54 }
 0x3d2   : > { %3149 = vmatpush3.bf16.msra.mxu1 %v1627_v54 }
 0x3d3   : > { %3150 = vmatprep.subr.bf16.mxu1 %v1625_v35 }
 0x3d4   : > { %v1623_v29 = vpop.permute.xlu0 %1622 }
 0x3d5   : > { %3137 = vmatmul.mubr.msk.bf16.gmra.mxu0 %vm438_vm0, %v1322_v11 }
 0x3d6   : > { %3140 = vmatprep.mubr.msk.bf16.mxu0 %vm438_vm0, %v1324_v6  ;;  %3151 = vmatpush3.bf16.msra.mxu1 %v1625_v35 }
 0x3d7   : > { %3152 = vmatprep.subr.bf16.mxu1 %v1623_v29 }
 0x3d8   : > { %v1621_v28 = vpop.permute.xlu0 %1620 }
 0x3da   : > { %3153 = vmatpush3.bf16.msra.mxu1 %v1623_v29 }
 0x3db   : > { %3154 = vmatprep.subr.bf16.mxu1 %v1621_v28 }
 0x3dc   : > { %v1619_v31 = vpop.permute.xlu0 %1618 }
 0x3dd   : > { %3141 = vmatmul.mubr.msk.bf16.gmra.mxu0 %vm438_vm0, %v1326_v56 }
 0x3de   : > { %3144 = vmatprep.mubr.msk.bf16.mxu0 %vm438_vm0, %v1328_v3  ;;  %3155 = vmatpush3.bf16.msra.mxu1 %v1621_v28 }
 0x3df   : > { %3156 = vmatprep.subr.bf16.mxu1 %v1619_v31 }
 0x3e0   : > { %v1615_v4 = vpop.permute.xlu0 %1614 }
 0x3e2   : > { %3157 = vmatpush3.bf16.msra.mxu1 %v1619_v31 }
 0x3e3   : > { %3158 = vmatprep.subr.bf16.mxu1 %v1617_v34 }
 0x3e5   : > { %3145 = vmatmul.mubr.msk.bf16.gmra.mxu0 %vm438_vm0, %v1330_v13 }
 0x3e6   : > { %3159 = vmatpush3.bf16.msra.mxu1 %v1617_v34 }
 0x3e7   : > { %3160 = vmatprep.subr.bf16.mxu1 %v1615_v4 }
 0x3ea   : > { %3161 = vmatpush3.bf16.msra.mxu1 %v1615_v4 }
 0x3eb   : > { %3162 = vmatprep.subr.bf16.mxu1 %v1613_v0 }
 0x3ee   : > { %3163 = vmatpush3.bf16.msra.mxu1 %v1613_v0 }
 0x428   : > { %v4518_v56 = vpop.permute.xlu0 %1795 }
 0x429   : > { %3316 = vmatprep.subr.msk.bf16.mxu1 %vm438_vm0, %v4518_v56 }
 0x42f   : > { %v4514_v11 = vpop.f32.mrf.mxu0 }
 0x430   : > { %5375 = vst [vmem:[#allocation2_spill] sm:$0xff] %v4514_v11  ;;  %v4615_v11 = vld [vmem:[%s5291_s2 + $0x38] sm:$0xff] }
 0x431   : > { %v4516_v6 = vpop.f32.mrf.mxu0 }
 0x432   : > { %5376 = vst [vmem:[#allocation3_spill] sm:$0xff] %v4516_v6 }
 0x433   : > { %v4520_v3 = vpop.f32.mrf.mxu0 }
 0x434   : > { %5377 = vst [vmem:[#allocation4_spill] sm:$0xff] %v4520_v3 }
 0x435   : > { %v4524_v13 = vpop.f32.mrf.mxu0 }
 0x436   : > { %5378 = vst [vmem:[#allocation5_spill] sm:$0xff] %v4524_v13 }
 0x46a   : > { %v4526_v51 = vpop.f32.mrf.mxu0 }
 0x46b   : > { %5379 = vst [vmem:[#allocation6_spill] sm:$0xff] %v4526_v51 }
 0x46c   : > { %v4528_v27 = vpop.f32.mrf.mxu0 }
 0x46d   : > { %5380 = vst [vmem:[#allocation7_spill] sm:$0xff] %v4528_v27 }
 0x46e   : > { %v4530_v8 = vpop.f32.mrf.mxu0 }
 0x46f   : > { %5381 = vst [vmem:[#allocation8_spill] sm:$0xff] %v4530_v8 }
 0x470   : > { %v4532_v15 = vpop.f32.mrf.mxu0 }
 0x471   : > { %5382 = vst [vmem:[#allocation9_spill] sm:$0xff] %v4532_v15 }
 0x47a   : > { %v4534_v54 = vpop.f32.mrf.mxu0 }
 0x47b   : > { %5383 = vst [vmem:[#allocation10_spill] sm:$0xff] %v4534_v54 }
 0x47c   : > { %v4536_v35 = vpop.f32.mrf.mxu0 }
 0x47d   : > { %5384 = vst [vmem:[#allocation43_spill] sm:$0xff] %v4536_v35 }
 0x47e   : > { %v4538_v29 = vpop.f32.mrf.mxu0 }
 0x47f   : > { %5385 = vst [vmem:[#allocation44_spill] sm:$0xff] %v4538_v29  ;;  %v4598_v29 = vld [vmem:[%s5291_s2 + $0x20] sm:$0xff] }
 0x480   : > { %v4540_v28 = vpop.f32.mrf.mxu0 }
 0x481   : > { %5386 = vst [vmem:[#allocation45_spill] sm:$0xff] %v4540_v28 }
 0x485   : > { %v4542_v31 = vpop.f32.mrf.mxu0 }
 0x486   : > { %5387 = vst [vmem:[#allocation46_spill] sm:$0xff] %v4542_v31  ;;  %v4570_v31 = vld [vmem:[%s5291_s2 + $0x18] sm:$0xff] }
 0x487   : > { %v4544_v34 = vpop.f32.mrf.mxu0 }
 0x488   : > { %5388 = vst [vmem:[#allocation47_spill] sm:$0xff] %v4544_v34  ;;  %v4588_v34 = vld [vmem:[%s5291_s2 + $0x30] sm:$0xff] }
 0x489   : > { %v4546_v4 = vpop.f32.mrf.mxu0 }
 0x48a   : > { %5389 = vst [vmem:[#allocation48_spill] sm:$0xff] %v4546_v4 }
 0x48b   : > { %v4548_v0 = vpop.f32.mrf.mxu0 }
 0x48c   : > { %5390 = vst [vmem:[#allocation49_spill] sm:$0xff] %v4548_v0 }
 0x48d   : > { %v3134_v58 = vpop.f32.mrf.mxu0 }
 0x48e   : > { %v4556_v36 = vadd.f32 %v4553_v14, %v3134_v58 }
 0x48f   : > { %v1429_v38 = vpop.f32.mrf.mxu0 }
 0x490   : > { %v4564_v33 = vadd.f32 %v4561_v5, %v1429_v38  ;;  %1496 = vmax.xlane.f32.xlu1 %v4556_v36  ;;  %v4580_v38 = vld [vmem:[%s5291_s2 + $0x8] sm:$0xff] }
 0x491   : > { %v3135_v4 = vpop.f32.mrf.mxu0 }
 0x492   : > { %v4573_v58 = vadd.f32 %v4570_v31, %v3135_v4  ;;  %1492 = vmax.xlane.f32.xlu0 %v4564_v33 }
 0x493   : > { %v1432_v8 = vpop.f32.mrf.mxu0 }
 0x494   : > { %1498 = vmax.xlane.f32.xlu1 %v4573_v58  ;;  %v4583_v0 = vadd.f32 %v4580_v38, %v1432_v8 }
 0x495   : > { %v3138_v51 = vpop.f32.mrf.mxu0 }
 0x496   : > { %v4591_v4 = vadd.f32 %v4588_v34, %v3138_v51  ;;  %v4606_v51 = vld [vmem:[%s5291_s2 + $0x28] sm:$0xff] }
 0x497   : > { %v1445_v15 = vpop.f32.mrf.mxu0 }
 0x498   : > { %1494 = vmax.xlane.f32.xlu1 %v4583_v0  ;;  %1504 = vmax.xlane.f32.xlu0 %v4591_v4  ;;  %v4601_v8 = vadd.f32 %v4598_v29, %v1445_v15 }
 0x499   : > { %v3139_v27 = vpop.f32.mrf.mxu0 }
 0x49a   : > { %v4618_v28 = vadd.f32 %v4615_v11, %v3139_v27 }
 0x49b   : > { %v1448_v54 = vpop.f32.mrf.mxu0 }
 0x49c   : > { %v4609_v3 = vadd.f32 %v4606_v51, %v1448_v54  ;;  %1500 = vmax.xlane.f32.xlu1 %v4601_v8 }
 0x49d   : > { %v3142_v15 = vpop.f32.mrf.mxu0 }
 0x49e   : > { %1502 = vmax.xlane.f32.xlu0 %v4609_v3  ;;  %v4622_v35 = vadd.f32 %v3142_v15, %v4118_v20  ;;  %v4637_v20 = vld [vmem:[%s5291_s2 + $0x48] sm:$0xff] }
 0x49f   : > { %v1461_v54 = vpop.f32.mrf.mxu0 }
 0x4a0   : > { %1506 = vmax.xlane.f32.xlu1 %v4618_v28  ;;  %v4627_v13 = vadd.f32 %v1461_v54, %v4128_v26  ;;  %v3756_v26 = vld [vmem:[%s3835_s26 + $0x20] ss:$8 sps:$4 sm:$0xff]   ;;  %v3757_v54 = vld [vmem:[%s3835_s26 + $0x30] ss:$8 sps:$4 sm:$0xff]  }
 0x4a1   : > { %v3143_v6 = vpop.f32.mrf.mxu0 }
 0x4a2   : > { %v4631_v27 = vadd.f32 %v3143_v6, %v4139_v32  ;;  %v4650_v6 = vld [vmem:[%s5291_s2 + $0x70] sm:$0xff] }
 0x4a3   : > { %v1464_v2 = vpop.f32.mrf.mxu0 }
 0x4a4   : > { %1512 = vmax.xlane.f32.xlu1 %v4622_v35  ;;  %v4640_v15 = vadd.f32 %v4637_v20, %v1464_v2 }
 0x4a5   : > { %v3146_v32 = vpop.f32.mrf.mxu0 }
 0x4a6   : > { %v4653_v42 = vadd.f32 %v4650_v6, %v3146_v32  ;;  %v4668_v32 = vld [vmem:[%s5291_s2 + $0x78] sm:$0xff] }
 0x4a7   : > { %v1477_v2 = vpop.f32.mrf.mxu0 }
 0x4a8   : > { %1508 = vmax.xlane.f32.xlu1 %v4627_v13 }
 0x4a9   : > { %v3147_v7 = vpop.f32.mrf.mxu0 }
 0x4aa   : > { %v4671_v25 = vadd.f32 %v4668_v32, %v3147_v7  ;;  %v3763_v7 = vld [vmem:[%s3835_s26] ss:$8 sps:$4 sm:$0xff]  }
 0x4ab   : > { %v1480_v45 = vpop.f32.mrf.mxu0 }
 0x4ac   : > { %1514 = vmax.xlane.f32.xlu1 %v4631_v27 }
 0x4b0   : > { %1510 = vmax.xlane.f32.xlu1 %v4640_v15 }
 0x4b4   : > { %1785 = vrot.lane.b32.xlu0 %v3756_v26, %s3785_s22  ;;  %v4659_v26 = vld [vmem:[%s5291_s2 + $0x60] sm:$0xff] }
 0x4c1   : > { %1787 = vrot.lane.b32.xlu1 %v3757_v54, %s3785_s22  ;;  %v4662_v54 = vadd.f32 %v4659_v26, %v1477_v2  ;;  %v4677_v2 = vld [vmem:[%s5291_s2 + $0x68] sm:$0xff] }
 0x4c2   : > { %v4680_v53 = vadd.f32 %v4677_v2, %v1480_v45  ;;  %v3765_v45 = vld [vmem:[%s3835_s26 + $0x44] ss:$8 sps:$4 sm:$0xff]  }
 0x4d3   : > { %1520 = vmax.xlane.f32.xlu0 %v4653_v42 }
 0x4d7   : > { %1516 = vmax.xlane.f32.xlu0 %v4662_v54 }
 0x4db   : > { %1522 = vmax.xlane.f32.xlu0 %v4671_v25 }
 0x4e5   : > { %1518 = vmax.xlane.f32.xlu1 %v4680_v53 }
 0x4f1   : > { %1783 = vrot.lane.b32.xlu0 %v3762_v30, %s3785_s22  ;;  %v3766_v30 = vld [vmem:[%s3835_s26 + $0x74] ss:$8 sps:$4 sm:$0xff]  }
 0x4f5   : > { %1765 = vrot.lane.b32.xlu0 %v3867_v9, %s3785_s22  ;;  %v3764_v9 = vld [vmem:[%s3835_s26 + $0x64] ss:$8 sps:$4 sm:$0xff]  }
 0x4f6   : > { %1781 = vrot.lane.b32.xlu1 %v3763_v7, %s3785_s22 }
 0x4f9   : > { %1769 = vrot.lane.b32.xlu0 %v5367_v57, %s3785_s22  ;;  %v4713_v57 = vpop.permute.xlu0 %1793 }
 0x4fa   : > { %1767 = vrot.lane.b32.xlu1 %v5366_v41, %s3785_s22  ;;  %v3767_v41 = vld [vmem:[%s3835_s26 + $0x24] ss:$8 sps:$4 sm:$0xff]  }
 0x4fd   : > { %1773 = vrot.lane.b32.xlu0 %v5368_v48, %s3785_s22  ;;  %v4717_v48 = vpop.permute.xlu1 %1791 }
 0x4fe   : > { %1771 = vrot.lane.b32.xlu1 %v3926_v39, %s3785_s22  ;;  %v3768_v39 = vld [vmem:[%s3835_s26 + $0x54] ss:$8 sps:$4 sm:$0xff]  }
 0x501   : > { %1777 = vrot.lane.b32.xlu0 %v5369_v19, %s3785_s22 }
 0x502   : > { %1775 = vrot.lane.b32.xlu1 %v3938_v49, %s3785_s22  ;;  %v3769_v49 = vld [vmem:[%s3835_s26 + $0x34] ss:$8 sps:$4 sm:$0xff]  }
 0x505   : > { %2074 = vrot.lane.b32.xlu0 %v3764_v9, %s3785_s22 }
 0x506   : > { %1779 = vrot.lane.b32.xlu1 %v3948_v55, %s3785_s22  ;;  %v4719_v55 = vpop.permute.xlu0 %1789 }
 0x509   : > { %2070 = vrot.lane.b32.xlu0 %v3765_v45, %s3785_s22 }
 0x50a   : > { %2076 = vrot.lane.b32.xlu1 %v3766_v30, %s3785_s22 }
 0x50d   : > { %2066 = vrot.lane.b32.xlu0 %v3767_v41, %s3785_s22 }
 0x50e   : > { %2072 = vrot.lane.b32.xlu1 %v3768_v39, %s3785_s22 }
 0x512   : > { %2068 = vrot.lane.b32.xlu1 %v3769_v49, %s3785_s22 }
 0x519   : > { %v1497_v19 = vpop.xlane.xlu1 %1496 }
 0x51a   : > { %v1526_v41 = vsub.f32 %v4556_v36, %v1497_v19 }
 0x51b   : > { %v1493_v7 = vpop.xlane.xlu0 %1492 }
 0x51c   : > { %v1524_v9 = vsub.f32 %v4564_v33, %v1493_v7  ;;  %v1544_v49 = vmul.f32 1.442695, %v1526_v41 }
 0x51d   : > { %v1499_v45 = vpop.xlane.xlu1 %1498 }
 0x51e   : > { %v1527_v30 = vsub.f32 %v4573_v58, %v1499_v45  ;;  %v1540_v18 = vmul.f32 1.442695, %v1524_v9 }
 0x520   : > { %v1546_v39 = vmul.f32 1.442695, %v1527_v30  ;;  %3551 = vpow2.f32 %v1540_v18 }
 0x521   : > { %v1495_v40 = vpop.xlane.xlu1 %1494  ;;  %v1505_v12 = vpop.xlane.xlu0 %1504 }
 0x522   : > { %v1525_v62 = vsub.f32 %v4583_v0, %v1495_v40  ;;  %3553 = vpow2.f32 %v1546_v39  ;;  %v1530_v59 = vsub.f32 %v4591_v4, %v1505_v12  ;;  %v1843_v39 = vsel %vm438_vm0, %v4518_v56, 0 }
 0x524   : > { %v1542_v46 = vmul.f32 1.442695, %v1525_v62  ;;  %v1552_v19 = vmul.f32 1.442695, %v1530_v59 }
 0x525   : > { %v1501_v22 = vpop.xlane.xlu1 %1500 }
 0x526   : > { %3555 = vpow2.f32 %v1542_v46  ;;  %v1528_v33 = vsub.f32 %v4601_v8, %v1501_v22 }
 0x527   : > { %3557 = vpow2.f32 %v1544_v49  ;;  %v1503_v58 = vpop.xlane.xlu0 %1502 }
 0x528   : > { %v1548_v7 = vmul.f32 1.442695, %v1528_v33  ;;  %v1529_v36 = vsub.f32 %v4609_v3, %v1503_v58 }
 0x529   : > { %v1507_v9 = vpop.xlane.xlu1 %1506 }
 0x52a   : > { %v1550_v45 = vmul.f32 1.442695, %v1529_v36  ;;  %v1531_v40 = vsub.f32 %v4618_v28, %v1507_v9  ;;  %3559 = vpow2.f32 %v1548_v7 }
 0x52c   : > { %3561 = vpow2.f32 %v1550_v45  ;;  %v1554_v62 = vmul.f32 1.442695, %v1531_v40  ;;  %v1840_v40 = vsel %vm438_vm0, %v4713_v57, 0 }
 0x52d   : > { %3563 = vpow2.f32 %v1552_v19  ;;  %v1513_v18 = vpop.xlane.xlu1 %1512  ;;  %v4729_v12 = vpop.eup %3551 }
 0x52e   : > { %3565 = vpow2.f32 %v1554_v62  ;;  %v1534_v41 = vsub.f32 %v4622_v35, %v1513_v18 }
 0x52f   : > { %v4731_v22 = vpop.eup %3553 }
 0x530   : > { %v1560_v56 = vmul.f32 1.442695, %v1534_v41 }
 0x531   : > { %v1509_v46 = vpop.xlane.xlu1 %1508 }
 0x532   : > { %v1532_v59 = vsub.f32 %v4627_v13, %v1509_v46 }
 0x533   : > { %v4733_v0 = vpop.eup %3555 }
 0x534   : > { %v4735_v4 = vpop.eup %3557  ;;  %v1604_v3 = vpack.c.bf16 %v4733_v0, %v4729_v12  ;;  %v1556_v33 = vmul.f32 1.442695, %v1532_v59 }
 0x535   : > { %v1515_v28 = vpop.xlane.xlu1 %1514  ;;  %v1605_v8 = vpack.c.bf16 %v4731_v22, %v4735_v4 }
 0x536   : > { %v1535_v30 = vsub.f32 %v4631_v27, %v1515_v28  ;;  %3164 = vmatprep.mubr.bf16.mxu1 %v1604_v3  ;;  %3567 = vpow2.f32 %v1556_v33 }
 0x537   : > { %3165 = vmatmul.mubr.bf16.vlgmr.msra.gmra.mxu1 %v1605_v8  ;;  %v4746_v49 = vpop.eup %3559 }
 0x538   : > { %3181 = vmatpush3.bf16.xpose.msra.mxu1 %v1843_v39  ;;  %v1562_v58 = vmul.f32 1.442695, %v1535_v30  ;;  %v1786_v30 = vpop.permute.xlu0 %1785 }
 0x539   : > { %v4748_v13 = vpop.eup %3561  ;;  %3317 = vmatprep.subr.msk.bf16.mxu1 %vm438_vm0, %v4713_v57  ;;  %v1511_v7 = vpop.xlane.xlu1 %1510  ;;  %v1828_v39 = vsel %vm438_vm0, %v1786_v30, 0 }
 0x53a   : > { %v4752_v36 = vpop.eup %3563  ;;  %v1533_v27 = vsub.f32 %v4640_v15, %v1511_v7  ;;  %v1606_v35 = vpack.c.bf16 %v4748_v13, %v4746_v49  ;;  %3569 = vpow2.f32 %v1562_v58  ;;  %v1837_v15 = vsel %vm438_vm0, %v4717_v48, 0 }
 0x53b   : > { %v4757_v19 = vpop.eup %3565 }
 0x53c   : > { %v1558_v9 = vmul.f32 1.442695, %v1533_v27  ;;  %3168 = vmatprep.mubr.bf16.mxu1 %v1606_v35  ;;  %v1607_v45 = vpack.c.bf16 %v4757_v19, %v4752_v36 }
 0x53d   : > { %v1788_v28 = vpop.permute.xlu1 %1787 }
 0x53e   : > { %3571 = vpow2.f32 %v1558_v9  ;;  %v1831_v8 = vsel %vm438_vm0, %v1788_v28, 0 }
 0x53f   : > { %3573 = vpow2.f32 %v1560_v56  ;;  %3169 = vmatmul.mubr.bf16.gmra.mxu1 %v1607_v45 }
 0x540   : > { %3183 = vmatpush3.bf16.xpose.msra.mxu1 %v1840_v40 }
 0x541   : > { %3318 = vmatprep.subr.msk.bf16.mxu1 %vm438_vm0, %v4717_v48  ;;  %v1834_v48 = vsel %vm438_vm0, %v4719_v55, 0 }
 0x543   : > { %v4767_v62 = vpop.eup %3567 }
 0x547   : > { %v4771_v18 = vpop.eup %3569 }
 0x548   : > { %3185 = vmatpush3.bf16.xpose.msra.mxu1 %v1837_v15 }
 0x549   : > { %3319 = vmatprep.subr.msk.bf16.mxu1 %vm438_vm0, %v4719_v55 }
 0x54b   : > { %v4773_v46 = vpop.eup %3571 }
 0x54c   : > { %v4775_v59 = vpop.eup %3573  ;;  %v1608_v57 = vpack.c.bf16 %v4773_v46, %v4767_v62 }
 0x54d   : > { %v1609_v3 = vpack.c.bf16 %v4771_v18, %v4775_v59 }
 0x54e   : > { %3172 = vmatprep.mubr.bf16.mxu1 %v1608_v57 }
 0x54f   : > { %3173 = vmatmul.mubr.bf16.gmra.mxu1 %v1609_v3 }
 0x550   : > { %3187 = vmatpush3.bf16.xpose.msra.mxu1 %v1834_v48 }
 0x551   : > { %3320 = vmatprep.subr.msk.bf16.mxu1 %vm438_vm0, %v1788_v28 }
 0x558   : > { %3189 = vmatpush3.bf16.xpose.msra.mxu1 %v1831_v8 }
 0x559   : > { %3321 = vmatprep.subr.msk.bf16.mxu1 %vm438_vm0, %v1786_v30 }
 0x55c   : > { %v1521_v41 = vpop.xlane.xlu0 %1520 }
 0x55d   : > { %v1538_v56 = vsub.f32 %v4653_v42, %v1521_v41 }
 0x55f   : > { %v1568_v57 = vmul.f32 1.442695, %v1538_v56 }
 0x560   : > { %3191 = vmatpush3.bf16.xpose.msra.mxu1 %v1828_v39  ;;  %v1517_v33 = vpop.xlane.xlu0 %1516 }
 0x561   : > { %v1536_v27 = vsub.f32 %v4662_v54, %v1517_v33 }
 0x563   : > { %v1564_v9 = vmul.f32 1.442695, %v1536_v27 }
 0x564   : > { %v1523_v58 = vpop.xlane.xlu0 %1522 }
 0x565   : > { %v1539_v35 = vsub.f32 %v4671_v25, %v1523_v58  ;;  %3575 = vpow2.f32 %v1564_v9 }
 0x567   : > { %v1570_v45 = vmul.f32 1.442695, %v1539_v35 }
 0x568   : > { %v1784_v7 = vpop.permute.xlu0 %1783 }
 0x569   : > { %3322 = vmatprep.subr.msk.bf16.mxu1 %vm438_vm0, %v1784_v7  ;;  %v1825_v55 = vsel %vm438_vm0, %v1784_v7, 0  ;;  %3577 = vpow2.f32 %v1570_v45 }
 0x56a   : > { %3193 = vmatpush3.bf16.xpose.msra.mxu1 %v1825_v55 }
 0x56c   : > { %v1766_v41 = vpop.permute.xlu0 %1765 }
 0x56e   : > { %v1519_v40 = vpop.xlane.xlu1 %1518 }
 0x56f   : > { %v1537_v15 = vsub.f32 %v4680_v53, %v1519_v40 }
 0x570   : > { %v1770_v33 = vpop.permute.xlu0 %1769 }
 0x571   : > { %v1566_v3 = vmul.f32 1.442695, %v1537_v15 }
 0x572   : > { %v1782_v48 = vpop.permute.xlu1 %1781  ;;  %v4795_v25 = vpop.eup %3575 }
 0x573   : > { %3579 = vpow2.f32 %v1566_v3  ;;  %3323 = vmatprep.subr.msk.bf16.mxu1 %vm438_vm0, %v1782_v48  ;;  %v1822_v54 = vsel %vm438_vm0, %v1782_v48, 0 }
 0x574   : > { %3581 = vpow2.f32 %v1568_v57  ;;  %3195 = vmatpush3.bf16.xpose.msra.mxu1 %v1822_v54  ;;  %v1774_v7 = vpop.permute.xlu0 %1773 }
 0x576   : > { %v4797_v42 = vpop.eup %3577  ;;  %v1768_v39 = vpop.permute.xlu1 %1767 }
 0x578   : > { %v1778_v55 = vpop.permute.xlu0 %1777 }
 0x57a   : > { %v1772_v58 = vpop.permute.xlu1 %1771 }
 0x57c   : > { %v2075_v9 = vpop.permute.xlu0 %2074 }
 0x57e   : > { %v1776_v27 = vpop.permute.xlu1 %1775 }
 0x580   : > { %v4799_v28 = vpop.eup %3579  ;;  %v2071_v40 = vpop.permute.xlu0 %2070 }
 0x581   : > { %v4801_v8 = vpop.eup %3581  ;;  %v1610_v53 = vpack.c.bf16 %v4799_v28, %v4795_v25 }
 0x582   : > { %v1611_v30 = vpack.c.bf16 %v4797_v42, %v4801_v8  ;;  %v1780_v35 = vpop.permute.xlu1 %1779 }
 0x583   : > { %3176 = vmatprep.mubr.bf16.mxu1 %v1610_v53 }
 0x584   : > { %3177 = vmatmul.mubr.bf16.gmra.mxu1 %v1611_v30  ;;  %v2067_v54 = vpop.permute.xlu0 %2066 }
 0x585   : > { %3196 = vmatprep.mubr.msk.bf16.mxu1 %vm438_vm0, %v1766_v41 }
 0x586   : > { %v2077_v56 = vpop.permute.xlu1 %2076 }
 0x587   : > { %3212 = vmatprep.subr.bf16.mxu0 %v2077_v56 }
 0x588   : > { %3213 = vmatpush3.bf16.msra.mxu0 %v2077_v56 }
 0x589   : > { %3214 = vmatprep.subr.bf16.mxu0 %v2075_v9 }
 0x58a   : > { %v2073_v45 = vpop.permute.xlu1 %2072 }
 0x58c   : > { %3197 = vmatmul.mubr.msk.bf16.vlgmr.msra.gmra.mxu1 %vm438_vm0, %v1768_v39  ;;  %3215 = vmatpush3.bf16.msra.mxu0 %v2075_v9 }
 0x58d   : > { %3200 = vmatprep.mubr.msk.bf16.mxu1 %vm438_vm0, %v1770_v33  ;;  %3216 = vmatprep.subr.bf16.mxu0 %v2073_v45 }
 0x58e   : > { %v2069_v15 = vpop.permute.xlu1 %2068 }
 0x590   : > { %3217 = vmatpush3.bf16.msra.mxu0 %v2073_v45 }
 0x591   : > { %3218 = vmatprep.subr.bf16.mxu0 %v2071_v40 }
 0x594   : > { %3201 = vmatmul.mubr.msk.bf16.gmra.mxu1 %vm438_vm0, %v1772_v58  ;;  %3219 = vmatpush3.bf16.msra.mxu0 %v2071_v40 }
 0x595   : > { %3204 = vmatprep.mubr.msk.bf16.mxu1 %vm438_vm0, %v1774_v7  ;;  %3220 = vmatprep.subr.bf16.mxu0 %v2069_v15 }
 0x598   : > { %3221 = vmatpush3.bf16.msra.mxu0 %v2069_v15 }
 0x599   : > { %3222 = vmatprep.subr.bf16.mxu0 %v2067_v54 }
 0x59c   : > { %3205 = vmatmul.mubr.msk.bf16.gmra.mxu1 %vm438_vm0, %v1776_v27  ;;  %3223 = vmatpush3.bf16.msra.mxu0 %v2067_v54 }
 0x59d   : > { %3208 = vmatprep.mubr.msk.bf16.mxu1 %vm438_vm0, %v1778_v55 }
 0x5a4   : > { %3209 = vmatmul.mubr.msk.bf16.gmra.mxu1 %vm438_vm0, %v1780_v35 }
 0x5f7   : > { %v4815_v57 = vpop.f32.mrf.mxu1 }
 0x5f9   : > { %v4817_v3 = vpop.f32.mrf.mxu1 }
 0x5fb   : > { %v4819_v48 = vpop.f32.mrf.mxu1 }
 0x5fd   : > { %v4821_v53 = vpop.f32.mrf.mxu1 }
 0x5ff   : > { %v4823_v30 = vpop.f32.mrf.mxu1 }
 0x600   : > { %5391 = vst [vmem:[#allocation50_spill] sm:$0xff] %v4823_v30 }
 0x601   : > { %v4825_v41 = vpop.f32.mrf.mxu1 }
 0x602   : > { %5392 = vst [vmem:[#allocation51_spill] sm:$0xff] %v4825_v41 }
 0x603   : > { %v4827_v39 = vpop.f32.mrf.mxu1 }
 0x604   : > { %5393 = vst [vmem:[#allocation52_spill] sm:$0xff] %v4827_v39 }
 0x605   : > { %v4829_v33 = vpop.f32.mrf.mxu1 }
 0x606   : > { %5394 = vst [vmem:[#allocation53_spill] sm:$0xff] %v4829_v33 }
 0x60f   : > { %v4831_v58 = vpop.f32.mrf.mxu1 }
 0x611   : > { %v4833_v7 = vpop.f32.mrf.mxu1 }
 0x613   : > { %v4835_v27 = vpop.f32.mrf.mxu1 }
 0x614   : > { %5395 = vst [vmem:[#allocation54_spill] sm:$0xff] %v4835_v27 }
 0x615   : > { %v4837_v55 = vpop.f32.mrf.mxu1 }
 0x644   : > { %v4839_v35 = vpop.f32.mrf.mxu1 }
 0x645   : > { %5396 = vst [vmem:[#allocation55_spill] sm:$0xff] %v4839_v35 }
 0x646   : > { %v4841_v56 = vpop.f32.mrf.mxu1 }
 0x647   : > { %5397 = vst [vmem:[#allocation56_spill] sm:$0xff] %v4841_v56 }
 0x648   : > { %v4843_v9 = vpop.f32.mrf.mxu1 }
 0x649   : > { %5398 = vst [vmem:[#allocation57_spill] sm:$0xff] %v4843_v9 }
 0x64a   : > { %v4845_v45 = vpop.f32.mrf.mxu1 }
 0x64b   : > { %5399 = vst [vmem:[#allocation58_spill] sm:$0xff] %v4845_v45 }
 0x64c   : > { %v3198_v40 = vpop.f32.mrf.mxu1 }
 0x64d   : > { %v4848_v15 = vadd.f32 %v4553_v14, %v3198_v40 }
 0x64e   : > { %v1879_v54 = vpop.f32.mrf.mxu1 }
 0x64f   : > { %1946 = vmax.xlane.f32.xlu0 %v4848_v15  ;;  %v4852_v39 = vadd.f32 %v4561_v5, %v1879_v54 }
 0x650   : > { %v3199_v30 = vpop.f32.mrf.mxu1 }
 0x651   : > { %v4859_v45 = vadd.f32 %v4570_v31, %v3199_v30  ;;  %v3770_v30 = vld [vmem:[%s5291_s2 + $0x50] sm:$0xff] }
 0x652   : > { %v1882_v33 = vpop.f32.mrf.mxu1 }
 0x653   : > { %v4855_v35 = vadd.f32 %v4580_v38, %v1882_v33  ;;  %1942 = vmax.xlane.f32.xlu0 %v4852_v39 }
 0x654   : > { %v3202_v9 = vpop.f32.mrf.mxu1 }
 0x655   : > { %v4862_v14 = vadd.f32 %v4588_v34, %v3202_v9  ;;  %1944 = vmax.xlane.f32.xlu1 %v4855_v35 }
 0x656   : > { %v1895_v40 = vpop.f32.mrf.mxu1 }
 0x657   : > { %1948 = vmax.xlane.f32.xlu0 %v4859_v45  ;;  %v4871_v33 = vadd.f32 %v4598_v29, %v1895_v40  ;;  %v3771_v29 = vld [vmem:[%s5291_s2 + $0x58] sm:$0xff] }
 0x658   : > { %v3203_v5 = vpop.f32.mrf.mxu1 }
 0x659   : > { %v4867_v54 = vadd.f32 %v4615_v11, %v3203_v5  ;;  %1954 = vmax.xlane.f32.xlu1 %v4862_v14 }
 0x65a   : > { %v1898_v38 = vpop.f32.mrf.mxu1 }
 0x65b   : > { %1956 = vmax.xlane.f32.xlu0 %v4867_v54  ;;  %v4875_v34 = vadd.f32 %v4606_v51, %v1898_v38  ;;  %v3772_v38 = vld [vmem:[%s5291_s2 + $0x40] sm:$0xff] }
 0x65c   : > { %v3206_v31 = vpop.f32.mrf.mxu1 }
 0x65d   : > { %v4880_v9 = vadd.f32 %v3770_v30, %v3206_v31  ;;  %1950 = vmax.xlane.f32.xlu1 %v4871_v33 }
 0x65e   : > { %v1911_v11 = vpop.f32.mrf.mxu1 }
 0x65f   : > { %1952 = vmax.xlane.f32.xlu0 %v4875_v34  ;;  %v4893_v31 = vadd.f32 %v3772_v38, %v1911_v11 }
 0x660   : > { %v3207_v5 = vpop.f32.mrf.mxu1 }
 0x661   : > { %v4887_v40 = vadd.f32 %v3771_v29, %v3207_v5  ;;  %1962 = vmax.xlane.f32.xlu1 %v4880_v9 }
 0x662   : > { %v1914_v51 = vpop.f32.mrf.mxu1 }
 0x663   : > { %1964 = vmax.xlane.f32.xlu0 %v4887_v40  ;;  %v4897_v56 = vadd.f32 %v4637_v20, %v1914_v51 }
 0x664   : > { %v3210_v30 = vpop.f32.mrf.mxu1 }
 0x665   : > { %v4900_v5 = vadd.f32 %v4650_v6, %v3210_v30  ;;  %1958 = vmax.xlane.f32.xlu1 %v4893_v31  ;;  %v3773_v6 = vld [vmem:[%s3835_s26 + $0x14] ss:$8 sps:$4 sm:$0xff]  }
 0x666   : > { %v1927_v29 = vpop.f32.mrf.mxu1 }
 0x667   : > { %1960 = vmax.xlane.f32.xlu0 %v4897_v56  ;;  %v4909_v27 = vadd.f32 %v4659_v26, %v1927_v29 }
 0x668   : > { %v3211_v41 = vpop.f32.mrf.mxu1 }
 0x669   : > { %v4905_v11 = vadd.f32 %v4668_v32, %v3211_v41  ;;  %1970 = vmax.xlane.f32.xlu1 %v4900_v5  ;;  %v3774_v32 = vld [vmem:[%s3835_s26 + $0x4] ss:$8 sps:$4 sm:$0xff]  }
 0x66a   : > { %v1930_v38 = vpop.f32.mrf.mxu1 }
 0x66b   : > { %1972 = vmax.xlane.f32.xlu0 %v4905_v11  ;;  %v4913_v20 = vadd.f32 %v4677_v2, %v1930_v38 }
 0x66d   : > { %1966 = vmax.xlane.f32.xlu1 %v4909_v27 }
 0x66f   : > { %1968 = vmax.xlane.f32.xlu0 %v4913_v20 }
 0x67e   : > { %2064 = vrot.lane.b32.xlu1 %v3773_v6, %s3785_s22 }
 0x685   : > { %2062 = vrot.lane.b32.xlu0 %v3774_v32, %s3785_s22 }
 0x6a2   : > { %1122 = vadd.xlane.f32.xlu1 %v4420_v16 }
 0x6a4   : > { %1124 = vadd.xlane.f32.xlu0 %v4426_v61 }
 0x6a6   : > { %1138 = vadd.xlane.f32.xlu1 %v4470_v10 }
 0x6a8   : > { %1140 = vadd.xlane.f32.xlu0 %v4476_v23 }
 0x6aa   : > { %1126 = vadd.xlane.f32.xlu1 %v4428_v63 }
 0x6ac   : > { %1128 = vadd.xlane.f32.xlu0 %v4424_v37 }
 0x6ae   : > { %1142 = vadd.xlane.f32.xlu1 %v4478_v43  ;;  %v5400_v43 = vld [vmem:[#allocation11_spill] sm:$0xff] }
 0x6b0   : > { %1144 = vadd.xlane.f32.xlu0 %v4472_v50 }
 0x6b2   : > { %1572 = vadd.xlane.f32.xlu1 %v4729_v12  ;;  %v5402_v12 = vld [vmem:[#allocation20_spill] sm:$0xff] }
 0x6b4   : > { %1574 = vadd.xlane.f32.xlu0 %v4733_v0  ;;  %v5403_v0 = vld [vmem:[#allocation19_spill] sm:$0xff] }
 0x6b6   : > { %1588 = vadd.xlane.f32.xlu1 %v4767_v62 }
 0x6b8   : > { %1590 = vadd.xlane.f32.xlu0 %v4773_v46  ;;  %v5405_v46 = vld [vmem:[#allocation12_spill] sm:$0xff] }
 0x6ba   : > { %1576 = vadd.xlane.f32.xlu1 %v4735_v4 }
 0x6bc   : > { %1578 = vadd.xlane.f32.xlu0 %v4731_v22 }
 0x6be   : > { %1592 = vadd.xlane.f32.xlu1 %v4775_v59 }
 0x6c0   : > { %1594 = vadd.xlane.f32.xlu0 %v4771_v18 }
 0x6c2   : > { %1130 = vadd.xlane.f32.xlu1 %v4453_v44 }
 0x6c4   : > { %1132 = vadd.xlane.f32.xlu0 %v4458_v17 }
 0x6c6   : > { %1146 = vadd.xlane.f32.xlu1 %v4488_v24 }
 0x6c8   : > { %1148 = vadd.xlane.f32.xlu0 %v4486_v52 }
 0x6ca   : > { %1134 = vadd.xlane.f32.xlu1 %v4460_v60 }
 0x6cc   : > { %1136 = vadd.xlane.f32.xlu0 %v4455_v47 }
 0x6ce   : > { %1150 = vadd.xlane.f32.xlu1 %v4492_v21  ;;  %v5401_v21 = vld [vmem:[#allocation13_spill] sm:$0xff] }
 0x6d0   : > { %1152 = vadd.xlane.f32.xlu0 %v4494_v1 }
 0x6d2   : > { %1580 = vadd.xlane.f32.xlu1 %v4746_v49 }
 0x6d4   : > { %1582 = vadd.xlane.f32.xlu0 %v4748_v13 }
 0x6d6   : > { %1596 = vadd.xlane.f32.xlu1 %v4795_v25 }
 0x6d8   : > { %1598 = vadd.xlane.f32.xlu0 %v4799_v28  ;;  %v1947_v16 = vpop.xlane.xlu0 %1946 }
 0x6d9   : > { %v1976_v17 = vsub.f32 %v4848_v15, %v1947_v16  ;;  %v5407_v15 = vld [vmem:[#allocation23_spill] sm:$0xff] }
 0x6da   : > { %1584 = vadd.xlane.f32.xlu1 %v4752_v36 }
 0x6db   : > { %v1994_v24 = vmul.f32 1.442695, %v1976_v17 }
 0x6dc   : > { %1586 = vadd.xlane.f32.xlu0 %v4757_v19  ;;  %v1943_v37 = vpop.xlane.xlu0 %1942  ;;  %v5404_v19 = vld [vmem:[#allocation14_spill] sm:$0xff] }
 0x6dd   : > { %v1974_v61 = vsub.f32 %v4852_v39, %v1943_v37 }
 0x6de   : > { %v1945_v63 = vpop.xlane.xlu1 %1944  ;;  %1600 = vadd.xlane.f32.xlu1 %v4801_v8  ;;  %v5406_v8 = vld [vmem:[#allocation22_spill] sm:$0xff] }
 0x6df   : > { %v1990_v44 = vmul.f32 1.442695, %v1974_v61  ;;  %v1975_v47 = vsub.f32 %v4855_v35, %v1945_v63 }
 0x6e0   : > { %1602 = vadd.xlane.f32.xlu0 %v4797_v42  ;;  %v1949_v60 = vpop.xlane.xlu0 %1948 }
 0x6e1   : > { %v1992_v10 = vmul.f32 1.442695, %v1975_v47  ;;  %v1977_v50 = vsub.f32 %v4859_v45, %v1949_v60  ;;  %3583 = vpow2.f32 %v1990_v44 }
 0x6e2   : > { %v1955_v23 = vpop.xlane.xlu1 %1954  ;;  %664 = vadd.xlane.f32.xlu1 %v5400_v43 }
 0x6e3   : > { %3585 = vpow2.f32 %v1992_v10  ;;  %v1996_v52 = vmul.f32 1.442695, %v1977_v50  ;;  %v1980_v22 = vsub.f32 %v4862_v14, %v1955_v23 }
 0x6e4   : > { %666 = vadd.xlane.f32.xlu0 %v5401_v21  ;;  %v1957_v1 = vpop.xlane.xlu0 %1956 }
 0x6e5   : > { %3587 = vpow2.f32 %v1996_v52  ;;  %v1981_v26 = vsub.f32 %v4867_v54, %v1957_v1  ;;  %v2002_v62 = vmul.f32 1.442695, %v1980_v22 }
 0x6e6   : > { %v1951_v2 = vpop.xlane.xlu1 %1950  ;;  %680 = vadd.xlane.f32.xlu1 %v5402_v12  ;;  %3589 = vpow2.f32 %v1994_v24 }
 0x6e7   : > { %v2004_v49 = vmul.f32 1.442695, %v1981_v26  ;;  %v1978_v18 = vsub.f32 %v4871_v33, %v1951_v2 }
 0x6e8   : > { %682 = vadd.xlane.f32.xlu0 %v5403_v0  ;;  %v1953_v4 = vpop.xlane.xlu0 %1952 }
 0x6e9   : > { %v1979_v13 = vsub.f32 %v4875_v34, %v1953_v4  ;;  %3591 = vpow2.f32 %v2004_v49  ;;  %v1998_v35 = vmul.f32 1.442695, %v1978_v18  ;;  %v5411_v18 = vld [vmem:[#allocation21_spill] sm:$0xff] }
 0x6ea   : > { %v1963_v36 = vpop.xlane.xlu1 %1962  ;;  %668 = vadd.xlane.f32.xlu1 %v5404_v19  ;;  %3593 = vpow2.f32 %v2002_v62  ;;  %v5409_v19 = vld [vmem:[#allocation17_spill] sm:$0xff]  ;;  %v5410_v62 = vld [vmem:[#allocation24_spill] sm:$0xff] }
 0x6eb   : > { %v2000_v25 = vmul.f32 1.442695, %v1979_v13  ;;  %v1984_v45 = vsub.f32 %v4880_v9, %v1963_v36 }
 0x6ec   : > { %670 = vadd.xlane.f32.xlu0 %v5405_v46  ;;  %v1965_v59 = vpop.xlane.xlu0 %1964 }
 0x6ed   : > { %v1985_v42 = vsub.f32 %v4887_v40, %v1965_v59  ;;  %3595 = vpow2.f32 %v2000_v25  ;;  %v5408_v40 = vld [vmem:[#allocation15_spill] sm:$0xff]  ;;  %v2010_v29 = vmul.f32 1.442695, %v1984_v45  ;;  %v5412_v59 = vld [vmem:[#allocation18_spill] sm:$0xff]  ;;  %v5413_v25 = vld [vmem:[#allocation16_spill] sm:$0xff] }
 0x6ee   : > { %v1959_v28 = vpop.xlane.xlu1 %1958  ;;  %684 = vadd.xlane.f32.xlu1 %v5406_v8  ;;  %v3584_v41 = vpop.eup %3583  ;;  %3597 = vpow2.f32 %v1998_v35 }
 0x6ef   : > { %v2012_v34 = vmul.f32 1.442695, %v1985_v42  ;;  %v1982_v38 = vsub.f32 %v4893_v31, %v1959_v28  ;;  %v5414_v42 = vld [vmem:[#allocation26_spill] sm:$0xff]  ;;  %v5415_v28 = vld [vmem:[#allocation25_spill] sm:$0xff] }
 0x6f0   : > { %v3586_v39 = vpop.eup %3585  ;;  %686 = vadd.xlane.f32.xlu0 %v5407_v15  ;;  %v1961_v14 = vpop.xlane.xlu0 %1960 }
 0x6f1   : > { %v2054_v54 = vpack.c.bf16 %v3586_v39, %v3584_v41  ;;  %v1983_v51 = vsub.f32 %v4897_v56, %v1961_v14  ;;  %3599 = vpow2.f32 %v2012_v34  ;;  %v2006_v61 = vmul.f32 1.442695, %v1982_v38 }
 0x6f2   : > { %v3588_v33 = vpop.eup %3587  ;;  %v1971_v30 = vpop.xlane.xlu1 %1970  ;;  %672 = vadd.xlane.f32.xlu1 %v5408_v40  ;;  %3601 = vpow2.f32 %v2010_v29  ;;  %v5417_v29 = vld [vmem:[#allocation5_spill] sm:$0xff] }
 0x6f3   : > { %3228 = vmatprep.mubr.bf16.mxu0 %v2054_v54  ;;  %v3590_v9 = vpop.eup %3589  ;;  %v2008_v32 = vmul.f32 1.442695, %v1983_v51  ;;  %v1988_v56 = vsub.f32 %v4900_v5, %v1971_v30  ;;  %v5416_v30 = vld [vmem:[#allocation3_spill] sm:$0xff] }
 0x6f4   : > { %2028 = vadd.xlane.f32.xlu0 %v3588_v33  ;;  %v1973_v6 = vpop.xlane.xlu0 %1972  ;;  %v2055_v52 = vpack.c.bf16 %v3588_v33, %v3590_v9 }
 0x6f5   : > { %v1989_v16 = vsub.f32 %v4905_v11, %v1973_v6  ;;  %3603 = vpow2.f32 %v2008_v32  ;;  %v2018_v60 = vmul.f32 1.442695, %v1988_v56 }
 0x6f6   : > { %v1967_v37 = vpop.xlane.xlu1 %1966  ;;  %2026 = vadd.xlane.f32.xlu1 %v3590_v9  ;;  %v3592_v17 = vpop.eup %3591  ;;  %3605 = vpow2.f32 %v2006_v61  ;;  %v5418_v61 = vld [vmem:[#allocation43_spill] sm:$0xff] }
 0x6f7   : > { %v2020_v44 = vmul.f32 1.442695, %v1989_v16  ;;  %v1986_v11 = vsub.f32 %v4909_v27, %v1967_v37  ;;  %v3594_v50 = vpop.eup %3593 }
 0x6f8   : > { %2024 = vadd.xlane.f32.xlu0 %v3586_v39  ;;  %v1969_v63 = vpop.xlane.xlu0 %1968  ;;  %v2057_v2 = vpack.c.bf16 %v3592_v17, %v3594_v50 }
 0x6f9   : > { %v1987_v47 = vsub.f32 %v4913_v20, %v1969_v63  ;;  %3607 = vpow2.f32 %v2020_v44  ;;  %v2014_v43 = vmul.f32 1.442695, %v1986_v11  ;;  %v5419_v63 = vld [vmem:[#allocation45_spill] sm:$0xff] }
 0x6fa   : > { %v2065_v31 = vpop.permute.xlu1 %2064  ;;  %2022 = vadd.xlane.f32.xlu1 %v3584_v41  ;;  %v3596_v23 = vpop.eup %3595  ;;  %3609 = vpow2.f32 %v2018_v60 }
 0x6fb   : > { %3224 = vmatprep.subr.bf16.mxu0 %v2065_v31  ;;  %v2016_v5 = vmul.f32 1.442695, %v1987_v47  ;;  %v3598_v20 = vpop.eup %3597 }
 0x6fc   : > { %3225 = vmatpush3.bf16.msra.mxu0 %v2065_v31  ;;  %2036 = vadd.xlane.f32.xlu0 %v3592_v17  ;;  %v2063_v10 = vpop.permute.xlu0 %2062  ;;  %v2056_v24 = vpack.c.bf16 %v3596_v23, %v3598_v20 }
 0x6fd   : > { %3226 = vmatprep.subr.bf16.mxu0 %v2063_v10  ;;  %3611 = vpow2.f32 %v2016_v5  ;;  %v5421_v5 = vld [vmem:[#allocation4_spill] sm:$0xff] }
 0x6fe   : > { %2034 = vadd.xlane.f32.xlu1 %v3594_v50  ;;  %v3600_v21 = vpop.eup %3599  ;;  %3613 = vpow2.f32 %v2014_v43 }
 0x6ff   : > { %v3602_v27 = vpop.eup %3601 }
 0x700   : > { %2032 = vadd.xlane.f32.xlu0 %v3596_v23  ;;  %3227 = vmatpush3.bf16.msra.mxu0 %v2063_v10  ;;  %v2059_v13 = vpack.c.bf16 %v3600_v21, %v3602_v27  ;;  %v5420_v10 = vld [vmem:[#allocation2_spill] sm:$0xff] }
 0x702   : > { %2030 = vadd.xlane.f32.xlu1 %v3598_v20  ;;  %v3604_v1 = vpop.eup %3603 }
 0x703   : > { %3229 = vmatmul.mubr.bf16.vlgmr.msra.gmra.mxu0 %v2055_v52  ;;  %v3606_v26 = vpop.eup %3605 }
 0x704   : > { %2044 = vadd.xlane.f32.xlu0 %v3600_v21  ;;  %3232 = vmatprep.mubr.bf16.mxu0 %v2056_v24  ;;  %v2058_v12 = vpack.c.bf16 %v3604_v1, %v3606_v26 }
 0x706   : > { %2042 = vadd.xlane.f32.xlu1 %v3602_v27  ;;  %v3608_v22 = vpop.eup %3607  ;;  %v5422_v27 = vld [vmem:[#allocation10_spill] sm:$0xff] }
 0x707   : > { %v3610_v0 = vpop.eup %3609 }
 0x708   : > { %2040 = vadd.xlane.f32.xlu0 %v3604_v1  ;;  %v2061_v46 = vpack.c.bf16 %v3608_v22, %v3610_v0 }
 0x70a   : > { %2038 = vadd.xlane.f32.xlu1 %v3606_v26  ;;  %v3612_v4 = vpop.eup %3611  ;;  %v5423_v26 = vld [vmem:[#allocation44_spill] sm:$0xff] }
 0x70b   : > { %3233 = vmatmul.mubr.bf16.gmra.mxu0 %v2057_v2  ;;  %v3614_v49 = vpop.eup %3613 }
 0x70c   : > { %2052 = vadd.xlane.f32.xlu0 %v3608_v22  ;;  %3236 = vmatprep.mubr.bf16.mxu0 %v2058_v12  ;;  %v2060_v36 = vpack.c.bf16 %v3612_v4, %v3614_v49 }
 0x70e   : > { %2050 = vadd.xlane.f32.xlu1 %v3610_v0 }
 0x710   : > { %2048 = vadd.xlane.f32.xlu0 %v3612_v4 }
 0x712   : > { %2046 = vadd.xlane.f32.xlu1 %v3614_v49 }
 0x713   : > { %3237 = vmatmul.mubr.bf16.gmra.mxu0 %v2059_v13 }
 0x714   : > { %674 = vadd.xlane.f32.xlu0 %v5409_v19  ;;  %3240 = vmatprep.mubr.bf16.mxu0 %v2060_v36 }
 0x716   : > { %688 = vadd.xlane.f32.xlu1 %v5410_v62 }
 0x718   : > { %690 = vadd.xlane.f32.xlu0 %v5411_v18 }
 0x71a   : > { %676 = vadd.xlane.f32.xlu1 %v5412_v59 }
 0x71b   : > { %3241 = vmatmul.mubr.bf16.gmra.mxu0 %v2061_v46 }
 0x71c   : > { %678 = vadd.xlane.f32.xlu0 %v5413_v25 }
 0x71e   : > { %692 = vadd.xlane.f32.xlu1 %v5414_v42 }
 0x720   : > { %694 = vadd.xlane.f32.xlu0 %v5415_v28 }
 0x72b   : > { %v1123_v8 = vpop.xlane.xlu1 %1122 }
 0x72c   : > { %3615 = vrcp.f32 %v1123_v8 }
 0x72d   : > { %v1125_v41 = vpop.xlane.xlu0 %1124 }
 0x72e   : > { %3617 = vrcp.f32 %v1125_v41 }
 0x72f   : > { %v1139_v39 = vpop.xlane.xlu1 %1138 }
 0x730   : > { %3619 = vrcp.f32 %v1139_v39 }
 0x731   : > { %v1141_v35 = vpop.xlane.xlu0 %1140 }
 0x732   : > { %3621 = vrcp.f32 %v1141_v35 }
 0x733   : > { %v1127_v45 = vpop.xlane.xlu1 %1126 }
 0x734   : > { %3623 = vrcp.f32 %v1127_v45 }
 0x735   : > { %v1129_v15 = vpop.xlane.xlu0 %1128 }
 0x736   : > { %3625 = vrcp.f32 %v1129_v15 }
 0x737   : > { %v1143_v14 = vpop.xlane.xlu1 %1142 }
 0x738   : > { %3627 = vrcp.f32 %v1143_v14 }
 0x739   : > { %v3616_v54 = vpop.eup %3615  ;;  %v1145_v33 = vpop.xlane.xlu0 %1144 }
 0x73a   : > { %3629 = vrcp.f32 %v1145_v33  ;;  %v1299_v40 = vmul.f32 %v3616_v54, %v5416_v30  ;;  %v5424_v33 = vld [vmem:[#allocation54_spill] sm:$0xff] }
 0x73b   : > { %v3618_v34 = vpop.eup %3617  ;;  %v1573_v51 = vpop.xlane.xlu1 %1572 }
 0x73c   : > { %3631 = vrcp.f32 %v1573_v51  ;;  %v1300_v38 = vmul.f32 %v3618_v34, %v5417_v29 }
 0x73d   : > { %v3620_v6 = vpop.eup %3619  ;;  %v1575_v9 = vpop.xlane.xlu0 %1574 }
 0x73e   : > { %3633 = vrcp.f32 %v1575_v9  ;;  %v3335_v32 = vpack.i.bf16 %v1300_v38, %v1299_v40  ;;  %v1307_v56 = vmul.f32 %v3620_v6, %v5418_v61  ;;  %v5426_v6 = vld [vmem:[#allocation9_spill] sm:$0xff] }
 0x73f   : > { %v3622_v16 = vpop.eup %3621  ;;  %v1589_v37 = vpop.xlane.xlu1 %1588 }
 0x740   : > { %3635 = vrcp.f32 %v1589_v37  ;;  %3336 = vrot.lane.b32.xlu1 %v3335_v32, %s3785_s22  ;;  %v1308_v44 = vmul.f32 %v3622_v16, %v5419_v63 }
 0x741   : > { %v3624_v47 = vpop.eup %3623  ;;  %v1591_v31 = vpop.xlane.xlu0 %1590 }
 0x742   : > { %3637 = vrcp.f32 %v1591_v31  ;;  %v3340_v17 = vpack.i.bf16 %v1308_v44, %v1307_v56  ;;  %v1301_v50 = vmul.f32 %v3624_v47, %v5420_v10  ;;  %v5427_v56 = vld [vmem:[#allocation47_spill] sm:$0xff]  ;;  %v5428_v44 = vld [vmem:[#allocation49_spill] sm:$0xff]  ;;  %v5429_v10 = vld [vmem:[#allocation6_spill] sm:$0xff] }
 0x743   : > { %v3626_v60 = vpop.eup %3625  ;;  %v1577_v11 = vpop.xlane.xlu1 %1576 }
 0x744   : > { %3639 = vrcp.f32 %v1577_v11  ;;  %3341 = vrot.lane.b32.xlu0 %v3340_v17, %s3785_s22  ;;  %v1302_v23 = vmul.f32 %v3626_v60, %v5421_v5  ;;  %v5430_v5 = vld [vmem:[#allocation8_spill] sm:$0xff] }
 0x745   : > { %v3628_v43 = vpop.eup %3627  ;;  %v1579_v20 = vpop.xlane.xlu0 %1578 }
 0x746   : > { %3641 = vrcp.f32 %v1579_v20  ;;  %v3345_v52 = vpack.i.bf16 %v1302_v23, %v1301_v50  ;;  %v1309_v1 = vmul.f32 %v3628_v43, %v5422_v27  ;;  %v5432_v27 = vld [vmem:[#allocation48_spill] sm:$0xff] }
 0x747   : > { %v3630_v24 = vpop.eup %3629  ;;  %v1593_v21 = vpop.xlane.xlu1 %1592 }
 0x748   : > { %3643 = vrcp.f32 %v1593_v21  ;;  %3346 = vrot.lane.b32.xlu1 %v3345_v52, %s3785_s22  ;;  %v1310_v2 = vmul.f32 %v3630_v24, %v5423_v26  ;;  %v5431_v24 = vld [vmem:[#allocation46_spill] sm:$0xff] }
 0x749   : > { %v3632_v12 = vpop.eup %3631  ;;  %v1595_v22 = vpop.xlane.xlu0 %1594 }
 0x74a   : > { %3645 = vrcp.f32 %v1595_v22  ;;  %v3350_v0 = vpack.i.bf16 %v1310_v2, %v1309_v1  ;;  %v1749_v13 = vmul.f32 %v3632_v12, %v4817_v3  ;;  %v5433_v22 = vld [vmem:[#allocation51_spill] sm:$0xff] }
 0x74b   : > { %v3634_v4 = vpop.eup %3633  ;;  %v1131_v49 = vpop.xlane.xlu1 %1130 }
 0x74c   : > { %3647 = vrcp.f32 %v1131_v49  ;;  %3351 = vrot.lane.b32.xlu1 %v3350_v0, %s3785_s22  ;;  %v1750_v36 = vmul.f32 %v3634_v4, %v4821_v53  ;;  %v5434_v4 = vld [vmem:[#allocation53_spill] sm:$0xff] }
 0x74d   : > { %v3636_v19 = vpop.eup %3635  ;;  %v1133_v62 = vpop.xlane.xlu0 %1132 }
 0x74e   : > { %3649 = vrcp.f32 %v1133_v62  ;;  %v3355_v18 = vpack.i.bf16 %v1750_v36, %v1749_v13  ;;  %v1757_v25 = vmul.f32 %v3636_v19, %v4833_v7  ;;  %v3479_v13 = vld [vmem:[%s5293_s4 + $0x38] sm:$0xff]   ;;  %v3480_v36 = vld [vmem:[%s5293_s4 + $0x30] sm:$0xff]  }
 0x74f   : > { %v3638_v46 = vpop.eup %3637  ;;  %v1147_v59 = vpop.xlane.xlu1 %1146  ;;  %3244 = vmatprep.subr.bf16.mxu0 %v3479_v13  ;;  %3276 = vmatprep.subr.bf16.mxu1 %v3479_v13 }
 0x750   : > { %3651 = vrcp.f32 %v1147_v59  ;;  %3356 = vrot.lane.b32.xlu0 %v3355_v18, %s3784_s20  ;;  %v1758_v42 = vmul.f32 %v3638_v46, %v4837_v55  ;;  %3245 = vmatpush3.bf16.msra.mxu0 %v3479_v13  ;;  %v5435_v46 = vld [vmem:[#allocation56_spill] sm:$0xff] }
 0x751   : > { %v3640_v28 = vpop.eup %3639  ;;  %v1149_v8 = vpop.xlane.xlu0 %1148  ;;  %3284 = vmatpush3.bf16.msra.mxu1 %v3479_v13  ;;  %3246 = vmatprep.subr.bf16.mxu0 %v3480_v36  ;;  %v5438_v13 = vld [vmem:[#allocation50_spill] sm:$0xff] }
 0x752   : > { %3653 = vrcp.f32 %v1149_v8  ;;  %v3360_v41 = vpack.i.bf16 %v1758_v42, %v1757_v25  ;;  %v1751_v53 = vmul.f32 %v3640_v28, %v4815_v57  ;;  %v5436_v25 = vld [vmem:[#allocation58_spill] sm:$0xff]  ;;  %v3481_v28 = vld [vmem:[%s5293_s4 + $0x28] sm:$0xff]   ;;  %3277 = vmatprep.subr.bf16.mxu1 %v3480_v36 }
 0x753   : > { %v3642_v3 = vpop.eup %3641  ;;  %v1135_v39 = vpop.xlane.xlu1 %1134 }
 0x754   : > { %3655 = vrcp.f32 %v1135_v39  ;;  %3361 = vrot.lane.b32.xlu1 %v3360_v41, %s3784_s20  ;;  %v1752_v35 = vmul.f32 %v3642_v3, %v4819_v48  ;;  %v5425_v48 = vld [vmem:[#allocation7_spill] sm:$0xff]  ;;  %3247 = vmatpush3.bf16.msra.mxu0 %v3480_v36  ;;  %v3482_v41 = vld [vmem:[%s5293_s4 + $0x20] sm:$0xff]   ;;  %v3483_v3 = vld [vmem:[%s5293_s4 + $0x18] sm:$0xff]  }
 0x755   : > { %v3644_v45 = vpop.eup %3643  ;;  %v1137_v15 = vpop.xlane.xlu0 %1136  ;;  %3285 = vmatpush3.bf16.msra.mxu1 %v3480_v36  ;;  %3248 = vmatprep.subr.bf16.mxu0 %v3481_v28  ;;  %v3484_v39 = vld [vmem:[%s5293_s4 + $0x10] sm:$0xff]  }
 0x756   : > { %3657 = vrcp.f32 %v1137_v15  ;;  %v3365_v14 = vpack.i.bf16 %v1752_v35, %v1751_v53  ;;  %v1759_v55 = vmul.f32 %v3644_v45, %v4831_v58  ;;  %3278 = vmatprep.subr.bf16.mxu1 %v3481_v28 }
 0x757   : > { %v3646_v7 = vpop.eup %3645  ;;  %v1151_v54 = vpop.xlane.xlu1 %1150 }
 0x758   : > { %3659 = vrcp.f32 %v1151_v54  ;;  %3366 = vrot.lane.b32.xlu0 %v3365_v14, %s3784_s20  ;;  %v1760_v34 = vmul.f32 %v3646_v7, %v5424_v33  ;;  %3249 = vmatpush3.bf16.msra.mxu0 %v3481_v28 }
 0x759   : > { %v3648_v51 = vpop.eup %3647  ;;  %v1153_v30 = vpop.xlane.xlu0 %1152  ;;  %3286 = vmatpush3.bf16.msra.mxu1 %v3481_v28  ;;  %3250 = vmatprep.subr.bf16.mxu0 %v3482_v41 }
 0x75a   : > { %3661 = vrcp.f32 %v1153_v30  ;;  %v3370_v40 = vpack.i.bf16 %v1760_v34, %v1759_v55  ;;  %v1303_v38 = vmul.f32 %v3648_v51, %v5425_v48  ;;  %3279 = vmatprep.subr.bf16.mxu1 %v3482_v41 }
 0x75b   : > { %v3650_v57 = vpop.eup %3649  ;;  %v1581_v29 = vpop.xlane.xlu1 %1580 }
 0x75c   : > { %3663 = vrcp.f32 %v1581_v29  ;;  %3371 = vrot.lane.b32.xlu1 %v3370_v40, %s3784_s20  ;;  %v1304_v9 = vmul.f32 %v3650_v57, %v5426_v6  ;;  %3251 = vmatpush3.bf16.msra.mxu0 %v3482_v41 }
 0x75d   : > { %v3652_v32 = vpop.eup %3651  ;;  %v1583_v16 = vpop.xlane.xlu0 %1582  ;;  %3287 = vmatpush3.bf16.msra.mxu1 %v3482_v41  ;;  %3252 = vmatprep.subr.bf16.mxu0 %v3483_v3 }
 0x75e   : > { %3665 = vrcp.f32 %v1583_v16  ;;  %v3375_v37 = vpack.i.bf16 %v1304_v9, %v1303_v38  ;;  %v1311_v63 = vmul.f32 %v3652_v32, %v5427_v56  ;;  %3280 = vmatprep.subr.bf16.mxu1 %v3483_v3 }
 0x75f   : > { %v3654_v58 = vpop.eup %3653  ;;  %v1597_v61 = vpop.xlane.xlu1 %1596 }
 0x760   : > { %3667 = vrcp.f32 %v1597_v61  ;;  %3376 = vrot.lane.b32.xlu0 %v3375_v37, %s3785_s22  ;;  %v1312_v47 = vmul.f32 %v3654_v58, %v5428_v44  ;;  %3253 = vmatpush3.bf16.msra.mxu0 %v3483_v3  ;;  %v3485_v58 = vld [vmem:[%s5293_s4 + $0x8] sm:$0xff]  }
 0x761   : > { %v3656_v31 = vpop.eup %3655  ;;  %v1599_v17 = vpop.xlane.xlu0 %1598  ;;  %3288 = vmatpush3.bf16.msra.mxu1 %v3483_v3  ;;  %3254 = vmatprep.subr.bf16.mxu0 %v3484_v39 }
 0x762   : > { %3669 = vrcp.f32 %v1599_v17  ;;  %v3380_v60 = vpack.i.bf16 %v1312_v47, %v1311_v63  ;;  %v1305_v50 = vmul.f32 %v3656_v31, %v5429_v10  ;;  %3281 = vmatprep.subr.bf16.mxu1 %v3484_v39  ;;  %v3486_v63 = vld [vmem:[%s5293_s4] sm:$0xff]  }
 0x763   : > { %v3658_v11 = vpop.eup %3657  ;;  %v1585_v53 = vpop.xlane.xlu1 %1584 }
 0x764   : > { %3381 = vrot.lane.b32.xlu1 %v3380_v60, %s3785_s22  ;;  %v1306_v23 = vmul.f32 %v3658_v11, %v5430_v5  ;;  %3255 = vmatpush3.bf16.msra.mxu0 %v3484_v39 }
 0x765   : > { %v3660_v43 = vpop.eup %3659  ;;  %v1587_v35 = vpop.xlane.xlu0 %1586  ;;  %3289 = vmatpush3.bf16.msra.mxu1 %v3484_v39  ;;  %3256 = vmatprep.subr.bf16.mxu0 %v3485_v58 }
 0x766   : > { %v3385_v20 = vpack.i.bf16 %v1306_v23, %v1305_v50  ;;  %v1313_v21 = vmul.f32 %v3660_v43, %v5431_v24  ;;  %3282 = vmatprep.subr.bf16.mxu1 %v3485_v58 }
 0x767   : > { %v3662_v52 = vpop.eup %3661  ;;  %v5045_v45 = vpop.xlane.xlu1 %1600 }
 0x768   : > { %3386 = vrot.lane.b32.xlu0 %v3385_v20, %s3785_s22  ;;  %v1314_v1 = vmul.f32 %v3662_v52, %v5432_v27  ;;  %3257 = vmatpush3.bf16.msra.mxu0 %v3485_v58 }
 0x769   : > { %v3664_v26 = vpop.eup %3663  ;;  %v1603_v15 = vpop.xlane.xlu0 %1602  ;;  %3290 = vmatpush3.bf16.msra.mxu1 %v3485_v58  ;;  %3258 = vmatprep.subr.bf16.mxu0 %v3486_v63 }
 0x76a   : > { %v3390_v2 = vpack.i.bf16 %v1314_v1, %v1313_v21  ;;  %v1753_v0 = vmul.f32 %v3664_v26, %v5433_v22  ;;  %3283 = vmatprep.subr.bf16.mxu1 %v3486_v63 }
 0x76b   : > { %v3666_v12 = vpop.eup %3665  ;;  %v5047_v14 = vpop.xlane.xlu1 %664 }
 0x76c   : > { %3391 = vrot.lane.b32.xlu1 %v3390_v2, %s3785_s22  ;;  %v1754_v49 = vmul.f32 %v3666_v12, %v5434_v4  ;;  %3259 = vmatpush3.bf16.msra.mxu0 %v3486_v63 }
 0x76d   : > { %v3668_v19 = vpop.eup %3667  ;;  %v5049_v7 = vpop.xlane.xlu0 %666  ;;  %3291 = vmatpush3.bf16.msra.mxu1 %v3486_v63 }
 0x76e   : > { %v3395_v62 = vpack.i.bf16 %v1754_v49, %v1753_v0  ;;  %v1761_v59 = vmul.f32 %v3668_v19, %v5435_v46  ;;  %v5437_v0 = vld [vmem:[#allocation52_spill] sm:$0xff] }
 0x76f   : > { %v3670_v18 = vpop.eup %3669  ;;  %v5051_v54 = vpop.xlane.xlu1 %680 }
 0x770   : > { %3396 = vrot.lane.b32.xlu0 %v3395_v62, %s3784_s20  ;;  %v1762_v42 = vmul.f32 %v3670_v18, %v5436_v25 }
 0x771   : > { %v5053_v55 = vpop.xlane.xlu0 %682 }
 0x772   : > { %v3400_v8 = vpack.i.bf16 %v1762_v42, %v1761_v59 }
 0x773   : > { %v5055_v33 = vpop.xlane.xlu1 %668 }
 0x774   : > { %3401 = vrot.lane.b32.xlu1 %v3400_v8, %s3784_s20 }
 0x775   : > { %v5057_v34 = vpop.xlane.xlu0 %670 }
 0x777   : > { %v5059_v51 = vpop.xlane.xlu1 %684 }
 0x779   : > { %v5061_v30 = vpop.xlane.xlu0 %686 }
 0x77b   : > { %v5063_v40 = vpop.xlane.xlu1 %672 }
 0x77d   : > { %v2029_v57 = vpop.xlane.xlu0 %2028 }
 0x77e   : > { %3671 = vrcp.f32 %v2029_v57 }
 0x77f   : > { %v2027_v29 = vpop.xlane.xlu1 %2026 }
 0x780   : > { %3673 = vrcp.f32 %v2027_v29 }
 0x781   : > { %v2025_v48 = vpop.xlane.xlu0 %2024 }
 0x782   : > { %3675 = vrcp.f32 %v2025_v48 }
 0x783   : > { %v2023_v38 = vpop.xlane.xlu1 %2022  ;;  %3677 = vrcp.f32 %v1587_v35 }
 0x784   : > { %3679 = vrcp.f32 %v2023_v38 }
 0x785   : > { %v2037_v6 = vpop.xlane.xlu0 %2036  ;;  %3681 = vrcp.f32 %v1585_v53 }
 0x787   : > { %v2035_v9 = vpop.xlane.xlu1 %2034 }
 0x789   : > { %v2033_v32 = vpop.xlane.xlu0 %2032 }
 0x78a   : > { %3683 = vrcp.f32 %v2033_v32 }
 0x78b   : > { %v2031_v16 = vpop.xlane.xlu1 %2030  ;;  %v3672_v31 = vpop.eup %3671 }
 0x78c   : > { %3685 = vrcp.f32 %v2031_v16 }
 0x78d   : > { %v2045_v37 = vpop.xlane.xlu0 %2044  ;;  %v3674_v17 = vpop.eup %3673  ;;  %3687 = vrcp.f32 %v2037_v6 }
 0x78e   : > { %3689 = vrcp.f32 %v2035_v9 }
 0x78f   : > { %v2043_v61 = vpop.xlane.xlu1 %2042  ;;  %v3676_v5 = vpop.eup %3675  ;;  %3691 = vrcp.f32 %v2045_v37 }
 0x790   : > { %v3678_v43 = vpop.eup %3677  ;;  %3693 = vrcp.f32 %v2043_v61 }
 0x791   : > { %v2041_v44 = vpop.xlane.xlu0 %2040  ;;  %v3680_v24 = vpop.eup %3679  ;;  %v1756_v4 = vmul.f32 %v3678_v43, %v5437_v0 }
 0x792   : > { %3695 = vrcp.f32 %v2041_v44  ;;  %v3682_v26 = vpop.eup %3681 }
 0x793   : > { %v2039_v60 = vpop.xlane.xlu1 %2038  ;;  %3697 = vrcp.f32 %v1603_v15  ;;  %v1755_v36 = vmul.f32 %v3682_v26, %v5438_v13 }
 0x794   : > { %3699 = vrcp.f32 %v2039_v60 }
 0x795   : > { %v2053_v21 = vpop.xlane.xlu0 %2052  ;;  %3701 = vrcp.f32 %v5045_v45  ;;  %v3415_v59 = vpack.i.bf16 %v1756_v4, %v1755_v36 }
 0x797   : > { %v2051_v2 = vpop.xlane.xlu1 %2050  ;;  %v3684_v19 = vpop.eup %3683 }
 0x799   : > { %v2049_v62 = vpop.xlane.xlu0 %2048  ;;  %v3686_v25 = vpop.eup %3685 }
 0x79a   : > { %v3688_v8 = vpop.eup %3687  ;;  %3703 = vrcp.f32 %v2049_v62 }
 0x79b   : > { %v2047_v42 = vpop.xlane.xlu1 %2046  ;;  %v3690_v3 = vpop.eup %3689 }
 0x79c   : > { %v3692_v53 = vpop.eup %3691  ;;  %3705 = vrcp.f32 %v2047_v42 }
 0x79d   : > { %v3694_v15 = vpop.eup %3693  ;;  %3707 = vrcp.f32 %v2053_v21 }
 0x79e   : > { %3709 = vrcp.f32 %v2051_v2 }
 0x79f   : > { %v3696_v6 = vpop.eup %3695  ;;  %v5088_v4 = vpop.xlane.xlu1 %688  ;;  %3711 = vrcp.f32 %v5055_v33 }
 0x7a0   : > { %v3698_v32 = vpop.eup %3697  ;;  %3713 = vrcp.f32 %v5057_v34 }
 0x7a1   : > { %v3700_v61 = vpop.eup %3699  ;;  %3715 = vrcp.f32 %v5047_v14 }
 0x7a2   : > { %v3702_v44 = vpop.eup %3701  ;;  %3717 = vrcp.f32 %v5049_v7 }
 0x7a3   : > { %v677_v13 = vpop.xlane.xlu1 %676  ;;  %3719 = vrcp.f32 %v5051_v54 }
 0x7a4   : > { %3721 = vrcp.f32 %v5053_v55 }
 0x7a5   : > { %3723 = vrcp.f32 %v5059_v51 }
 0x7a6   : > { %3725 = vrcp.f32 %v5061_v30 }
 0x7a7   : > { %v5094_v62 = vpop.xlane.xlu1 %692  ;;  %3727 = vrcp.f32 %v5063_v40  ;;  %v5441_v40 = vld [vmem:[#allocation27_spill] sm:$0xff] }
 0x7c3   : > { %v3230_v56 = vpop.f32.mrf.mxu0 }
 0x7c4   : > { %v2201_v10 = vmul.f32 %v3674_v17, %v3230_v56  ;;  %v5439_v17 = vld [vmem:[#allocation57_spill] sm:$0xff] }
 0x7c5   : > { %v2120_v47 = vpop.f32.mrf.mxu0  ;;  %v1764_v60 = vmul.f32 %v3698_v32, %v5439_v17  ;;  %v5444_v17 = vld [vmem:[#allocation30_spill] sm:$0xff] }
 0x7c6   : > { %v2199_v1 = vmul.f32 %v3680_v24, %v2120_v47 }
 0x7c7   : > { %v3231_v11 = vpop.f32.mrf.mxu0 }
 0x7c8   : > { %v2202_v50 = vmul.f32 %v3672_v31, %v3231_v11 }
 0x7c9   : > { %v2123_v23 = vpop.f32.mrf.mxu0 }
 0x7ca   : > { %v3405_v20 = vpack.i.bf16 %v2202_v50, %v2201_v10  ;;  %v2200_v52 = vmul.f32 %v3676_v5, %v2123_v23  ;;  %v5440_v10 = vld [vmem:[#allocation55_spill] sm:$0xff]  ;;  %v3704_v5 = vpop.eup %3703 }
 0x7cb   : > { %v3234_v27 = vpop.f32.mrf.mxu0  ;;  %v1763_v50 = vmul.f32 %v3702_v44, %v5440_v10 }
 0x7cc   : > { %3406 = vrot.lane.b32.xlu0 %v3405_v20, %s3783_s28  ;;  %v3410_v22 = vpack.i.bf16 %v2200_v52, %v2199_v1  ;;  %v2205_v29 = vmul.f32 %v3690_v3, %v3234_v27  ;;  %v3706_v52 = vpop.eup %3705 }
 0x7cd   : > { %v2136_v12 = vpop.f32.mrf.mxu0  ;;  %v3430_v20 = vpack.i.bf16 %v1764_v60, %v1763_v50  ;;  %v3708_v21 = vpop.eup %3707 }
 0x7ce   : > { %v2203_v41 = vmul.f32 %v3686_v25, %v2136_v12  ;;  %v3710_v26 = vpop.eup %3709 }
 0x7cf   : > { %v3235_v49 = vpop.f32.mrf.mxu0  ;;  %v3712_v14 = vpop.eup %3711 }
 0x7d0   : > { %3411 = vrot.lane.b32.xlu0 %v3410_v22, %s3783_s28  ;;  %v2206_v35 = vmul.f32 %v3688_v8, %v3235_v49  ;;  %v675_v22 = vpop.xlane.xlu0 %674  ;;  %v3714_v7 = vpop.eup %3713 }
 0x7d1   : > { %v2139_v18 = vpop.f32.mrf.mxu0  ;;  %3729 = vrcp.f32 %v675_v22  ;;  %v3716_v51 = vpop.eup %3715 }
 0x7d2   : > { %v2204_v46 = vmul.f32 %v3684_v19, %v2139_v18  ;;  %v3445_v16 = vpack.i.bf16 %v2206_v35, %v2205_v29  ;;  %3731 = vrcp.f32 %v677_v13  ;;  %v3718_v3 = vpop.eup %3717 }
 0x7d3   : > { %v3238_v28 = vpop.f32.mrf.mxu0  ;;  %v850_v60 = vmul.f32 %v3718_v3, %v5444_v17 }
 0x7d4   : > { %3416 = vrot.lane.b32.xlu0 %v3415_v59, %s3784_s20  ;;  %v3435_v45 = vpack.i.bf16 %v2204_v46, %v2203_v41  ;;  %v2209_v48 = vmul.f32 %v3694_v15, %v3238_v28  ;;  %v5086_v0 = vpop.xlane.xlu0 %690  ;;  %v3337_v46 = vpop.permute.xlu1 %3336 }
 0x7d5   : > { %v2152_v39 = vpop.f32.mrf.mxu0  ;;  %v3339_v15 = vunpack.i.h.bf16 %v3337_v46 }
 0x7d6   : > { %v2207_v63 = vmul.f32 %v3700_v61, %v2152_v39  ;;  %v851_v39 = vmul.f32 %v3712_v14, %v5441_v40  ;;  %v5450_v40 = vld [vmem:[#allocation34_spill] sm:$0xff] }
 0x7d7   : > { %v3239_v57 = vpop.f32.mrf.mxu0 }
 0x7d8   : > { %v2210_v38 = vmul.f32 %v3692_v53, %v3239_v57  ;;  %3436 = vrot.lane.b32.xlu0 %v3435_v45, %s3783_s28  ;;  %v679_v49 = vpop.xlane.xlu0 %678  ;;  %v3347_v25 = vpop.permute.xlu1 %3346  ;;  %v5442_v53 = vld [vmem:[#allocation29_spill] sm:$0xff]  ;;  %v3338_v57 = vunpack.i.l.bf16 %v3337_v46 }
 0x7d9   : > { %v2155_v9 = vpop.f32.mrf.mxu0  ;;  %3733 = vrcp.f32 %v679_v49  ;;  %v3349_v28 = vunpack.i.h.bf16 %v3347_v25  ;;  %v3348_v8 = vunpack.i.l.bf16 %v3347_v25  ;;  %v852_v35 = vmul.f32 %v3714_v7, %v5442_v53  ;;  %v3720_v45 = vpop.eup %3719  ;;  %v5447_v49 = vld [vmem:[#allocation35_spill] sm:$0xff] }
 0x7da   : > { %v3420_v37 = vpack.i.bf16 %v2210_v38, %v2209_v48  ;;  %v2208_v58 = vmul.f32 %v3696_v6, %v2155_v9  ;;  %v3722_v38 = vpop.eup %3721  ;;  %3735 = vrcp.f32 %v5088_v4  ;;  %v5449_v4 = vld [vmem:[#allocation32_spill] sm:$0xff] }
 0x7db   : > { %v3242_v56 = vpop.f32.mrf.mxu0  ;;  %v2409_v6 = vsel %vm438_vm0, %v851_v39, %v3348_v8  ;;  %v2410_v9 = vsel %vm438_vm0, %v852_v35, %v3349_v28  ;;  %3737 = vrcp.f32 %v5086_v0  ;;  %v5448_v28 = vld [vmem:[#allocation37_spill] sm:$0xff]  ;;  %v5451_v35 = vld [vmem:[#allocation31_spill] sm:$0xff] }
 0x7dc   : > { %3446 = vrot.lane.b32.xlu0 %v3445_v16, %s3783_s28  ;;  %3421 = vrot.lane.b32.xlu1 %v3420_v37, %s3783_s28  ;;  %v3425_v31 = vpack.i.bf16 %v2208_v58, %v2207_v63  ;;  %v2213_v2 = vmul.f32 %v3710_v26, %v3242_v56  ;;  %v5090_v36 = vpop.xlane.xlu0 %694  ;;  %v5109_v33 = vpop.permute.xlu1 %3351  ;;  %v2408_v26 = vsel %vm438_vm0, %v850_v60, %v3339_v15  ;;  %3739 = vrcp.f32 %v5094_v62  ;;  %v5452_v15 = vld [vmem:[#allocation33_spill] sm:$0xff] }
 0x7dd   : > { %v2168_v47 = vpop.f32.mrf.mxu0  ;;  %v3724_v37 = vpop.eup %3723  ;;  %v3353_v25 = vunpack.i.l.bf16 %v5109_v33  ;;  %3741 = vrcp.f32 %v5090_v36  ;;  %v3354_v36 = vunpack.i.h.bf16 %v5109_v33 }
 0x7de   : > { %v2211_v24 = vmul.f32 %v3706_v52, %v2168_v47  ;;  %v3726_v44 = vpop.eup %3725  ;;  %v5443_v47 = vld [vmem:[#allocation28_spill] sm:$0xff]  ;;  %v859_v13 = vmul.f32 %v3724_v37, %v5447_v49 }
 0x7df   : > { %v3243_v11 = vpop.f32.mrf.mxu0  ;;  %v3728_v50 = vpop.eup %3727  ;;  %v860_v8 = vmul.f32 %v3726_v44, %v5448_v28 }
 0x7e0   : > { %3426 = vrot.lane.b32.xlu1 %v3425_v31, %s3783_s28  ;;  %v2214_v27 = vmul.f32 %v3708_v21, %v3243_v11  ;;  %v5092_v19 = vpop.permute.xlu0 %3341  ;;  %v5113_v54 = vpop.permute.xlu1 %3361  ;;  %v849_v31 = vmul.f32 %v3716_v51, %v5443_v47  ;;  %v853_v51 = vmul.f32 %v3728_v50, %v5449_v4 }
 0x7e1   : > { %v2171_v23 = vpop.f32.mrf.mxu0  ;;  %v3364_v17 = vunpack.i.h.bf16 %v5113_v54 }
 0x7e2   : > { %v2212_v43 = vmul.f32 %v3704_v5, %v2171_v23  ;;  %v3450_v12 = vpack.i.bf16 %v2214_v27, %v2213_v2  ;;  %v5445_v5 = vld [vmem:[#allocation36_spill] sm:$0xff]  ;;  %v3730_v27 = vpop.eup %3729 }
 0x7e3   : > { %v5132_v23 = vmul.f32 %v3720_v45, %v5445_v5  ;;  %v3732_v22 = vpop.eup %3731  ;;  %v854_v0 = vmul.f32 %v3730_v27, %v5450_v40 }
 0x7e4   : > { %3431 = vrot.lane.b32.xlu1 %v3430_v20, %s3784_s20  ;;  %v3440_v1 = vpack.i.bf16 %v2212_v43, %v2211_v24  ;;  %v5096_v18 = vpop.permute.xlu0 %3356  ;;  %v5119_v29 = vpop.permute.xlu1 %3371  ;;  %v5446_v43 = vld [vmem:[#allocation38_spill] sm:$0xff]  ;;  %v855_v45 = vmul.f32 %v3732_v22, %v5451_v35 }
 0x7e5   : > { %v3359_v58 = vunpack.i.h.bf16 %v5096_v18  ;;  %v3358_v61 = vunpack.i.l.bf16 %v5096_v18  ;;  %v5135_v20 = vmul.f32 %v3722_v38, %v5446_v43  ;;  %v3344_v38 = vunpack.i.h.bf16 %v5092_v19 }
 0x7e7   : > { %v2425_v18 = vsel %vm2423_vm1, %v2408_v26, %v3359_v58  ;;  %v2416_v4 = vsel %vm438_vm0, %v5135_v20, %v3344_v38 }
 0x7e8   : > { %3441 = vrot.lane.b32.xlu1 %v3440_v1, %s3783_s28  ;;  %v3367_v59 = vpop.permute.xlu0 %3366  ;;  %v5137_v52 = vpop.permute.xlu1 %3381  ;;  %v2407_v1 = vsel %vm438_vm0, %v849_v31, %v3338_v57 }
 0x7e9   : > { %v3369_v41 = vunpack.i.h.bf16 %v3367_v59  ;;  %v3368_v30 = vunpack.i.l.bf16 %v3367_v59  ;;  %v2424_v46 = vsel %vm2423_vm1, %v2407_v1, %v3358_v61  ;;  %v3734_v59 = vpop.eup %3733 }
 0x7ea   : > { %v856_v62 = vmul.f32 %v3734_v59, %v5452_v15  ;;  %v3383_v15 = vunpack.i.l.bf16 %v5137_v52 }
 0x7eb   : > { %v2427_v56 = vsel %vm2423_vm1, %v2410_v9, %v3369_v41  ;;  %v2426_v63 = vsel %vm2423_vm1, %v2409_v6, %v3368_v30  ;;  %v3343_v6 = vunpack.i.l.bf16 %v5092_v19  ;;  %v2417_v9 = vsel %vm438_vm0, %v859_v13, %v3353_v25 }
 0x7ec   : > { %3451 = vrot.lane.b32.xlu1 %v3450_v12, %s3783_s28  ;;  %v5104_v42 = vpop.permute.xlu0 %3376  ;;  %v5152_v41 = vpop.permute.xlu1 %3391 }
 0x7ed   : > { %v3379_v39 = vunpack.i.h.bf16 %v5104_v42  ;;  %v3378_v53 = vunpack.i.l.bf16 %v5104_v42  ;;  %v3374_v42 = vunpack.i.h.bf16 %v5119_v29 }
 0x7ef   : > { %v2412_v61 = vsel %vm438_vm0, %v854_v0, %v3379_v39  ;;  %v2411_v19 = vsel %vm438_vm0, %v853_v51, %v3378_v53  ;;  %v2415_v51 = vsel %vm438_vm0, %v5132_v23, %v3343_v6  ;;  %v2433_v39 = vsel %vm2423_vm1, %v2416_v4, %v3364_v17 }
 0x7f0   : > { %v5111_v34 = vpop.permute.xlu0 %3386  ;;  %v5170_v58 = vpop.permute.xlu1 %3401 }
 0x7f1   : > { %v3388_v37 = vunpack.i.l.bf16 %v5111_v34  ;;  %v3404_v6 = vunpack.i.h.bf16 %v5170_v58 }
 0x7f3   : > { %v2413_v50 = vsel %vm438_vm0, %v855_v45, %v3388_v37  ;;  %v3384_v45 = vunpack.i.h.bf16 %v5137_v52  ;;  %v3393_v52 = vunpack.i.l.bf16 %v5152_v41 }
 0x7f4   : > { %v5115_v55 = vpop.permute.xlu0 %3396 }
 0x7f5   : > { %v3399_v57 = vunpack.i.h.bf16 %v5115_v55 }
 0x7f7   : > { %v2429_v44 = vsel %vm2423_vm1, %v2412_v61, %v3399_v57  ;;  %v5453_v57 = vld [vmem:[#allocation40_spill] sm:$0xff] }
 0x83e   : > { %v3407_v48 = vpop.permute.xlu0 %3406 }
 0x83f   : > { %v3409_v32 = vunpack.i.h.bf16 %v3407_v48  ;;  %v3408_v16 = vunpack.i.l.bf16 %v3407_v48  ;;  %v3398_v48 = vunpack.i.l.bf16 %v5115_v55 }
 0x841   : > { %v2443_v11 = vsel %vm2440_vm2, %v2426_v63, %v3408_v16  ;;  %v2444_v10 = vsel %vm2440_vm2, %v2427_v56, %v3409_v32  ;;  %v3373_v32 = vunpack.i.l.bf16 %v5119_v29  ;;  %v3389_v16 = vunpack.i.h.bf16 %v5111_v34 }
 0x842   : > { %v2458_v24 = vpack.c.bf16 %v2444_v10, %v2443_v11  ;;  %v3412_v21 = vpop.permute.xlu0 %3411  ;;  %v2428_v63 = vsel %vm2423_vm1, %v2411_v19, %v3398_v48  ;;  %v2418_v29 = vsel %vm438_vm0, %v860_v8, %v3354_v36  ;;  %v3363_v11 = vunpack.i.l.bf16 %v5113_v54  ;;  %v3736_v54 = vpop.eup %3735  ;;  %v5454_v48 = vld [vmem:[#allocation42_spill] sm:$0xff] }
 0x843   : > { %v3414_v2 = vunpack.i.h.bf16 %v3412_v21  ;;  %v3413_v12 = vunpack.i.l.bf16 %v3412_v21  ;;  %v2414_v10 = vsel %vm438_vm0, %v856_v62, %v3389_v16  ;;  %v3738_v25 = vpop.eup %3737  ;;  %v861_v23 = vmul.f32 %v3736_v54, %v5453_v57 }
 0x844   : > { %v3740_v8 = vpop.eup %3739  ;;  %v2432_v0 = vsel %vm2423_vm1, %v2415_v51, %v3363_v11  ;;  %v862_v38 = vmul.f32 %v3738_v25, %v5454_v48  ;;  %v3403_v36 = vunpack.i.l.bf16 %v5170_v58  ;;  %v3394_v16 = vunpack.i.h.bf16 %v5152_v41  ;;  %v5455_v58 = vld [vmem:[#allocation39_spill] sm:$0xff]  ;;  %v2639_v51 = vld [vmem:[%s5225_s12 + $0x30] sm:$0xff] }
 0x845   : > { %v2441_v14 = vsel %vm2440_vm2, %v2424_v46, %v3413_v12  ;;  %v2442_v7 = vsel %vm2440_vm2, %v2425_v18, %v3414_v2  ;;  %v2434_v2 = vsel %vm2423_vm1, %v2417_v9, %v3373_v32  ;;  %v2435_v12 = vsel %vm2423_vm1, %v2418_v29, %v3374_v42  ;;  %v3742_v40 = vpop.eup %3741  ;;  %v2638_v48 = vld [vmem:[%s5225_s12 + $0x28] sm:$0xff] }
 0x846   : > { %v3417_v30 = vpop.permute.xlu0 %3416  ;;  %v2457_v3 = vpack.c.bf16 %v2442_v7, %v2441_v14  ;;  %v2419_v9 = vsel %vm438_vm0, %v861_v23, %v3383_v15  ;;  %v2420_v42 = vsel %vm438_vm0, %v862_v38, %v3384_v45 }
 0x847   : > { %v3419_v47 = vunpack.i.h.bf16 %v3417_v30  ;;  %v3418_v31 = vunpack.i.l.bf16 %v3417_v30  ;;  %v2436_v61 = vsel %vm2423_vm1, %v2419_v9, %v3403_v36  ;;  %v2437_v19 = vsel %vm2423_vm1, %v2420_v42, %v3404_v6  ;;  %v2641_v9 = vld [vmem:[%s5225_s12 + $0x40] sm:$0xff] }
 0x848   : > { %3260 = vmatprep.mubr.bf16.mxu0 %v2457_v3 }
 0x849   : > { %3261 = vmatmul.mubr.bf16.vlgmr.msra.gmra.mxu0 %v2458_v24  ;;  %v2430_v22 = vsel %vm2423_vm1, %v2413_v50, %v3418_v31  ;;  %v2431_v49 = vsel %vm2423_vm1, %v2414_v10, %v3419_v47 }
 0x84a   : > { %v3437_v55 = vpop.permute.xlu0 %3436 }
 0x84b   : > { %v3439_v56 = vunpack.i.h.bf16 %v3437_v55  ;;  %v3438_v33 = vunpack.i.l.bf16 %v3437_v55 }
 0x84d   : > { %v2445_v34 = vsel %vm2440_vm2, %v2428_v63, %v3438_v33  ;;  %v2446_v60 = vsel %vm2440_vm2, %v2429_v44, %v3439_v56  ;;  %v863_v63 = vmul.f32 %v3740_v8, %v5455_v58  ;;  %v5456_v44 = vld [vmem:[#allocation41_spill] sm:$0xff] }
 0x84e   : > { %v3422_v5 = vpop.permute.xlu1 %3421  ;;  %v3447_v43 = vpop.permute.xlu0 %3446  ;;  %v2459_v24 = vpack.c.bf16 %v2446_v60, %v2445_v34  ;;  %v864_v47 = vmul.f32 %v3742_v40, %v5456_v44  ;;  %v2637_v40 = vld [vmem:[%s5225_s12 + $0x20] sm:$0xff] }
 0x84f   : > { %v3424_v21 = vunpack.i.h.bf16 %v3422_v5  ;;  %v3423_v27 = vunpack.i.l.bf16 %v3422_v5  ;;  %v3449_v1 = vunpack.i.h.bf16 %v3447_v43  ;;  %v3448_v26 = vunpack.i.l.bf16 %v3447_v43 }
 0x850   : > { %3264 = vmatprep.mubr.bf16.mxu0 %v2459_v24  ;;  %v2421_v41 = vsel %vm438_vm0, %v863_v63, %v3393_v52  ;;  %v2422_v60 = vsel %vm438_vm0, %v864_v47, %v3394_v16  ;;  %v2647_v47 = vld [vmem:[%s5225_s12 + $0x70] sm:$0xff] }
 0x851   : > { %v2452_v13 = vsel %vm2440_vm2, %v2435_v12, %v3424_v21  ;;  %v2451_v18 = vsel %vm2440_vm2, %v2434_v2, %v3423_v27  ;;  %v2447_v46 = vsel %vm2440_vm2, %v2430_v22, %v3448_v26  ;;  %v2448_v59 = vsel %vm2440_vm2, %v2431_v49, %v3449_v1  ;;  %v5230_v27 = vld [vmem:[%s5294_s5] ss:$0 sm:$0xff]  ;;  %v2635_v26 = vld [vmem:[%s5225_s12 + $0x10] sm:$0xff] }
 0x852   : > { %v2462_v14 = vpack.c.bf16 %v2452_v13, %v2451_v18  ;;  %v3427_v7 = vpop.permute.xlu1 %3426  ;;  %v2460_v28 = vpack.c.bf16 %v2448_v59, %v2447_v46  ;;  %v2633_v22 = vld [vmem:[%s5225_s12] sm:$0xff]  ;;  %v2636_v18 = vld [vmem:[%s5225_s12 + $0x18] sm:$0xff] }
 0x853   : > { %v3429_v30 = vunpack.i.h.bf16 %v3427_v7  ;;  %v3428_v3 = vunpack.i.l.bf16 %v3427_v7 }
 0x854   : > { %3265 = vmatmul.mubr.bf16.gmra.mxu0 %v2460_v28 }
 0x855   : > { %v2449_v53 = vsel %vm2440_vm2, %v2432_v0, %v3428_v3  ;;  %v2450_v35 = vsel %vm2440_vm2, %v2433_v39, %v3429_v30 }
 0x856   : > { %v3432_v20 = vpop.permute.xlu1 %3431  ;;  %v2461_v62 = vpack.c.bf16 %v2450_v35, %v2449_v53  ;;  %v2640_v35 = vld [vmem:[%s5225_s12 + $0x38] sm:$0xff] }
 0x857   : > { %v3434_v56 = vunpack.i.h.bf16 %v3432_v20  ;;  %v3433_v33 = vunpack.i.l.bf16 %v3432_v20 }
 0x858   : > { %3268 = vmatprep.mubr.bf16.mxu1 %v2461_v62  ;;  %v2643_v62 = vld [vmem:[%s5225_s12 + $0x50] sm:$0xff] }
 0x859   : > { %3269 = vmatmul.mubr.bf16.vlgmr.msra.gmra.mxu1 %v2462_v14  ;;  %v2438_v50 = vsel %vm2423_vm1, %v2421_v41, %v3433_v33  ;;  %v2439_v5 = vsel %vm2423_vm1, %v2422_v60, %v3434_v56  ;;  %v2634_v14 = vld [vmem:[%s5225_s12 + $0x8] sm:$0xff] }
 0x85a   : > { %v3442_v32 = vpop.permute.xlu1 %3441  ;;  %v2642_v56 = vld [vmem:[%s5225_s12 + $0x48] sm:$0xff] }
 0x85b   : > { %v3444_v37 = vunpack.i.h.bf16 %v3442_v32  ;;  %v3443_v55 = vunpack.i.l.bf16 %v3442_v32 }
 0x85d   : > { %v2453_v31 = vsel %vm2440_vm2, %v2436_v61, %v3443_v55  ;;  %v2454_v29 = vsel %vm2440_vm2, %v2437_v19, %v3444_v37  ;;  %v2644_v37 = vld [vmem:[%s5225_s12 + $0x58] sm:$0xff] }
 0x85e   : > { %v3452_v17 = vpop.permute.xlu1 %3451  ;;  %v2463_v34 = vpack.c.bf16 %v2454_v29, %v2453_v31 }
 0x85f   : > { %v3454_v11 = vunpack.i.h.bf16 %v3452_v17  ;;  %v3453_v10 = vunpack.i.l.bf16 %v3452_v17  ;;  %v2645_v17 = vld [vmem:[%s5225_s12 + $0x60] sm:$0xff] }
 0x860   : > { %3272 = vmatprep.mubr.bf16.mxu1 %v2463_v34 }
 0x861   : > { %v2455_v43 = vsel %vm2440_vm2, %v2438_v50, %v3453_v10  ;;  %v2456_v24 = vsel %vm2440_vm2, %v2439_v5, %v3454_v11  ;;  %v2648_v11 = vld [vmem:[%s5225_s12 + $0x78] sm:$0xff] }
 0x862   : > { %v2464_v21 = vpack.c.bf16 %v2456_v24, %v2455_v43  ;;  %v2646_v43 = vld [vmem:[%s5225_s12 + $0x68] sm:$0xff] }
 0x864   : > { %3273 = vmatmul.mubr.bf16.gmra.mxu1 %v2464_v21 }
 0x909   : > { %v3262_v1 = vpop.f32.mrf.mxu0 }
 0x90a   : > { %v2579_v2 = vadd.f32 %v3262_v1, %v5230_v27 }
 0x90b   : > { %v2570_v12 = vpop.f32.mrf.mxu0 }
 0x90c   : > { %v2651_v49 = vadd.f32 %v2635_v26, %v2579_v2  ;;  %v2571_v54 = vadd.f32 %v5230_v27, %v2570_v12 }
 0x90d   : > { %v3263_v13 = vpop.f32.mrf.mxu0 }
 0x90e   : > { %2667 = vst [vmem:[%s5238_s16 + $0x10] sm:$0xff] %v2651_v49  ;;  %v2649_v46 = vadd.f32 %v2633_v22, %v2571_v54  ;;  %v2582_v59 = vadd.f32 %v3263_v13, %v5230_v27 }
 0x90f   : > { %v2573_v25 = vpop.f32.mrf.mxu0 }
 0x910   : > { %2665 = vst [vmem:[%s5238_s16] sm:$0xff] %v2649_v46  ;;  %v2652_v7 = vadd.f32 %v2636_v18, %v2582_v59  ;;  %v2574_v28 = vadd.f32 %v5230_v27, %v2573_v25 }
 0x912   : > { %2668 = vst [vmem:[%s5238_s16 + $0x18] sm:$0xff] %v2652_v7  ;;  %v2650_v8 = vadd.f32 %v2634_v14, %v2574_v28 }
 0x914   : > { %2666 = vst [vmem:[%s5238_s16 + $0x8] sm:$0xff] %v2650_v8  ;;  %v3266_v4 = vpop.f32.mrf.mxu0 }
 0x915   : > { %v2595_v30 = vadd.f32 %v3266_v4, %v5230_v27 }
 0x916   : > { %v2586_v3 = vpop.f32.mrf.mxu0 }
 0x917   : > { %v2655_v0 = vadd.f32 %v2639_v51, %v2595_v30  ;;  %v2587_v39 = vadd.f32 %v5230_v27, %v2586_v3 }
 0x918   : > { %v3267_v53 = vpop.f32.mrf.mxu0 }
 0x919   : > { %2671 = vst [vmem:[%s5238_s16 + $0x30] sm:$0xff] %v2655_v0  ;;  %v2653_v45 = vadd.f32 %v2637_v40, %v2587_v39  ;;  %v2598_v15 = vadd.f32 %v3267_v53, %v5230_v27  ;;  %v3270_v20 = vpop.f32.mrf.mxu1 }
 0x91a   : > { %v2611_v57 = vadd.f32 %v3270_v20, %v5230_v27  ;;  %v2589_v23 = vpop.f32.mrf.mxu0 }
 0x91b   : > { %2669 = vst [vmem:[%s5238_s16 + $0x20] sm:$0xff] %v2653_v45  ;;  %v2656_v38 = vadd.f32 %v2640_v35, %v2598_v15  ;;  %v2590_v6 = vadd.f32 %v5230_v27, %v2589_v23  ;;  %v2602_v36 = vpop.f32.mrf.mxu1 }
 0x91c   : > { %v2659_v42 = vadd.f32 %v2643_v62, %v2611_v57  ;;  %v2603_v32 = vadd.f32 %v5230_v27, %v2602_v36 }
 0x91d   : > { %2672 = vst [vmem:[%s5238_s16 + $0x38] sm:$0xff] %v2656_v38  ;;  %v2654_v16 = vadd.f32 %v2638_v48, %v2590_v6  ;;  %v3271_v52 = vpop.f32.mrf.mxu1 }
 0x91e   : > { %2675 = vst [vmem:[%s5238_s16 + $0x50] sm:$0xff] %v2659_v42  ;;  %v2657_v55 = vadd.f32 %v2641_v9, %v2603_v32  ;;  %v2614_v61 = vadd.f32 %v3271_v52, %v5230_v27 }
 0x91f   : > { %2670 = vst [vmem:[%s5238_s16 + $0x28] sm:$0xff] %v2654_v16  ;;  %v2605_v19 = vpop.f32.mrf.mxu1 }
 0x920   : > { %2673 = vst [vmem:[%s5238_s16 + $0x40] sm:$0xff] %v2657_v55  ;;  %v2660_v33 = vadd.f32 %v2644_v37, %v2614_v61  ;;  %v2606_v58 = vadd.f32 %v5230_v27, %v2605_v19 }
 0x922   : > { %2676 = vst [vmem:[%s5238_s16 + $0x58] sm:$0xff] %v2660_v33  ;;  %v2658_v63 = vadd.f32 %v2642_v56, %v2606_v58 }
 0x924   : > { %2674 = vst [vmem:[%s5238_s16 + $0x48] sm:$0xff] %v2658_v63  ;;  %v3274_v44 = vpop.f32.mrf.mxu1 }
 0x925   : > { %v2627_v31 = vadd.f32 %v3274_v44, %v5230_v27 }
 0x926   : > { %v2618_v29 = vpop.f32.mrf.mxu1 }
 0x927   : > { %v2663_v34 = vadd.f32 %v2647_v47, %v2627_v31  ;;  %v2619_v41 = vadd.f32 %v5230_v27, %v2618_v29 }
 0x928   : > { %v3275_v60 = vpop.f32.mrf.mxu1 }
 0x929   : > { %2679 = vst [vmem:[%s5238_s16 + $0x70] sm:$0xff] %v2663_v34  ;;  %v2661_v10 = vadd.f32 %v2645_v17, %v2619_v41  ;;  %v2630_v50 = vadd.f32 %v3275_v60, %v5230_v27 }
 0x92a   : > { %v2621_v5 = vpop.f32.mrf.mxu1 }
 0x92b   : > { %2677 = vst [vmem:[%s5238_s16 + $0x60] sm:$0xff] %v2661_v10  ;;  %v2664_v24 = vadd.f32 %v2648_v11, %v2630_v50  ;;  %v2622_v21 = vadd.f32 %v5230_v27, %v2621_v5 }
 0x92d   : > { %2680 = vst [vmem:[%s5238_s16 + $0x78] sm:$0xff] %v2664_v24  ;;  %v2662_v1 = vadd.f32 %v2646_v43, %v2622_v21 }
 0x92f   : > { %2678 = vst [vmem:[%s5238_s16 + $0x68] sm:$0xff] %v2662_v1 }
 0x930 PF: > { %s16_s21 = sadd.s32 1, %s3781_s21  }
 0x931   : > { %p13_p4 = scmp.ge.s32.totalorder %s16_s21, 4  }
 0x933   :  { %15 = sbr.rel (!%p13_p4) target bundleno = 1 (0x1), region = 80 }

// kernel: decoder_forward_pallas.17
= control target key start
LH: loop header
LB: loop body
LE: loop exit
PB: predicated region body
PF: predicated region fallthrough
CT: control target
= control target key end

     0   :  { %s1520_s24 = smov 0   ;;  %s2002_s0 = inlined_call_operand.vmem [shape: f32[256,128], index: 0, kind: input, shape index: {}]   ;;  %s2003_s1 = inlined_call_operand.vmem [shape: f32[1,128], index: 1, kind: input, shape index: {}]   ;;  %s2004_s2 = inlined_call_operand.vmem [shape: f32[1,128], index: 2, kind: input, shape index: {}]   ;;  %s2005_s3 = inlined_call_operand.vmem [shape: bf16[128,256], index: 3, kind: input, shape index: {}]   ;;  %s2006_s4 = inlined_call_operand.vmem [shape: f32[1,256], index: 4, kind: input, shape index: {}]   ;;  %s2007_s5 = inlined_call_operand.vmem [shape: bf16[256,128], index: 5, kind: input, shape index: {}]   ;;  %s2008_s6 = inlined_call_operand.vmem [shape: f32[1,128], index: 6, kind: input, shape index: {}]   ;;  %s2009_s7 = inlined_call_operand.vmem [shape: f32[256,128], index: 7, kind: output, shape index: {}]  }
   0x1 LB: > { %s1232_s25 = sadd.s32 4294967295, %s1477_s24   ;;  %p1236_p0 = scmp.ge.s32.totalorder %s1477_s24, 1  ;;  %s1477_s24 = sphi %s1520_s24, %s17_s24  }
   0x2   : > { %p238_p1 = scmp.lt.s32.totalorder %s1477_s24, 3 }
   0x4   : > { %p239_p2 = pnand %p1236_p0, %p238_p1 }
   0x5   : > { %s1237_s26 = sshll.u32 (!%p239_p2), %s1232_s25, 4 }
   0x6   : > { %242 = sbr.rel (%p239_p2) target bundleno = 813 (0x32d), region = 48  ;;  %p271_p3 = scmp.lt.s32.totalorder (!%p239_p2), %s1237_s26, 31 }
   0xb   : > { %s2011_s26 = smov (!%p271_p3, %s1237_s26), 31 }
   0xc   : > { %s1238_s27 = sshll.u32 %s2011_s26, 3 }
   0xd   : > { %s1536_s30 = scalar_lea.vmem %s2002_s0, %s1238_s27  ;;  %s1950_s28 = scalar_lea.vmem %s2009_s7, %s1238_s27 }
   0xe   : > { %v283_v0 = vld [vmem:[%s1536_s30] sm:$0xff]  ;;  %v285_v1 = vld [vmem:[%s1536_s30 + $0x10] sm:$0xff]  ;;  %v284_v2 = vld [vmem:[%s1536_s30 + $0x8] sm:$0xff] }
   0xf   : > { %301 = vadd.xlane.f32.xlu0 %v283_v0  ;;  %305 = vadd.xlane.f32.xlu1 %v285_v1  ;;  %v286_v3 = vld [vmem:[%s1536_s30 + $0x18] sm:$0xff]  ;;  %v287_v4 = vld [vmem:[%s1536_s30 + $0x20] sm:$0xff]  ;;  %v288_v5 = vld [vmem:[%s1536_s30 + $0x28] sm:$0xff] }
  0x10   : > { %v289_v6 = vld [vmem:[%s1536_s30 + $0x30] sm:$0xff]  ;;  %v290_v7 = vld [vmem:[%s1536_s30 + $0x38] sm:$0xff]  ;;  %v291_v8 = vld [vmem:[%s1536_s30 + $0x40] sm:$0xff] }
  0x11   : > { %v292_v9 = vld [vmem:[%s1536_s30 + $0x48] sm:$0xff]  ;;  %v293_v10 = vld [vmem:[%s1536_s30 + $0x50] sm:$0xff]  ;;  %v1550_v11 = vld [vmem:[%s1536_s30 + $0x58] sm:$0xff] }
  0x12   : > { %v1554_v12 = vld [vmem:[%s1536_s30 + $0x60] sm:$0xff]  ;;  %v1557_v13 = vld [vmem:[%s1536_s30 + $0x68] sm:$0xff]  ;;  %v1562_v14 = vld [vmem:[%s1536_s30 + $0x70] sm:$0xff] }
  0x13   : > { %303 = vadd.xlane.f32.xlu0 %v284_v2  ;;  %307 = vadd.xlane.f32.xlu1 %v286_v3  ;;  %v1565_v15 = vld [vmem:[%s1536_s30 + $0x78] sm:$0xff] }
  0x17   : > { %309 = vadd.xlane.f32.xlu0 %v287_v4  ;;  %311 = vadd.xlane.f32.xlu1 %v288_v5 }
  0x1b   : > { %313 = vadd.xlane.f32.xlu0 %v289_v6  ;;  %315 = vadd.xlane.f32.xlu1 %v290_v7 }
  0x1f   : > { %317 = vadd.xlane.f32.xlu0 %v291_v8  ;;  %319 = vadd.xlane.f32.xlu1 %v292_v9 }
  0x23   : > { %321 = vadd.xlane.f32.xlu0 %v293_v10  ;;  %323 = vadd.xlane.f32.xlu1 %v1550_v11 }
  0x27   : > { %325 = vadd.xlane.f32.xlu0 %v1554_v12  ;;  %327 = vadd.xlane.f32.xlu1 %v1557_v13 }
  0x2b   : > { %329 = vadd.xlane.f32.xlu0 %v1562_v14  ;;  %331 = vadd.xlane.f32.xlu1 %v1565_v15 }
  0x98   : > { %v302_v16 = vpop.xlane.xlu0 %301  ;;  %v306_v17 = vpop.xlane.xlu1 %305 }
  0x99   : > { %v334_v18 = vmul.f32 0.0078125, %v302_v16  ;;  %v336_v19 = vmul.f32 0.0078125, %v306_v17  ;;  %v1351_v16 = vld [vmem:[%s2005_s3 + $0x74] ss:$8 sps:$4 sm:$0xff]  }
  0x9a   : > { %751 = vmatprep.subr.bf16.mxu0 %v1351_v16 }
  0x9b   : > { %v1569_v20 = vsub.f32 %v283_v0, %v334_v18  ;;  %v1571_v21 = vsub.f32 %v285_v1, %v336_v19  ;;  %v1354_v18 = vld [vmem:[%s2005_s3 + $0x64] ss:$8 sps:$4 sm:$0xff]   ;;  %v1356_v19 = vld [vmem:[%s2005_s3 + $0x60] ss:$8 sps:$4 sm:$0xff]  }
  0x9c   : > { %v304_v22 = vpop.xlane.xlu0 %303  ;;  %v308_v23 = vpop.xlane.xlu1 %307 }
  0x9d   : > { %v335_v24 = vmul.f32 0.0078125, %v304_v22  ;;  %v366_v25 = vmul.f32 %v1569_v20, %v1569_v20  ;;  %v337_v26 = vmul.f32 0.0078125, %v308_v23  ;;  %v368_v29 = vmul.f32 %v1571_v21, %v1571_v21  ;;  %v1357_v22 = vld [vmem:[%s2005_s3 + $0x54] ss:$8 sps:$4 sm:$0xff]   ;;  %v1359_v23 = vld [vmem:[%s2005_s3 + $0x50] ss:$8 sps:$4 sm:$0xff]  }
  0x9f   : > { %v1575_v27 = vsub.f32 %v284_v2, %v335_v24  ;;  %382 = vadd.xlane.f32.xlu0 %v366_v25  ;;  %v1577_v28 = vsub.f32 %v286_v3, %v337_v26  ;;  %v1360_v24 = vld [vmem:[%s2005_s3 + $0x44] ss:$8 sps:$4 sm:$0xff]   ;;  %v1362_v25 = vld [vmem:[%s2005_s3 + $0x40] ss:$8 sps:$4 sm:$0xff]   ;;  %v1363_v26 = vld [vmem:[%s2005_s3 + $0x34] ss:$8 sps:$4 sm:$0xff]  }
  0xa0   : > { %v310_v30 = vpop.xlane.xlu0 %309  ;;  %v312_v31 = vpop.xlane.xlu1 %311 }
  0xa1   : > { %v338_v32 = vmul.f32 0.0078125, %v310_v30  ;;  %v367_v33 = vmul.f32 %v1575_v27, %v1575_v27  ;;  %v339_v34 = vmul.f32 0.0078125, %v312_v31  ;;  %v369_v37 = vmul.f32 %v1577_v28, %v1577_v28  ;;  %v1366_v30 = vld [vmem:[%s2005_s3 + $0x24] ss:$8 sps:$4 sm:$0xff]   ;;  %v1368_v31 = vld [vmem:[%s2005_s3 + $0x20] ss:$8 sps:$4 sm:$0xff]  }
  0xa3   : > { %v1583_v35 = vsub.f32 %v287_v4, %v338_v32  ;;  %386 = vadd.xlane.f32.xlu0 %v368_v29  ;;  %384 = vadd.xlane.f32.xlu1 %v367_v33  ;;  %v1585_v36 = vsub.f32 %v288_v5, %v339_v34  ;;  %v1365_v29 = vld [vmem:[%s2005_s3 + $0x30] ss:$8 sps:$4 sm:$0xff]   ;;  %v1369_v32 = vld [vmem:[%s2005_s3 + $0x14] ss:$8 sps:$4 sm:$0xff]   ;;  %v1372_v34 = vld [vmem:[%s2005_s3 + $0x4] ss:$8 sps:$4 sm:$0xff]  }
  0xa4   : > { %v314_v38 = vpop.xlane.xlu0 %313  ;;  %v316_v39 = vpop.xlane.xlu1 %315  ;;  %v1371_v33 = vld [vmem:[%s2005_s3 + $0x10] ss:$8 sps:$4 sm:$0xff]  }
  0xa5   : > { %v340_v40 = vmul.f32 0.0078125, %v314_v38  ;;  %v370_v41 = vmul.f32 %v1583_v35, %v1583_v35  ;;  %v341_v42 = vmul.f32 0.0078125, %v316_v39  ;;  %v371_v45 = vmul.f32 %v1585_v36, %v1585_v36  ;;  %v1375_v39 = vld [vmem:[%s2007_s5 + $0x78] sm:$0xff]  }
  0xa6   : > { %v1479_v38 = vmov 0   ;;  %1278 = vmatprep.subr.bf16.mxu1 %v1375_v39 }
  0xa7   : > { %v1591_v43 = vsub.f32 %v289_v6, %v340_v40  ;;  %388 = vadd.xlane.f32.xlu1 %v369_v37  ;;  %390 = vadd.xlane.f32.xlu0 %v370_v41  ;;  %v1593_v44 = vsub.f32 %v290_v7, %v341_v42  ;;  %v1374_v37 = vld [vmem:[%s2005_s3] ss:$8 sps:$4 sm:$0xff]   ;;  %v1376_v40 = vld [vmem:[%s2007_s5 + $0x38] sm:$0xff]   ;;  %v1377_v41 = vld [vmem:[%s2007_s5 + $0x70] sm:$0xff]  }
  0xa8   : > { %v318_v46 = vpop.xlane.xlu0 %317  ;;  %v320_v47 = vpop.xlane.xlu1 %319  ;;  %783 = vmatprep.mubr.bf16.mxu0 %v1479_v38  ;;  %1279 = vmatpush3.bf16.msra.mxu1 %v1376_v40  ;;  %v1378_v42 = vld [vmem:[%s2007_s5 + $0x30] sm:$0xff]  }
  0xa9   : > { %v342_v48 = vmul.f32 0.0078125, %v318_v46  ;;  %v372_v49 = vmul.f32 %v1591_v43, %v1591_v43  ;;  %v343_v50 = vmul.f32 0.0078125, %v320_v47  ;;  %v373_v53 = vmul.f32 %v1593_v44, %v1593_v44  ;;  %1280 = vmatprep.subr.bf16.mxu1 %v1377_v41  ;;  %v1380_v46 = vld [vmem:[%s2007_s5 + $0x28] sm:$0xff]   ;;  %v1381_v47 = vld [vmem:[%s2007_s5 + $0x60] sm:$0xff]  }
  0xab   : > { %v1599_v51 = vsub.f32 %v291_v8, %v342_v48  ;;  %392 = vadd.xlane.f32.xlu1 %v371_v45  ;;  %394 = vadd.xlane.f32.xlu0 %v372_v49  ;;  %v1601_v52 = vsub.f32 %v292_v9, %v343_v50  ;;  %v1379_v45 = vld [vmem:[%s2007_s5 + $0x68] sm:$0xff]   ;;  %v1382_v48 = vld [vmem:[%s2007_s5 + $0x20] sm:$0xff]   ;;  %v1383_v49 = vld [vmem:[%s2007_s5 + $0x58] sm:$0xff]  }
  0xac   : > { %v322_v54 = vpop.xlane.xlu0 %321  ;;  %v324_v55 = vpop.xlane.xlu1 %323  ;;  %1281 = vmatpush3.bf16.msra.mxu1 %v1378_v42  ;;  %v1384_v50 = vld [vmem:[%s2007_s5 + $0x18] sm:$0xff]  }
  0xad   : > { %v344_v56 = vmul.f32 0.0078125, %v322_v54  ;;  %v374_v57 = vmul.f32 %v1599_v51, %v1599_v51  ;;  %v345_v58 = vmul.f32 0.0078125, %v324_v55  ;;  %v375_v61 = vmul.f32 %v1601_v52, %v1601_v52  ;;  %1282 = vmatprep.subr.bf16.mxu1 %v1379_v45 }
  0xaf   : > { %v1607_v59 = vsub.f32 %v293_v10, %v344_v56  ;;  %396 = vadd.xlane.f32.xlu1 %v373_v53  ;;  %398 = vadd.xlane.f32.xlu0 %v374_v57  ;;  %v1610_v60 = vsub.f32 %v1550_v11, %v345_v58 }
  0xb0   : > { %v326_v62 = vpop.xlane.xlu0 %325  ;;  %v328_v63 = vpop.xlane.xlu1 %327  ;;  %1283 = vmatpush3.bf16.msra.mxu1 %v1380_v46 }
  0xb1   : > { %v346_v0 = vmul.f32 0.0078125, %v326_v62  ;;  %v376_v1 = vmul.f32 %v1607_v59, %v1607_v59  ;;  %v347_v2 = vmul.f32 0.0078125, %v328_v63  ;;  %v377_v5 = vmul.f32 %v1610_v60, %v1610_v60  ;;  %1284 = vmatprep.subr.bf16.mxu1 %v1381_v47 }
  0xb3   : > { %v1617_v3 = vsub.f32 %v1554_v12, %v346_v0  ;;  %400 = vadd.xlane.f32.xlu1 %v375_v61  ;;  %402 = vadd.xlane.f32.xlu0 %v376_v1  ;;  %v1620_v4 = vsub.f32 %v1557_v13, %v347_v2 }
  0xb4   : > { %v330_v6 = vpop.xlane.xlu0 %329  ;;  %v332_v7 = vpop.xlane.xlu1 %331  ;;  %1285 = vmatpush3.bf16.msra.mxu1 %v1382_v48 }
  0xb5   : > { %v348_v8 = vmul.f32 0.0078125, %v330_v6  ;;  %v378_v9 = vmul.f32 %v1617_v3, %v1617_v3  ;;  %v349_v10 = vmul.f32 0.0078125, %v332_v7  ;;  %v379_v13 = vmul.f32 %v1620_v4, %v1620_v4  ;;  %1286 = vmatprep.subr.bf16.mxu1 %v1383_v49 }
  0xb7   : > { %v1627_v11 = vsub.f32 %v1562_v14, %v348_v8  ;;  %404 = vadd.xlane.f32.xlu1 %v377_v5  ;;  %406 = vadd.xlane.f32.xlu0 %v378_v9  ;;  %v1630_v12 = vsub.f32 %v1565_v15, %v349_v10  ;;  %v1353_v14 = vld [vmem:[%s2005_s3 + $0x70] ss:$8 sps:$4 sm:$0xff]  }
  0xb8   : > { %752 = vmatpush1.bf16.msra.mxu0 %v1353_v14  ;;  %1287 = vmatpush3.bf16.msra.mxu1 %v1384_v50 }
  0xb9   : > { %v380_v17 = vmul.f32 %v1627_v11, %v1627_v11  ;;  %v381_v15 = vmul.f32 %v1630_v12, %v1630_v12  ;;  %753 = vmatprep.subr.bf16.mxu0 %v1354_v18 }
  0xbb   : > { %408 = vadd.xlane.f32.xlu1 %v379_v13  ;;  %410 = vadd.xlane.f32.xlu0 %v380_v17 }
  0xbc   : > { %754 = vmatpush1.bf16.msra.mxu0 %v1356_v19 }
  0xbd   : > { %755 = vmatprep.subr.bf16.mxu0 %v1357_v22 }
  0xbf   : > { %412 = vadd.xlane.f32.xlu1 %v381_v15 }
  0xc0   : > { %756 = vmatpush1.bf16.msra.mxu0 %v1359_v23 }
  0xc1   : > { %757 = vmatprep.subr.bf16.mxu0 %v1360_v24 }
  0xc4   : > { %758 = vmatpush1.bf16.msra.mxu0 %v1362_v25 }
  0xc5   : > { %759 = vmatprep.subr.bf16.mxu0 %v1363_v26 }
  0xc8   : > { %760 = vmatpush1.bf16.msra.mxu0 %v1365_v29 }
  0xc9   : > { %761 = vmatprep.subr.bf16.mxu0 %v1366_v30 }
  0xcc   : > { %762 = vmatpush1.bf16.msra.mxu0 %v1368_v31 }
  0xcd   : > { %763 = vmatprep.subr.bf16.mxu0 %v1369_v32 }
  0xd0   : > { %764 = vmatpush1.bf16.msra.mxu0 %v1371_v33 }
  0xd1   : > { %765 = vmatprep.subr.bf16.mxu0 %v1372_v34 }
  0xd4   : > { %766 = vmatpush1.bf16.msra.mxu0 %v1374_v37 }
 0x128   : > { %v383_v53 = vpop.xlane.xlu0 %382 }
 0x129   : > { %v415_v54 = vmul.f32 0.007874016, %v383_v53 }
 0x12b   : > { %1391 = vrsqrt.f32 %v415_v54  ;;  %vm433_vm0 = vcmp.eq.f32.partialorder %v415_v54, inf  ;;  %v436_v16 = vand.u32 2147483648, %v415_v54  ;;  %vm435_vm1 = vcmp.eq.f32.partialorder %v415_v54, 0.0 }
 0x12c   : > { %v385_v55 = vpop.xlane.xlu1 %384  ;;  %v387_v56 = vpop.xlane.xlu0 %386 }
 0x12d   : > { %v416_v57 = vmul.f32 0.007874016, %v385_v55  ;;  %v417_v58 = vmul.f32 0.007874016, %v387_v56 }
 0x12f   : > { %1393 = vrsqrt.f32 %v416_v57  ;;  %vm440_vm2 = vcmp.eq.f32.partialorder %v416_v57, inf  ;;  %vm442_vm3 = vcmp.eq.f32.partialorder %v416_v57, 0.0  ;;  %v443_v25 = vand.u32 2147483648, %v416_v57 }
 0x130   : > { %1395 = vrsqrt.f32 %v417_v58  ;;  %v389_v61 = vpop.xlane.xlu1 %388  ;;  %v391_v62 = vpop.xlane.xlu0 %390  ;;  %vm447_vm4 = vcmp.eq.f32.partialorder %v417_v58, inf  ;;  %v450_v31 = vand.u32 2147483648, %v417_v58  ;;  %vm449_vm5 = vcmp.eq.f32.partialorder %v417_v58, 0.0 }
 0x131   : > { %v418_v63 = vmul.f32 0.007874016, %v389_v61  ;;  %v1717_v0 = vmul.f32 0.007874016, %v391_v62 }
 0x133   : > { %1397 = vrsqrt.f32 %v418_v63  ;;  %vm454_vm6 = vcmp.eq.f32.partialorder %v418_v63, inf  ;;  %vm456_vm7 = vcmp.eq.f32.partialorder %v418_v63, 0.0  ;;  %v457_v46 = vand.u32 2147483648, %v418_v63 }
 0x134   : > { %1399 = vrsqrt.f32 %v1717_v0  ;;  %v393_v1 = vpop.xlane.xlu1 %392  ;;  %v395_v2 = vpop.xlane.xlu0 %394  ;;  %vm461_vm8 = vcmp.eq.f32.partialorder %v1717_v0, inf  ;;  %vm463_vm9 = vcmp.eq.f32.partialorder %v1717_v0, 0.0  ;;  %v464_v55 = vand.u32 2147483648, %v1717_v0 }
 0x135   : > { %v1720_v5 = vmul.f32 0.007874016, %v393_v1  ;;  %v1722_v6 = vmul.f32 0.007874016, %v395_v2 }
 0x137   : > { %1401 = vrsqrt.f32 %v1720_v5  ;;  %vm468_vm10 = vcmp.eq.f32.partialorder %v1720_v5, inf  ;;  %vm470_vm11 = vcmp.eq.f32.partialorder %v1720_v5, 0.0  ;;  %vm475_vm12 = vcmp.eq.f32.partialorder %v1722_v6, inf }
 0x138   : > { %v1392_v7 = vpop.eup %1391  ;;  %1403 = vrsqrt.f32 %v1722_v6  ;;  %v397_v8 = vpop.xlane.xlu1 %396  ;;  %vm477_vm13 = vcmp.eq.f32.partialorder %v1722_v6, 0.0 }
 0x139   : > { %v399_v9 = vpop.xlane.xlu0 %398  ;;  %v432_v10 = vmul.f32 %v1392_v7, %v415_v54  ;;  %v1726_v13 = vmul.f32 0.007874016, %v397_v8 }
 0x13a   : > { %v1728_v17 = vmul.f32 0.007874016, %v399_v9 }
 0x13b   : > { %v434_v14 = vsel %vm433_vm0, %v415_v54, %v432_v10  ;;  %1405 = vrsqrt.f32 %v1726_v13  ;;  %vm482_vm14 = vcmp.eq.f32.partialorder %v1726_v13, inf  ;;  %vm484_vm15 = vcmp.eq.f32.partialorder %v1726_v13, 0.0 }
 0x13c   : > { %v1394_v15 = vpop.eup %1393  ;;  %v437_v18 = vsel %vm435_vm1, %v436_v16, %v434_v14  ;;  %v401_v19 = vpop.xlane.xlu1 %400  ;;  %1407 = vrsqrt.f32 %v1728_v17  ;;  %v478_v14 = vand.u32 2147483648, %v1722_v6  ;;  %vm489_vm1 = vcmp.eq.f32.partialorder %v1728_v17, inf }
 0x13d   : > { %v1396_v22 = vpop.eup %1395  ;;  %v543_v23 = vadd.f32 1e-06, %v437_v18  ;;  %v439_v24 = vmul.f32 %v1394_v15, %v416_v57  ;;  %v1732_v29 = vmul.f32 0.007874016, %v401_v19  ;;  %v403_v42 = vpop.xlane.xlu0 %402 }
 0x13e   : > { %v446_v26 = vmul.f32 %v1396_v22, %v417_v58  ;;  %v1740_v56 = vmul.f32 0.007874016, %v403_v42 }
 0x13f   : > { %1409 = vrcp.f32 %v543_v23  ;;  %v441_v30 = vsel %vm440_vm2, %v416_v57, %v439_v24  ;;  %vm496_vm0 = vcmp.eq.f32.partialorder %v1732_v29, inf  ;;  %v499_v42 = vand.u32 2147483648, %v1732_v29 }
 0x140   : > { %v1398_v32 = vpop.eup %1397  ;;  %v444_v33 = vsel %vm442_vm3, %v443_v25, %v441_v30  ;;  %v448_v34 = vsel %vm447_vm4, %v417_v58, %v446_v26  ;;  %1411 = vrsqrt.f32 %v1732_v29  ;;  %v405_v48 = vpop.xlane.xlu1 %404  ;;  %v485_v25 = vand.u32 2147483648, %v1726_v13 }
 0x141   : > { %v1400_v37 = vpop.eup %1399  ;;  %v544_v39 = vadd.f32 1e-06, %v444_v33  ;;  %v451_v40 = vsel %vm449_vm5, %v450_v31, %v448_v34  ;;  %v453_v41 = vmul.f32 %v1398_v32, %v418_v63  ;;  %v1744_v62 = vmul.f32 0.007874016, %v405_v48 }
 0x142   : > { %v545_v45 = vadd.f32 1e-06, %v451_v40  ;;  %v460_v47 = vmul.f32 %v1400_v37, %v1717_v0  ;;  %vm491_vm2 = vcmp.eq.f32.partialorder %v1728_v17, 0.0  ;;  %vm498_vm3 = vcmp.eq.f32.partialorder %v1732_v29, 0.0 }
 0x143   : > { %1413 = vrcp.f32 %v544_v39  ;;  %v455_v49 = vsel %vm454_vm6, %v418_v63, %v453_v41  ;;  %v471_v63 = vand.u32 2147483648, %v1720_v5  ;;  %vm510_vm4 = vcmp.eq.f32.partialorder %v1744_v62, inf }
 0x144   : > { %v1402_v50 = vpop.eup %1401  ;;  %v458_v53 = vsel %vm456_vm7, %v457_v46, %v455_v49  ;;  %v462_v54 = vsel %vm461_vm8, %v1717_v0, %v460_v47  ;;  %1415 = vrcp.f32 %v545_v45  ;;  %v409_v10 = vpop.xlane.xlu1 %408  ;;  %vm503_vm5 = vcmp.eq.f32.partialorder %v1740_v56, inf }
 0x145   : > { %v1404_v57 = vpop.eup %1403  ;;  %v546_v58 = vadd.f32 1e-06, %v458_v53  ;;  %v467_v61 = vmul.f32 %v1402_v50, %v1720_v5  ;;  %v465_v2 = vsel %vm463_vm9, %v464_v55, %v462_v54  ;;  %v1761_v23 = vmul.f32 0.007874016, %v409_v10  ;;  %v1791_v54 = vld [vmem:[%s2004_s2] ss:$0 sm:$0xff] }
 0x146   : > { %v474_v1 = vmul.f32 %v1404_v57, %v1722_v6  ;;  %v547_v18 = vadd.f32 1e-06, %v465_v2  ;;  %v492_v53 = vand.u32 2147483648, %v1728_v17  ;;  %vm512_vm6 = vcmp.eq.f32.partialorder %v1744_v62, 0.0 }
 0x147   : > { %1417 = vrcp.f32 %v546_v58  ;;  %v469_v7 = vsel %vm468_vm10, %v1720_v5, %v467_v61  ;;  %v407_v5 = vpop.xlane.xlu0 %406  ;;  %vm505_vm7 = vcmp.eq.f32.partialorder %v1740_v56, 0.0  ;;  %vm524_vm8 = vcmp.eq.f32.partialorder %v1761_v23, inf }
 0x148   : > { %v1406_v8 = vpop.eup %1405  ;;  %v472_v9 = vsel %vm470_vm11, %v471_v63, %v469_v7  ;;  %1419 = vrsqrt.f32 %v1740_v56  ;;  %v476_v0 = vsel %vm475_vm12, %v1722_v6, %v474_v1  ;;  %v1765_v31 = vmul.f32 0.007874016, %v407_v5  ;;  %v413_v33 = vpop.xlane.xlu1 %412 }
 0x149   : > { %v548_v16 = vadd.f32 1e-06, %v472_v9  ;;  %v481_v15 = vmul.f32 %v1406_v8, %v1726_v13  ;;  %1421 = vrsqrt.f32 %v1744_v62  ;;  %v1408_v19 = vpop.eup %1407  ;;  %v479_v30 = vsel %vm477_vm13, %v478_v14, %v476_v0 }
 0x14a   : > { %v549_v37 = vadd.f32 1e-06, %v479_v30  ;;  %v488_v39 = vmul.f32 %v1408_v19, %v1728_v17  ;;  %v1780_v46 = vmul.f32 0.007874016, %v413_v33  ;;  %vm517_vm9 = vcmp.eq.f32.partialorder %v1765_v31, inf }
 0x14b   : > { %v483_v22 = vsel %vm482_vm14, %v1726_v13, %v481_v15  ;;  %1423 = vrcp.f32 %v548_v16  ;;  %v1777_v13 = vld [vmem:[%s2003_s1] ss:$0 sm:$0xff]  ;;  %v411_v45 = vpop.xlane.xlu0 %410  ;;  %vm526_vm10 = vcmp.eq.f32.partialorder %v1761_v23, 0.0  ;;  %vm519_vm11 = vcmp.eq.f32.partialorder %v1765_v31, 0.0 }
 0x14c   : > { %v1410_v24 = vpop.eup %1409  ;;  %1425 = vrcp.f32 %v547_v18  ;;  %v486_v6 = vsel %vm484_vm15, %v485_v25, %v483_v22  ;;  %v490_v50 = vsel %vm489_vm1, %v1728_v17, %v488_v39  ;;  %v1794_v58 = vmul.f32 0.007874016, %v411_v45 }
 0x14d   : > { %v1412_v26 = vpop.eup %1411  ;;  %1427 = vrsqrt.f32 %v1761_v23  ;;  %v575_v40 = vmul.f32 %v1410_v24, %v1569_v20  ;;  %v550_v41 = vadd.f32 1e-06, %v486_v6  ;;  %v493_v9 = vsel %vm491_vm2, %v492_v53, %v490_v50 }
 0x14e   : > { %v495_v32 = vmul.f32 %v1412_v26, %v1732_v29  ;;  %1429 = vrsqrt.f32 %v1765_v31  ;;  %v513_v18 = vand.u32 2147483648, %v1744_v62  ;;  %v506_v22 = vand.u32 2147483648, %v1740_v56 }
 0x14f   : > { %1431 = vrcp.f32 %v549_v37  ;;  %v597_v55 = vmul.f32 %v1777_v13, %v575_v40  ;;  %vm538_vm12 = vcmp.eq.f32.partialorder %v1780_v46, inf  ;;  %vm531_vm13 = vcmp.eq.f32.partialorder %v1794_v58, inf }
 0x150   : > { %v1414_v34 = vpop.eup %1413  ;;  %v497_v20 = vsel %vm496_vm0, %v1732_v29, %v495_v32  ;;  %1433 = vrcp.f32 %v550_v41  ;;  %vm540_vm14 = vcmp.eq.f32.partialorder %v1780_v46, 0.0  ;;  %vm533_vm15 = vcmp.eq.f32.partialorder %v1794_v58, 0.0 }
 0x151   : > { %v1416_v47 = vpop.eup %1415  ;;  %v576_v48 = vmul.f32 %v1414_v34, %v1575_v27  ;;  %v500_v63 = vsel %vm498_vm3, %v499_v42, %v497_v20  ;;  %1435 = vrsqrt.f32 %v1780_v46  ;;  %v619_v2 = vadd.f32 %v1791_v54, %v597_v55 }
 0x152   : > { %v577_v8 = vmul.f32 %v1416_v47, %v1571_v21  ;;  %1437 = vrsqrt.f32 %v1794_v58  ;;  %v551_v21 = vadd.f32 1e-06, %v493_v9  ;;  %v527_v42 = vand.u32 2147483648, %v1761_v23 }
 0x153   : > { %v598_v29 = vmul.f32 %v1777_v13, %v576_v48  ;;  %v520_v48 = vand.u32 2147483648, %v1765_v31 }
 0x154   : > { %v1418_v49 = vpop.eup %1417  ;;  %v599_v5 = vmul.f32 %v1777_v13, %v577_v8 }
 0x155   : > { %v1420_v57 = vpop.eup %1419  ;;  %v578_v27 = vmul.f32 %v1418_v49, %v1577_v28  ;;  %v620_v7 = vadd.f32 %v1791_v54, %v598_v29  ;;  %v552_v28 = vadd.f32 1e-06, %v500_v63 }
 0x156   : > { %v1422_v61 = vpop.eup %1421  ;;  %v502_v10 = vmul.f32 %v1420_v57, %v1740_v56  ;;  %v621_v32 = vadd.f32 %v1791_v54, %v599_v5 }
 0x157   : > { %v509_v1 = vmul.f32 %v1422_v61, %v1744_v62  ;;  %v635_v16 = vpack.c.bf16 %v620_v7, %v619_v2  ;;  %v600_v14 = vmul.f32 %v1777_v13, %v578_v27  ;;  %1439 = vrcp.f32 %v552_v28 }
 0x158   : > { %v1424_v15 = vpop.eup %1423  ;;  %v504_v24 = vsel %vm503_vm5, %v1740_v56, %v502_v10  ;;  %1441 = vrcp.f32 %v551_v21  ;;  %v534_v28 = vand.u32 2147483648, %v1794_v58 }
 0x159   : > { %v1426_v0 = vpop.eup %1425  ;;  %v511_v17 = vsel %vm510_vm4, %v1744_v62, %v509_v1  ;;  %784 = vmatmul.mubr.bf16.vlgmr.msra.gmra.mxu0 %v635_v16  ;;  %v622_v25 = vadd.f32 %v1791_v54, %v600_v14  ;;  %v580_v26 = vmul.f32 %v1424_v15, %v1585_v36  ;;  %v507_v34 = vsel %vm505_vm7, %v506_v22, %v504_v24 }
 0x15a   : > { %v1428_v19 = vpop.eup %1427  ;;  %793 = vmatprep.mubr.bf16.mxu0 %v1479_v38  ;;  %v514_v6 = vsel %vm512_vm6, %v513_v18, %v511_v17  ;;  %v579_v33 = vmul.f32 %v1426_v0, %v1583_v35  ;;  %v553_v47 = vadd.f32 1e-06, %v507_v34 }
 0x15b   : > { %v1430_v30 = vpop.eup %1429  ;;  %v523_v62 = vmul.f32 %v1428_v19, %v1761_v23  ;;  %v554_v39 = vadd.f32 1e-06, %v514_v6  ;;  %v636_v40 = vpack.c.bf16 %v622_v25, %v621_v32  ;;  %v602_v41 = vmul.f32 %v1777_v13, %v580_v26 }
 0x15c   : > { %v1432_v37 = vpop.eup %1431  ;;  %v516_v56 = vmul.f32 %v1430_v30, %v1765_v31  ;;  %v601_v35 = vmul.f32 %v1777_v13, %v579_v33 }
 0x15d   : > { %v1434_v36 = vpop.eup %1433  ;;  %v525_v20 = vsel %vm524_vm8, %v1761_v23, %v523_v62  ;;  %1443 = vrcp.f32 %v554_v39  ;;  %v624_v50 = vadd.f32 %v1791_v54, %v602_v41  ;;  %v581_v27 = vmul.f32 %v1432_v37, %v1591_v43 }
 0x15e   : > { %v1436_v45 = vpop.eup %1435  ;;  %v518_v49 = vsel %vm517_vm9, %v1765_v31, %v516_v56  ;;  %v582_v53 = vmul.f32 %v1434_v36, %v1593_v44  ;;  %v528_v57 = vsel %vm526_vm10, %v527_v42, %v525_v20  ;;  %1445 = vrcp.f32 %v553_v47 }
 0x15f   : > { %v1438_v55 = vpop.eup %1437  ;;  %v537_v23 = vmul.f32 %v1436_v45, %v1780_v46  ;;  %v623_v29 = vadd.f32 %v1791_v54, %v601_v35  ;;  %v521_v61 = vsel %vm519_vm11, %v520_v48, %v518_v49  ;;  %v556_v63 = vadd.f32 1e-06, %v528_v57 }
 0x160   : > { %v530_v1 = vmul.f32 %v1438_v55, %v1794_v58  ;;  %v604_v2 = vmul.f32 %v1777_v13, %v582_v53  ;;  %v541_v44 = vand.u32 2147483648, %v1780_v46  ;;  %v555_v8 = vadd.f32 1e-06, %v521_v61  ;;  %v1390_v55 = vld [vmem:[%s2007_s5] sm:$0xff]  }
 0x161   : > { %794 = vmatmul.mubr.bf16.gmra.mxu0 %v636_v40  ;;  %v637_v31 = vpack.c.bf16 %v624_v50, %v623_v29  ;;  %v539_v9 = vsel %vm538_vm12, %v1780_v46, %v537_v23  ;;  %v603_v43 = vmul.f32 %v1777_v13, %v581_v27  ;;  %1447 = vrcp.f32 %v556_v63  ;;  %v659_v61 = vld [vmem:[%s2006_s4] sm:$0x3] }
 0x162   : > { %803 = vmatprep.mubr.bf16.mxu0 %v1479_v38  ;;  %v532_v16 = vsel %vm531_vm13, %v1794_v58, %v530_v1  ;;  %v626_v14 = vadd.f32 %v1791_v54, %v604_v2  ;;  %v542_v18 = vsel %vm540_vm14, %v541_v44, %v539_v9  ;;  %1449 = vrcp.f32 %v555_v8 }
 0x163   : > { %v625_v46 = vadd.f32 %v1791_v54, %v603_v43  ;;  %v535_v21 = vsel %vm533_vm15, %v534_v28, %v532_v16  ;;  %v558_v17 = vadd.f32 1e-06, %v542_v18  ;;  %v661_v57 = vlaneseq }
 0x164   : > { %v1440_v7 = vpop.eup %1439  ;;  %v557_v24 = vadd.f32 1e-06, %v535_v21 }
 0x165   : > { %v1442_v10 = vpop.eup %1441  ;;  %v584_v15 = vmul.f32 %v1440_v7, %v1601_v52  ;;  %v638_v5 = vpack.c.bf16 %v626_v14, %v625_v46  ;;  %1451 = vrcp.f32 %v558_v17  ;;  %v662_v23 = vshrl.u32 %v661_v57, 7 }
 0x166   : > { %v583_v0 = vmul.f32 %v1442_v10, %v1599_v51  ;;  %1453 = vrcp.f32 %v557_v24 }
 0x167   : > { %v606_v19 = vmul.f32 %v1777_v13, %v584_v15  ;;  %v667_v29 = vsub.s32 1, %v662_v23  ;;  %v663_v27 = vsub.s32 0, %v662_v23 }
 0x168   : > { %v605_v58 = vmul.f32 %v1777_v13, %v583_v0 }
 0x169   : > { %804 = vmatmul.mubr.bf16.gmra.mxu0 %v637_v31  ;;  %v628_v52 = vadd.f32 %v1791_v54, %v606_v19  ;;  %v1903_v1 = vrot.slane %v659_v61, %v667_v29  ;;  %v1905_v31 = vrot.slane %v659_v61, %v663_v27 }
 0x16a   : > { %813 = vmatprep.mubr.bf16.mxu0 %v1479_v38  ;;  %v1444_v22 = vpop.eup %1443  ;;  %v627_v51 = vadd.f32 %v1791_v54, %v605_v58 }
 0x16b   : > { %v1446_v25 = vpop.eup %1445  ;;  %v586_v26 = vmul.f32 %v1444_v22, %v1610_v60 }
 0x16c   : > { %v585_v30 = vmul.f32 %v1446_v25, %v1607_v59  ;;  %v639_v6 = vpack.c.bf16 %v628_v52, %v627_v51 }
 0x16d   : > { %v608_v62 = vmul.f32 %v1777_v13, %v586_v26 }
 0x16e   : > { %v1448_v32 = vpop.eup %1447  ;;  %v607_v33 = vmul.f32 %v1777_v13, %v585_v30 }
 0x16f   : > { %v1450_v34 = vpop.eup %1449  ;;  %v630_v37 = vadd.f32 %v1791_v54, %v608_v62  ;;  %v588_v39 = vmul.f32 %v1448_v32, %v1620_v4 }
 0x170   : > { %v629_v60 = vadd.f32 %v1791_v54, %v607_v33  ;;  %v587_v56 = vmul.f32 %v1450_v34, %v1617_v3 }
 0x171   : > { %814 = vmatmul.mubr.bf16.gmra.mxu0 %v638_v5  ;;  %v610_v59 = vmul.f32 %v1777_v13, %v588_v39 }
 0x172   : > { %823 = vmatprep.mubr.bf16.mxu0 %v1479_v38  ;;  %v640_v40 = vpack.c.bf16 %v630_v37, %v629_v60  ;;  %v1452_v41 = vpop.eup %1451  ;;  %v609_v36 = vmul.f32 %v1777_v13, %v587_v56 }
 0x173   : > { %v1454_v42 = vpop.eup %1453  ;;  %v632_v45 = vadd.f32 %v1791_v54, %v610_v59  ;;  %v590_v47 = vmul.f32 %v1452_v41, %v1630_v12  ;;  %v1385_v12 = vld [vmem:[%s2007_s5 + $0x50] sm:$0xff]  }
 0x174   : > { %v631_v4 = vadd.f32 %v1791_v54, %v609_v36  ;;  %v589_v20 = vmul.f32 %v1454_v42, %v1627_v11  ;;  %v1386_v11 = vld [vmem:[%s2007_s5 + $0x10] sm:$0xff]   ;;  %1288 = vmatprep.subr.bf16.mxu1 %v1385_v12 }
 0x175   : > { %v612_v3 = vmul.f32 %v1777_v13, %v590_v47  ;;  %1289 = vmatpush3.bf16.msra.mxu1 %v1386_v11 }
 0x176   : > { %v641_v35 = vpack.c.bf16 %v632_v45, %v631_v4  ;;  %v611_v48 = vmul.f32 %v1777_v13, %v589_v20  ;;  %v1388_v13 = vld [vmem:[%s2007_s5 + $0x8] sm:$0xff]  }
 0x177   : > { %v634_v49 = vadd.f32 %v1791_v54, %v612_v3 }
 0x178   : > { %v633_v50 = vadd.f32 %v1791_v54, %v611_v48  ;;  %v1389_v54 = vld [vmem:[%s2007_s5 + $0x40] sm:$0xff]  }
 0x179   : > { %824 = vmatmul.mubr.bf16.gmra.mxu0 %v639_v6 }
 0x17a   : > { %833 = vmatprep.mubr.bf16.mxu0 %v1479_v38  ;;  %v642_v53 = vpack.c.bf16 %v634_v49, %v633_v50 }
 0x181   : > { %834 = vmatmul.mubr.bf16.gmra.mxu0 %v640_v40 }
 0x182   : > { %843 = vmatprep.mubr.bf16.mxu0 %v1479_v38 }
 0x189   : > { %844 = vmatmul.mubr.bf16.gmra.mxu0 %v641_v35 }
 0x18a   : > { %853 = vmatprep.mubr.bf16.mxu0 %v1479_v38  ;;  %v1387_v38 = vld [vmem:[%s2007_s5 + $0x48] sm:$0xff]  }
 0x18b   : > { %1290 = vmatprep.subr.bf16.mxu1 %v1387_v38 }
 0x18c   : > { %1291 = vmatpush3.bf16.msra.mxu1 %v1388_v13 }
 0x18d   : > { %1292 = vmatprep.subr.bf16.mxu1 %v1389_v54 }
 0x190   : > { %1293 = vmatpush3.bf16.msra.mxu1 %v1390_v55 }
 0x191   : > { %854 = vmatmul.mubr.bf16.gmra.mxu0 %v642_v53 }
 0x219   : > { %v785_v63 = vpop.f32.mrf.mxu0 }
 0x21a   : > { %v786_v9 = vadd.f32 %v785_v63, %v1905_v31 }
 0x21b   : > { %v787_v2 = vpop.f32.mrf.mxu0 }
 0x21c   : > { %v788_v44 = vadd.f32 %v787_v2, %v1903_v1  ;;  %v864_v18 = vmax.f32 %v786_v9, 0.0 }
 0x21d   : > { %v789_v7 = vpop.f32.mrf.mxu0 }
 0x21e   : > { %v790_v8 = vadd.f32 %v789_v7, %v1905_v31  ;;  %v865_v14 = vmax.f32 %v788_v44, 0.0 }
 0x21f   : > { %v791_v43 = vpop.f32.mrf.mxu0 }
 0x220   : > { %v792_v10 = vadd.f32 %v791_v43, %v1903_v1  ;;  %v866_v28 = vmax.f32 %v790_v8, 0.0 }
 0x221   : > { %v795_v16 = vpop.f32.mrf.mxu0 }
 0x222   : > { %v867_v15 = vmax.f32 %v792_v10, 0.0  ;;  %v896_v21 = vpack.c.bf16 %v866_v28, %v864_v18  ;;  %v796_v22 = vadd.f32 %v795_v16, %v1905_v31 }
 0x223   : > { %v797_v46 = vpop.f32.mrf.mxu0 }
 0x224   : > { %v897_v0 = vpack.c.bf16 %v867_v15, %v865_v14  ;;  %v798_v5 = vadd.f32 %v797_v46, %v1903_v1  ;;  %v868_v30 = vmax.f32 %v796_v22, 0.0 }
 0x225   : > { %v799_v17 = vpop.f32.mrf.mxu0 }
 0x226   : > { %v800_v19 = vadd.f32 %v799_v17, %v1905_v31  ;;  %1079 = vmatprep.mubr.bf16.mxu1 %v897_v0  ;;  %v869_v26 = vmax.f32 %v798_v5, 0.0 }
 0x227   : > { %v801_v24 = vpop.f32.mrf.mxu0  ;;  %1080 = vmatmul.mubr.bf16.vlgmr.msra.gmra.mxu1 %v896_v21 }
 0x228   : > { %v802_v58 = vadd.f32 %v801_v24, %v1903_v1  ;;  %v870_v25 = vmax.f32 %v800_v19, 0.0 }
 0x229   : > { %v805_v52 = vpop.f32.mrf.mxu0 }
 0x22a   : > { %v871_v51 = vmax.f32 %v802_v58, 0.0  ;;  %v898_v32 = vpack.c.bf16 %v870_v25, %v868_v30  ;;  %v806_v39 = vadd.f32 %v805_v52, %v1905_v31 }
 0x22b   : > { %v807_v6 = vpop.f32.mrf.mxu0 }
 0x22c   : > { %v899_v62 = vpack.c.bf16 %v871_v51, %v869_v26  ;;  %v808_v34 = vadd.f32 %v807_v6, %v1903_v1  ;;  %v872_v42 = vmax.f32 %v806_v39, 0.0 }
 0x22d   : > { %v809_v33 = vpop.f32.mrf.mxu0 }
 0x22e   : > { %v810_v37 = vadd.f32 %v809_v33, %v1905_v31  ;;  %1087 = vmatprep.mubr.bf16.mxu1 %v899_v62  ;;  %v873_v41 = vmax.f32 %v808_v34, 0.0 }
 0x22f   : > { %v811_v60 = vpop.f32.mrf.mxu0  ;;  %1088 = vmatmul.mubr.bf16.gmra.mxu1 %v898_v32 }
 0x230   : > { %v812_v56 = vadd.f32 %v811_v60, %v1903_v1  ;;  %v874_v40 = vmax.f32 %v810_v37, 0.0 }
 0x231   : > { %v815_v59 = vpop.f32.mrf.mxu0 }
 0x232   : > { %v875_v36 = vmax.f32 %v812_v56, 0.0  ;;  %v900_v4 = vpack.c.bf16 %v874_v40, %v872_v42  ;;  %v816_v48 = vadd.f32 %v815_v59, %v1905_v31 }
 0x233   : > { %v817_v45 = vpop.f32.mrf.mxu0 }
 0x234   : > { %v901_v47 = vpack.c.bf16 %v875_v36, %v873_v41  ;;  %v818_v35 = vadd.f32 %v817_v45, %v1903_v1  ;;  %v876_v13 = vmax.f32 %v816_v48, 0.0 }
 0x235   : > { %v819_v20 = vpop.f32.mrf.mxu0 }
 0x236   : > { %v820_v3 = vadd.f32 %v819_v20, %v1905_v31  ;;  %1095 = vmatprep.mubr.bf16.mxu1 %v901_v47  ;;  %v877_v11 = vmax.f32 %v818_v35, 0.0 }
 0x237   : > { %v821_v49 = vpop.f32.mrf.mxu0  ;;  %1096 = vmatmul.mubr.bf16.gmra.mxu1 %v900_v4 }
 0x238   : > { %v822_v50 = vadd.f32 %v821_v49, %v1903_v1  ;;  %v878_v53 = vmax.f32 %v820_v3, 0.0 }
 0x239   : > { %v825_v12 = vpop.f32.mrf.mxu0 }
 0x23a   : > { %v879_v38 = vmax.f32 %v822_v50, 0.0  ;;  %v902_v57 = vpack.c.bf16 %v878_v53, %v876_v13  ;;  %v826_v61 = vadd.f32 %v825_v12, %v1905_v31 }
 0x23b   : > { %v827_v54 = vpop.f32.mrf.mxu0 }
 0x23c   : > { %v903_v55 = vpack.c.bf16 %v879_v38, %v877_v11  ;;  %v828_v29 = vadd.f32 %v827_v54, %v1903_v1  ;;  %v880_v43 = vmax.f32 %v826_v61, 0.0  ;;  %v1455_v54 = vld [vmem:[%s1536_s30] sm:$0xff]  ;;  %v1456_v61 = vld [vmem:[%s1536_s30 + $0x8] sm:$0xff] }
 0x23d   : > { %v829_v23 = vpop.f32.mrf.mxu0 }
 0x23e   : > { %v830_v27 = vadd.f32 %v829_v23, %v1905_v31  ;;  %1103 = vmatprep.mubr.bf16.mxu1 %v903_v55  ;;  %v881_v8 = vmax.f32 %v828_v29, 0.0 }
 0x23f   : > { %v831_v63 = vpop.f32.mrf.mxu0  ;;  %1104 = vmatmul.mubr.bf16.gmra.mxu1 %v902_v57 }
 0x240   : > { %v832_v2 = vadd.f32 %v831_v63, %v1903_v1  ;;  %v882_v7 = vmax.f32 %v830_v27, 0.0 }
 0x241   : > { %v835_v44 = vpop.f32.mrf.mxu0 }
 0x242   : > { %v883_v9 = vmax.f32 %v832_v2, 0.0  ;;  %v904_v16 = vpack.c.bf16 %v882_v7, %v880_v43  ;;  %v836_v46 = vadd.f32 %v835_v44, %v1905_v31 }
 0x243   : > { %v837_v10 = vpop.f32.mrf.mxu0 }
 0x244   : > { %v905_v28 = vpack.c.bf16 %v883_v9, %v881_v8  ;;  %v838_v15 = vadd.f32 %v837_v10, %v1903_v1  ;;  %v884_v24 = vmax.f32 %v836_v46, 0.0  ;;  %v1457_v9 = vld [vmem:[%s1536_s30 + $0x10] sm:$0xff] }
 0x245   : > { %v839_v14 = vpop.f32.mrf.mxu0 }
 0x246   : > { %v840_v18 = vadd.f32 %v839_v14, %v1905_v31  ;;  %1111 = vmatprep.mubr.bf16.mxu1 %v905_v28  ;;  %v885_v19 = vmax.f32 %v838_v15, 0.0  ;;  %v1458_v15 = vld [vmem:[%s1536_s30 + $0x18] sm:$0xff] }
 0x247   : > { %v841_v0 = vpop.f32.mrf.mxu0  ;;  %1112 = vmatmul.mubr.bf16.gmra.mxu1 %v904_v16 }
 0x248   : > { %v842_v21 = vadd.f32 %v841_v0, %v1903_v1  ;;  %v886_v17 = vmax.f32 %v840_v18, 0.0 }
 0x249   : > { %v845_v5 = vpop.f32.mrf.mxu0 }
 0x24a   : > { %v887_v22 = vmax.f32 %v842_v21, 0.0  ;;  %v906_v52 = vpack.c.bf16 %v886_v17, %v884_v24  ;;  %v846_v6 = vadd.f32 %v845_v5, %v1905_v31  ;;  %v1459_v5 = vld [vmem:[%s1536_s30 + $0x20] sm:$0xff] }
 0x24b   : > { %v847_v58 = vpop.f32.mrf.mxu0 }
 0x24c   : > { %v907_v25 = vpack.c.bf16 %v887_v22, %v885_v19  ;;  %v848_v51 = vadd.f32 %v847_v58, %v1903_v1  ;;  %v888_v60 = vmax.f32 %v846_v6, 0.0 }
 0x24d   : > { %v849_v26 = vpop.f32.mrf.mxu0 }
 0x24e   : > { %v850_v30 = vadd.f32 %v849_v26, %v1905_v31  ;;  %1119 = vmatprep.mubr.bf16.mxu1 %v907_v25  ;;  %v889_v37 = vmax.f32 %v848_v51, 0.0 }
 0x24f   : > { %v851_v62 = vpop.f32.mrf.mxu0  ;;  %1120 = vmatmul.mubr.bf16.gmra.mxu1 %v906_v52  ;;  %v1460_v52 = vld [vmem:[%s1536_s30 + $0x28] sm:$0xff] }
 0x250   : > { %v852_v32 = vadd.f32 %v851_v62, %v1903_v1  ;;  %v890_v33 = vmax.f32 %v850_v30, 0.0 }
 0x251   : > { %v855_v34 = vpop.f32.mrf.mxu0 }
 0x252   : > { %v891_v39 = vmax.f32 %v852_v32, 0.0  ;;  %v908_v59 = vpack.c.bf16 %v890_v33, %v888_v60  ;;  %v856_v45 = vadd.f32 %v855_v34, %v1905_v31  ;;  %v1461_v32 = vld [vmem:[%s1536_s30 + $0x30] sm:$0xff] }
 0x253   : > { %v857_v56 = vpop.f32.mrf.mxu0 }
 0x254   : > { %v909_v40 = vpack.c.bf16 %v891_v39, %v889_v37  ;;  %v858_v36 = vadd.f32 %v857_v56, %v1903_v1  ;;  %v892_v48 = vmax.f32 %v856_v45, 0.0  ;;  %v1462_v56 = vld [vmem:[%s1536_s30 + $0x38] sm:$0xff]  ;;  %v1463_v45 = vld [vmem:[%s1536_s30 + $0x40] sm:$0xff] }
 0x255   : > { %v859_v41 = vpop.f32.mrf.mxu0 }
 0x256   : > { %v860_v42 = vadd.f32 %v859_v41, %v1905_v31  ;;  %1127 = vmatprep.mubr.bf16.mxu1 %v909_v40  ;;  %v893_v35 = vmax.f32 %v858_v36, 0.0  ;;  %v1942_v31 = vld [vmem:[%s2008_s6] ss:$0 sm:$0xff] }
 0x257   : > { %v861_v47 = vpop.f32.mrf.mxu0  ;;  %1128 = vmatmul.mubr.bf16.gmra.mxu1 %v908_v59 }
 0x258   : > { %v862_v4 = vadd.f32 %v861_v47, %v1903_v1  ;;  %v894_v20 = vmax.f32 %v860_v42, 0.0 }
 0x25a   : > { %v895_v3 = vmax.f32 %v862_v4, 0.0  ;;  %v910_v50 = vpack.c.bf16 %v894_v20, %v892_v48  ;;  %v1464_v48 = vld [vmem:[%s1536_s30 + $0x48] sm:$0xff] }
 0x25c   : > { %v911_v49 = vpack.c.bf16 %v895_v3, %v893_v35 }
 0x25e   : > { %1135 = vmatprep.mubr.bf16.mxu1 %v911_v49 }
 0x25f   : > { %1136 = vmatmul.mubr.bf16.gmra.mxu1 %v910_v50 }
 0x2e7   : > { %v1294_v53 = vpop.f32.mrf.mxu1 }
 0x2e9   : > { %v1295_v12 = vpop.f32.mrf.mxu1 }
 0x2ea   : > { %v1296_v11 = vadd.f32 %v1295_v12, %v1294_v53 }
 0x2eb   : > { %v1297_v38 = vpop.f32.mrf.mxu1 }
 0x2ec   : > { %v1082_v1 = vadd.f32 %v1296_v11, %v1942_v31 }
 0x2ed   : > { %v1298_v13 = vpop.f32.mrf.mxu1 }
 0x2ee   : > { %v1144_v55 = vadd.f32 %v1455_v54, %v1082_v1  ;;  %v1299_v57 = vadd.f32 %v1298_v13, %v1297_v38  ;;  %v1465_v38 = vld [vmem:[%s1536_s30 + $0x50] sm:$0xff] }
 0x2ef   : > { %v1300_v23 = vpop.f32.mrf.mxu1 }
 0x2f0   : > { %1160 = vst [vmem:[%s1950_s28] sm:$0xff] %v1144_v55  ;;  %v1085_v29 = vadd.f32 %v1299_v57, %v1942_v31 }
 0x2f1   : > { %v1301_v27 = vpop.f32.mrf.mxu1 }
 0x2f2   : > { %v1145_v63 = vadd.f32 %v1456_v61, %v1085_v29  ;;  %v1302_v2 = vadd.f32 %v1301_v27, %v1300_v23  ;;  %v1466_v23 = vld [vmem:[%s1536_s30 + $0x58] sm:$0xff] }
 0x2f3   : > { %v1303_v7 = vpop.f32.mrf.mxu1 }
 0x2f4   : > { %1161 = vst [vmem:[%s1950_s28 + $0x8] sm:$0xff] %v1145_v63  ;;  %v1090_v44 = vadd.f32 %v1302_v2, %v1942_v31 }
 0x2f5   : > { %v1304_v8 = vpop.f32.mrf.mxu1 }
 0x2f6   : > { %v1146_v43 = vadd.f32 %v1457_v9, %v1090_v44  ;;  %v1305_v10 = vadd.f32 %v1304_v8, %v1303_v7  ;;  %v1467_v7 = vld [vmem:[%s1536_s30 + $0x60] sm:$0xff] }
 0x2f7   : > { %v1306_v28 = vpop.f32.mrf.mxu1 }
 0x2f8   : > { %1162 = vst [vmem:[%s1950_s28 + $0x10] sm:$0xff] %v1146_v43  ;;  %v1093_v16 = vadd.f32 %v1305_v10, %v1942_v31 }
 0x2f9   : > { %v1307_v14 = vpop.f32.mrf.mxu1 }
 0x2fa   : > { %v1147_v18 = vadd.f32 %v1458_v15, %v1093_v16  ;;  %v1308_v46 = vadd.f32 %v1307_v14, %v1306_v28  ;;  %v1468_v28 = vld [vmem:[%s1536_s30 + $0x68] sm:$0xff] }
 0x2fb   : > { %v1309_v0 = vpop.f32.mrf.mxu1 }
 0x2fc   : > { %1163 = vst [vmem:[%s1950_s28 + $0x18] sm:$0xff] %v1147_v18  ;;  %v1098_v21 = vadd.f32 %v1308_v46, %v1942_v31 }
 0x2fd   : > { %v1310_v17 = vpop.f32.mrf.mxu1 }
 0x2fe   : > { %v1148_v19 = vadd.f32 %v1459_v5, %v1098_v21  ;;  %v1311_v22 = vadd.f32 %v1310_v17, %v1309_v0  ;;  %v1469_v0 = vld [vmem:[%s1536_s30 + $0x70] sm:$0xff] }
 0x2ff   : > { %v1312_v24 = vpop.f32.mrf.mxu1 }
 0x300   : > { %1164 = vst [vmem:[%s1950_s28 + $0x20] sm:$0xff] %v1148_v19  ;;  %v1101_v58 = vadd.f32 %v1311_v22, %v1942_v31  ;;  %v1470_v19 = vld [vmem:[%s1536_s30 + $0x78] sm:$0xff] }
 0x301   : > { %v1313_v25 = vpop.f32.mrf.mxu1 }
 0x302   : > { %v1149_v26 = vadd.f32 %v1460_v52, %v1101_v58  ;;  %v1314_v51 = vadd.f32 %v1313_v25, %v1312_v24 }
 0x303   : > { %v1315_v30 = vpop.f32.mrf.mxu1 }
 0x304   : > { %1165 = vst [vmem:[%s1950_s28 + $0x28] sm:$0xff] %v1149_v26  ;;  %v1106_v6 = vadd.f32 %v1314_v51, %v1942_v31 }
 0x305   : > { %v1316_v62 = vpop.f32.mrf.mxu1 }
 0x306   : > { %v1150_v33 = vadd.f32 %v1461_v32, %v1106_v6  ;;  %v1317_v34 = vadd.f32 %v1316_v62, %v1315_v30 }
 0x307   : > { %v1318_v37 = vpop.f32.mrf.mxu1 }
 0x308   : > { %1166 = vst [vmem:[%s1950_s28 + $0x30] sm:$0xff] %v1150_v33  ;;  %v1109_v39 = vadd.f32 %v1317_v34, %v1942_v31 }
 0x309   : > { %v1319_v60 = vpop.f32.mrf.mxu1 }
 0x30a   : > { %v1151_v40 = vadd.f32 %v1462_v56, %v1109_v39  ;;  %v1320_v59 = vadd.f32 %v1319_v60, %v1318_v37 }
 0x30b   : > { %v1321_v41 = vpop.f32.mrf.mxu1 }
 0x30c   : > { %1167 = vst [vmem:[%s1950_s28 + $0x38] sm:$0xff] %v1151_v40  ;;  %v1114_v36 = vadd.f32 %v1320_v59, %v1942_v31 }
 0x30d   : > { %v1322_v42 = vpop.f32.mrf.mxu1 }
 0x30e   : > { %v1152_v47 = vadd.f32 %v1463_v45, %v1114_v36  ;;  %v1323_v4 = vadd.f32 %v1322_v42, %v1321_v41 }
 0x30f   : > { %v1324_v20 = vpop.f32.mrf.mxu1 }
 0x310   : > { %1168 = vst [vmem:[%s1950_s28 + $0x40] sm:$0xff] %v1152_v47  ;;  %v1117_v35 = vadd.f32 %v1323_v4, %v1942_v31 }
 0x311   : > { %v1325_v3 = vpop.f32.mrf.mxu1 }
 0x312   : > { %v1153_v49 = vadd.f32 %v1464_v48, %v1117_v35  ;;  %v1326_v50 = vadd.f32 %v1325_v3, %v1324_v20 }
 0x313   : > { %v1327_v53 = vpop.f32.mrf.mxu1 }
 0x314   : > { %1169 = vst [vmem:[%s1950_s28 + $0x48] sm:$0xff] %v1153_v49  ;;  %v1122_v12 = vadd.f32 %v1326_v50, %v1942_v31 }
 0x315   : > { %v1328_v11 = vpop.f32.mrf.mxu1 }
 0x316   : > { %v1154_v1 = vadd.f32 %v1465_v38, %v1122_v12  ;;  %v1329_v13 = vadd.f32 %v1328_v11, %v1327_v53 }
 0x317   : > { %v1330_v54 = vpop.f32.mrf.mxu1 }
 0x318   : > { %1170 = vst [vmem:[%s1950_s28 + $0x50] sm:$0xff] %v1154_v1  ;;  %v1125_v55 = vadd.f32 %v1329_v13, %v1942_v31 }
 0x319   : > { %v1331_v57 = vpop.f32.mrf.mxu1 }
 0x31a   : > { %v1155_v29 = vadd.f32 %v1466_v23, %v1125_v55  ;;  %v1332_v27 = vadd.f32 %v1331_v57, %v1330_v54 }
 0x31b   : > { %v1333_v61 = vpop.f32.mrf.mxu1 }
 0x31c   : > { %1171 = vst [vmem:[%s1950_s28 + $0x58] sm:$0xff] %v1155_v29  ;;  %v1130_v63 = vadd.f32 %v1332_v27, %v1942_v31 }
 0x31d   : > { %v1334_v2 = vpop.f32.mrf.mxu1 }
 0x31e   : > { %v1156_v44 = vadd.f32 %v1467_v7, %v1130_v63  ;;  %v1335_v8 = vadd.f32 %v1334_v2, %v1333_v61 }
 0x31f   : > { %v1336_v9 = vpop.f32.mrf.mxu1 }
 0x320   : > { %1172 = vst [vmem:[%s1950_s28 + $0x60] sm:$0xff] %v1156_v44  ;;  %v1133_v43 = vadd.f32 %v1335_v8, %v1942_v31 }
 0x321   : > { %v1337_v10 = vpop.f32.mrf.mxu1 }
 0x322   : > { %v1157_v16 = vadd.f32 %v1468_v28, %v1133_v43  ;;  %v1338_v14 = vadd.f32 %v1337_v10, %v1336_v9 }
 0x323   : > { %v1339_v15 = vpop.f32.mrf.mxu1 }
 0x324   : > { %1173 = vst [vmem:[%s1950_s28 + $0x68] sm:$0xff] %v1157_v16  ;;  %v1138_v18 = vadd.f32 %v1338_v14, %v1942_v31 }
 0x325   : > { %v1340_v46 = vpop.f32.mrf.mxu1 }
 0x326   : > { %v1158_v21 = vadd.f32 %v1469_v0, %v1138_v18  ;;  %v1341_v17 = vadd.f32 %v1340_v46, %v1339_v15 }
 0x328   : > { %1174 = vst [vmem:[%s1950_s28 + $0x70] sm:$0xff] %v1158_v21  ;;  %v1141_v5 = vadd.f32 %v1341_v17, %v1942_v31 }
 0x32a   : > { %v1159_v22 = vadd.f32 %v1470_v19, %v1141_v5 }
 0x32c   : > { %1175 = vst [vmem:[%s1950_s28 + $0x78] sm:$0xff] %v1159_v22 }
 0x32d PF: > { %s17_s24 = sadd.s32 1, %s1477_s24  }
 0x32e   : > { %p14_p4 = scmp.ge.s32.totalorder %s17_s24, 4  }
 0x330   :  { %16 = sbr.rel (!%p14_p4) target bundleno = 1 (0x1), region = 78 }

// kernel: decoder_forward_pallas.23
= control target key start
LH: loop header
LB: loop body
LE: loop exit
PB: predicated region body
PF: predicated region fallthrough
CT: control target
= control target key end

     0   :  { %12 = vsyncpa [#allocation3], 0  ;;  %s2194_s0 = inlined_call_operand.vmem [shape: f32[256,128], index: 0, kind: input, shape index: {}]   ;;  %s2195_s1 = inlined_call_operand.vmem [shape: f32[1,128], index: 1, kind: input, shape index: {}]   ;;  %s2196_s2 = inlined_call_operand.vmem [shape: f32[1,128], index: 2, kind: input, shape index: {}]   ;;  %s2197_s3 = inlined_call_operand.vmem [shape: bf16[128,256], index: 3, kind: input, shape index: {}]   ;;  %s2198_s4 = inlined_call_operand.vmem [shape: f32[1,256], index: 4, kind: input, shape index: {}]   ;;  %s2199_s5 = inlined_call_operand.vmem [shape: bf16[256,128], index: 5, kind: input, shape index: {}]   ;;  %s2200_s6 = inlined_call_operand.vmem [shape: f32[1,128], index: 6, kind: input, shape index: {}]   ;;  %s2201_s7 = inlined_call_operand.hbm [shape: f32[256,128], index: 7, kind: output, shape index: {}]  }
   0x1   :  { %14 = vsyncpa [#allocation3 + $0x1], 0  ;;  %s1630_s24 = smov 0   ;;  %s1632_s25 = smov 0  }
   0x2   :  { %s1634_s26 = smov 0   ;;  %s1636_s27 = smov 0  }
   0x3 LB: > { %s1651_s28 = sadd.s32 4294967295, %s1584_s27   ;;  %s1250_s29 = sadd.s32 4294967294, %s1584_s27   ;;  %s1584_s27 = sphi %s1636_s27, %s2207_s27   ;;  %s1580_s26 = sphi %s1634_s26, %s2206_s26   ;;  %s1576_s25 = sphi %s1632_s25, %s2205_s25   ;;  %s1572_s24 = sphi %s1630_s24, %s2204_s24  }
   0x4   : > { %s1655_s30 = sadd.s32 1, %s1584_s27   ;;  %s179_s8 = sadd.s32 1, %s1580_s26 }
   0x5   : > { %s176_s9 = ssub.s32 %s1584_s27, %s1655_s30  ;;  %p189_p0 = scmp.ne.s32.totalorder %s1580_s26, %s1576_s25 }
   0x6   : > { %p177_p1 = scmp.eq.s32.totalorder %s176_s9, 0  ;;  %p190_p2 = scmp.eq.s32.totalorder %s1651_s28, 1 }
   0x7   : > { %p195_p3 = scmp.ne.s32.totalorder %s1576_s25, %s1572_s24  ;;  %p196_p4 = scmp.eq.s32.totalorder %s1250_s29, 1 }
   0x8   : > { %s1666_s10 = scalar_select %p177_p1, %s1580_s26, %s179_s8  }
   0x9   : > { %p1668_p5 = por %p190_p2, %p189_p0  ;;  %p1672_p6 = por %p196_p4, %p195_p3 }
   0xa   : > { %p1253_p7 = scmp.ge.s32.totalorder %s1584_s27, 1  ;;  %p241_p8 = scmp.lt.s32.totalorder %s1584_s27, 3 }
   0xc   : > { %p242_p9 = pnand %p1253_p7, %p241_p8 }
   0xd   : > { %s1255_s13 = sshll.u32 (!%p242_p9), %s1651_s28, 4  ;;  %s270_s23 = sand.u32 (!%p242_p9), 1, %s1576_s25  }
   0xe   : > { %245 = sbr.rel (%p242_p9) target bundleno = 834 (0x342), region = 48  ;;  %p274_p10 = scmp.lt.s32.totalorder (!%p242_p9), %s1255_s13, 31 }
   0xf   : > { %s1254_s9 = sshll.u32 (!%p242_p9), %s270_s23, 7  ;;  %s2154_s20 = scalar_lea.sflag (!%p242_p9), [#allocation3], %s270_s23 }
  0x10   : > { %s1587_s21 = smov (!%p242_p9), [#allocation2]  }
  0x11   : > { %s1528_s22 = sshll.u32 (!%p242_p9), %s1587_s21, 4  ;;  %s1529_s22 = int_to_ptr.vmem [resolvable:$false] %s1528_s22 }
  0x12   : > { %s1530_s29 = scalar_lea.vmem (!%p242_p9), %s1529_s22, 4096 }
  0x13   : > { %s2209_s13 = smov (!%p274_p10, %s1255_s13), 31 }
  0x14   : > { %s1256_s14 = sshll.u32 %s2209_s13, 3  ;;  %s2095_s13 = scalar_lea.vmem [#allocation2], %s1254_s9 }
  0x15   : > { %s1682_s17 = scalar_lea.vmem %s2194_s0, %s1256_s14  ;;  %s1297_s14 = sshll.u32 %s1651_s28, 11 }
  0x16   : > { %v281_v0 = vld [vmem:[%s1682_s17] sm:$0xff]  ;;  %v283_v1 = vld [vmem:[%s1682_s17 + $0x10] sm:$0xff]  ;;  %v282_v2 = vld [vmem:[%s1682_s17 + $0x8] sm:$0xff]  ;;  %s1188_s15 = sshll.u32 %s2095_s13, 4  ;;  %s2146_s19 = scalar_lea.hbm %s2201_s7, %s1297_s14  ;;  %s2148_s15 = int_to_ptr.vmem [resolvable:$true] %s1188_s15 }
  0x17   : > { %299 = vadd.xlane.f32.xlu0 %v281_v0  ;;  %303 = vadd.xlane.f32.xlu1 %v283_v1  ;;  %v284_v3 = vld [vmem:[%s1682_s17 + $0x18] sm:$0xff]  ;;  %v285_v4 = vld [vmem:[%s1682_s17 + $0x20] sm:$0xff]  ;;  %v286_v5 = vld [vmem:[%s1682_s17 + $0x28] sm:$0xff]  ;;  %s1524_s28 = scalar_lea.vmem %s2148_s15, 2048  ;;  %p1531_p0 = scmp.lt.s32.totalorder %s2148_s15, %s1529_s22 }
  0x18   : > { %v287_v6 = vld [vmem:[%s1682_s17 + $0x30] sm:$0xff]  ;;  %v288_v7 = vld [vmem:[%s1682_s17 + $0x38] sm:$0xff]  ;;  %v289_v8 = vld [vmem:[%s1682_s17 + $0x40] sm:$0xff]  ;;  %p1525_p11 = scmp.ne.s32.totalorder %s2148_s15, %s1524_s28  ;;  %p1532_p1 = scmp.lt.s32.totalorder %s1530_s29, %s1524_s28 }
  0x19   : > { %v290_v9 = vld [vmem:[%s1682_s17 + $0x48] sm:$0xff]  ;;  %v291_v10 = vld [vmem:[%s1682_s17 + $0x50] sm:$0xff]  ;;  %v1696_v11 = vld [vmem:[%s1682_s17 + $0x58] sm:$0xff] }
  0x1a   : > { %v1700_v12 = vld [vmem:[%s1682_s17 + $0x60] sm:$0xff]  ;;  %v1703_v13 = vld [vmem:[%s1682_s17 + $0x68] sm:$0xff]  ;;  %v1708_v14 = vld [vmem:[%s1682_s17 + $0x70] sm:$0xff]  ;;  %p1526_p12 = pnand %p1525_p11, %p1668_p5  ;;  %p1533_p2 = por %p1532_p1, %p1531_p0 }
  0x1b   : > { %301 = vadd.xlane.f32.xlu0 %v282_v2  ;;  %305 = vadd.xlane.f32.xlu1 %v284_v3  ;;  %v1711_v15 = vld [vmem:[%s1682_s17 + $0x78] sm:$0xff] }
  0x1c   : > { %p1527_p13 = pneg %p1526_p12 }
  0x1e   : > { %p1534_p3 = pnand %p1533_p2, %p1527_p13 }
  0x1f   : > { %307 = vadd.xlane.f32.xlu0 %v285_v4  ;;  %309 = vadd.xlane.f32.xlu1 %v286_v5 }
  0x23   : > { %311 = vadd.xlane.f32.xlu0 %v287_v6  ;;  %313 = vadd.xlane.f32.xlu1 %v288_v7 }
  0x27   : > { %315 = vadd.xlane.f32.xlu0 %v289_v8  ;;  %317 = vadd.xlane.f32.xlu1 %v290_v9 }
  0x2b   : > { %319 = vadd.xlane.f32.xlu0 %v291_v10  ;;  %321 = vadd.xlane.f32.xlu1 %v1696_v11 }
  0x2f   : > { %323 = vadd.xlane.f32.xlu0 %v1700_v12  ;;  %325 = vadd.xlane.f32.xlu1 %v1703_v13 }
  0x33   : > { %327 = vadd.xlane.f32.xlu0 %v1708_v14  ;;  %329 = vadd.xlane.f32.xlu1 %v1711_v15 }
  0xa0   : > { %v300_v16 = vpop.xlane.xlu0 %299  ;;  %v304_v17 = vpop.xlane.xlu1 %303 }
  0xa1   : > { %v332_v18 = vmul.f32 0.0078125, %v300_v16  ;;  %v334_v19 = vmul.f32 0.0078125, %v304_v17  ;;  %v1404_v16 = vld [vmem:[%s2197_s3 + $0x74] ss:$8 sps:$4 sm:$0xff]  }
  0xa2   : > { %749 = vmatprep.subr.bf16.mxu0 %v1404_v16 }
  0xa3   : > { %v1715_v20 = vsub.f32 %v281_v0, %v332_v18  ;;  %v1717_v21 = vsub.f32 %v283_v1, %v334_v19  ;;  %v1407_v18 = vld [vmem:[%s2197_s3 + $0x64] ss:$8 sps:$4 sm:$0xff]   ;;  %v1409_v19 = vld [vmem:[%s2197_s3 + $0x60] ss:$8 sps:$4 sm:$0xff]  }
  0xa4   : > { %v302_v22 = vpop.xlane.xlu0 %301  ;;  %v306_v23 = vpop.xlane.xlu1 %305 }
  0xa5   : > { %v333_v24 = vmul.f32 0.0078125, %v302_v22  ;;  %v364_v25 = vmul.f32 %v1715_v20, %v1715_v20  ;;  %v335_v26 = vmul.f32 0.0078125, %v306_v23  ;;  %v366_v29 = vmul.f32 %v1717_v21, %v1717_v21  ;;  %v1410_v22 = vld [vmem:[%s2197_s3 + $0x54] ss:$8 sps:$4 sm:$0xff]   ;;  %v1412_v23 = vld [vmem:[%s2197_s3 + $0x50] ss:$8 sps:$4 sm:$0xff]  }
  0xa7   : > { %v1721_v27 = vsub.f32 %v282_v2, %v333_v24  ;;  %380 = vadd.xlane.f32.xlu0 %v364_v25  ;;  %v1723_v28 = vsub.f32 %v284_v3, %v335_v26  ;;  %v1413_v24 = vld [vmem:[%s2197_s3 + $0x44] ss:$8 sps:$4 sm:$0xff]   ;;  %v1415_v25 = vld [vmem:[%s2197_s3 + $0x40] ss:$8 sps:$4 sm:$0xff]   ;;  %v1416_v26 = vld [vmem:[%s2197_s3 + $0x34] ss:$8 sps:$4 sm:$0xff]  }
  0xa8   : > { %v308_v30 = vpop.xlane.xlu0 %307  ;;  %v310_v31 = vpop.xlane.xlu1 %309 }
  0xa9   : > { %v336_v32 = vmul.f32 0.0078125, %v308_v30  ;;  %v365_v33 = vmul.f32 %v1721_v27, %v1721_v27  ;;  %v337_v34 = vmul.f32 0.0078125, %v310_v31  ;;  %v367_v37 = vmul.f32 %v1723_v28, %v1723_v28  ;;  %v1419_v30 = vld [vmem:[%s2197_s3 + $0x24] ss:$8 sps:$4 sm:$0xff]   ;;  %v1421_v31 = vld [vmem:[%s2197_s3 + $0x20] ss:$8 sps:$4 sm:$0xff]  }
  0xab   : > { %v1729_v35 = vsub.f32 %v285_v4, %v336_v32  ;;  %384 = vadd.xlane.f32.xlu0 %v366_v29  ;;  %382 = vadd.xlane.f32.xlu1 %v365_v33  ;;  %v1731_v36 = vsub.f32 %v286_v5, %v337_v34  ;;  %v1418_v29 = vld [vmem:[%s2197_s3 + $0x30] ss:$8 sps:$4 sm:$0xff]   ;;  %v1422_v32 = vld [vmem:[%s2197_s3 + $0x14] ss:$8 sps:$4 sm:$0xff]   ;;  %v1425_v34 = vld [vmem:[%s2197_s3 + $0x4] ss:$8 sps:$4 sm:$0xff]  }
  0xac   : > { %v312_v38 = vpop.xlane.xlu0 %311  ;;  %v314_v39 = vpop.xlane.xlu1 %313  ;;  %v1424_v33 = vld [vmem:[%s2197_s3 + $0x10] ss:$8 sps:$4 sm:$0xff]  }
  0xad   : > { %v338_v40 = vmul.f32 0.0078125, %v312_v38  ;;  %v368_v41 = vmul.f32 %v1729_v35, %v1729_v35  ;;  %v339_v42 = vmul.f32 0.0078125, %v314_v39  ;;  %v369_v45 = vmul.f32 %v1731_v36, %v1731_v36  ;;  %v1428_v39 = vld [vmem:[%s2199_s5 + $0x78] sm:$0xff]  }
  0xae   : > { %v1586_v38 = vmov 0   ;;  %1298 = vmatprep.subr.bf16.mxu1 %v1428_v39 }
  0xaf   : > { %v1737_v43 = vsub.f32 %v287_v6, %v338_v40  ;;  %386 = vadd.xlane.f32.xlu1 %v367_v37  ;;  %388 = vadd.xlane.f32.xlu0 %v368_v41  ;;  %v1739_v44 = vsub.f32 %v288_v7, %v339_v42  ;;  %v1427_v37 = vld [vmem:[%s2197_s3] ss:$8 sps:$4 sm:$0xff]   ;;  %v1429_v40 = vld [vmem:[%s2199_s5 + $0x38] sm:$0xff]   ;;  %v1430_v41 = vld [vmem:[%s2199_s5 + $0x70] sm:$0xff]  }
  0xb0   : > { %v316_v46 = vpop.xlane.xlu0 %315  ;;  %v318_v47 = vpop.xlane.xlu1 %317  ;;  %781 = vmatprep.mubr.bf16.mxu0 %v1586_v38  ;;  %1299 = vmatpush3.bf16.msra.mxu1 %v1429_v40  ;;  %v1431_v42 = vld [vmem:[%s2199_s5 + $0x30] sm:$0xff]  }
  0xb1   : > { %v340_v48 = vmul.f32 0.0078125, %v316_v46  ;;  %v370_v49 = vmul.f32 %v1737_v43, %v1737_v43  ;;  %v341_v50 = vmul.f32 0.0078125, %v318_v47  ;;  %v371_v53 = vmul.f32 %v1739_v44, %v1739_v44  ;;  %1300 = vmatprep.subr.bf16.mxu1 %v1430_v41  ;;  %v1433_v46 = vld [vmem:[%s2199_s5 + $0x28] sm:$0xff]   ;;  %v1434_v47 = vld [vmem:[%s2199_s5 + $0x60] sm:$0xff]  }
  0xb3   : > { %v1745_v51 = vsub.f32 %v289_v8, %v340_v48  ;;  %390 = vadd.xlane.f32.xlu1 %v369_v45  ;;  %392 = vadd.xlane.f32.xlu0 %v370_v49  ;;  %v1747_v52 = vsub.f32 %v290_v9, %v341_v50  ;;  %v1432_v45 = vld [vmem:[%s2199_s5 + $0x68] sm:$0xff]   ;;  %v1435_v48 = vld [vmem:[%s2199_s5 + $0x20] sm:$0xff]   ;;  %v1436_v49 = vld [vmem:[%s2199_s5 + $0x58] sm:$0xff]  }
  0xb4   : > { %v320_v54 = vpop.xlane.xlu0 %319  ;;  %v322_v55 = vpop.xlane.xlu1 %321  ;;  %1301 = vmatpush3.bf16.msra.mxu1 %v1431_v42  ;;  %v1437_v50 = vld [vmem:[%s2199_s5 + $0x18] sm:$0xff]  }
  0xb5   : > { %v342_v56 = vmul.f32 0.0078125, %v320_v54  ;;  %v372_v57 = vmul.f32 %v1745_v51, %v1745_v51  ;;  %v343_v58 = vmul.f32 0.0078125, %v322_v55  ;;  %v373_v61 = vmul.f32 %v1747_v52, %v1747_v52  ;;  %1302 = vmatprep.subr.bf16.mxu1 %v1432_v45 }
  0xb7   : > { %v1753_v59 = vsub.f32 %v291_v10, %v342_v56  ;;  %394 = vadd.xlane.f32.xlu1 %v371_v53  ;;  %396 = vadd.xlane.f32.xlu0 %v372_v57  ;;  %v1756_v60 = vsub.f32 %v1696_v11, %v343_v58 }
  0xb8   : > { %v324_v62 = vpop.xlane.xlu0 %323  ;;  %v326_v63 = vpop.xlane.xlu1 %325  ;;  %1303 = vmatpush3.bf16.msra.mxu1 %v1433_v46 }
  0xb9   : > { %v344_v0 = vmul.f32 0.0078125, %v324_v62  ;;  %v374_v1 = vmul.f32 %v1753_v59, %v1753_v59  ;;  %v345_v2 = vmul.f32 0.0078125, %v326_v63  ;;  %v375_v5 = vmul.f32 %v1756_v60, %v1756_v60  ;;  %1304 = vmatprep.subr.bf16.mxu1 %v1434_v47 }
  0xbb   : > { %v1763_v3 = vsub.f32 %v1700_v12, %v344_v0  ;;  %398 = vadd.xlane.f32.xlu1 %v373_v61  ;;  %400 = vadd.xlane.f32.xlu0 %v374_v1  ;;  %v1766_v4 = vsub.f32 %v1703_v13, %v345_v2 }
  0xbc   : > { %v328_v6 = vpop.xlane.xlu0 %327  ;;  %v330_v7 = vpop.xlane.xlu1 %329  ;;  %1305 = vmatpush3.bf16.msra.mxu1 %v1435_v48 }
  0xbd   : > { %v346_v8 = vmul.f32 0.0078125, %v328_v6  ;;  %v376_v9 = vmul.f32 %v1763_v3, %v1763_v3  ;;  %v347_v10 = vmul.f32 0.0078125, %v330_v7  ;;  %v377_v13 = vmul.f32 %v1766_v4, %v1766_v4  ;;  %1306 = vmatprep.subr.bf16.mxu1 %v1436_v49 }
  0xbf   : > { %v1773_v11 = vsub.f32 %v1708_v14, %v346_v8  ;;  %402 = vadd.xlane.f32.xlu1 %v375_v5  ;;  %404 = vadd.xlane.f32.xlu0 %v376_v9  ;;  %v1776_v12 = vsub.f32 %v1711_v15, %v347_v10  ;;  %v1406_v14 = vld [vmem:[%s2197_s3 + $0x70] ss:$8 sps:$4 sm:$0xff]  }
  0xc0   : > { %750 = vmatpush1.bf16.msra.mxu0 %v1406_v14  ;;  %1307 = vmatpush3.bf16.msra.mxu1 %v1437_v50 }
  0xc1   : > { %v378_v17 = vmul.f32 %v1773_v11, %v1773_v11  ;;  %v379_v15 = vmul.f32 %v1776_v12, %v1776_v12  ;;  %751 = vmatprep.subr.bf16.mxu0 %v1407_v18 }
  0xc3   : > { %406 = vadd.xlane.f32.xlu1 %v377_v13  ;;  %408 = vadd.xlane.f32.xlu0 %v378_v17 }
  0xc4   : > { %752 = vmatpush1.bf16.msra.mxu0 %v1409_v19 }
  0xc5   : > { %753 = vmatprep.subr.bf16.mxu0 %v1410_v22 }
  0xc7   : > { %410 = vadd.xlane.f32.xlu1 %v379_v15 }
  0xc8   : > { %754 = vmatpush1.bf16.msra.mxu0 %v1412_v23 }
  0xc9   : > { %755 = vmatprep.subr.bf16.mxu0 %v1413_v24 }
  0xcc   : > { %756 = vmatpush1.bf16.msra.mxu0 %v1415_v25 }
  0xcd   : > { %757 = vmatprep.subr.bf16.mxu0 %v1416_v26 }
  0xd0   : > { %758 = vmatpush1.bf16.msra.mxu0 %v1418_v29 }
  0xd1   : > { %759 = vmatprep.subr.bf16.mxu0 %v1419_v30 }
  0xd4   : > { %760 = vmatpush1.bf16.msra.mxu0 %v1421_v31 }
  0xd5   : > { %761 = vmatprep.subr.bf16.mxu0 %v1422_v32 }
  0xd8   : > { %762 = vmatpush1.bf16.msra.mxu0 %v1424_v33 }
  0xd9   : > { %763 = vmatprep.subr.bf16.mxu0 %v1425_v34 }
  0xdc   : > { %764 = vmatpush1.bf16.msra.mxu0 %v1427_v37 }
 0x130   : > { %v381_v53 = vpop.xlane.xlu0 %380 }
 0x131   : > { %v413_v54 = vmul.f32 0.007874016, %v381_v53 }
 0x133   : > { %1444 = vrsqrt.f32 %v413_v54  ;;  %vm431_vm0 = vcmp.eq.f32.partialorder %v413_v54, inf  ;;  %v434_v16 = vand.u32 2147483648, %v413_v54  ;;  %vm433_vm1 = vcmp.eq.f32.partialorder %v413_v54, 0.0 }
 0x134   : > { %v383_v55 = vpop.xlane.xlu1 %382  ;;  %v385_v56 = vpop.xlane.xlu0 %384 }
 0x135   : > { %v414_v57 = vmul.f32 0.007874016, %v383_v55  ;;  %v415_v58 = vmul.f32 0.007874016, %v385_v56 }
 0x137   : > { %1446 = vrsqrt.f32 %v414_v57  ;;  %vm438_vm2 = vcmp.eq.f32.partialorder %v414_v57, inf  ;;  %vm440_vm3 = vcmp.eq.f32.partialorder %v414_v57, 0.0  ;;  %v441_v25 = vand.u32 2147483648, %v414_v57 }
 0x138   : > { %1448 = vrsqrt.f32 %v415_v58  ;;  %v387_v61 = vpop.xlane.xlu1 %386  ;;  %v389_v62 = vpop.xlane.xlu0 %388  ;;  %vm445_vm4 = vcmp.eq.f32.partialorder %v415_v58, inf  ;;  %v448_v31 = vand.u32 2147483648, %v415_v58  ;;  %vm447_vm5 = vcmp.eq.f32.partialorder %v415_v58, 0.0 }
 0x139   : > { %v416_v63 = vmul.f32 0.007874016, %v387_v61  ;;  %v1863_v0 = vmul.f32 0.007874016, %v389_v62 }
 0x13b   : > { %1450 = vrsqrt.f32 %v416_v63  ;;  %vm452_vm6 = vcmp.eq.f32.partialorder %v416_v63, inf  ;;  %vm454_vm7 = vcmp.eq.f32.partialorder %v416_v63, 0.0  ;;  %v455_v46 = vand.u32 2147483648, %v416_v63 }
 0x13c   : > { %1452 = vrsqrt.f32 %v1863_v0  ;;  %v391_v1 = vpop.xlane.xlu1 %390  ;;  %v393_v2 = vpop.xlane.xlu0 %392  ;;  %vm459_vm8 = vcmp.eq.f32.partialorder %v1863_v0, inf  ;;  %vm461_vm9 = vcmp.eq.f32.partialorder %v1863_v0, 0.0  ;;  %v462_v55 = vand.u32 2147483648, %v1863_v0 }
 0x13d   : > { %v1866_v5 = vmul.f32 0.007874016, %v391_v1  ;;  %v1868_v6 = vmul.f32 0.007874016, %v393_v2 }
 0x13f   : > { %1454 = vrsqrt.f32 %v1866_v5  ;;  %vm466_vm10 = vcmp.eq.f32.partialorder %v1866_v5, inf  ;;  %vm468_vm11 = vcmp.eq.f32.partialorder %v1866_v5, 0.0  ;;  %vm473_vm12 = vcmp.eq.f32.partialorder %v1868_v6, inf }
 0x140   : > { %v1445_v7 = vpop.eup %1444  ;;  %1456 = vrsqrt.f32 %v1868_v6  ;;  %v395_v8 = vpop.xlane.xlu1 %394  ;;  %vm475_vm13 = vcmp.eq.f32.partialorder %v1868_v6, 0.0 }
 0x141   : > { %v397_v9 = vpop.xlane.xlu0 %396  ;;  %v430_v10 = vmul.f32 %v1445_v7, %v413_v54  ;;  %v1872_v13 = vmul.f32 0.007874016, %v395_v8 }
 0x142   : > { %v1874_v17 = vmul.f32 0.007874016, %v397_v9 }
 0x143   : > { %v432_v14 = vsel %vm431_vm0, %v413_v54, %v430_v10  ;;  %1458 = vrsqrt.f32 %v1872_v13  ;;  %vm480_vm14 = vcmp.eq.f32.partialorder %v1872_v13, inf  ;;  %vm482_vm15 = vcmp.eq.f32.partialorder %v1872_v13, 0.0 }
 0x144   : > { %v1447_v15 = vpop.eup %1446  ;;  %v435_v18 = vsel %vm433_vm1, %v434_v16, %v432_v14  ;;  %v399_v19 = vpop.xlane.xlu1 %398  ;;  %1460 = vrsqrt.f32 %v1874_v17  ;;  %v476_v14 = vand.u32 2147483648, %v1868_v6  ;;  %vm487_vm1 = vcmp.eq.f32.partialorder %v1874_v17, inf }
 0x145   : > { %v1449_v22 = vpop.eup %1448  ;;  %v541_v23 = vadd.f32 1e-06, %v435_v18  ;;  %v437_v24 = vmul.f32 %v1447_v15, %v414_v57  ;;  %v1878_v29 = vmul.f32 0.007874016, %v399_v19  ;;  %v401_v42 = vpop.xlane.xlu0 %400 }
 0x146   : > { %v444_v26 = vmul.f32 %v1449_v22, %v415_v58  ;;  %v1886_v56 = vmul.f32 0.007874016, %v401_v42 }
 0x147   : > { %1462 = vrcp.f32 %v541_v23  ;;  %v439_v30 = vsel %vm438_vm2, %v414_v57, %v437_v24  ;;  %vm494_vm0 = vcmp.eq.f32.partialorder %v1878_v29, inf  ;;  %v497_v42 = vand.u32 2147483648, %v1878_v29 }
 0x148   : > { %v1451_v32 = vpop.eup %1450  ;;  %v442_v33 = vsel %vm440_vm3, %v441_v25, %v439_v30  ;;  %v446_v34 = vsel %vm445_vm4, %v415_v58, %v444_v26  ;;  %1464 = vrsqrt.f32 %v1878_v29  ;;  %v403_v48 = vpop.xlane.xlu1 %402  ;;  %v483_v25 = vand.u32 2147483648, %v1872_v13 }
 0x149   : > { %v1453_v37 = vpop.eup %1452  ;;  %v542_v39 = vadd.f32 1e-06, %v442_v33  ;;  %v449_v40 = vsel %vm447_vm5, %v448_v31, %v446_v34  ;;  %v451_v41 = vmul.f32 %v1451_v32, %v416_v63  ;;  %v1890_v62 = vmul.f32 0.007874016, %v403_v48 }
 0x14a   : > { %v543_v45 = vadd.f32 1e-06, %v449_v40  ;;  %v458_v47 = vmul.f32 %v1453_v37, %v1863_v0  ;;  %vm489_vm2 = vcmp.eq.f32.partialorder %v1874_v17, 0.0  ;;  %vm496_vm3 = vcmp.eq.f32.partialorder %v1878_v29, 0.0 }
 0x14b   : > { %1466 = vrcp.f32 %v542_v39  ;;  %v453_v49 = vsel %vm452_vm6, %v416_v63, %v451_v41  ;;  %v469_v63 = vand.u32 2147483648, %v1866_v5  ;;  %vm508_vm4 = vcmp.eq.f32.partialorder %v1890_v62, inf }
 0x14c   : > { %v1455_v50 = vpop.eup %1454  ;;  %v456_v53 = vsel %vm454_vm7, %v455_v46, %v453_v49  ;;  %v460_v54 = vsel %vm459_vm8, %v1863_v0, %v458_v47  ;;  %1468 = vrcp.f32 %v543_v45  ;;  %v407_v10 = vpop.xlane.xlu1 %406  ;;  %vm501_vm5 = vcmp.eq.f32.partialorder %v1886_v56, inf }
 0x14d   : > { %v1457_v57 = vpop.eup %1456  ;;  %v544_v58 = vadd.f32 1e-06, %v456_v53  ;;  %v465_v61 = vmul.f32 %v1455_v50, %v1866_v5  ;;  %v463_v2 = vsel %vm461_vm9, %v462_v55, %v460_v54  ;;  %v1907_v23 = vmul.f32 0.007874016, %v407_v10  ;;  %v1937_v54 = vld [vmem:[%s2196_s2] ss:$0 sm:$0xff] }
 0x14e   : > { %v472_v1 = vmul.f32 %v1457_v57, %v1868_v6  ;;  %v545_v18 = vadd.f32 1e-06, %v463_v2  ;;  %v490_v53 = vand.u32 2147483648, %v1874_v17  ;;  %vm510_vm6 = vcmp.eq.f32.partialorder %v1890_v62, 0.0 }
 0x14f   : > { %1470 = vrcp.f32 %v544_v58  ;;  %v467_v7 = vsel %vm466_vm10, %v1866_v5, %v465_v61  ;;  %v405_v5 = vpop.xlane.xlu0 %404  ;;  %vm503_vm7 = vcmp.eq.f32.partialorder %v1886_v56, 0.0  ;;  %vm522_vm8 = vcmp.eq.f32.partialorder %v1907_v23, inf }
 0x150   : > { %v1459_v8 = vpop.eup %1458  ;;  %v470_v9 = vsel %vm468_vm11, %v469_v63, %v467_v7  ;;  %1472 = vrsqrt.f32 %v1886_v56  ;;  %v474_v0 = vsel %vm473_vm12, %v1868_v6, %v472_v1  ;;  %v1911_v31 = vmul.f32 0.007874016, %v405_v5  ;;  %v411_v33 = vpop.xlane.xlu1 %410 }
 0x151   : > { %v546_v16 = vadd.f32 1e-06, %v470_v9  ;;  %v479_v15 = vmul.f32 %v1459_v8, %v1872_v13  ;;  %1474 = vrsqrt.f32 %v1890_v62  ;;  %v1461_v19 = vpop.eup %1460  ;;  %v477_v30 = vsel %vm475_vm13, %v476_v14, %v474_v0 }
 0x152   : > { %v547_v37 = vadd.f32 1e-06, %v477_v30  ;;  %v486_v39 = vmul.f32 %v1461_v19, %v1874_v17  ;;  %v1926_v46 = vmul.f32 0.007874016, %v411_v33  ;;  %vm515_vm9 = vcmp.eq.f32.partialorder %v1911_v31, inf }
 0x153   : > { %v481_v22 = vsel %vm480_vm14, %v1872_v13, %v479_v15  ;;  %1476 = vrcp.f32 %v546_v16  ;;  %v1923_v13 = vld [vmem:[%s2195_s1] ss:$0 sm:$0xff]  ;;  %v409_v45 = vpop.xlane.xlu0 %408  ;;  %vm524_vm10 = vcmp.eq.f32.partialorder %v1907_v23, 0.0  ;;  %vm517_vm11 = vcmp.eq.f32.partialorder %v1911_v31, 0.0 }
 0x154   : > { %v1463_v24 = vpop.eup %1462  ;;  %1478 = vrcp.f32 %v545_v18  ;;  %v484_v6 = vsel %vm482_vm15, %v483_v25, %v481_v22  ;;  %v488_v50 = vsel %vm487_vm1, %v1874_v17, %v486_v39  ;;  %v1940_v58 = vmul.f32 0.007874016, %v409_v45 }
 0x155   : > { %v1465_v26 = vpop.eup %1464  ;;  %1480 = vrsqrt.f32 %v1907_v23  ;;  %v573_v40 = vmul.f32 %v1463_v24, %v1715_v20  ;;  %v548_v41 = vadd.f32 1e-06, %v484_v6  ;;  %v491_v9 = vsel %vm489_vm2, %v490_v53, %v488_v50 }
 0x156   : > { %v493_v32 = vmul.f32 %v1465_v26, %v1878_v29  ;;  %1482 = vrsqrt.f32 %v1911_v31  ;;  %v511_v18 = vand.u32 2147483648, %v1890_v62  ;;  %v504_v22 = vand.u32 2147483648, %v1886_v56 }
 0x157   : > { %1484 = vrcp.f32 %v547_v37  ;;  %v595_v55 = vmul.f32 %v1923_v13, %v573_v40  ;;  %vm536_vm12 = vcmp.eq.f32.partialorder %v1926_v46, inf  ;;  %vm529_vm13 = vcmp.eq.f32.partialorder %v1940_v58, inf }
 0x158   : > { %v1467_v34 = vpop.eup %1466  ;;  %v495_v20 = vsel %vm494_vm0, %v1878_v29, %v493_v32  ;;  %1486 = vrcp.f32 %v548_v41  ;;  %vm538_vm14 = vcmp.eq.f32.partialorder %v1926_v46, 0.0  ;;  %vm531_vm15 = vcmp.eq.f32.partialorder %v1940_v58, 0.0 }
 0x159   : > { %v1469_v47 = vpop.eup %1468  ;;  %v574_v48 = vmul.f32 %v1467_v34, %v1721_v27  ;;  %v498_v63 = vsel %vm496_vm3, %v497_v42, %v495_v20  ;;  %1488 = vrsqrt.f32 %v1926_v46  ;;  %v617_v2 = vadd.f32 %v1937_v54, %v595_v55 }
 0x15a   : > { %v575_v8 = vmul.f32 %v1469_v47, %v1717_v21  ;;  %1490 = vrsqrt.f32 %v1940_v58  ;;  %v549_v21 = vadd.f32 1e-06, %v491_v9  ;;  %v525_v42 = vand.u32 2147483648, %v1907_v23 }
 0x15b   : > { %v596_v29 = vmul.f32 %v1923_v13, %v574_v48  ;;  %v518_v48 = vand.u32 2147483648, %v1911_v31 }
 0x15c   : > { %v1471_v49 = vpop.eup %1470  ;;  %v597_v5 = vmul.f32 %v1923_v13, %v575_v8 }
 0x15d   : > { %v1473_v57 = vpop.eup %1472  ;;  %v576_v27 = vmul.f32 %v1471_v49, %v1723_v28  ;;  %v618_v7 = vadd.f32 %v1937_v54, %v596_v29  ;;  %v550_v28 = vadd.f32 1e-06, %v498_v63 }
 0x15e   : > { %v1475_v61 = vpop.eup %1474  ;;  %v500_v10 = vmul.f32 %v1473_v57, %v1886_v56  ;;  %v619_v32 = vadd.f32 %v1937_v54, %v597_v5 }
 0x15f   : > { %v507_v1 = vmul.f32 %v1475_v61, %v1890_v62  ;;  %v633_v16 = vpack.c.bf16 %v618_v7, %v617_v2  ;;  %v598_v14 = vmul.f32 %v1923_v13, %v576_v27  ;;  %1492 = vrcp.f32 %v550_v28 }
 0x160   : > { %v1477_v15 = vpop.eup %1476  ;;  %v502_v24 = vsel %vm501_vm5, %v1886_v56, %v500_v10  ;;  %1494 = vrcp.f32 %v549_v21  ;;  %v532_v28 = vand.u32 2147483648, %v1940_v58 }
 0x161   : > { %v1479_v0 = vpop.eup %1478  ;;  %v509_v17 = vsel %vm508_vm4, %v1890_v62, %v507_v1  ;;  %782 = vmatmul.mubr.bf16.vlgmr.msra.gmra.mxu0 %v633_v16  ;;  %v620_v25 = vadd.f32 %v1937_v54, %v598_v14  ;;  %v578_v26 = vmul.f32 %v1477_v15, %v1731_v36  ;;  %v505_v34 = vsel %vm503_vm7, %v504_v22, %v502_v24 }
 0x162   : > { %v1481_v19 = vpop.eup %1480  ;;  %791 = vmatprep.mubr.bf16.mxu0 %v1586_v38  ;;  %v512_v6 = vsel %vm510_vm6, %v511_v18, %v509_v17  ;;  %v577_v33 = vmul.f32 %v1479_v0, %v1729_v35  ;;  %v551_v47 = vadd.f32 1e-06, %v505_v34 }
 0x163   : > { %v1483_v30 = vpop.eup %1482  ;;  %v521_v62 = vmul.f32 %v1481_v19, %v1907_v23  ;;  %v552_v39 = vadd.f32 1e-06, %v512_v6  ;;  %v634_v40 = vpack.c.bf16 %v620_v25, %v619_v32  ;;  %v600_v41 = vmul.f32 %v1923_v13, %v578_v26 }
 0x164   : > { %v1485_v37 = vpop.eup %1484  ;;  %v514_v56 = vmul.f32 %v1483_v30, %v1911_v31  ;;  %v599_v35 = vmul.f32 %v1923_v13, %v577_v33 }
 0x165   : > { %v1487_v36 = vpop.eup %1486  ;;  %v523_v20 = vsel %vm522_vm8, %v1907_v23, %v521_v62  ;;  %1496 = vrcp.f32 %v552_v39  ;;  %v622_v50 = vadd.f32 %v1937_v54, %v600_v41  ;;  %v579_v27 = vmul.f32 %v1485_v37, %v1737_v43 }
 0x166   : > { %v1489_v45 = vpop.eup %1488  ;;  %v516_v49 = vsel %vm515_vm9, %v1911_v31, %v514_v56  ;;  %v580_v53 = vmul.f32 %v1487_v36, %v1739_v44  ;;  %v526_v57 = vsel %vm524_vm10, %v525_v42, %v523_v20  ;;  %1498 = vrcp.f32 %v551_v47 }
 0x167   : > { %v1491_v55 = vpop.eup %1490  ;;  %v535_v23 = vmul.f32 %v1489_v45, %v1926_v46  ;;  %v621_v29 = vadd.f32 %v1937_v54, %v599_v35  ;;  %v519_v61 = vsel %vm517_vm11, %v518_v48, %v516_v49  ;;  %v554_v63 = vadd.f32 1e-06, %v526_v57 }
 0x168   : > { %v528_v1 = vmul.f32 %v1491_v55, %v1940_v58  ;;  %v602_v2 = vmul.f32 %v1923_v13, %v580_v53  ;;  %v539_v44 = vand.u32 2147483648, %v1926_v46  ;;  %v553_v8 = vadd.f32 1e-06, %v519_v61  ;;  %v1443_v55 = vld [vmem:[%s2199_s5] sm:$0xff]  }
 0x169   : > { %792 = vmatmul.mubr.bf16.gmra.mxu0 %v634_v40  ;;  %v635_v31 = vpack.c.bf16 %v622_v50, %v621_v29  ;;  %v537_v9 = vsel %vm536_vm12, %v1926_v46, %v535_v23  ;;  %v601_v43 = vmul.f32 %v1923_v13, %v579_v27  ;;  %1500 = vrcp.f32 %v554_v63  ;;  %v657_v61 = vld [vmem:[%s2198_s4] sm:$0x3] }
 0x16a   : > { %801 = vmatprep.mubr.bf16.mxu0 %v1586_v38  ;;  %v530_v16 = vsel %vm529_vm13, %v1940_v58, %v528_v1  ;;  %v624_v14 = vadd.f32 %v1937_v54, %v602_v2  ;;  %v540_v18 = vsel %vm538_vm14, %v539_v44, %v537_v9  ;;  %1502 = vrcp.f32 %v553_v8 }
 0x16b   : > { %v623_v46 = vadd.f32 %v1937_v54, %v601_v43  ;;  %v533_v21 = vsel %vm531_vm15, %v532_v28, %v530_v16  ;;  %v556_v17 = vadd.f32 1e-06, %v540_v18  ;;  %v659_v57 = vlaneseq }
 0x16c   : > { %v1493_v7 = vpop.eup %1492  ;;  %v555_v24 = vadd.f32 1e-06, %v533_v21 }
 0x16d   : > { %v1495_v10 = vpop.eup %1494  ;;  %v582_v15 = vmul.f32 %v1493_v7, %v1747_v52  ;;  %v636_v5 = vpack.c.bf16 %v624_v14, %v623_v46  ;;  %1504 = vrcp.f32 %v556_v17  ;;  %v660_v23 = vshrl.u32 %v659_v57, 7 }
 0x16e   : > { %v581_v0 = vmul.f32 %v1495_v10, %v1745_v51  ;;  %1506 = vrcp.f32 %v555_v24 }
 0x16f   : > { %v604_v19 = vmul.f32 %v1923_v13, %v582_v15  ;;  %v665_v29 = vsub.s32 1, %v660_v23  ;;  %v661_v27 = vsub.s32 0, %v660_v23 }
 0x170   : > { %v603_v58 = vmul.f32 %v1923_v13, %v581_v0 }
 0x171   : > { %802 = vmatmul.mubr.bf16.gmra.mxu0 %v635_v31  ;;  %v626_v52 = vadd.f32 %v1937_v54, %v604_v19  ;;  %v2049_v1 = vrot.slane %v657_v61, %v665_v29  ;;  %v2051_v31 = vrot.slane %v657_v61, %v661_v27 }
 0x172   : > { %811 = vmatprep.mubr.bf16.mxu0 %v1586_v38  ;;  %v1497_v22 = vpop.eup %1496  ;;  %v625_v51 = vadd.f32 %v1937_v54, %v603_v58 }
 0x173   : > { %v1499_v25 = vpop.eup %1498  ;;  %v584_v26 = vmul.f32 %v1497_v22, %v1756_v60 }
 0x174   : > { %v583_v30 = vmul.f32 %v1499_v25, %v1753_v59  ;;  %v637_v6 = vpack.c.bf16 %v626_v52, %v625_v51 }
 0x175   : > { %v606_v62 = vmul.f32 %v1923_v13, %v584_v26 }
 0x176   : > { %v1501_v32 = vpop.eup %1500  ;;  %v605_v33 = vmul.f32 %v1923_v13, %v583_v30 }
 0x177   : > { %v1503_v34 = vpop.eup %1502  ;;  %v628_v37 = vadd.f32 %v1937_v54, %v606_v62  ;;  %v586_v39 = vmul.f32 %v1501_v32, %v1766_v4 }
 0x178   : > { %v627_v60 = vadd.f32 %v1937_v54, %v605_v33  ;;  %v585_v56 = vmul.f32 %v1503_v34, %v1763_v3 }
 0x179   : > { %812 = vmatmul.mubr.bf16.gmra.mxu0 %v636_v5  ;;  %v608_v59 = vmul.f32 %v1923_v13, %v586_v39 }
 0x17a   : > { %821 = vmatprep.mubr.bf16.mxu0 %v1586_v38  ;;  %v638_v40 = vpack.c.bf16 %v628_v37, %v627_v60  ;;  %v1505_v41 = vpop.eup %1504  ;;  %v607_v36 = vmul.f32 %v1923_v13, %v585_v56 }
 0x17b   : > { %v1507_v42 = vpop.eup %1506  ;;  %v630_v45 = vadd.f32 %v1937_v54, %v608_v59  ;;  %v588_v47 = vmul.f32 %v1505_v41, %v1776_v12  ;;  %v1438_v12 = vld [vmem:[%s2199_s5 + $0x50] sm:$0xff]  }
 0x17c   : > { %v629_v4 = vadd.f32 %v1937_v54, %v607_v36  ;;  %v587_v20 = vmul.f32 %v1507_v42, %v1773_v11  ;;  %v1439_v11 = vld [vmem:[%s2199_s5 + $0x10] sm:$0xff]   ;;  %1308 = vmatprep.subr.bf16.mxu1 %v1438_v12 }
 0x17d   : > { %v610_v3 = vmul.f32 %v1923_v13, %v588_v47  ;;  %1309 = vmatpush3.bf16.msra.mxu1 %v1439_v11 }
 0x17e   : > { %v639_v35 = vpack.c.bf16 %v630_v45, %v629_v4  ;;  %v609_v48 = vmul.f32 %v1923_v13, %v587_v20  ;;  %v1441_v13 = vld [vmem:[%s2199_s5 + $0x8] sm:$0xff]  }
 0x17f   : > { %v632_v49 = vadd.f32 %v1937_v54, %v610_v3 }
 0x180   : > { %v631_v50 = vadd.f32 %v1937_v54, %v609_v48  ;;  %v1442_v54 = vld [vmem:[%s2199_s5 + $0x40] sm:$0xff]  }
 0x181   : > { %822 = vmatmul.mubr.bf16.gmra.mxu0 %v637_v6 }
 0x182   : > { %831 = vmatprep.mubr.bf16.mxu0 %v1586_v38  ;;  %v640_v53 = vpack.c.bf16 %v632_v49, %v631_v50 }
 0x189   : > { %832 = vmatmul.mubr.bf16.gmra.mxu0 %v638_v40 }
 0x18a   : > { %841 = vmatprep.mubr.bf16.mxu0 %v1586_v38 }
 0x191   : > { %842 = vmatmul.mubr.bf16.gmra.mxu0 %v639_v35 }
 0x192   : > { %851 = vmatprep.mubr.bf16.mxu0 %v1586_v38  ;;  %v1440_v38 = vld [vmem:[%s2199_s5 + $0x48] sm:$0xff]  }
 0x193   : > { %1310 = vmatprep.subr.bf16.mxu1 %v1440_v38 }
 0x194   : > { %1311 = vmatpush3.bf16.msra.mxu1 %v1441_v13 }
 0x195   : > { %1312 = vmatprep.subr.bf16.mxu1 %v1442_v54 }
 0x198   : > { %1313 = vmatpush3.bf16.msra.mxu1 %v1443_v55 }
 0x199   : > { %852 = vmatmul.mubr.bf16.gmra.mxu0 %v640_v53 }
 0x221   : > { %v783_v63 = vpop.f32.mrf.mxu0 }
 0x222   : > { %v784_v9 = vadd.f32 %v783_v63, %v2051_v31 }
 0x223   : > { %v785_v2 = vpop.f32.mrf.mxu0 }
 0x224   : > { %v786_v44 = vadd.f32 %v785_v2, %v2049_v1  ;;  %v862_v18 = vmax.f32 %v784_v9, 0.0 }
 0x225   : > { %v787_v7 = vpop.f32.mrf.mxu0 }
 0x226   : > { %v788_v8 = vadd.f32 %v787_v7, %v2051_v31  ;;  %v863_v14 = vmax.f32 %v786_v44, 0.0 }
 0x227   : > { %v789_v43 = vpop.f32.mrf.mxu0 }
 0x228   : > { %v790_v10 = vadd.f32 %v789_v43, %v2049_v1  ;;  %v864_v28 = vmax.f32 %v788_v8, 0.0 }
 0x229   : > { %v793_v16 = vpop.f32.mrf.mxu0 }
 0x22a   : > { %v865_v15 = vmax.f32 %v790_v10, 0.0  ;;  %v894_v21 = vpack.c.bf16 %v864_v28, %v862_v18  ;;  %v794_v22 = vadd.f32 %v793_v16, %v2051_v31 }
 0x22b   : > { %v795_v46 = vpop.f32.mrf.mxu0 }
 0x22c   : > { %v895_v0 = vpack.c.bf16 %v865_v15, %v863_v14  ;;  %v796_v5 = vadd.f32 %v795_v46, %v2049_v1  ;;  %v866_v30 = vmax.f32 %v794_v22, 0.0 }
 0x22d   : > { %v797_v17 = vpop.f32.mrf.mxu0 }
 0x22e   : > { %v798_v19 = vadd.f32 %v797_v17, %v2051_v31  ;;  %1077 = vmatprep.mubr.bf16.mxu1 %v895_v0  ;;  %v867_v26 = vmax.f32 %v796_v5, 0.0 }
 0x22f   : > { %v799_v24 = vpop.f32.mrf.mxu0  ;;  %1078 = vmatmul.mubr.bf16.vlgmr.msra.gmra.mxu1 %v894_v21 }
 0x230   : > { %v800_v58 = vadd.f32 %v799_v24, %v2049_v1  ;;  %v868_v25 = vmax.f32 %v798_v19, 0.0 }
 0x231   : > { %v803_v52 = vpop.f32.mrf.mxu0 }
 0x232   : > { %v869_v51 = vmax.f32 %v800_v58, 0.0  ;;  %v896_v32 = vpack.c.bf16 %v868_v25, %v866_v30  ;;  %v804_v39 = vadd.f32 %v803_v52, %v2051_v31 }
 0x233   : > { %v805_v6 = vpop.f32.mrf.mxu0 }
 0x234   : > { %v897_v62 = vpack.c.bf16 %v869_v51, %v867_v26  ;;  %v806_v34 = vadd.f32 %v805_v6, %v2049_v1  ;;  %v870_v42 = vmax.f32 %v804_v39, 0.0 }
 0x235   : > { %v807_v33 = vpop.f32.mrf.mxu0 }
 0x236   : > { %v808_v37 = vadd.f32 %v807_v33, %v2051_v31  ;;  %1085 = vmatprep.mubr.bf16.mxu1 %v897_v62  ;;  %v871_v41 = vmax.f32 %v806_v34, 0.0 }
 0x237   : > { %v809_v60 = vpop.f32.mrf.mxu0  ;;  %1086 = vmatmul.mubr.bf16.gmra.mxu1 %v896_v32 }
 0x238   : > { %v810_v56 = vadd.f32 %v809_v60, %v2049_v1  ;;  %v872_v40 = vmax.f32 %v808_v37, 0.0 }
 0x239   : > { %v813_v59 = vpop.f32.mrf.mxu0 }
 0x23a   : > { %v873_v36 = vmax.f32 %v810_v56, 0.0  ;;  %v898_v4 = vpack.c.bf16 %v872_v40, %v870_v42  ;;  %v814_v48 = vadd.f32 %v813_v59, %v2051_v31 }
 0x23b   : > { %v815_v45 = vpop.f32.mrf.mxu0 }
 0x23c   : > { %v899_v47 = vpack.c.bf16 %v873_v36, %v871_v41  ;;  %v816_v35 = vadd.f32 %v815_v45, %v2049_v1  ;;  %v874_v13 = vmax.f32 %v814_v48, 0.0 }
 0x23d   : > { %v817_v20 = vpop.f32.mrf.mxu0 }
 0x23e   : > { %v818_v3 = vadd.f32 %v817_v20, %v2051_v31  ;;  %1093 = vmatprep.mubr.bf16.mxu1 %v899_v47  ;;  %v875_v11 = vmax.f32 %v816_v35, 0.0 }
 0x23f   : > { %v819_v49 = vpop.f32.mrf.mxu0  ;;  %1094 = vmatmul.mubr.bf16.gmra.mxu1 %v898_v4 }
 0x240   : > { %v820_v50 = vadd.f32 %v819_v49, %v2049_v1  ;;  %v876_v53 = vmax.f32 %v818_v3, 0.0 }
 0x241   : > { %v823_v12 = vpop.f32.mrf.mxu0 }
 0x242   : > { %v877_v38 = vmax.f32 %v820_v50, 0.0  ;;  %v900_v57 = vpack.c.bf16 %v876_v53, %v874_v13  ;;  %v824_v61 = vadd.f32 %v823_v12, %v2051_v31 }
 0x243   : > { %v825_v54 = vpop.f32.mrf.mxu0 }
 0x244   : > { %v901_v55 = vpack.c.bf16 %v877_v38, %v875_v11  ;;  %v826_v29 = vadd.f32 %v825_v54, %v2049_v1  ;;  %v878_v43 = vmax.f32 %v824_v61, 0.0  ;;  %v1508_v54 = vld [vmem:[%s1682_s17] sm:$0xff]  ;;  %v1509_v61 = vld [vmem:[%s1682_s17 + $0x8] sm:$0xff] }
 0x245   : > { %v827_v23 = vpop.f32.mrf.mxu0 }
 0x246   : > { %v828_v27 = vadd.f32 %v827_v23, %v2051_v31  ;;  %1101 = vmatprep.mubr.bf16.mxu1 %v901_v55  ;;  %v879_v8 = vmax.f32 %v826_v29, 0.0 }
 0x247   : > { %v829_v63 = vpop.f32.mrf.mxu0  ;;  %1102 = vmatmul.mubr.bf16.gmra.mxu1 %v900_v57 }
 0x248   : > { %v830_v2 = vadd.f32 %v829_v63, %v2049_v1  ;;  %v880_v7 = vmax.f32 %v828_v27, 0.0 }
 0x249   : > { %v833_v44 = vpop.f32.mrf.mxu0 }
 0x24a   : > { %v881_v9 = vmax.f32 %v830_v2, 0.0  ;;  %v902_v16 = vpack.c.bf16 %v880_v7, %v878_v43  ;;  %v834_v46 = vadd.f32 %v833_v44, %v2051_v31 }
 0x24b   : > { %v835_v10 = vpop.f32.mrf.mxu0 }
 0x24c   : > { %v903_v28 = vpack.c.bf16 %v881_v9, %v879_v8  ;;  %v836_v15 = vadd.f32 %v835_v10, %v2049_v1  ;;  %v882_v24 = vmax.f32 %v834_v46, 0.0  ;;  %v1510_v9 = vld [vmem:[%s1682_s17 + $0x10] sm:$0xff] }
 0x24d   : > { %v837_v14 = vpop.f32.mrf.mxu0 }
 0x24e   : > { %v838_v18 = vadd.f32 %v837_v14, %v2051_v31  ;;  %1109 = vmatprep.mubr.bf16.mxu1 %v903_v28  ;;  %v883_v19 = vmax.f32 %v836_v15, 0.0  ;;  %v1511_v15 = vld [vmem:[%s1682_s17 + $0x18] sm:$0xff] }
 0x24f   : > { %v839_v0 = vpop.f32.mrf.mxu0  ;;  %1110 = vmatmul.mubr.bf16.gmra.mxu1 %v902_v16 }
 0x250   : > { %v840_v21 = vadd.f32 %v839_v0, %v2049_v1  ;;  %v884_v17 = vmax.f32 %v838_v18, 0.0 }
 0x251   : > { %v843_v5 = vpop.f32.mrf.mxu0 }
 0x252   : > { %v885_v22 = vmax.f32 %v840_v21, 0.0  ;;  %v904_v52 = vpack.c.bf16 %v884_v17, %v882_v24  ;;  %v844_v6 = vadd.f32 %v843_v5, %v2051_v31  ;;  %v1512_v5 = vld [vmem:[%s1682_s17 + $0x20] sm:$0xff] }
 0x253   : > { %v845_v58 = vpop.f32.mrf.mxu0 }
 0x254   : > { %v905_v25 = vpack.c.bf16 %v885_v22, %v883_v19  ;;  %v846_v51 = vadd.f32 %v845_v58, %v2049_v1  ;;  %v886_v60 = vmax.f32 %v844_v6, 0.0 }
 0x255   : > { %v847_v26 = vpop.f32.mrf.mxu0 }
 0x256   : > { %v848_v30 = vadd.f32 %v847_v26, %v2051_v31  ;;  %1117 = vmatprep.mubr.bf16.mxu1 %v905_v25  ;;  %v887_v37 = vmax.f32 %v846_v51, 0.0 }
 0x257   : > { %v849_v62 = vpop.f32.mrf.mxu0  ;;  %1118 = vmatmul.mubr.bf16.gmra.mxu1 %v904_v52  ;;  %v1513_v52 = vld [vmem:[%s1682_s17 + $0x28] sm:$0xff] }
 0x258   : > { %v850_v32 = vadd.f32 %v849_v62, %v2049_v1  ;;  %v888_v33 = vmax.f32 %v848_v30, 0.0 }
 0x259   : > { %v853_v34 = vpop.f32.mrf.mxu0 }
 0x25a   : > { %v889_v39 = vmax.f32 %v850_v32, 0.0  ;;  %v906_v59 = vpack.c.bf16 %v888_v33, %v886_v60  ;;  %v854_v45 = vadd.f32 %v853_v34, %v2051_v31  ;;  %v1514_v32 = vld [vmem:[%s1682_s17 + $0x30] sm:$0xff] }
 0x25b   : > { %v855_v56 = vpop.f32.mrf.mxu0 }
 0x25c   : > { %v907_v40 = vpack.c.bf16 %v889_v39, %v887_v37  ;;  %v856_v36 = vadd.f32 %v855_v56, %v2049_v1  ;;  %v890_v48 = vmax.f32 %v854_v45, 0.0  ;;  %v1515_v56 = vld [vmem:[%s1682_s17 + $0x38] sm:$0xff]  ;;  %v1516_v45 = vld [vmem:[%s1682_s17 + $0x40] sm:$0xff] }
 0x25d   : > { %v857_v41 = vpop.f32.mrf.mxu0 }
 0x25e   : > { %v858_v42 = vadd.f32 %v857_v41, %v2051_v31  ;;  %1125 = vmatprep.mubr.bf16.mxu1 %v907_v40  ;;  %v891_v35 = vmax.f32 %v856_v36, 0.0  ;;  %v2089_v31 = vld [vmem:[%s2200_s6] ss:$0 sm:$0xff] }
 0x25f   : > { %v859_v47 = vpop.f32.mrf.mxu0  ;;  %1126 = vmatmul.mubr.bf16.gmra.mxu1 %v906_v59 }
 0x260   : > { %v860_v4 = vadd.f32 %v859_v47, %v2049_v1  ;;  %v892_v20 = vmax.f32 %v858_v42, 0.0 }
 0x262   : > { %v893_v3 = vmax.f32 %v860_v4, 0.0  ;;  %v908_v50 = vpack.c.bf16 %v892_v20, %v890_v48  ;;  %v1517_v48 = vld [vmem:[%s1682_s17 + $0x48] sm:$0xff] }
 0x264   : > { %v909_v49 = vpack.c.bf16 %v893_v3, %v891_v35 }
 0x266   : > { %1133 = vmatprep.mubr.bf16.mxu1 %v909_v49 }
 0x267   : > { %1134 = vmatmul.mubr.bf16.gmra.mxu1 %v908_v50 }
 0x2ef   : > { %v1314_v53 = vpop.f32.mrf.mxu1 }
 0x2f1   : > { %v1315_v12 = vpop.f32.mrf.mxu1 }
 0x2f2   : > { %v1316_v1 = vadd.f32 %v1315_v12, %v1314_v53 }
 0x2f3   : > { %v1317_v11 = vpop.f32.mrf.mxu1 }
 0x2f4   : > { %v1080_v38 = vadd.f32 %v1316_v1, %v2089_v31 }
 0x2f5   : > { %v1318_v13 = vpop.f32.mrf.mxu1 }
 0x2f6   : > { %v1142_v55 = vadd.f32 %v1508_v54, %v1080_v38  ;;  %v1319_v57 = vadd.f32 %v1318_v13, %v1317_v11  ;;  %v1518_v11 = vld [vmem:[%s1682_s17 + $0x50] sm:$0xff] }
 0x2f7   : > { %v1320_v23 = vpop.f32.mrf.mxu1 }
 0x2f8   : > { %1158 = vst [vmem:[%s2095_s13] sm:$0xff] %v1142_v55  ;;  %v1083_v29 = vadd.f32 %v1319_v57, %v2089_v31 }
 0x2f9   : > { %v1321_v27 = vpop.f32.mrf.mxu1 }
 0x2fa   : > { %v1143_v63 = vadd.f32 %v1509_v61, %v1083_v29  ;;  %v1322_v2 = vadd.f32 %v1321_v27, %v1320_v23  ;;  %v1519_v23 = vld [vmem:[%s1682_s17 + $0x58] sm:$0xff] }
 0x2fb   : > { %v1323_v7 = vpop.f32.mrf.mxu1 }
 0x2fc   : > { %1159 = vst [vmem:[%s2095_s13 + $0x8] sm:$0xff] %v1143_v63  ;;  %v1088_v44 = vadd.f32 %v1322_v2, %v2089_v31 }
 0x2fd   : > { %v1324_v8 = vpop.f32.mrf.mxu1 }
 0x2fe   : > { %v1144_v43 = vadd.f32 %v1510_v9, %v1088_v44  ;;  %v1325_v10 = vadd.f32 %v1324_v8, %v1323_v7  ;;  %v1520_v7 = vld [vmem:[%s1682_s17 + $0x60] sm:$0xff] }
 0x2ff   : > { %v1326_v28 = vpop.f32.mrf.mxu1 }
 0x300   : > { %1160 = vst [vmem:[%s2095_s13 + $0x10] sm:$0xff] %v1144_v43  ;;  %v1091_v16 = vadd.f32 %v1325_v10, %v2089_v31 }
 0x301   : > { %v1327_v14 = vpop.f32.mrf.mxu1 }
 0x302   : > { %v1145_v18 = vadd.f32 %v1511_v15, %v1091_v16  ;;  %v1328_v46 = vadd.f32 %v1327_v14, %v1326_v28  ;;  %v1521_v28 = vld [vmem:[%s1682_s17 + $0x68] sm:$0xff] }
 0x303   : > { %v1329_v0 = vpop.f32.mrf.mxu1 }
 0x304   : > { %1161 = vst [vmem:[%s2095_s13 + $0x18] sm:$0xff] %v1145_v18  ;;  %v1096_v21 = vadd.f32 %v1328_v46, %v2089_v31 }
 0x305   : > { %v1330_v17 = vpop.f32.mrf.mxu1 }
 0x306   : > { %v1146_v19 = vadd.f32 %v1512_v5, %v1096_v21  ;;  %v1331_v22 = vadd.f32 %v1330_v17, %v1329_v0  ;;  %v1522_v0 = vld [vmem:[%s1682_s17 + $0x70] sm:$0xff] }
 0x307   : > { %v1332_v24 = vpop.f32.mrf.mxu1 }
 0x308   : > { %1162 = vst [vmem:[%s2095_s13 + $0x20] sm:$0xff] %v1146_v19  ;;  %v1099_v58 = vadd.f32 %v1331_v22, %v2089_v31  ;;  %v1523_v19 = vld [vmem:[%s1682_s17 + $0x78] sm:$0xff] }
 0x309   : > { %v1333_v25 = vpop.f32.mrf.mxu1 }
 0x30a   : > { %v1147_v26 = vadd.f32 %v1513_v52, %v1099_v58  ;;  %v1334_v51 = vadd.f32 %v1333_v25, %v1332_v24 }
 0x30b   : > { %v1335_v30 = vpop.f32.mrf.mxu1 }
 0x30c   : > { %1163 = vst [vmem:[%s2095_s13 + $0x28] sm:$0xff] %v1147_v26  ;;  %v1104_v6 = vadd.f32 %v1334_v51, %v2089_v31 }
 0x30d   : > { %v1336_v62 = vpop.f32.mrf.mxu1 }
 0x30e   : > { %v1148_v33 = vadd.f32 %v1514_v32, %v1104_v6  ;;  %v1337_v34 = vadd.f32 %v1336_v62, %v1335_v30 }
 0x30f   : > { %v1338_v37 = vpop.f32.mrf.mxu1 }
 0x310   : > { %1164 = vst [vmem:[%s2095_s13 + $0x30] sm:$0xff] %v1148_v33  ;;  %v1107_v39 = vadd.f32 %v1337_v34, %v2089_v31 }
 0x311   : > { %v1339_v60 = vpop.f32.mrf.mxu1 }
 0x312   : > { %v1149_v40 = vadd.f32 %v1515_v56, %v1107_v39  ;;  %v1340_v59 = vadd.f32 %v1339_v60, %v1338_v37 }
 0x313   : > { %v1341_v41 = vpop.f32.mrf.mxu1 }
 0x314   : > { %1165 = vst [vmem:[%s2095_s13 + $0x38] sm:$0xff] %v1149_v40  ;;  %v1112_v36 = vadd.f32 %v1340_v59, %v2089_v31 }
 0x315   : > { %v1342_v42 = vpop.f32.mrf.mxu1 }
 0x316   : > { %v1150_v47 = vadd.f32 %v1516_v45, %v1112_v36  ;;  %v1343_v4 = vadd.f32 %v1342_v42, %v1341_v41 }
 0x317   : > { %v1344_v20 = vpop.f32.mrf.mxu1 }
 0x318   : > { %1166 = vst [vmem:[%s2095_s13 + $0x40] sm:$0xff] %v1150_v47  ;;  %v1115_v35 = vadd.f32 %v1343_v4, %v2089_v31 }
 0x319   : > { %v1345_v3 = vpop.f32.mrf.mxu1 }
 0x31a   : > { %v1151_v49 = vadd.f32 %v1517_v48, %v1115_v35  ;;  %v1346_v50 = vadd.f32 %v1345_v3, %v1344_v20 }
 0x31b   : > { %v1347_v53 = vpop.f32.mrf.mxu1 }
 0x31c   : > { %1167 = vst [vmem:[%s2095_s13 + $0x48] sm:$0xff] %v1151_v49  ;;  %v1120_v12 = vadd.f32 %v1346_v50, %v2089_v31 }
 0x31d   : > { %v1348_v1 = vpop.f32.mrf.mxu1 }
 0x31e   : > { %v1152_v38 = vadd.f32 %v1518_v11, %v1120_v12  ;;  %v1349_v13 = vadd.f32 %v1348_v1, %v1347_v53 }
 0x31f   : > { %v1350_v54 = vpop.f32.mrf.mxu1 }
 0x320   : > { %1168 = vst [vmem:[%s2095_s13 + $0x50] sm:$0xff] %v1152_v38  ;;  %v1123_v55 = vadd.f32 %v1349_v13, %v2089_v31 }
 0x321   : > { %v1351_v57 = vpop.f32.mrf.mxu1 }
 0x322   : > { %v1153_v29 = vadd.f32 %v1519_v23, %v1123_v55  ;;  %v1352_v27 = vadd.f32 %v1351_v57, %v1350_v54 }
 0x323   : > { %v1353_v61 = vpop.f32.mrf.mxu1 }
 0x324   : > { %1169 = vst [vmem:[%s2095_s13 + $0x58] sm:$0xff] %v1153_v29  ;;  %v1128_v63 = vadd.f32 %v1352_v27, %v2089_v31 }
 0x325   : > { %v1354_v2 = vpop.f32.mrf.mxu1 }
 0x326   : > { %v1154_v44 = vadd.f32 %v1520_v7, %v1128_v63  ;;  %v1355_v8 = vadd.f32 %v1354_v2, %v1353_v61 }
 0x327   : > { %v1356_v9 = vpop.f32.mrf.mxu1 }
 0x328   : > { %1170 = vst [vmem:[%s2095_s13 + $0x60] sm:$0xff] %v1154_v44  ;;  %v1131_v43 = vadd.f32 %v1355_v8, %v2089_v31 }
 0x329   : > { %v1357_v10 = vpop.f32.mrf.mxu1 }
 0x32a   : > { %v1155_v16 = vadd.f32 %v1521_v28, %v1131_v43  ;;  %v1358_v14 = vadd.f32 %v1357_v10, %v1356_v9 }
 0x32b   : > { %v1359_v15 = vpop.f32.mrf.mxu1 }
 0x32c   : > { %1171 = vst [vmem:[%s2095_s13 + $0x68] sm:$0xff] %v1155_v16  ;;  %v1136_v18 = vadd.f32 %v1358_v14, %v2089_v31 }
 0x32d   : > { %v1360_v46 = vpop.f32.mrf.mxu1 }
 0x32e   : > { %v1156_v21 = vadd.f32 %v1522_v0, %v1136_v18  ;;  %v1361_v17 = vadd.f32 %v1360_v46, %v1359_v15 }
 0x330   : > { %1172 = vst [vmem:[%s2095_s13 + $0x70] sm:$0xff] %v1156_v21  ;;  %v1139_v5 = vadd.f32 %v1361_v17, %v2089_v31 }
 0x332   : > { %v1157_v22 = vadd.f32 %v1523_v19, %v1139_v5 }
 0x334   : > { %1173 = vst [vmem:[%s2095_s13 + $0x78] sm:$0xff] %v1157_v22 }
 0x335   : > { %1537 = shalt.err (!%p1534_p3)
}
 0x336   : > { %s1538_s17 = scalar_lea.hbm %s2146_s19, 2048  ;;  %s1542_s9 = scalar_lea.hbm %s2201_s7, 4096 }
 0x337   : > { %p1539_p4 = scmp.ne.s32.totalorder %s2146_s19, %s1538_s17  ;;  %p1543_p9 = scmp.lt.s32.totalorder %s2146_s19, %s2201_s7 }
 0x338   : > { %p1544_p10 = scmp.lt.s32.totalorder %s1542_s9, %s1538_s17 }
 0x339   : > { %p1540_p7 = pnand %p1539_p4, %p1668_p5 }
 0x33a   : > { %p1545_p11 = por %p1544_p10, %p1543_p9 }
 0x33b   : > { %p1541_p8 = pneg %p1540_p7 }
 0x33d   : > { %p1546_p12 = pnand %p1545_p11, %p1541_p8 }
 0x33f   : > { %1549 = shalt.err (!%p1546_p12)
}
 0x340   : > { %s1588_s16 = smov 128   ;;  %s1589_s18 = smov 8  }
 0x341   : > { %1362 = dma.vmem_to_hbm [thread:$0]  (%p1668_p5), %s2148_s15, 2048, %s2146_s19, %s2154_s20, %s1588_s16, %s1588_s16, %s1589_s18  }
 0x342 PF: > { %p1368_p13 = scmp.ge.s32.totalorder %s1584_s27, 2  ;;  %s1203_s28 = sand.u32 1, %s1572_s24  }
 0x343   : > { %s1204_s21 = scalar_lea.sflag [#allocation3], %s1203_s28 }
 0x344   : > { %p1365_p0 = pnand %p1368_p13, %p1672_p6 }
 0x346   : > { %p1366_p1 = pneg %p1365_p0 }
 0x348   : > { %1567 = dma.done.wait (%p1366_p1), %s1204_s21, 2048  }
 0x349   : > { %1569 = vsyncadd (%p1366_p1), %s1204_s21, 4294965248  ;;  %p17_p2 = scmp.ge.s32.totalorder %s1655_s30, 4   ;;  %s2204_s24 = smov %s1576_s25 }
 0x34a   : > { %s2205_s25 = smov %s1580_s26  ;;  %s2206_s26 = smov %s1666_s10 }
 0x34b   : > { %s2207_s27 = smov %s1655_s30  ;;  %19 = sbr.rel (!%p17_p2) target bundleno = 3 (0x3), region = 83 }
 0x350   :  { %1209 = vsyncpa [#allocation3], 1 }
 0x351   :  { %1211 = vsyncpa [#allocation3 + $0x1], 1 }

// kernel: decoder_forward_pallas.16
= control target key start
LH: loop header
LB: loop body
LE: loop exit
PB: predicated region body
PF: predicated region fallthrough
CT: control target
= control target key end

     0   :  { %s3756_s18 = smov 0   ;;  %s4981_s0 = inlined_call_operand.vmem [shape: bf16[2,128,128], index: 0, kind: input, shape index: {}]   ;;  %s4982_s1 = inlined_call_operand.vmem [shape: bf16[2,128,256], index: 1, kind: input, shape index: {}]   ;;  %s4983_s2 = inlined_call_operand.vmem [shape: f32[2,128,128], index: 2, kind: input, shape index: {}]   ;;  %s4984_s3 = inlined_call_operand.vmem [shape: bf16[128,128], index: 3, kind: input, shape index: {}]   ;;  %s4985_s4 = inlined_call_operand.vmem [shape: f32[1,128], index: 4, kind: input, shape index: {}]   ;;  %s4986_s5 = inlined_call_operand.vmem [shape: f32[2,128,128], index: 5, kind: output, shape index: {}]  }
   0x1 LB: > { %s2717_s19 = sadd.s32 4294967295, %s3721_s18   ;;  %p2721_p0 = scmp.ge.s32.totalorder %s3721_s18, 1  ;;  %s3721_s18 = sphi %s3756_s18, %s15_s18  }
   0x2   : > { %p207_p1 = scmp.lt.s32.totalorder %s3721_s18, 3 }
   0x4   : > { %p208_p2 = pnand %p2721_p0, %p207_p1 }
   0x6   : > { %211 = sbr.rel (%p208_p2) target bundleno = 2344 (0x928), region = 40 }
   0xb   : > { %p245_p3 = scmp.lt.s32.totalorder %s2717_s19, 1  ;;  %vm395_vm0 = vcmask 261120   ;;  %s3723_s25 = smov 96   ;;  %vm2380_vm1 = vcmask 523264   ;;  %vm2397_vm2 = vcmask 785408  }
   0xc   : > { %s3724_s29 = smov 64   ;;  %s3725_s30 = smov 32  }
   0xd   : > { %s5091_s19 = smov (!%p245_p3, %s2717_s19), 1 }
   0xe   : > { %s3764_s20 = sshll.u32 %s5091_s19, 7  ;;  %s2797_s24 = sshll.u32 %s5091_s19, 6 }
   0xf   : > { %s3770_s23 = scalar_lea.vmem %s4982_s1, %s3764_s20  ;;  %s3794_s28 = scalar_lea.vmem %s4981_s0, %s2797_s24 }
  0x10   : > { %v3773_v0 = vld [vmem:[%s3770_s23 + $0x70] ss:$8 sps:$4 sm:$0xff]   ;;  %v3776_v1 = vld [vmem:[%s3770_s23 + $0x60] ss:$8 sps:$4 sm:$0xff]   ;;  %v268_v6 = vld [vmem:[%s3794_s28 + $0x4] sm:$0xf]  ;;  %s4917_s26 = scalar_lea.vmem %s4983_s2, %s3764_s20  ;;  %s4930_s6 = scalar_lea.vmem %s4986_s5, %s3764_s20 }
  0x11   : > { %3249 = vmatprep.subr.msk.bf16.mxu0 %vm395_vm0, %v3773_v0  ;;  %v442_v2 = vsel %vm395_vm0, %v3773_v0, 0  ;;  %852 = vrot.lane.b32.xlu0 %v3773_v0, %s3723_s25  ;;  %v3789_v3 = vld [vmem:[%s3770_s23 + $0x50] ss:$8 sps:$4 sm:$0xff]   ;;  %v439_v4 = vsel %vm395_vm0, %v3776_v1, 0  ;;  %v267_v5 = vld [vmem:[%s3794_s28] sm:$0xf] }
  0x12   : > { %2946 = vmatpush3.bf16.xpose.msra.mxu0 %v442_v2  ;;  %850 = vrot.lane.b32.xlu1 %v3776_v1, %s3723_s25  ;;  %v299_v7 = vmul.bf16 1043676725, %v267_v5  ;;  %v300_v8 = vmul.bf16 1043676725, %v268_v6  ;;  %v436_v10 = vsel %vm395_vm0, %v3789_v3, 0 }
  0x13   : > { %3250 = vmatprep.subr.msk.bf16.mxu0 %vm395_vm0, %v3776_v1  ;;  %v3811_v11 = vld [vmem:[%s3770_s23 + $0x40] ss:$8 sps:$4 sm:$0xff]   ;;  %v3818_v13 = vld [vmem:[%s3770_s23 + $0x30] ss:$8 sps:$4 sm:$0xff]   ;;  %v270_v21 = vld [vmem:[%s3794_s28 + $0xc] sm:$0xf] }
  0x14   : > { %v3802_v9 = vcombine.low %v299_v7, %v300_v8  ;;  %v433_v12 = vsel %vm395_vm0, %v3811_v11, 0  ;;  %v430_v14 = vsel %vm395_vm0, %v3818_v13, 0  ;;  %v3825_v15 = vld [vmem:[%s3770_s23 + $0x20] ss:$8 sps:$4 sm:$0xff]   ;;  %v3832_v17 = vld [vmem:[%s3770_s23 + $0x10] ss:$8 sps:$4 sm:$0xff]  }
  0x15   : > { %848 = vrot.lane.b32.xlu0 %v3789_v3, %s3723_s25  ;;  %v427_v16 = vsel %vm395_vm0, %v3825_v15, 0  ;;  %v424_v18 = vsel %vm395_vm0, %v3832_v17, 0  ;;  %v3839_v19 = vld [vmem:[%s3770_s23] ss:$8 sps:$4 sm:$0xff]   ;;  %v271_v23 = vld [vmem:[%s3794_s28 + $0x10] sm:$0xf] }
  0x16   : > { %2961 = vmatprep.mubr.msk.bf16.mxu0 %vm395_vm0, %v3802_v9  ;;  %v269_v20 = vld [vmem:[%s3794_s28 + $0x8] sm:$0xf]  ;;  %v421_v22 = vsel %vm395_vm0, %v3839_v19, 0  ;;  %v272_v24 = vld [vmem:[%s3794_s28 + $0x14] sm:$0xf] }
  0x17   : > { %v301_v25 = vmul.bf16 1043676725, %v269_v20  ;;  %v302_v26 = vmul.bf16 1043676725, %v270_v21  ;;  %v303_v27 = vmul.bf16 1043676725, %v271_v23 }
  0x18   : > { %v304_v28 = vmul.bf16 1043676725, %v272_v24  ;;  %v273_v31 = vld [vmem:[%s3794_s28 + $0x18] sm:$0xf]  ;;  %v274_v32 = vld [vmem:[%s3794_s28 + $0x1c] sm:$0xf] }
  0x19   : > { %v3849_v29 = vcombine.low %v301_v25, %v302_v26  ;;  %v275_v33 = vld [vmem:[%s3794_s28 + $0x20] sm:$0xf]  ;;  %v276_v34 = vld [vmem:[%s3794_s28 + $0x24] sm:$0xf]  ;;  %v305_v35 = vmul.bf16 1043676725, %v273_v31 }
  0x1a   : > { %2948 = vmatpush3.bf16.xpose.msra.mxu0 %v439_v4  ;;  %v3851_v30 = vcombine.low %v303_v27, %v304_v28  ;;  %v306_v36 = vmul.bf16 1043676725, %v274_v32  ;;  %v307_v37 = vmul.bf16 1043676725, %v275_v33  ;;  %v308_v38 = vmul.bf16 1043676725, %v276_v34 }
  0x1b   : > { %3251 = vmatprep.subr.msk.bf16.mxu0 %vm395_vm0, %v3789_v3  ;;  %v277_v41 = vld [vmem:[%s3794_s28 + $0x28] sm:$0xf]  ;;  %v278_v42 = vld [vmem:[%s3794_s28 + $0x2c] sm:$0xf]  ;;  %v279_v43 = vld [vmem:[%s3794_s28 + $0x30] sm:$0xf] }
  0x1c   : > { %v3861_v39 = vcombine.low %v305_v35, %v306_v36  ;;  %v3863_v40 = vcombine.low %v307_v37, %v308_v38  ;;  %v280_v44 = vld [vmem:[%s3794_s28 + $0x34] sm:$0xf]  ;;  %v309_v45 = vmul.bf16 1043676725, %v277_v41  ;;  %v310_v46 = vmul.bf16 1043676725, %v278_v42 }
  0x1d   : > { %v311_v47 = vmul.bf16 1043676725, %v279_v43  ;;  %v312_v48 = vmul.bf16 1043676725, %v280_v44  ;;  %v281_v51 = vld [vmem:[%s3794_s28 + $0x38] sm:$0xf] }
  0x1e   : > { %v3873_v49 = vcombine.low %v309_v45, %v310_v46  ;;  %v282_v52 = vld [vmem:[%s3794_s28 + $0x3c] sm:$0xf]  ;;  %v313_v53 = vmul.bf16 1043676725, %v281_v51  ;;  %v3891_v57 = vld [vmem:[%s3770_s23 + $0x64] ss:$8 sps:$4 sm:$0xff]  }
  0x1f   : > { %v3875_v50 = vcombine.low %v311_v47, %v312_v48  ;;  %v314_v54 = vmul.bf16 1043676725, %v282_v52  ;;  %v3888_v56 = vld [vmem:[%s3770_s23 + $0x74] ss:$8 sps:$4 sm:$0xff]   ;;  %v3903_v59 = vld [vmem:[%s3770_s23 + $0x44] ss:$8 sps:$4 sm:$0xff]  }
  0x20   : > { %2977 = vmatprep.subr.bf16.mxu1 %v3888_v56  ;;  %v3898_v58 = vld [vmem:[%s3770_s23 + $0x54] ss:$8 sps:$4 sm:$0xff]   ;;  %v3911_v61 = vld [vmem:[%s3770_s23 + $0x24] ss:$8 sps:$4 sm:$0xff]  }
  0x21   : > { %v3883_v55 = vcombine.low %v313_v53, %v314_v54  ;;  %2978 = vmatpush3.bf16.msra.mxu1 %v3888_v56  ;;  %v3908_v60 = vld [vmem:[%s3770_s23 + $0x34] ss:$8 sps:$4 sm:$0xff]   ;;  %v3922_v63 = vld [vmem:[%s3770_s23 + $0x4] ss:$8 sps:$4 sm:$0xff]  }
  0x22   : > { %2950 = vmatpush3.bf16.xpose.msra.mxu0 %v436_v10  ;;  %2979 = vmatprep.subr.bf16.mxu1 %v3891_v57  ;;  %v3917_v62 = vld [vmem:[%s3770_s23 + $0x14] ss:$8 sps:$4 sm:$0xff]  }
  0x23   : > { %3252 = vmatprep.subr.msk.bf16.mxu0 %vm395_vm0, %v3811_v11 }
  0x25   : > { %2980 = vmatpush3.bf16.msra.mxu1 %v3891_v57 }
  0x26   : > { %2981 = vmatprep.subr.bf16.mxu1 %v3898_v58 }
  0x29   : > { %2982 = vmatpush3.bf16.msra.mxu1 %v3898_v58 }
  0x2a   : > { %2952 = vmatpush3.bf16.xpose.msra.mxu0 %v433_v12  ;;  %2983 = vmatprep.subr.bf16.mxu1 %v3903_v59 }
  0x2b   : > { %3253 = vmatprep.subr.msk.bf16.mxu0 %vm395_vm0, %v3818_v13 }
  0x2d   : > { %2984 = vmatpush3.bf16.msra.mxu1 %v3903_v59 }
  0x2e   : > { %2985 = vmatprep.subr.bf16.mxu1 %v3908_v60 }
  0x31   : > { %2986 = vmatpush3.bf16.msra.mxu1 %v3908_v60 }
  0x32   : > { %2954 = vmatpush3.bf16.xpose.msra.mxu0 %v430_v14  ;;  %2987 = vmatprep.subr.bf16.mxu1 %v3911_v61 }
  0x33   : > { %3254 = vmatprep.subr.msk.bf16.mxu0 %vm395_vm0, %v3825_v15 }
  0x35   : > { %2988 = vmatpush3.bf16.msra.mxu1 %v3911_v61 }
  0x36   : > { %2989 = vmatprep.subr.bf16.mxu1 %v3917_v62 }
  0x39   : > { %2990 = vmatpush3.bf16.msra.mxu1 %v3917_v62 }
  0x3a   : > { %2956 = vmatpush3.bf16.xpose.msra.mxu0 %v427_v16  ;;  %2991 = vmatprep.subr.bf16.mxu1 %v3922_v63 }
  0x3b   : > { %3255 = vmatprep.subr.msk.bf16.mxu0 %vm395_vm0, %v3832_v17 }
  0x3d   : > { %2992 = vmatpush3.bf16.msra.mxu1 %v3922_v63 }
  0x42   : > { %2958 = vmatpush3.bf16.xpose.msra.mxu0 %v424_v18 }
  0x43   : > { %3256 = vmatprep.subr.msk.bf16.mxu0 %vm395_vm0, %v3839_v19 }
  0x4a   : > { %2960 = vmatpush3.bf16.xpose.msra.mxu0 %v421_v22 }
  0x51   : > { %2962 = vmatmul.mubr.msk.bf16.vlgmr.msra.gmra.mxu0 %vm395_vm0, %v3849_v29 }
  0x52   : > { %2965 = vmatprep.mubr.msk.bf16.mxu0 %vm395_vm0, %v3851_v30 }
  0x59   : > { %2966 = vmatmul.mubr.msk.bf16.gmra.mxu0 %vm395_vm0, %v3861_v39 }
  0x5a   : > { %2969 = vmatprep.mubr.msk.bf16.mxu0 %vm395_vm0, %v3863_v40 }
  0x61   : > { %2970 = vmatmul.mubr.msk.bf16.gmra.mxu0 %vm395_vm0, %v3873_v49 }
  0x62   : > { %2973 = vmatprep.mubr.msk.bf16.mxu0 %vm395_vm0, %v3875_v50 }
  0x69   : > { %2974 = vmatmul.mubr.msk.bf16.gmra.mxu0 %vm395_vm0, %v3883_v55 }
  0x83   : > { %v3926_v2 = vpop.permute.xlu0 %852 }
  0x84   : > { %3257 = vmatprep.subr.msk.bf16.mxu1 %vm395_vm0, %v3926_v2  ;;  %v851_v26 = vpop.permute.xlu1 %850 }
  0x87   : > { %v849_v27 = vpop.permute.xlu0 %848 }
 0x111   : > { %v3931_v4 = vpop.f32.mrf.mxu0 }
 0x112   : > { %545 = vmax.xlane.f32.xlu1 %v3931_v4 }
 0x113   : > { %v478_v5 = vpop.f32.mrf.mxu0 }
 0x114   : > { %541 = vmax.xlane.f32.xlu0 %v478_v5 }
 0x115   : > { %v2964_v6 = vpop.f32.mrf.mxu0 }
 0x116   : > { %547 = vmax.xlane.f32.xlu1 %v2964_v6 }
 0x117   : > { %v481_v7 = vpop.f32.mrf.mxu0 }
 0x118   : > { %543 = vmax.xlane.f32.xlu0 %v481_v7 }
 0x119   : > { %v3934_v8 = vpop.f32.mrf.mxu0 }
 0x11a   : > { %553 = vmax.xlane.f32.xlu1 %v3934_v8 }
 0x11b   : > { %v3937_v10 = vpop.f32.mrf.mxu0 }
 0x11d   : > { %v3939_v12 = vpop.f32.mrf.mxu0 }
 0x11e   : > { %549 = vmax.xlane.f32.xlu1 %v3937_v10 }
 0x11f   : > { %v3942_v14 = vpop.f32.mrf.mxu0 }
 0x121   : > { %v3944_v16 = vpop.f32.mrf.mxu0 }
 0x122   : > { %555 = vmax.xlane.f32.xlu1 %v3939_v12 }
 0x123   : > { %v3947_v18 = vpop.f32.mrf.mxu0 }
 0x125   : > { %v3949_v20 = vpop.f32.mrf.mxu0 }
 0x126   : > { %551 = vmax.xlane.f32.xlu1 %v3942_v14 }
 0x127   : > { %v3952_v21 = vpop.f32.mrf.mxu0 }
 0x129   : > { %v3955_v22 = vpop.f32.mrf.mxu0 }
 0x12a   : > { %559 = vmax.xlane.f32.xlu1 %v3952_v21 }
 0x12b   : > { %v3960_v23 = vpop.f32.mrf.mxu0 }
 0x12d   : > { %v3963_v24 = vpop.f32.mrf.mxu0 }
 0x12e   : > { %846 = vrot.lane.b32.xlu0 %v3811_v11, %s3723_s25  ;;  %569 = vmax.xlane.f32.xlu1 %v3955_v22 }
 0x12f   : > { %v3966_v25 = vpop.f32.mrf.mxu0 }
 0x132   : > { %565 = vmax.xlane.f32.xlu1 %v3960_v23 }
 0x136   : > { %571 = vmax.xlane.f32.xlu1 %v3963_v24 }
 0x13a   : > { %567 = vmax.xlane.f32.xlu1 %v3966_v25 }
 0x14b   : > { %844 = vrot.lane.b32.xlu1 %v3818_v13, %s3723_s25 }
 0x14d   : > { %561 = vmax.xlane.f32.xlu0 %v3944_v16 }
 0x14f   : > { %824 = vrot.lane.b32.xlu1 %v3849_v29, %s3723_s25 }
 0x151   : > { %557 = vmax.xlane.f32.xlu0 %v3947_v18 }
 0x153   : > { %828 = vrot.lane.b32.xlu1 %v3861_v39, %s3723_s25 }
 0x155   : > { %563 = vmax.xlane.f32.xlu0 %v3949_v20 }
 0x157   : > { %832 = vrot.lane.b32.xlu1 %v3873_v49, %s3723_s25 }
 0x15b   : > { %836 = vrot.lane.b32.xlu1 %v3883_v55, %s3723_s25 }
 0x15f   : > { %1131 = vrot.lane.b32.xlu1 %v3891_v57, %s3723_s25 }
 0x163   : > { %1123 = vrot.lane.b32.xlu1 %v3911_v61, %s3723_s25 }
 0x167   : > { %1119 = vrot.lane.b32.xlu1 %v3922_v63, %s3723_s25 }
 0x16b   : > { %842 = vrot.lane.b32.xlu0 %v3825_v15, %s3723_s25  ;;  %1300 = vrot.lane.b32.xlu1 %v3776_v1, %s3724_s29 }
 0x16f   : > { %840 = vrot.lane.b32.xlu0 %v3832_v17, %s3723_s25 }
 0x173   : > { %838 = vrot.lane.b32.xlu0 %v3839_v19, %s3723_s25 }
 0x177   : > { %822 = vrot.lane.b32.xlu0 %v3802_v9, %s3723_s25 }
 0x17b   : > { %826 = vrot.lane.b32.xlu0 %v3851_v30, %s3723_s25 }
 0x17f   : > { %830 = vrot.lane.b32.xlu0 %v3863_v40, %s3723_s25 }
 0x183   : > { %834 = vrot.lane.b32.xlu0 %v3875_v50, %s3723_s25 }
 0x187   : > { %1133 = vrot.lane.b32.xlu0 %v3888_v56, %s3723_s25 }
 0x18b   : > { %1129 = vrot.lane.b32.xlu0 %v3898_v58, %s3723_s25 }
 0x18f   : > { %1127 = vrot.lane.b32.xlu0 %v3903_v59, %s3723_s25 }
 0x193   : > { %1125 = vrot.lane.b32.xlu0 %v3908_v60, %s3723_s25 }
 0x197   : > { %1121 = vrot.lane.b32.xlu0 %v3917_v62, %s3723_s25 }
 0x19b   : > { %v546_v28 = vpop.xlane.xlu1 %545  ;;  %1302 = vrot.lane.b32.xlu0 %v3773_v0, %s3724_s29 }
 0x19c   : > { %v575_v33 = vsub.f32 %v3931_v4, %v546_v28 }
 0x19d   : > { %v542_v31 = vpop.xlane.xlu0 %541 }
 0x19e   : > { %v573_v32 = vsub.f32 %v478_v5, %v542_v31  ;;  %v593_v42 = vmul.f32 1.442695, %v575_v33 }
 0x19f   : > { %v548_v34 = vpop.xlane.xlu1 %547 }
 0x1a0   : > { %v589_v35 = vmul.f32 1.442695, %v573_v32  ;;  %v576_v36 = vsub.f32 %v2964_v6, %v548_v34 }
 0x1a1   : > { %v544_v37 = vpop.xlane.xlu0 %543 }
 0x1a2   : > { %v595_v38 = vmul.f32 1.442695, %v576_v36  ;;  %v574_v41 = vsub.f32 %v481_v7, %v544_v37  ;;  %3444 = vpow2.f32 %v589_v35  ;;  %v897_v36 = vsel %vm395_vm0, %v851_v26, 0 }
 0x1a3   : > { %v554_v43 = vpop.xlane.xlu1 %553 }
 0x1a4   : > { %v591_v44 = vmul.f32 1.442695, %v574_v41  ;;  %3446 = vpow2.f32 %v595_v38  ;;  %v579_v51 = vsub.f32 %v3934_v8, %v554_v43 }
 0x1a6   : > { %3448 = vpow2.f32 %v591_v44  ;;  %v601_v6 = vmul.f32 1.442695, %v579_v51  ;;  %v847_v44 = vpop.permute.xlu0 %846 }
 0x1a7   : > { %3450 = vpow2.f32 %v593_v42  ;;  %v550_v45 = vpop.xlane.xlu1 %549 }
 0x1a8   : > { %v577_v46 = vsub.f32 %v3937_v10, %v550_v45 }
 0x1aa   : > { %v597_v52 = vmul.f32 1.442695, %v577_v46 }
 0x1ab   : > { %v556_v47 = vpop.xlane.xlu1 %555 }
 0x1ac   : > { %v580_v48 = vsub.f32 %v3939_v12, %v556_v47  ;;  %3452 = vpow2.f32 %v597_v52  ;;  %v891_v47 = vsel %vm395_vm0, %v847_v44, 0 }
 0x1ae   : > { %v603_v53 = vmul.f32 1.442695, %v580_v48 }
 0x1af   : > { %v552_v54 = vpop.xlane.xlu1 %551  ;;  %v4017_v5 = vpop.eup %3444 }
 0x1b0   : > { %v578_v4 = vsub.f32 %v3942_v14, %v552_v54  ;;  %3454 = vpow2.f32 %v603_v53  ;;  %v900_v14 = vsel %vm395_vm0, %v3926_v2, 0 }
 0x1b1   : > { %v4019_v7 = vpop.eup %3446 }
 0x1b2   : > { %v599_v28 = vmul.f32 1.442695, %v578_v4 }
 0x1b3   : > { %v4021_v31 = vpop.eup %3448  ;;  %v560_v10 = vpop.xlane.xlu1 %559 }
 0x1b4   : > { %v4023_v32 = vpop.eup %3450  ;;  %3456 = vpow2.f32 %v599_v28  ;;  %v653_v8 = vpack.c.bf16 %v4021_v31, %v4017_v5  ;;  %v582_v51 = vsub.f32 %v3952_v21, %v560_v10 }
 0x1b5   : > { %3458 = vpow2.f32 %v601_v6  ;;  %v654_v12 = vpack.c.bf16 %v4019_v7, %v4023_v32 }
 0x1b6   : > { %2993 = vmatprep.mubr.bf16.mxu1 %v653_v8 }
 0x1b7   : > { %2994 = vmatmul.mubr.bf16.vlgmr.msra.gmra.mxu1 %v654_v12  ;;  %v570_v33 = vpop.xlane.xlu1 %569 }
 0x1b8   : > { %3010 = vmatpush3.bf16.xpose.msra.mxu1 %v900_v14 }
 0x1b9   : > { %3258 = vmatprep.subr.msk.bf16.mxu1 %vm395_vm0, %v851_v26  ;;  %v4032_v35 = vpop.eup %3452  ;;  %v894_v26 = vsel %vm395_vm0, %v849_v27, 0 }
 0x1bb   : > { %v566_v34 = vpop.xlane.xlu1 %565 }
 0x1bc   : > { %v585_v28 = vsub.f32 %v3960_v23, %v566_v34 }
 0x1bd   : > { %v4035_v37 = vpop.eup %3454 }
 0x1be   : > { %4990 = vst [vmem:[#allocation2_spill] sm:$0xff] %v4035_v37  ;;  %v613_v10 = vmul.f32 1.442695, %v585_v28 }
 0x1bf   : > { %v572_v43 = vpop.xlane.xlu1 %571 }
 0x1c0   : > { %3012 = vmatpush3.bf16.xpose.msra.mxu1 %v897_v36 }
 0x1c1   : > { %v4037_v38 = vpop.eup %3456  ;;  %3259 = vmatprep.subr.msk.bf16.mxu1 %vm395_vm0, %v849_v27  ;;  %v607_v27 = vmul.f32 1.442695, %v582_v51 }
 0x1c2   : > { %v4040_v41 = vpop.eup %3458  ;;  %v655_v2 = vpack.c.bf16 %v4037_v38, %v4032_v35 }
 0x1c3   : > { %v656_v42 = vpack.c.bf16 %v4035_v37, %v4040_v41  ;;  %v568_v45 = vpop.xlane.xlu1 %567  ;;  %3460 = vpow2.f32 %v607_v27 }
 0x1c4   : > { %2997 = vmatprep.mubr.bf16.mxu1 %v655_v2  ;;  %v586_v53 = vsub.f32 %v3966_v25, %v568_v45  ;;  %v588_v2 = vsub.f32 %v3963_v24, %v572_v43 }
 0x1c5   : > { %2998 = vmatmul.mubr.bf16.gmra.mxu1 %v656_v42  ;;  %v587_v42 = vsub.f32 %v3955_v22, %v570_v33 }
 0x1c6   : > { %v615_v8 = vmul.f32 1.442695, %v586_v53  ;;  %v619_v23 = vmul.f32 1.442695, %v588_v2 }
 0x1c7   : > { %v845_v46 = vpop.permute.xlu1 %844 }
 0x1c8   : > { %3014 = vmatpush3.bf16.xpose.msra.mxu1 %v894_v26  ;;  %v888_v48 = vsel %vm395_vm0, %v845_v46, 0  ;;  %v617_v26 = vmul.f32 1.442695, %v587_v42 }
 0x1c9   : > { %3260 = vmatprep.subr.msk.bf16.mxu1 %vm395_vm0, %v847_v44 }
 0x1d0   : > { %3016 = vmatpush3.bf16.xpose.msra.mxu1 %v891_v47  ;;  %v4063_v43 = vpop.eup %3460 }
 0x1d1   : > { %3261 = vmatprep.subr.msk.bf16.mxu1 %vm395_vm0, %v845_v46 }
 0x1d6   : > { %v562_v52 = vpop.xlane.xlu0 %561 }
 0x1d7   : > { %v583_v54 = vsub.f32 %v3944_v16, %v562_v52 }
 0x1d8   : > { %3018 = vmatpush3.bf16.xpose.msra.mxu1 %v888_v48 }
 0x1d9   : > { %v609_v14 = vmul.f32 1.442695, %v583_v54 }
 0x1da   : > { %v558_v4 = vpop.xlane.xlu0 %557 }
 0x1db   : > { %v581_v6 = vsub.f32 %v3947_v18, %v558_v4 }
 0x1dd   : > { %v605_v12 = vmul.f32 1.442695, %v581_v6  ;;  %v825_v6 = vpop.permute.xlu1 %824 }
 0x1de   : > { %v564_v36 = vpop.xlane.xlu0 %563 }
 0x1df   : > { %3462 = vpow2.f32 %v605_v12  ;;  %v584_v21 = vsub.f32 %v3949_v20, %v564_v36 }
 0x1e0   : > { %3464 = vpow2.f32 %v615_v8 }
 0x1e1   : > { %v611_v25 = vmul.f32 1.442695, %v584_v21  ;;  %3466 = vpow2.f32 %v609_v14  ;;  %v829_v8 = vpop.permute.xlu1 %828 }
 0x1e2   : > { %v843_v16 = vpop.permute.xlu0 %842 }
 0x1e3   : > { %3468 = vpow2.f32 %v611_v25  ;;  %3262 = vmatprep.subr.msk.bf16.mxu1 %vm395_vm0, %v843_v16  ;;  %v885_v18 = vsel %vm395_vm0, %v843_v16, 0 }
 0x1e4   : > { %3470 = vpow2.f32 %v613_v10  ;;  %3020 = vmatpush3.bf16.xpose.msra.mxu1 %v885_v18 }
 0x1e5   : > { %3472 = vpow2.f32 %v619_v23  ;;  %v833_v14 = vpop.permute.xlu1 %832 }
 0x1e6   : > { %v841_v34 = vpop.permute.xlu0 %840  ;;  %3474 = vpow2.f32 %v617_v26 }
 0x1e7   : > { %3263 = vmatprep.subr.msk.bf16.mxu1 %vm395_vm0, %v841_v34  ;;  %v882_v20 = vsel %vm395_vm0, %v841_v34, 0 }
 0x1e9   : > { %v837_v21 = vpop.permute.xlu1 %836 }
 0x1ea   : > { %v839_v24 = vpop.permute.xlu0 %838 }
 0x1eb   : > { %v879_v51 = vsel %vm395_vm0, %v839_v24, 0 }
 0x1ec   : > { %v4065_v22 = vpop.eup %3462  ;;  %3022 = vmatpush3.bf16.xpose.msra.mxu1 %v882_v20 }
 0x1ed   : > { %v657_v33 = vpack.c.bf16 %v4063_v43, %v4065_v22  ;;  %3264 = vmatprep.subr.msk.bf16.mxu1 %vm395_vm0, %v839_v24  ;;  %v4070_v44 = vpop.eup %3464  ;;  %v1132_v2 = vpop.permute.xlu1 %1131 }
 0x1ee   : > { %v4072_v45 = vpop.eup %3466  ;;  %v823_v4 = vpop.permute.xlu0 %822 }
 0x1ef   : > { %3001 = vmatprep.mubr.bf16.mxu1 %v657_v33 }
 0x1f0   : > { %v4074_v46 = vpop.eup %3468 }
 0x1f1   : > { %v4076_v47 = vpop.eup %3470  ;;  %v658_v48 = vpack.c.bf16 %v4074_v46, %v4072_v45  ;;  %v1124_v16 = vpop.permute.xlu1 %1123 }
 0x1f2   : > { %v659_v52 = vpack.c.bf16 %v4070_v44, %v4076_v47  ;;  %v4083_v53 = vpop.eup %3472  ;;  %v827_v28 = vpop.permute.xlu0 %826 }
 0x1f3   : > { %3002 = vmatmul.mubr.bf16.gmra.mxu1 %v658_v48  ;;  %4991 = vst [vmem:[#allocation3_spill] sm:$0xff] %v4083_v53  ;;  %v4085_v27 = vpop.eup %3474 }
 0x1f4   : > { %3005 = vmatprep.mubr.bf16.mxu1 %v659_v52  ;;  %3024 = vmatpush3.bf16.xpose.msra.mxu1 %v879_v51  ;;  %4992 = vst [vmem:[#allocation4_spill] sm:$0xff] %v4085_v27  ;;  %v660_v54 = vpack.c.bf16 %v4083_v53, %v4085_v27 }
 0x1f5   : > { %v1120_v23 = vpop.permute.xlu1 %1119 }
 0x1f6   : > { %v831_v12 = vpop.permute.xlu0 %830 }
 0x1fa   : > { %v835_v36 = vpop.permute.xlu0 %834 }
 0x1fb   : > { %3006 = vmatmul.mubr.bf16.gmra.mxu1 %v660_v54 }
 0x1fc   : > { %3025 = vmatprep.mubr.msk.bf16.mxu1 %vm395_vm0, %v823_v4 }
 0x1fe   : > { %v1134_v10 = vpop.permute.xlu0 %1133 }
 0x1ff   : > { %3041 = vmatprep.subr.bf16.mxu0 %v1134_v10 }
 0x200   : > { %3042 = vmatpush3.bf16.msra.mxu0 %v1134_v10 }
 0x201   : > { %3043 = vmatprep.subr.bf16.mxu0 %v1132_v2 }
 0x202   : > { %v1130_v25 = vpop.permute.xlu0 %1129 }
 0x203   : > { %3026 = vmatmul.mubr.msk.bf16.vlgmr.msra.gmra.mxu1 %vm395_vm0, %v825_v6 }
 0x204   : > { %3029 = vmatprep.mubr.msk.bf16.mxu1 %vm395_vm0, %v827_v28  ;;  %3044 = vmatpush3.bf16.msra.mxu0 %v1132_v2 }
 0x205   : > { %3045 = vmatprep.subr.bf16.mxu0 %v1130_v25 }
 0x206   : > { %v1128_v1 = vpop.permute.xlu0 %1127 }
 0x208   : > { %3046 = vmatpush3.bf16.msra.mxu0 %v1130_v25 }
 0x209   : > { %3047 = vmatprep.subr.bf16.mxu0 %v1128_v1 }
 0x20a   : > { %v1126_v0 = vpop.permute.xlu0 %1125 }
 0x20b   : > { %3030 = vmatmul.mubr.msk.bf16.gmra.mxu1 %vm395_vm0, %v829_v8 }
 0x20c   : > { %3033 = vmatprep.mubr.msk.bf16.mxu1 %vm395_vm0, %v831_v12  ;;  %3048 = vmatpush3.bf16.msra.mxu0 %v1128_v1 }
 0x20d   : > { %3049 = vmatprep.subr.bf16.mxu0 %v1126_v0 }
 0x20e   : > { %v1122_v42 = vpop.permute.xlu0 %1121 }
 0x210   : > { %3050 = vmatpush3.bf16.msra.mxu0 %v1126_v0 }
 0x211   : > { %3051 = vmatprep.subr.bf16.mxu0 %v1124_v16 }
 0x212   : > { %v4103_v34 = vpop.permute.xlu0 %1302 }
 0x213   : > { %3034 = vmatmul.mubr.msk.bf16.gmra.mxu1 %vm395_vm0, %v833_v14 }
 0x214   : > { %3037 = vmatprep.mubr.msk.bf16.mxu1 %vm395_vm0, %v835_v36  ;;  %3052 = vmatpush3.bf16.msra.mxu0 %v1124_v16 }
 0x215   : > { %3053 = vmatprep.subr.bf16.mxu0 %v1122_v42 }
 0x218   : > { %3054 = vmatpush3.bf16.msra.mxu0 %v1122_v42 }
 0x219   : > { %3055 = vmatprep.subr.bf16.mxu0 %v1120_v23 }
 0x21b   : > { %3038 = vmatmul.mubr.msk.bf16.gmra.mxu1 %vm395_vm0, %v837_v21 }
 0x21c   : > { %3056 = vmatpush3.bf16.msra.mxu0 %v1120_v23 }
 0x21d   : > { %3265 = vmatprep.subr.msk.bf16.mxu0 %vm395_vm0, %v4103_v34 }
 0x277   : > { %v4101_v18 = vpop.f32.mrf.mxu1 }
 0x278   : > { %4993 = vst [vmem:[#allocation5_spill] sm:$0xff] %v4101_v18 }
 0x279   : > { %v4107_v26 = vpop.f32.mrf.mxu1 }
 0x27a   : > { %4994 = vst [vmem:[#allocation6_spill] sm:$0xff] %v4107_v26 }
 0x27b   : > { %v4109_v20 = vpop.f32.mrf.mxu1 }
 0x27c   : > { %4995 = vst [vmem:[#allocation7_spill] sm:$0xff] %v4109_v20 }
 0x27d   : > { %v4111_v24 = vpop.f32.mrf.mxu1 }
 0x27e   : > { %4996 = vst [vmem:[#allocation8_spill] sm:$0xff] %v4111_v24 }
 0x285   : > { %v4113_v33 = vpop.f32.mrf.mxu1 }
 0x286   : > { %4997 = vst [vmem:[#allocation9_spill] sm:$0xff] %v4113_v33 }
 0x287   : > { %v4115_v48 = vpop.f32.mrf.mxu1 }
 0x288   : > { %4998 = vst [vmem:[#allocation10_spill] sm:$0xff] %v4115_v48 }
 0x289   : > { %v4117_v51 = vpop.f32.mrf.mxu1 }
 0x28a   : > { %4999 = vst [vmem:[#allocation11_spill] sm:$0xff] %v4117_v51 }
 0x28b   : > { %v4119_v52 = vpop.f32.mrf.mxu1 }
 0x28c   : > { %5000 = vst [vmem:[#allocation12_spill] sm:$0xff] %v4119_v52 }
 0x2b3   : > { %v4121_v54 = vpop.f32.mrf.mxu1 }
 0x2b4   : > { %5001 = vst [vmem:[#allocation13_spill] sm:$0xff] %v4121_v54 }
 0x2b5   : > { %v4123_v4 = vpop.f32.mrf.mxu1 }
 0x2b6   : > { %5002 = vst [vmem:[#allocation14_spill] sm:$0xff] %v4123_v4 }
 0x2b7   : > { %v4125_v6 = vpop.f32.mrf.mxu1 }
 0x2b8   : > { %5003 = vst [vmem:[#allocation15_spill] sm:$0xff] %v4125_v6 }
 0x2b9   : > { %v4127_v28 = vpop.f32.mrf.mxu1 }
 0x2ba   : > { %5004 = vst [vmem:[#allocation16_spill] sm:$0xff] %v4127_v28 }
 0x2bb   : > { %v4129_v8 = vpop.f32.mrf.mxu1 }
 0x2bc   : > { %5005 = vst [vmem:[#allocation17_spill] sm:$0xff] %v4129_v8 }
 0x2bd   : > { %v4131_v12 = vpop.f32.mrf.mxu1 }
 0x2be   : > { %5006 = vst [vmem:[#allocation18_spill] sm:$0xff] %v4131_v12 }
 0x2bf   : > { %v4133_v14 = vpop.f32.mrf.mxu1 }
 0x2c0   : > { %5007 = vst [vmem:[#allocation19_spill] sm:$0xff] %v4133_v14 }
 0x2c1   : > { %v4135_v36 = vpop.f32.mrf.mxu1 }
 0x2c2   : > { %5008 = vst [vmem:[#allocation20_spill] sm:$0xff] %v4135_v36 }
 0x2c3   : > { %v3027_v21 = vpop.f32.mrf.mxu1 }
 0x2c4   : > { %1003 = vmax.xlane.f32.xlu1 %v3027_v21 }
 0x2c5   : > { %v936_v10 = vpop.f32.mrf.mxu1 }
 0x2c6   : > { %999 = vmax.xlane.f32.xlu0 %v936_v10 }
 0x2c7   : > { %v3028_v2 = vpop.f32.mrf.mxu1 }
 0x2c8   : > { %1005 = vmax.xlane.f32.xlu1 %v3028_v2 }
 0x2c9   : > { %v939_v25 = vpop.f32.mrf.mxu1 }
 0x2cb   : > { %v4137_v1 = vpop.f32.mrf.mxu1 }
 0x2cc   : > { %1001 = vmax.xlane.f32.xlu1 %v939_v25 }
 0x2cd   : > { %v4139_v0 = vpop.f32.mrf.mxu1 }
 0x2cf   : > { %v4145_v16 = vpop.f32.mrf.mxu1 }
 0x2d1   : > { %v4149_v42 = vpop.f32.mrf.mxu1 }
 0x2d3   : > { %v4151_v23 = vpop.f32.mrf.mxu1 }
 0x2d5   : > { %v4153_v14 = vpop.f32.mrf.mxu1 }
 0x2d7   : > { %v4155_v8 = vpop.f32.mrf.mxu1 }
 0x2d9   : > { %v4157_v36 = vpop.f32.mrf.mxu1 }
 0x2db   : > { %v4159_v12 = vpop.f32.mrf.mxu1 }
 0x2dc   : > { %1296 = vrot.lane.b32.xlu0 %v3811_v11, %s3724_s29 }
 0x2dd   : > { %1298 = vrot.lane.b32.xlu1 %v3789_v3, %s3724_s29  ;;  %v4161_v33 = vpop.f32.mrf.mxu1 }
 0x2df   : > { %v4163_v3 = vpop.f32.mrf.mxu1 }
 0x2e0   : > { %1294 = vrot.lane.b32.xlu0 %v3818_v13, %s3724_s29 }
 0x2e1   : > { %v4167_v13 = vpop.f32.mrf.mxu1 }
 0x2ff   : > { %1011 = vmax.xlane.f32.xlu0 %v4137_v1 }
 0x301   : > { %1007 = vmax.xlane.f32.xlu1 %v4139_v0 }
 0x303   : > { %1013 = vmax.xlane.f32.xlu0 %v4145_v16 }
 0x305   : > { %1025 = vmax.xlane.f32.xlu1 %v4167_v13 }
 0x307   : > { %1009 = vmax.xlane.f32.xlu0 %v4149_v42 }
 0x30b   : > { %1019 = vmax.xlane.f32.xlu0 %v4151_v23 }
 0x30f   : > { %1015 = vmax.xlane.f32.xlu0 %v4153_v14 }
 0x313   : > { %1021 = vmax.xlane.f32.xlu0 %v4155_v8 }
 0x316   : > { %1292 = vrot.lane.b32.xlu1 %v3825_v15, %s3724_s29  ;;  %v1301_v15 = vpop.permute.xlu1 %1300 }
 0x317   : > { %1017 = vmax.xlane.f32.xlu0 %v4157_v36 }
 0x31a   : > { %1278 = vrot.lane.b32.xlu1 %v3861_v39, %s3724_s29 }
 0x31b   : > { %1027 = vmax.xlane.f32.xlu0 %v4159_v12 }
 0x31e   : > { %1282 = vrot.lane.b32.xlu1 %v3873_v49, %s3724_s29 }
 0x31f   : > { %1023 = vmax.xlane.f32.xlu0 %v4161_v33 }
 0x322   : > { %1286 = vrot.lane.b32.xlu1 %v3883_v55, %s3724_s29 }
 0x323   : > { %1029 = vmax.xlane.f32.xlu0 %v4163_v3 }
 0x326   : > { %1581 = vrot.lane.b32.xlu1 %v3891_v57, %s3724_s29 }
 0x32a   : > { %1573 = vrot.lane.b32.xlu1 %v3911_v61, %s3724_s29 }
 0x32e   : > { %1569 = vrot.lane.b32.xlu1 %v3922_v63, %s3724_s29 }
 0x339   : > { %1290 = vrot.lane.b32.xlu0 %v3832_v17, %s3724_s29 }
 0x33d   : > { %1288 = vrot.lane.b32.xlu0 %v3839_v19, %s3724_s29 }
 0x341   : > { %1272 = vrot.lane.b32.xlu0 %v3802_v9, %s3724_s29 }
 0x345   : > { %1274 = vrot.lane.b32.xlu0 %v3849_v29, %s3724_s29 }
 0x349   : > { %1276 = vrot.lane.b32.xlu0 %v3851_v30, %s3724_s29 }
 0x34d   : > { %v1004_v57 = vpop.xlane.xlu1 %1003  ;;  %1280 = vrot.lane.b32.xlu0 %v3863_v40, %s3724_s29 }
 0x34e   : > { %v1033_v51 = vsub.f32 %v3027_v21, %v1004_v57 }
 0x34f   : > { %v1000_v61 = vpop.xlane.xlu0 %999 }
 0x350   : > { %v1031_v63 = vsub.f32 %v936_v10, %v1000_v61  ;;  %v1051_v4 = vmul.f32 1.442695, %v1033_v51 }
 0x351   : > { %v1006_v17 = vpop.xlane.xlu1 %1005  ;;  %1284 = vrot.lane.b32.xlu0 %v3875_v50, %s3724_s29 }
 0x352   : > { %v1034_v19 = vsub.f32 %v3028_v2, %v1006_v17  ;;  %v1047_v52 = vmul.f32 1.442695, %v1031_v63 }
 0x354   : > { %v1053_v48 = vmul.f32 1.442695, %v1034_v19  ;;  %3476 = vpow2.f32 %v1047_v52 }
 0x355   : > { %v1002_v6 = vpop.xlane.xlu1 %1001  ;;  %1583 = vrot.lane.b32.xlu0 %v3888_v56, %s3724_s29 }
 0x356   : > { %v1032_v54 = vsub.f32 %v939_v25, %v1002_v6  ;;  %3478 = vpow2.f32 %v1053_v48 }
 0x358   : > { %v1049_v28 = vmul.f32 1.442695, %v1032_v54 }
 0x359   : > { %1579 = vrot.lane.b32.xlu0 %v3898_v58, %s3724_s29  ;;  %v1299_v52 = vpop.permute.xlu1 %1298 }
 0x35a   : > { %3480 = vpow2.f32 %v1049_v28  ;;  %v1344_v54 = vsel %vm395_vm0, %v1299_v52, 0 }
 0x35b   : > { %3482 = vpow2.f32 %v1051_v4  ;;  %v1297_v4 = vpop.permute.xlu0 %1296 }
 0x35c   : > { %v1341_v6 = vsel %vm395_vm0, %v1297_v4, 0 }
 0x35d   : > { %1577 = vrot.lane.b32.xlu0 %v3903_v59, %s3724_s29 }
 0x35f   : > { %v1295_v28 = vpop.permute.xlu0 %1294 }
 0x360   : > { %v1338_v25 = vsel %vm395_vm0, %v1295_v28, 0 }
 0x361   : > { %1575 = vrot.lane.b32.xlu0 %v3908_v60, %s3724_s29  ;;  %v4215_v21 = vpop.eup %3476  ;;  %v1350_v60 = vsel %vm395_vm0, %v4103_v34, 0 }
 0x363   : > { %v4219_v56 = vpop.eup %3478 }
 0x365   : > { %1571 = vrot.lane.b32.xlu0 %v3917_v62, %s3724_s29  ;;  %v1347_v62 = vsel %vm395_vm0, %v1301_v15, 0 }
 0x367   : > { %v4221_v51 = vpop.eup %3480 }
 0x368   : > { %v4223_v48 = vpop.eup %3482  ;;  %v1111_v58 = vpack.c.bf16 %v4221_v51, %v4215_v21 }
 0x369   : > { %v1112_v59 = vpack.c.bf16 %v4219_v56, %v4223_v48 }
 0x36a   : > { %3057 = vmatprep.mubr.bf16.mxu0 %v1111_v58 }
 0x36b   : > { %3058 = vmatmul.mubr.bf16.vlgmr.msra.gmra.mxu0 %v1112_v59 }
 0x36c   : > { %3074 = vmatpush3.bf16.xpose.msra.mxu0 %v1350_v60 }
 0x36d   : > { %3266 = vmatprep.subr.msk.bf16.mxu0 %vm395_vm0, %v1301_v15 }
 0x374   : > { %3076 = vmatpush3.bf16.xpose.msra.mxu0 %v1347_v62 }
 0x375   : > { %3267 = vmatprep.subr.msk.bf16.mxu0 %vm395_vm0, %v1299_v52 }
 0x37c   : > { %3078 = vmatpush3.bf16.xpose.msra.mxu0 %v1344_v54 }
 0x37d   : > { %3268 = vmatprep.subr.msk.bf16.mxu0 %vm395_vm0, %v1297_v4 }
 0x384   : > { %3080 = vmatpush3.bf16.xpose.msra.mxu0 %v1341_v6 }
 0x385   : > { %3269 = vmatprep.subr.msk.bf16.mxu0 %vm395_vm0, %v1295_v28 }
 0x388   : > { %v1012_v34 = vpop.xlane.xlu0 %1011 }
 0x389   : > { %v1037_v61 = vsub.f32 %v4137_v1, %v1012_v34 }
 0x38a   : > { %v1008_v10 = vpop.xlane.xlu1 %1007 }
 0x38b   : > { %v1035_v2 = vsub.f32 %v4139_v0, %v1008_v10  ;;  %v1059_v60 = vmul.f32 1.442695, %v1037_v61 }
 0x38c   : > { %3082 = vmatpush3.bf16.xpose.msra.mxu0 %v1338_v25  ;;  %v1014_v15 = vpop.xlane.xlu0 %1013 }
 0x38d   : > { %v1038_v57 = vsub.f32 %v4145_v16, %v1014_v15  ;;  %v1055_v17 = vmul.f32 1.442695, %v1035_v2 }
 0x38e   : > { %v1026_v63 = vpop.xlane.xlu1 %1025 }
 0x38f   : > { %v1061_v19 = vmul.f32 1.442695, %v1038_v57  ;;  %3484 = vpow2.f32 %v1055_v17 }
 0x390   : > { %v1010_v58 = vpop.xlane.xlu0 %1009 }
 0x391   : > { %v1036_v59 = vsub.f32 %v4149_v42, %v1010_v58  ;;  %3486 = vpow2.f32 %v1061_v19 }
 0x392   : > { %v1293_v62 = vpop.permute.xlu1 %1292 }
 0x393   : > { %v1057_v52 = vmul.f32 1.442695, %v1036_v59  ;;  %3270 = vmatprep.subr.msk.bf16.mxu0 %vm395_vm0, %v1293_v62  ;;  %v1335_v0 = vsel %vm395_vm0, %v1293_v62, 0 }
 0x394   : > { %v1020_v54 = vpop.xlane.xlu0 %1019  ;;  %3084 = vmatpush3.bf16.xpose.msra.mxu0 %v1335_v0 }
 0x395   : > { %3488 = vpow2.f32 %v1057_v52  ;;  %v1041_v42 = vsub.f32 %v4151_v23, %v1020_v54  ;;  %v1044_v23 = vsub.f32 %v4167_v13, %v1026_v63 }
 0x396   : > { %3490 = vpow2.f32 %v1059_v60 }
 0x397   : > { %v1067_v61 = vmul.f32 1.442695, %v1041_v42 }
 0x398   : > { %v1016_v1 = vpop.xlane.xlu0 %1015 }
 0x399   : > { %v1039_v16 = vsub.f32 %v4153_v14, %v1016_v1 }
 0x39b   : > { %v1063_v28 = vmul.f32 1.442695, %v1039_v16 }
 0x39c   : > { %v1022_v4 = vpop.xlane.xlu0 %1021  ;;  %v4248_v34 = vpop.eup %3484 }
 0x39d   : > { %v1042_v6 = vsub.f32 %v4155_v8, %v1022_v4  ;;  %3492 = vpow2.f32 %v1063_v28  ;;  %v3701_v28 = vld [vmem:[%s3770_s23 + $0x50] ss:$8 sps:$4 sm:$0xff]  }
 0x39e   : > { %v4250_v25 = vpop.eup %3486  ;;  %1748 = vrot.lane.b32.xlu1 %v3701_v28, %s3725_s30 }
 0x39f   : > { %v1069_v10 = vmul.f32 1.442695, %v1042_v6  ;;  %v3700_v6 = vld [vmem:[%s3770_s23 + $0x70] ss:$8 sps:$4 sm:$0xff]  }
 0x3a0   : > { %v1018_v2 = vpop.xlane.xlu0 %1017  ;;  %1752 = vrot.lane.b32.xlu0 %v3700_v6, %s3725_s30 }
 0x3a1   : > { %v1040_v15 = vsub.f32 %v4157_v36, %v1018_v2  ;;  %3494 = vpow2.f32 %v1069_v10  ;;  %v1073_v36 = vmul.f32 1.442695, %v1044_v23 }
 0x3a2   : > { %v4253_v57 = vpop.eup %3488 }
 0x3a3   : > { %v4255_v17 = vpop.eup %3490  ;;  %v1065_v14 = vmul.f32 1.442695, %v1040_v15  ;;  %v1113_v8 = vpack.c.bf16 %v4253_v57, %v4248_v34  ;;  %v3702_v15 = vld [vmem:[%s3770_s23 + $0x60] ss:$8 sps:$4 sm:$0xff]  }
 0x3a4   : > { %v1028_v19 = vpop.xlane.xlu0 %1027  ;;  %v1114_v58 = vpack.c.bf16 %v4250_v25, %v4255_v17  ;;  %1750 = vrot.lane.b32.xlu0 %v3702_v15, %s3725_s30 }
 0x3a5   : > { %3496 = vpow2.f32 %v1065_v14  ;;  %3061 = vmatprep.mubr.bf16.mxu0 %v1113_v8  ;;  %v1045_v59 = vsub.f32 %v4159_v12, %v1028_v19 }
 0x3a6   : > { %3498 = vpow2.f32 %v1067_v61  ;;  %3062 = vmatmul.mubr.bf16.gmra.mxu0 %v1114_v58 }
 0x3a7   : > { %3500 = vpow2.f32 %v1073_v36  ;;  %v1075_v0 = vmul.f32 1.442695, %v1045_v59 }
 0x3a8   : > { %v1024_v60 = vpop.xlane.xlu0 %1023  ;;  %1746 = vrot.lane.b32.xlu0 %v3811_v11, %s3725_s30  ;;  %v1279_v11 = vpop.permute.xlu1 %1278 }
 0x3a9   : > { %v1043_v62 = vsub.f32 %v4161_v33, %v1024_v60 }
 0x3aa   : > { %v4265_v1 = vpop.eup %3492 }
 0x3ab   : > { %v1071_v52 = vmul.f32 1.442695, %v1043_v62 }
 0x3ac   : > { %v1030_v13 = vpop.xlane.xlu0 %1029 }
 0x3ad   : > { %3502 = vpow2.f32 %v1071_v52  ;;  %v1046_v63 = vsub.f32 %v4163_v3, %v1030_v13 }
 0x3ae   : > { %3504 = vpow2.f32 %v1075_v0  ;;  %v4267_v4 = vpop.eup %3494  ;;  %v1283_v0 = vpop.permute.xlu1 %1282 }
 0x3af   : > { %v1077_v54 = vmul.f32 1.442695, %v1046_v63 }
 0x3b0   : > { %v1291_v16 = vpop.permute.xlu0 %1290 }
 0x3b1   : > { %3506 = vpow2.f32 %v1077_v54  ;;  %3271 = vmatprep.subr.msk.bf16.mxu0 %vm395_vm0, %v1291_v16  ;;  %v1332_v33 = vsel %vm395_vm0, %v1291_v16, 0 }
 0x3b2   : > { %v4271_v12 = vpop.eup %3496  ;;  %3086 = vmatpush3.bf16.xpose.msra.mxu0 %v1332_v33  ;;  %v1287_v63 = vpop.permute.xlu1 %1286 }
 0x3b3   : > { %v4275_v3 = vpop.eup %3498  ;;  %v1115_v42 = vpack.c.bf16 %v4271_v12, %v4265_v1 }
 0x3b4   : > { %v1116_v10 = vpack.c.bf16 %v4267_v4, %v4275_v3  ;;  %v1289_v2 = vpop.permute.xlu0 %1288  ;;  %v4287_v14 = vpop.eup %3500 }
 0x3b5   : > { %3065 = vmatprep.mubr.bf16.mxu0 %v1115_v42  ;;  %3272 = vmatprep.subr.msk.bf16.mxu0 %vm395_vm0, %v1289_v2  ;;  %v1329_v61 = vsel %vm395_vm0, %v1289_v2, 0 }
 0x3b6   : > { %3066 = vmatmul.mubr.bf16.gmra.mxu0 %v1116_v10  ;;  %v1582_v16 = vpop.permute.xlu1 %1581 }
 0x3b8   : > { %v1273_v58 = vpop.permute.xlu0 %1272 }
 0x3ba   : > { %v4289_v8 = vpop.eup %3502  ;;  %3088 = vmatpush3.bf16.xpose.msra.mxu0 %v1329_v61  ;;  %v1574_v28 = vpop.permute.xlu1 %1573 }
 0x3bb   : > { %v1117_v23 = vpack.c.bf16 %v4287_v14, %v4289_v8  ;;  %v4295_v19 = vpop.eup %3504 }
 0x3bc   : > { %v1275_v60 = vpop.permute.xlu0 %1274 }
 0x3bd   : > { %3069 = vmatprep.mubr.bf16.mxu0 %v1117_v23 }
 0x3be   : > { %v4297_v36 = vpop.eup %3506  ;;  %v1570_v2 = vpop.permute.xlu1 %1569 }
 0x3bf   : > { %v1118_v59 = vpack.c.bf16 %v4297_v36, %v4295_v19 }
 0x3c0   : > { %v1277_v62 = vpop.permute.xlu0 %1276 }
 0x3c1   : > { %3070 = vmatmul.mubr.bf16.gmra.mxu0 %v1118_v59 }
 0x3c2   : > { %3089 = vmatprep.mubr.msk.bf16.mxu0 %vm395_vm0, %v1273_v58 }
 0x3c4   : > { %v1281_v52 = vpop.permute.xlu0 %1280 }
 0x3c8   : > { %v1285_v13 = vpop.permute.xlu0 %1284 }
 0x3c9   : > { %3090 = vmatmul.mubr.msk.bf16.vlgmr.msra.gmra.mxu0 %vm395_vm0, %v1275_v60 }
 0x3ca   : > { %3093 = vmatprep.mubr.msk.bf16.mxu0 %vm395_vm0, %v1277_v62 }
 0x3cc   : > { %v1584_v54 = vpop.permute.xlu0 %1583 }
 0x3cd   : > { %3105 = vmatprep.subr.bf16.mxu1 %v1584_v54 }
 0x3ce   : > { %3106 = vmatpush3.bf16.msra.mxu1 %v1584_v54 }
 0x3cf   : > { %3107 = vmatprep.subr.bf16.mxu1 %v1582_v16 }
 0x3d0   : > { %v1580_v33 = vpop.permute.xlu0 %1579 }
 0x3d1   : > { %3094 = vmatmul.mubr.msk.bf16.gmra.mxu0 %vm395_vm0, %v1279_v11 }
 0x3d2   : > { %3097 = vmatprep.mubr.msk.bf16.mxu0 %vm395_vm0, %v1281_v52  ;;  %3108 = vmatpush3.bf16.msra.mxu1 %v1582_v16 }
 0x3d3   : > { %3109 = vmatprep.subr.bf16.mxu1 %v1580_v33 }
 0x3d4   : > { %v1578_v6 = vpop.permute.xlu0 %1577 }
 0x3d6   : > { %3110 = vmatpush3.bf16.msra.mxu1 %v1580_v33 }
 0x3d7   : > { %3111 = vmatprep.subr.bf16.mxu1 %v1578_v6 }
 0x3d8   : > { %v1576_v42 = vpop.permute.xlu0 %1575 }
 0x3d9   : > { %3098 = vmatmul.mubr.msk.bf16.gmra.mxu0 %vm395_vm0, %v1283_v0 }
 0x3da   : > { %3101 = vmatprep.mubr.msk.bf16.mxu0 %vm395_vm0, %v1285_v13  ;;  %3112 = vmatpush3.bf16.msra.mxu1 %v1578_v6 }
 0x3db   : > { %3113 = vmatprep.subr.bf16.mxu1 %v1576_v42 }
 0x3dc   : > { %v1572_v10 = vpop.permute.xlu0 %1571 }
 0x3de   : > { %3114 = vmatpush3.bf16.msra.mxu1 %v1576_v42 }
 0x3df   : > { %3115 = vmatprep.subr.bf16.mxu1 %v1574_v28 }
 0x3e1   : > { %3102 = vmatmul.mubr.msk.bf16.gmra.mxu0 %vm395_vm0, %v1287_v63 }
 0x3e2   : > { %3116 = vmatpush3.bf16.msra.mxu1 %v1574_v28 }
 0x3e3   : > { %3117 = vmatprep.subr.bf16.mxu1 %v1572_v10 }
 0x3e6   : > { %3118 = vmatpush3.bf16.msra.mxu1 %v1572_v10 }
 0x3e7   : > { %3119 = vmatprep.subr.bf16.mxu1 %v1570_v2 }
 0x3ea   : > { %3120 = vmatpush3.bf16.msra.mxu1 %v1570_v2 }
 0x412   : > { %v4313_v23 = vpop.permute.xlu0 %1752 }
 0x413   : > { %3273 = vmatprep.subr.msk.bf16.mxu1 %vm395_vm0, %v4313_v23 }
 0x42b   : > { %v4309_v15 = vpop.f32.mrf.mxu0 }
 0x42c   : > { %5009 = vst [vmem:[#allocation21_spill] sm:$0xff] %v4309_v15 }
 0x42d   : > { %v4311_v61 = vpop.f32.mrf.mxu0 }
 0x42e   : > { %5010 = vst [vmem:[#allocation22_spill] sm:$0xff] %v4311_v61 }
 0x42f   : > { %v4317_v58 = vpop.f32.mrf.mxu0 }
 0x430   : > { %5011 = vst [vmem:[#allocation23_spill] sm:$0xff] %v4317_v58 }
 0x431   : > { %v4319_v59 = vpop.f32.mrf.mxu0 }
 0x432   : > { %5012 = vst [vmem:[#allocation24_spill] sm:$0xff] %v4319_v59 }
 0x466   : > { %v4321_v60 = vpop.f32.mrf.mxu0 }
 0x467   : > { %5013 = vst [vmem:[#allocation25_spill] sm:$0xff] %v4321_v60 }
 0x468   : > { %v4323_v62 = vpop.f32.mrf.mxu0 }
 0x469   : > { %5014 = vst [vmem:[#allocation26_spill] sm:$0xff] %v4323_v62 }
 0x46a   : > { %v4325_v11 = vpop.f32.mrf.mxu0 }
 0x46b   : > { %5015 = vst [vmem:[#allocation27_spill] sm:$0xff] %v4325_v11 }
 0x46c   : > { %v4327_v52 = vpop.f32.mrf.mxu0 }
 0x46d   : > { %5016 = vst [vmem:[#allocation28_spill] sm:$0xff] %v4327_v52  ;;  %v3704_v52 = vld [vmem:[%s3770_s23 + $0x30] ss:$8 sps:$4 sm:$0xff]  }
 0x476   : > { %v4329_v0 = vpop.f32.mrf.mxu0 }
 0x477   : > { %5017 = vst [vmem:[#allocation29_spill] sm:$0xff] %v4329_v0 }
 0x478   : > { %v4331_v13 = vpop.f32.mrf.mxu0 }
 0x479   : > { %5018 = vst [vmem:[#allocation30_spill] sm:$0xff] %v4331_v13 }
 0x47a   : > { %v4333_v63 = vpop.f32.mrf.mxu0 }
 0x47b   : > { %5019 = vst [vmem:[#allocation31_spill] sm:$0xff] %v4333_v63 }
 0x47c   : > { %v4335_v54 = vpop.f32.mrf.mxu0 }
 0x47d   : > { %5020 = vst [vmem:[#allocation32_spill] sm:$0xff] %v4335_v54 }
 0x481   : > { %v4337_v16 = vpop.f32.mrf.mxu0 }
 0x482   : > { %5021 = vst [vmem:[#allocation33_spill] sm:$0xff] %v4337_v16 }
 0x483   : > { %v4339_v33 = vpop.f32.mrf.mxu0 }
 0x484   : > { %5022 = vst [vmem:[#allocation34_spill] sm:$0xff] %v4339_v33  ;;  %v3703_v33 = vld [vmem:[%s3770_s23 + $0x20] ss:$8 sps:$4 sm:$0xff]  }
 0x485   : > { %v4341_v6 = vpop.f32.mrf.mxu0 }
 0x486   : > { %5023 = vst [vmem:[#allocation35_spill] sm:$0xff] %v4341_v6 }
 0x487   : > { %v4343_v42 = vpop.f32.mrf.mxu0 }
 0x488   : > { %5024 = vst [vmem:[#allocation36_spill] sm:$0xff] %v4343_v42 }
 0x489   : > { %v4345_v28 = vpop.f32.mrf.mxu0 }
 0x48a   : > { %1453 = vmax.xlane.f32.xlu1 %v4345_v28 }
 0x48b   : > { %v4348_v10 = vpop.f32.mrf.mxu0 }
 0x48c   : > { %1449 = vmax.xlane.f32.xlu0 %v4348_v10 }
 0x48d   : > { %v4351_v2 = vpop.f32.mrf.mxu0 }
 0x48e   : > { %1455 = vmax.xlane.f32.xlu1 %v4351_v2 }
 0x48f   : > { %v4354_v24 = vpop.f32.mrf.mxu0 }
 0x491   : > { %v4356_v26 = vpop.f32.mrf.mxu0 }
 0x492   : > { %1451 = vmax.xlane.f32.xlu1 %v4354_v24  ;;  %1461 = vmax.xlane.f32.xlu0 %v4356_v26 }
 0x493   : > { %v4360_v20 = vpop.f32.mrf.mxu0 }
 0x495   : > { %v4362_v18 = vpop.f32.mrf.mxu0 }
 0x496   : > { %1457 = vmax.xlane.f32.xlu1 %v4360_v20 }
 0x497   : > { %v4365_v6 = vpop.f32.mrf.mxu0 }
 0x498   : > { %1459 = vmax.xlane.f32.xlu0 %v4365_v6 }
 0x499   : > { %v4369_v16 = vpop.f32.mrf.mxu0 }
 0x49a   : > { %1463 = vmax.xlane.f32.xlu1 %v4362_v18 }
 0x49b   : > { %v4372_v11 = vpop.f32.mrf.mxu0 }
 0x49d   : > { %v4375_v60 = vpop.f32.mrf.mxu0 }
 0x49e   : > { %1469 = vmax.xlane.f32.xlu1 %v4369_v16 }
 0x49f   : > { %v4378_v42 = vpop.f32.mrf.mxu0 }
 0x4a1   : > { %v4385_v62 = vpop.f32.mrf.mxu0 }
 0x4a2   : > { %1465 = vmax.xlane.f32.xlu1 %v4372_v11 }
 0x4a3   : > { %v4388_v63 = vpop.f32.mrf.mxu0 }
 0x4a5   : > { %v4391_v0 = vpop.f32.mrf.mxu0 }
 0x4a6   : > { %1471 = vmax.xlane.f32.xlu1 %v4375_v60 }
 0x4a7   : > { %v4394_v58 = vpop.f32.mrf.mxu0 }
 0x4aa   : > { %1467 = vmax.xlane.f32.xlu1 %v4378_v42 }
 0x4ae   : > { %1742 = vrot.lane.b32.xlu0 %v3703_v33, %s3725_s30  ;;  %v3705_v33 = vld [vmem:[%s3770_s23 + $0x10] ss:$8 sps:$4 sm:$0xff]  }
 0x4bb   : > { %1744 = vrot.lane.b32.xlu1 %v3704_v52, %s3725_s30  ;;  %v3706_v52 = vld [vmem:[%s3770_s23] ss:$8 sps:$4 sm:$0xff]  }
 0x4cd   : > { %1477 = vmax.xlane.f32.xlu0 %v4385_v62 }
 0x4d1   : > { %1473 = vmax.xlane.f32.xlu0 %v4388_v63 }
 0x4d5   : > { %1479 = vmax.xlane.f32.xlu0 %v4391_v0 }
 0x4df   : > { %1475 = vmax.xlane.f32.xlu1 %v4394_v58 }
 0x4eb   : > { %1740 = vrot.lane.b32.xlu0 %v3705_v33, %s3725_s30  ;;  %v4431_v33 = vpop.permute.xlu1 %1748 }
 0x4ef   : > { %1722 = vrot.lane.b32.xlu0 %v3802_v9, %s3725_s30  ;;  %v3707_v9 = vld [vmem:[%s3770_s23 + $0x64] ss:$8 sps:$4 sm:$0xff]  }
 0x4f0   : > { %1738 = vrot.lane.b32.xlu1 %v3706_v52, %s3725_s30 }
 0x4f3   : > { %1726 = vrot.lane.b32.xlu0 %v3851_v30, %s3725_s30  ;;  %v3709_v30 = vld [vmem:[%s3770_s23 + $0x74] ss:$8 sps:$4 sm:$0xff]  }
 0x4f4   : > { %1724 = vrot.lane.b32.xlu1 %v3849_v29, %s3725_s30  ;;  %v3708_v29 = vld [vmem:[%s3770_s23 + $0x44] ss:$8 sps:$4 sm:$0xff]  }
 0x4f7   : > { %1730 = vrot.lane.b32.xlu0 %v3863_v40, %s3725_s30  ;;  %v3710_v40 = vld [vmem:[%s3770_s23 + $0x24] ss:$8 sps:$4 sm:$0xff]  }
 0x4f8   : > { %1728 = vrot.lane.b32.xlu1 %v3861_v39, %s3725_s30  ;;  %v3711_v39 = vld [vmem:[%s3770_s23 + $0x54] ss:$8 sps:$4 sm:$0xff]  }
 0x4fb   : > { %1734 = vrot.lane.b32.xlu0 %v3875_v50, %s3725_s30  ;;  %v4427_v50 = vpop.permute.xlu0 %1750 }
 0x4fc   : > { %1732 = vrot.lane.b32.xlu1 %v3873_v49, %s3725_s30  ;;  %v3712_v49 = vld [vmem:[%s3770_s23 + $0x34] ss:$8 sps:$4 sm:$0xff]  }
 0x4ff   : > { %2031 = vrot.lane.b32.xlu0 %v3707_v9, %s3725_s30 }
 0x500   : > { %1736 = vrot.lane.b32.xlu1 %v3883_v55, %s3725_s30  ;;  %v4433_v55 = vpop.permute.xlu0 %1746 }
 0x503   : > { %2027 = vrot.lane.b32.xlu0 %v3708_v29, %s3725_s30 }
 0x504   : > { %2033 = vrot.lane.b32.xlu1 %v3709_v30, %s3725_s30 }
 0x507   : > { %2023 = vrot.lane.b32.xlu0 %v3710_v40, %s3725_s30 }
 0x508   : > { %2029 = vrot.lane.b32.xlu1 %v3711_v39, %s3725_s30 }
 0x50c   : > { %2025 = vrot.lane.b32.xlu1 %v3712_v49, %s3725_s30 }
 0x513   : > { %v1454_v52 = vpop.xlane.xlu1 %1453 }
 0x514   : > { %v1483_v40 = vsub.f32 %v4345_v28, %v1454_v52 }
 0x515   : > { %v1450_v9 = vpop.xlane.xlu0 %1449 }
 0x516   : > { %v1481_v29 = vsub.f32 %v4348_v10, %v1450_v9  ;;  %v1501_v49 = vmul.f32 1.442695, %v1483_v40 }
 0x517   : > { %v1456_v30 = vpop.xlane.xlu1 %1455 }
 0x518   : > { %v1484_v15 = vsub.f32 %v4351_v2, %v1456_v30  ;;  %v1497_v54 = vmul.f32 1.442695, %v1481_v29 }
 0x51a   : > { %v1503_v13 = vmul.f32 1.442695, %v1484_v15  ;;  %3508 = vpow2.f32 %v1497_v54 }
 0x51b   : > { %v1452_v39 = vpop.xlane.xlu1 %1451  ;;  %v1462_v59 = vpop.xlane.xlu0 %1461 }
 0x51c   : > { %v1482_v61 = vsub.f32 %v4354_v24, %v1452_v39  ;;  %v1487_v27 = vsub.f32 %v4356_v26, %v1462_v59  ;;  %3510 = vpow2.f32 %v1503_v13 }
 0x51e   : > { %v1499_v53 = vmul.f32 1.442695, %v1482_v61  ;;  %v1509_v52 = vmul.f32 1.442695, %v1487_v27 }
 0x51f   : > { %v1458_v37 = vpop.xlane.xlu1 %1457 }
 0x520   : > { %v1485_v10 = vsub.f32 %v4360_v20, %v1458_v37  ;;  %3512 = vpow2.f32 %v1499_v53 }
 0x521   : > { %v1460_v9 = vpop.xlane.xlu0 %1459  ;;  %3514 = vpow2.f32 %v1501_v49 }
 0x522   : > { %v1505_v2 = vmul.f32 1.442695, %v1485_v10  ;;  %v1486_v28 = vsub.f32 %v4365_v6, %v1460_v9 }
 0x523   : > { %v1464_v15 = vpop.xlane.xlu1 %1463 }
 0x524   : > { %v1507_v29 = vmul.f32 1.442695, %v1486_v28  ;;  %v1488_v24 = vsub.f32 %v4362_v18, %v1464_v15  ;;  %3516 = vpow2.f32 %v1505_v2 }
 0x526   : > { %3518 = vpow2.f32 %v1507_v29  ;;  %v1511_v61 = vmul.f32 1.442695, %v1488_v24  ;;  %v1797_v24 = vsel %vm395_vm0, %v4427_v50, 0 }
 0x527   : > { %3520 = vpow2.f32 %v1509_v52  ;;  %v1470_v26 = vpop.xlane.xlu1 %1469  ;;  %v4443_v13 = vpop.eup %3508 }
 0x528   : > { %3522 = vpow2.f32 %v1511_v61  ;;  %v1491_v40 = vsub.f32 %v4369_v16, %v1470_v26 }
 0x529   : > { %v4445_v37 = vpop.eup %3510 }
 0x52a   : > { %v1517_v15 = vmul.f32 1.442695, %v1491_v40 }
 0x52b   : > { %v1466_v59 = vpop.xlane.xlu1 %1465 }
 0x52c   : > { %v1489_v20 = vsub.f32 %v4372_v11, %v1466_v59  ;;  %v1800_v11 = vsel %vm395_vm0, %v4313_v23, 0 }
 0x52d   : > { %v4447_v53 = vpop.eup %3512 }
 0x52e   : > { %v4450_v27 = vpop.eup %3514  ;;  %v1561_v18 = vpack.c.bf16 %v4447_v53, %v4443_v13  ;;  %v1513_v49 = vmul.f32 1.442695, %v1489_v20 }
 0x52f   : > { %v1472_v54 = vpop.xlane.xlu1 %1471  ;;  %v1562_v30 = vpack.c.bf16 %v4445_v37, %v4450_v27 }
 0x530   : > { %v1492_v6 = vsub.f32 %v4375_v60, %v1472_v54  ;;  %3121 = vmatprep.mubr.bf16.mxu1 %v1561_v18  ;;  %3524 = vpow2.f32 %v1513_v49 }
 0x531   : > { %v4458_v39 = vpop.eup %3516  ;;  %3122 = vmatmul.mubr.bf16.vlgmr.msra.gmra.mxu1 %v1562_v30 }
 0x532   : > { %v1519_v9 = vmul.f32 1.442695, %v1492_v6  ;;  %3138 = vmatpush3.bf16.xpose.msra.mxu1 %v1800_v11  ;;  %v1743_v6 = vpop.permute.xlu0 %1742 }
 0x533   : > { %v4462_v10 = vpop.eup %3518  ;;  %v1468_v2 = vpop.xlane.xlu1 %1467  ;;  %3274 = vmatprep.subr.msk.bf16.mxu1 %vm395_vm0, %v4427_v50  ;;  %v1785_v49 = vsel %vm395_vm0, %v1743_v6, 0 }
 0x534   : > { %v4464_v28 = vpop.eup %3520  ;;  %v1490_v60 = vsub.f32 %v4378_v42, %v1468_v2  ;;  %v1563_v16 = vpack.c.bf16 %v4462_v10, %v4458_v39  ;;  %3526 = vpow2.f32 %v1519_v9  ;;  %v1794_v42 = vsel %vm395_vm0, %v4431_v33, 0 }
 0x535   : > { %v4471_v52 = vpop.eup %3522 }
 0x536   : > { %v1515_v23 = vmul.f32 1.442695, %v1490_v60  ;;  %3125 = vmatprep.mubr.bf16.mxu1 %v1563_v16  ;;  %v1564_v29 = vpack.c.bf16 %v4471_v52, %v4464_v28 }
 0x537   : > { %v1745_v18 = vpop.permute.xlu1 %1744 }
 0x538   : > { %3528 = vpow2.f32 %v1515_v23  ;;  %v1788_v30 = vsel %vm395_vm0, %v1745_v18, 0 }
 0x539   : > { %3530 = vpow2.f32 %v1517_v15  ;;  %3126 = vmatmul.mubr.bf16.gmra.mxu1 %v1564_v29 }
 0x53a   : > { %3140 = vmatpush3.bf16.xpose.msra.mxu1 %v1797_v24 }
 0x53b   : > { %3275 = vmatprep.subr.msk.bf16.mxu1 %vm395_vm0, %v4431_v33  ;;  %v1791_v33 = vsel %vm395_vm0, %v4433_v55, 0 }
 0x53d   : > { %v4481_v61 = vpop.eup %3524 }
 0x541   : > { %v4483_v26 = vpop.eup %3526 }
 0x542   : > { %3142 = vmatpush3.bf16.xpose.msra.mxu1 %v1794_v42 }
 0x543   : > { %3276 = vmatprep.subr.msk.bf16.mxu1 %vm395_vm0, %v4433_v55 }
 0x545   : > { %v4487_v59 = vpop.eup %3528 }
 0x546   : > { %v4489_v20 = vpop.eup %3530  ;;  %v1565_v50 = vpack.c.bf16 %v4487_v59, %v4481_v61 }
 0x547   : > { %v1566_v54 = vpack.c.bf16 %v4483_v26, %v4489_v20 }
 0x548   : > { %3129 = vmatprep.mubr.bf16.mxu1 %v1565_v50 }
 0x549   : > { %3130 = vmatmul.mubr.bf16.gmra.mxu1 %v1566_v54 }
 0x54a   : > { %3144 = vmatpush3.bf16.xpose.msra.mxu1 %v1791_v33 }
 0x54b   : > { %3277 = vmatprep.subr.msk.bf16.mxu1 %vm395_vm0, %v1745_v18 }
 0x552   : > { %3146 = vmatpush3.bf16.xpose.msra.mxu1 %v1788_v30 }
 0x553   : > { %3278 = vmatprep.subr.msk.bf16.mxu1 %vm395_vm0, %v1743_v6 }
 0x556   : > { %v1478_v40 = vpop.xlane.xlu0 %1477 }
 0x557   : > { %v1495_v15 = vsub.f32 %v4385_v62, %v1478_v40 }
 0x559   : > { %v1525_v50 = vmul.f32 1.442695, %v1495_v15 }
 0x55a   : > { %v1474_v11 = vpop.xlane.xlu0 %1473  ;;  %3148 = vmatpush3.bf16.xpose.msra.mxu1 %v1785_v49 }
 0x55b   : > { %v1493_v60 = vsub.f32 %v4388_v63, %v1474_v11 }
 0x55d   : > { %v1521_v23 = vmul.f32 1.442695, %v1493_v60 }
 0x55e   : > { %v1480_v9 = vpop.xlane.xlu0 %1479 }
 0x55f   : > { %v1496_v16 = vsub.f32 %v4391_v0, %v1480_v9  ;;  %3532 = vpow2.f32 %v1521_v23 }
 0x561   : > { %v1527_v29 = vmul.f32 1.442695, %v1496_v16 }
 0x562   : > { %v1741_v2 = vpop.permute.xlu0 %1740 }
 0x563   : > { %3279 = vmatprep.subr.msk.bf16.mxu1 %vm395_vm0, %v1741_v2  ;;  %v1782_v55 = vsel %vm395_vm0, %v1741_v2, 0  ;;  %3534 = vpow2.f32 %v1527_v29 }
 0x564   : > { %3150 = vmatpush3.bf16.xpose.msra.mxu1 %v1782_v55 }
 0x566   : > { %v1723_v40 = vpop.permute.xlu0 %1722 }
 0x568   : > { %v1476_v24 = vpop.xlane.xlu1 %1475 }
 0x569   : > { %v1494_v42 = vsub.f32 %v4394_v58, %v1476_v24 }
 0x56a   : > { %v1727_v11 = vpop.permute.xlu0 %1726 }
 0x56b   : > { %v1523_v54 = vmul.f32 1.442695, %v1494_v42 }
 0x56c   : > { %v1739_v33 = vpop.permute.xlu1 %1738  ;;  %v4509_v0 = vpop.eup %3532 }
 0x56d   : > { %3536 = vpow2.f32 %v1523_v54  ;;  %3280 = vmatprep.subr.msk.bf16.mxu1 %vm395_vm0, %v1739_v33  ;;  %v1779_v63 = vsel %vm395_vm0, %v1739_v33, 0 }
 0x56e   : > { %3538 = vpow2.f32 %v1525_v50  ;;  %3152 = vmatpush3.bf16.xpose.msra.mxu1 %v1779_v63  ;;  %v1731_v2 = vpop.permute.xlu0 %1730 }
 0x570   : > { %v4511_v62 = vpop.eup %3534  ;;  %v1725_v49 = vpop.permute.xlu1 %1724 }
 0x572   : > { %v1735_v55 = vpop.permute.xlu0 %1734 }
 0x574   : > { %v1729_v9 = vpop.permute.xlu1 %1728 }
 0x576   : > { %v2032_v23 = vpop.permute.xlu0 %2031 }
 0x578   : > { %v1733_v60 = vpop.permute.xlu1 %1732 }
 0x57a   : > { %v4513_v18 = vpop.eup %3536  ;;  %v2028_v24 = vpop.permute.xlu0 %2027 }
 0x57b   : > { %v4515_v6 = vpop.eup %3538  ;;  %v1567_v58 = vpack.c.bf16 %v4513_v18, %v4509_v0 }
 0x57c   : > { %v1568_v30 = vpack.c.bf16 %v4511_v62, %v4515_v6  ;;  %v1737_v16 = vpop.permute.xlu1 %1736 }
 0x57d   : > { %3133 = vmatprep.mubr.bf16.mxu1 %v1567_v58 }
 0x57e   : > { %3134 = vmatmul.mubr.bf16.gmra.mxu1 %v1568_v30  ;;  %v2024_v63 = vpop.permute.xlu0 %2023 }
 0x57f   : > { %3153 = vmatprep.mubr.msk.bf16.mxu1 %vm395_vm0, %v1723_v40 }
 0x580   : > { %v2034_v15 = vpop.permute.xlu1 %2033 }
 0x581   : > { %3169 = vmatprep.subr.bf16.mxu0 %v2034_v15 }
 0x582   : > { %3170 = vmatpush3.bf16.msra.mxu0 %v2034_v15 }
 0x583   : > { %3171 = vmatprep.subr.bf16.mxu0 %v2032_v23 }
 0x584   : > { %v2030_v29 = vpop.permute.xlu1 %2029 }
 0x586   : > { %3154 = vmatmul.mubr.msk.bf16.vlgmr.msra.gmra.mxu1 %vm395_vm0, %v1725_v49  ;;  %3172 = vmatpush3.bf16.msra.mxu0 %v2032_v23 }
 0x587   : > { %3157 = vmatprep.mubr.msk.bf16.mxu1 %vm395_vm0, %v1727_v11  ;;  %3173 = vmatprep.subr.bf16.mxu0 %v2030_v29 }
 0x588   : > { %v2026_v42 = vpop.permute.xlu1 %2025 }
 0x58a   : > { %3174 = vmatpush3.bf16.msra.mxu0 %v2030_v29 }
 0x58b   : > { %3175 = vmatprep.subr.bf16.mxu0 %v2028_v24 }
 0x58e   : > { %3158 = vmatmul.mubr.msk.bf16.gmra.mxu1 %vm395_vm0, %v1729_v9  ;;  %3176 = vmatpush3.bf16.msra.mxu0 %v2028_v24 }
 0x58f   : > { %3161 = vmatprep.mubr.msk.bf16.mxu1 %vm395_vm0, %v1731_v2  ;;  %3177 = vmatprep.subr.bf16.mxu0 %v2026_v42 }
 0x592   : > { %3178 = vmatpush3.bf16.msra.mxu0 %v2026_v42 }
 0x593   : > { %3179 = vmatprep.subr.bf16.mxu0 %v2024_v63 }
 0x596   : > { %3162 = vmatmul.mubr.msk.bf16.gmra.mxu1 %vm395_vm0, %v1733_v60  ;;  %3180 = vmatpush3.bf16.msra.mxu0 %v2024_v63 }
 0x597   : > { %3165 = vmatprep.mubr.msk.bf16.mxu1 %vm395_vm0, %v1735_v55 }
 0x59e   : > { %3166 = vmatmul.mubr.msk.bf16.gmra.mxu1 %vm395_vm0, %v1737_v16 }
 0x5f1   : > { %v4529_v50 = vpop.f32.mrf.mxu1 }
 0x5f2   : > { %5025 = vst [vmem:[#allocation37_spill] sm:$0xff] %v4529_v50 }
 0x5f3   : > { %v4531_v54 = vpop.f32.mrf.mxu1 }
 0x5f5   : > { %v4533_v33 = vpop.f32.mrf.mxu1 }
 0x5f6   : > { %5026 = vst [vmem:[#allocation38_spill] sm:$0xff] %v4533_v33 }
 0x5f7   : > { %v4535_v58 = vpop.f32.mrf.mxu1 }
 0x5f8   : > { %5027 = vst [vmem:[#allocation39_spill] sm:$0xff] %v4535_v58  ;;  %v3714_v58 = vld [vmem:[%s3770_s23 + $0x4] ss:$8 sps:$4 sm:$0xff]  }
 0x5f9   : > { %v4537_v30 = vpop.f32.mrf.mxu1 }
 0x5fa   : > { %5028 = vst [vmem:[#allocation40_spill] sm:$0xff] %v4537_v30 }
 0x5fb   : > { %v4539_v40 = vpop.f32.mrf.mxu1 }
 0x5fc   : > { %5029 = vst [vmem:[#allocation41_spill] sm:$0xff] %v4539_v40 }
 0x5fd   : > { %v4541_v49 = vpop.f32.mrf.mxu1 }
 0x5fe   : > { %5030 = vst [vmem:[#allocation42_spill] sm:$0xff] %v4541_v49 }
 0x5ff   : > { %v4543_v11 = vpop.f32.mrf.mxu1 }
 0x600   : > { %5031 = vst [vmem:[#allocation43_spill] sm:$0xff] %v4543_v11 }
 0x609   : > { %v4545_v9 = vpop.f32.mrf.mxu1 }
 0x60a   : > { %5032 = vst [vmem:[#allocation44_spill] sm:$0xff] %v4545_v9 }
 0x60b   : > { %v4547_v2 = vpop.f32.mrf.mxu1 }
 0x60c   : > { %5033 = vst [vmem:[#allocation45_spill] sm:$0xff] %v4547_v2  ;;  %v3713_v2 = vld [vmem:[%s3770_s23 + $0x14] ss:$8 sps:$4 sm:$0xff]  }
 0x60d   : > { %v4549_v60 = vpop.f32.mrf.mxu1 }
 0x60e   : > { %5034 = vst [vmem:[#allocation46_spill] sm:$0xff] %v4549_v60 }
 0x60f   : > { %v4551_v55 = vpop.f32.mrf.mxu1 }
 0x610   : > { %5035 = vst [vmem:[#allocation47_spill] sm:$0xff] %v4551_v55 }
 0x63e   : > { %v4553_v16 = vpop.f32.mrf.mxu1 }
 0x63f   : > { %5036 = vst [vmem:[#allocation48_spill] sm:$0xff] %v4553_v16 }
 0x640   : > { %v4555_v15 = vpop.f32.mrf.mxu1 }
 0x641   : > { %5037 = vst [vmem:[#allocation49_spill] sm:$0xff] %v4555_v15 }
 0x642   : > { %v4557_v23 = vpop.f32.mrf.mxu1 }
 0x643   : > { %5038 = vst [vmem:[#allocation50_spill] sm:$0xff] %v4557_v23 }
 0x644   : > { %v4559_v29 = vpop.f32.mrf.mxu1 }
 0x645   : > { %5039 = vst [vmem:[#allocation51_spill] sm:$0xff] %v4559_v29 }
 0x646   : > { %v4561_v24 = vpop.f32.mrf.mxu1 }
 0x647   : > { %1903 = vmax.xlane.f32.xlu0 %v4561_v24 }
 0x648   : > { %v4564_v42 = vpop.f32.mrf.mxu1 }
 0x64a   : > { %v4566_v63 = vpop.f32.mrf.mxu1 }
 0x64b   : > { %1899 = vmax.xlane.f32.xlu0 %v4564_v42 }
 0x64c   : > { %v4569_v30 = vpop.f32.mrf.mxu1 }
 0x64d   : > { %1901 = vmax.xlane.f32.xlu1 %v4569_v30 }
 0x64e   : > { %v4572_v16 = vpop.f32.mrf.mxu1 }
 0x64f   : > { %1905 = vmax.xlane.f32.xlu0 %v4566_v63 }
 0x650   : > { %v4575_v23 = vpop.f32.mrf.mxu1 }
 0x651   : > { %1911 = vmax.xlane.f32.xlu1 %v4572_v16 }
 0x652   : > { %v4578_v49 = vpop.f32.mrf.mxu1 }
 0x653   : > { %1913 = vmax.xlane.f32.xlu0 %v4578_v49 }
 0x654   : > { %v4581_v29 = vpop.f32.mrf.mxu1 }
 0x655   : > { %1907 = vmax.xlane.f32.xlu1 %v4575_v23 }
 0x656   : > { %v4584_v15 = vpop.f32.mrf.mxu1 }
 0x657   : > { %1909 = vmax.xlane.f32.xlu0 %v4581_v29 }
 0x658   : > { %v4587_v11 = vpop.f32.mrf.mxu1 }
 0x659   : > { %1919 = vmax.xlane.f32.xlu1 %v4584_v15 }
 0x65a   : > { %v4590_v40 = vpop.f32.mrf.mxu1 }
 0x65b   : > { %1921 = vmax.xlane.f32.xlu0 %v4590_v40 }
 0x65c   : > { %v4593_v60 = vpop.f32.mrf.mxu1 }
 0x65d   : > { %1915 = vmax.xlane.f32.xlu1 %v4587_v11 }
 0x65e   : > { %v4596_v9 = vpop.f32.mrf.mxu1 }
 0x65f   : > { %1917 = vmax.xlane.f32.xlu0 %v4593_v60 }
 0x660   : > { %v4599_v33 = vpop.f32.mrf.mxu1 }
 0x661   : > { %1927 = vmax.xlane.f32.xlu1 %v4596_v9 }
 0x662   : > { %v4602_v50 = vpop.f32.mrf.mxu1 }
 0x663   : > { %1929 = vmax.xlane.f32.xlu0 %v4602_v50 }
 0x664   : > { %v4606_v55 = vpop.f32.mrf.mxu1 }
 0x665   : > { %1923 = vmax.xlane.f32.xlu1 %v4599_v33 }
 0x667   : > { %1925 = vmax.xlane.f32.xlu0 %v4606_v55 }
 0x676   : > { %2021 = vrot.lane.b32.xlu1 %v3713_v2, %s3725_s30 }
 0x67d   : > { %2019 = vrot.lane.b32.xlu0 %v3714_v58, %s3725_s30 }
 0x69a   : > { %1079 = vadd.xlane.f32.xlu1 %v4215_v21 }
 0x69c   : > { %1081 = vadd.xlane.f32.xlu0 %v4221_v51 }
 0x69e   : > { %1095 = vadd.xlane.f32.xlu1 %v4265_v1 }
 0x6a0   : > { %1097 = vadd.xlane.f32.xlu0 %v4271_v12 }
 0x6a2   : > { %1083 = vadd.xlane.f32.xlu1 %v4223_v48 }
 0x6a4   : > { %1085 = vadd.xlane.f32.xlu0 %v4219_v56 }
 0x6a6   : > { %1099 = vadd.xlane.f32.xlu1 %v4275_v3 }
 0x6a8   : > { %1101 = vadd.xlane.f32.xlu0 %v4267_v4 }
 0x6aa   : > { %1529 = vadd.xlane.f32.xlu1 %v4443_v13 }
 0x6ac   : > { %1531 = vadd.xlane.f32.xlu0 %v4447_v53 }
 0x6ae   : > { %1545 = vadd.xlane.f32.xlu1 %v4481_v61 }
 0x6b0   : > { %1547 = vadd.xlane.f32.xlu0 %v4487_v59 }
 0x6b2   : > { %1533 = vadd.xlane.f32.xlu1 %v4450_v27 }
 0x6b4   : > { %1535 = vadd.xlane.f32.xlu0 %v4445_v37 }
 0x6b6   : > { %1549 = vadd.xlane.f32.xlu1 %v4489_v20 }
 0x6b8   : > { %1551 = vadd.xlane.f32.xlu0 %v4483_v26 }
 0x6ba   : > { %1087 = vadd.xlane.f32.xlu1 %v4248_v34 }
 0x6bc   : > { %1089 = vadd.xlane.f32.xlu0 %v4253_v57 }
 0x6be   : > { %1103 = vadd.xlane.f32.xlu1 %v4289_v8 }
 0x6c0   : > { %1105 = vadd.xlane.f32.xlu0 %v4287_v14 }
 0x6c2   : > { %1091 = vadd.xlane.f32.xlu1 %v4255_v17 }
 0x6c4   : > { %1093 = vadd.xlane.f32.xlu0 %v4250_v25 }
 0x6c6   : > { %1107 = vadd.xlane.f32.xlu1 %v4295_v19 }
 0x6c8   : > { %1109 = vadd.xlane.f32.xlu0 %v4297_v36 }
 0x6ca   : > { %1537 = vadd.xlane.f32.xlu1 %v4458_v39 }
 0x6cc   : > { %1539 = vadd.xlane.f32.xlu0 %v4462_v10 }
 0x6ce   : > { %1553 = vadd.xlane.f32.xlu1 %v4509_v0 }
 0x6d0   : > { %v1904_v21 = vpop.xlane.xlu0 %1903  ;;  %1555 = vadd.xlane.f32.xlu0 %v4513_v18 }
 0x6d1   : > { %v1933_v57 = vsub.f32 %v4561_v24, %v1904_v21 }
 0x6d2   : > { %1541 = vadd.xlane.f32.xlu1 %v4464_v28 }
 0x6d3   : > { %v1951_v14 = vmul.f32 1.442695, %v1933_v57 }
 0x6d4   : > { %v1900_v56 = vpop.xlane.xlu0 %1899  ;;  %1543 = vadd.xlane.f32.xlu0 %v4471_v52 }
 0x6d5   : > { %v1931_v51 = vsub.f32 %v4564_v42, %v1900_v56 }
 0x6d6   : > { %1557 = vadd.xlane.f32.xlu1 %v4515_v6  ;;  %v1902_v48 = vpop.xlane.xlu1 %1901 }
 0x6d7   : > { %v1947_v34 = vmul.f32 1.442695, %v1931_v51  ;;  %v1932_v25 = vsub.f32 %v4569_v30, %v1902_v48 }
 0x6d8   : > { %v1906_v17 = vpop.xlane.xlu0 %1905  ;;  %1559 = vadd.xlane.f32.xlu0 %v4511_v62 }
 0x6d9   : > { %v1949_v1 = vmul.f32 1.442695, %v1932_v25  ;;  %v1934_v4 = vsub.f32 %v4566_v63, %v1906_v17  ;;  %3540 = vpow2.f32 %v1947_v34 }
 0x6da   : > { %621 = vadd.xlane.f32.xlu1 %v4017_v5  ;;  %v1912_v12 = vpop.xlane.xlu1 %1911 }
 0x6db   : > { %3542 = vpow2.f32 %v1949_v1  ;;  %v1953_v3 = vmul.f32 1.442695, %v1934_v4  ;;  %v1937_v13 = vsub.f32 %v4572_v16, %v1912_v12 }
 0x6dc   : > { %v1914_v8 = vpop.xlane.xlu0 %1913  ;;  %623 = vadd.xlane.f32.xlu0 %v4021_v31 }
 0x6dd   : > { %3544 = vpow2.f32 %v1953_v3  ;;  %v1938_v19 = vsub.f32 %v4578_v49, %v1914_v8  ;;  %v1959_v39 = vmul.f32 1.442695, %v1937_v13  ;;  %v5041_v13 = vld [vmem:[#allocation4_spill] sm:$0xff] }
 0x6de   : > { %637 = vadd.xlane.f32.xlu1 %v4065_v22  ;;  %v1908_v36 = vpop.xlane.xlu1 %1907  ;;  %3546 = vpow2.f32 %v1951_v14 }
 0x6df   : > { %v1961_v5 = vmul.f32 1.442695, %v1938_v19  ;;  %v1935_v31 = vsub.f32 %v4575_v23, %v1908_v36  ;;  %v5040_v36 = vld [vmem:[#allocation2_spill] sm:$0xff] }
 0x6e0   : > { %v1910_v37 = vpop.xlane.xlu0 %1909  ;;  %639 = vadd.xlane.f32.xlu0 %v4063_v43 }
 0x6e1   : > { %v1936_v53 = vsub.f32 %v4581_v29, %v1910_v37  ;;  %3548 = vpow2.f32 %v1961_v5  ;;  %v1955_v26 = vmul.f32 1.442695, %v1935_v31  ;;  %v5042_v37 = vld [vmem:[#allocation3_spill] sm:$0xff] }
 0x6e2   : > { %625 = vadd.xlane.f32.xlu1 %v4023_v32  ;;  %v1920_v27 = vpop.xlane.xlu1 %1919  ;;  %3550 = vpow2.f32 %v1959_v39 }
 0x6e3   : > { %v1957_v22 = vmul.f32 1.442695, %v1936_v53  ;;  %v1941_v32 = vsub.f32 %v4584_v15, %v1920_v27 }
 0x6e4   : > { %v1922_v10 = vpop.xlane.xlu0 %1921  ;;  %627 = vadd.xlane.f32.xlu0 %v4019_v7 }
 0x6e5   : > { %v1942_v28 = vsub.f32 %v4590_v40, %v1922_v10  ;;  %3552 = vpow2.f32 %v1957_v22 }
 0x6e6   : > { %641 = vadd.xlane.f32.xlu1 %v4072_v45  ;;  %v1916_v52 = vpop.xlane.xlu1 %1915  ;;  %v3541_v43 = vpop.eup %3540  ;;  %3554 = vpow2.f32 %v1955_v26  ;;  %v1967_v45 = vmul.f32 1.442695, %v1941_v32 }
 0x6e7   : > { %v1969_v7 = vmul.f32 1.442695, %v1942_v28  ;;  %v1939_v6 = vsub.f32 %v4587_v11, %v1916_v52  ;;  %v5043_v28 = vld [vmem:[#allocation22_spill] sm:$0xff] }
 0x6e8   : > { %v3543_v61 = vpop.eup %3542  ;;  %v1918_v59 = vpop.xlane.xlu0 %1917  ;;  %643 = vadd.xlane.f32.xlu0 %v4074_v46 }
 0x6e9   : > { %v2011_v20 = vpack.c.bf16 %v3543_v61, %v3541_v43  ;;  %v1940_v62 = vsub.f32 %v4593_v60, %v1918_v59  ;;  %3556 = vpow2.f32 %v1969_v7  ;;  %v1963_v2 = vmul.f32 1.442695, %v1939_v6  ;;  %v5045_v7 = vld [vmem:[#allocation30_spill] sm:$0xff] }
 0x6ea   : > { %v3545_v0 = vpop.eup %3544  ;;  %629 = vadd.xlane.f32.xlu1 %v4032_v35  ;;  %v1928_v18 = vpop.xlane.xlu1 %1927  ;;  %3558 = vpow2.f32 %v1967_v45 }
 0x6eb   : > { %3185 = vmatprep.mubr.bf16.mxu0 %v2011_v20  ;;  %v3547_v30 = vpop.eup %3546  ;;  %v1965_v40 = vmul.f32 1.442695, %v1940_v62  ;;  %v1945_v60 = vsub.f32 %v4596_v9, %v1928_v18  ;;  %v5046_v18 = vld [vmem:[#allocation32_spill] sm:$0xff] }
 0x6ec   : > { %v1930_v58 = vpop.xlane.xlu0 %1929  ;;  %1985 = vadd.xlane.f32.xlu0 %v3545_v0  ;;  %v2012_v56 = vpack.c.bf16 %v3545_v0, %v3547_v30 }
 0x6ed   : > { %v1946_v46 = vsub.f32 %v4602_v50, %v1930_v58  ;;  %3560 = vpow2.f32 %v1965_v40  ;;  %v1975_v29 = vmul.f32 1.442695, %v1945_v60  ;;  %v5048_v60 = vld [vmem:[#allocation23_spill] sm:$0xff] }
 0x6ee   : > { %1983 = vadd.xlane.f32.xlu1 %v3547_v30  ;;  %v1924_v49 = vpop.xlane.xlu1 %1923  ;;  %v3549_v23 = vpop.eup %3548  ;;  %3562 = vpow2.f32 %v1963_v2 }
 0x6ef   : > { %v1977_v16 = vmul.f32 1.442695, %v1946_v46  ;;  %v1943_v50 = vsub.f32 %v4599_v33, %v1924_v49  ;;  %v3551_v42 = vpop.eup %3550  ;;  %v5047_v49 = vld [vmem:[#allocation21_spill] sm:$0xff] }
 0x6f0   : > { %v1926_v35 = vpop.xlane.xlu0 %1925  ;;  %1981 = vadd.xlane.f32.xlu0 %v3543_v61  ;;  %v2014_v57 = vpack.c.bf16 %v3549_v23, %v3551_v42 }
 0x6f1   : > { %v1944_v15 = vsub.f32 %v4606_v55, %v1926_v35  ;;  %3564 = vpow2.f32 %v1977_v16  ;;  %v1971_v21 = vmul.f32 1.442695, %v1943_v50  ;;  %v5049_v50 = vld [vmem:[#allocation29_spill] sm:$0xff] }
 0x6f2   : > { %1979 = vadd.xlane.f32.xlu1 %v3541_v43  ;;  %v2022_v11 = vpop.permute.xlu1 %2021  ;;  %v3553_v63 = vpop.eup %3552  ;;  %3566 = vpow2.f32 %v1975_v29  ;;  %v5044_v43 = vld [vmem:[#allocation24_spill] sm:$0xff] }
 0x6f3   : > { %3181 = vmatprep.subr.bf16.mxu0 %v2022_v11  ;;  %v1973_v9 = vmul.f32 1.442695, %v1944_v15  ;;  %v3555_v55 = vpop.eup %3554 }
 0x6f4   : > { %1993 = vadd.xlane.f32.xlu0 %v3549_v23  ;;  %3182 = vmatpush3.bf16.msra.mxu0 %v2022_v11  ;;  %v2020_v24 = vpop.permute.xlu0 %2019  ;;  %v2013_v51 = vpack.c.bf16 %v3553_v63, %v3555_v55 }
 0x6f5   : > { %3183 = vmatprep.subr.bf16.mxu0 %v2020_v24  ;;  %3568 = vpow2.f32 %v1973_v9 }
 0x6f6   : > { %1991 = vadd.xlane.f32.xlu1 %v3551_v42  ;;  %v3557_v48 = vpop.eup %3556  ;;  %3570 = vpow2.f32 %v1971_v21  ;;  %v5050_v42 = vld [vmem:[#allocation31_spill] sm:$0xff] }
 0x6f7   : > { %v3559_v33 = vpop.eup %3558 }
 0x6f8   : > { %1989 = vadd.xlane.f32.xlu0 %v3553_v63  ;;  %3184 = vmatpush3.bf16.msra.mxu0 %v2020_v24  ;;  %v2016_v14 = vpack.c.bf16 %v3557_v48, %v3559_v33 }
 0x6fa   : > { %1987 = vadd.xlane.f32.xlu1 %v3555_v55  ;;  %v3561_v34 = vpop.eup %3560 }
 0x6fb   : > { %3186 = vmatmul.mubr.bf16.vlgmr.msra.gmra.mxu0 %v2012_v56  ;;  %v3563_v25 = vpop.eup %3562 }
 0x6fc   : > { %2001 = vadd.xlane.f32.xlu0 %v3557_v48  ;;  %3189 = vmatprep.mubr.bf16.mxu0 %v2013_v51  ;;  %v2015_v17 = vpack.c.bf16 %v3561_v34, %v3563_v25 }
 0x6fe   : > { %1999 = vadd.xlane.f32.xlu1 %v3559_v33  ;;  %v3565_v1 = vpop.eup %3564  ;;  %v5051_v33 = vld [vmem:[#allocation39_spill] sm:$0xff] }
 0x6ff   : > { %v3567_v4 = vpop.eup %3566 }
 0x700   : > { %1997 = vadd.xlane.f32.xlu0 %v3561_v34  ;;  %v2018_v19 = vpack.c.bf16 %v3565_v1, %v3567_v4 }
 0x702   : > { %1995 = vadd.xlane.f32.xlu1 %v3563_v25  ;;  %v3569_v12 = vpop.eup %3568 }
 0x703   : > { %3190 = vmatmul.mubr.bf16.gmra.mxu0 %v2014_v57  ;;  %v3571_v3 = vpop.eup %3570 }
 0x704   : > { %2009 = vadd.xlane.f32.xlu0 %v3565_v1  ;;  %3193 = vmatprep.mubr.bf16.mxu0 %v2015_v17  ;;  %v2017_v8 = vpack.c.bf16 %v3569_v12, %v3571_v3 }
 0x706   : > { %2007 = vadd.xlane.f32.xlu1 %v3567_v4 }
 0x708   : > { %2005 = vadd.xlane.f32.xlu0 %v3569_v12  ;;  %v5052_v12 = vld [vmem:[#allocation45_spill] sm:$0xff] }
 0x70a   : > { %2003 = vadd.xlane.f32.xlu1 %v3571_v3 }
 0x70b   : > { %3194 = vmatmul.mubr.bf16.gmra.mxu0 %v2016_v14  ;;  %v5053_v14 = vld [vmem:[#allocation47_spill] sm:$0xff] }
 0x70c   : > { %631 = vadd.xlane.f32.xlu0 %v4037_v38  ;;  %3197 = vmatprep.mubr.bf16.mxu0 %v2017_v8 }
 0x70e   : > { %645 = vadd.xlane.f32.xlu1 %v4076_v47 }
 0x710   : > { %647 = vadd.xlane.f32.xlu0 %v4070_v44 }
 0x712   : > { %633 = vadd.xlane.f32.xlu1 %v4040_v41 }
 0x713   : > { %3198 = vmatmul.mubr.bf16.gmra.mxu0 %v2018_v19 }
 0x714   : > { %635 = vadd.xlane.f32.xlu0 %v5040_v36 }
 0x716   : > { %649 = vadd.xlane.f32.xlu1 %v5041_v13 }
 0x718   : > { %651 = vadd.xlane.f32.xlu0 %v5042_v37 }
 0x723   : > { %v1080_v5 = vpop.xlane.xlu1 %1079 }
 0x724   : > { %3572 = vrcp.f32 %v1080_v5  ;;  %v5054_v5 = vld [vmem:[#allocation37_spill] sm:$0xff] }
 0x725   : > { %v1082_v53 = vpop.xlane.xlu0 %1081 }
 0x726   : > { %3574 = vrcp.f32 %v1082_v53 }
 0x727   : > { %v1096_v38 = vpop.xlane.xlu1 %1095 }
 0x728   : > { %3576 = vrcp.f32 %v1096_v38  ;;  %v5055_v38 = vld [vmem:[#allocation38_spill] sm:$0xff] }
 0x729   : > { %v1098_v27 = vpop.xlane.xlu0 %1097 }
 0x72a   : > { %3578 = vrcp.f32 %v1098_v27 }
 0x72b   : > { %v1084_v47 = vpop.xlane.xlu1 %1083 }
 0x72c   : > { %3580 = vrcp.f32 %v1084_v47 }
 0x72d   : > { %v1086_v44 = vpop.xlane.xlu0 %1085 }
 0x72e   : > { %3582 = vrcp.f32 %v1086_v44 }
 0x72f   : > { %v1100_v41 = vpop.xlane.xlu1 %1099 }
 0x730   : > { %3584 = vrcp.f32 %v1100_v41 }
 0x731   : > { %v3573_v39 = vpop.eup %3572  ;;  %v1102_v31 = vpop.xlane.xlu0 %1101 }
 0x732   : > { %3586 = vrcp.f32 %v1102_v31  ;;  %v1256_v52 = vmul.f32 %v3573_v39, %v5043_v28  ;;  %v5057_v28 = vld [vmem:[#allocation46_spill] sm:$0xff] }
 0x733   : > { %v3575_v10 = vpop.eup %3574  ;;  %v1530_v22 = vpop.xlane.xlu1 %1529 }
 0x734   : > { %3588 = vrcp.f32 %v1530_v22  ;;  %v1257_v61 = vmul.f32 %v3575_v10, %v5044_v43  ;;  %v5056_v10 = vld [vmem:[#allocation44_spill] sm:$0xff] }
 0x735   : > { %v3577_v26 = vpop.eup %3576  ;;  %v1532_v32 = vpop.xlane.xlu0 %1531 }
 0x736   : > { %3590 = vrcp.f32 %v1532_v32  ;;  %v3292_v59 = vpack.i.bf16 %v1257_v61, %v1256_v52  ;;  %v1264_v62 = vmul.f32 %v3577_v26, %v5045_v7  ;;  %v5059_v7 = vld [vmem:[#allocation28_spill] sm:$0xff] }
 0x737   : > { %v3579_v20 = vpop.eup %3578  ;;  %v1546_v0 = vpop.xlane.xlu1 %1545 }
 0x738   : > { %3592 = vrcp.f32 %v1546_v0  ;;  %3293 = vrot.lane.b32.xlu1 %v3292_v59, %s3725_s30  ;;  %v1265_v45 = vmul.f32 %v3579_v20, %v5046_v18  ;;  %v5058_v20 = vld [vmem:[#allocation26_spill] sm:$0xff] }
 0x739   : > { %v3581_v6 = vpop.eup %3580  ;;  %v1548_v58 = vpop.xlane.xlu0 %1547 }
 0x73a   : > { %3594 = vrcp.f32 %v1548_v58  ;;  %v3297_v30 = vpack.i.bf16 %v1265_v45, %v1264_v62  ;;  %v1258_v2 = vmul.f32 %v3581_v6, %v5047_v49  ;;  %v5061_v49 = vld [vmem:[#allocation36_spill] sm:$0xff] }
 0x73b   : > { %v3583_v40 = vpop.eup %3582  ;;  %v1534_v46 = vpop.xlane.xlu1 %1533 }
 0x73c   : > { %3596 = vrcp.f32 %v1534_v46  ;;  %3298 = vrot.lane.b32.xlu0 %v3297_v30, %s3725_s30  ;;  %v1259_v35 = vmul.f32 %v3583_v40, %v5048_v60  ;;  %v5060_v40 = vld [vmem:[#allocation34_spill] sm:$0xff] }
 0x73d   : > { %v3585_v16 = vpop.eup %3584  ;;  %v1536_v15 = vpop.xlane.xlu0 %1535 }
 0x73e   : > { %3598 = vrcp.f32 %v1536_v15  ;;  %v3302_v11 = vpack.i.bf16 %v1259_v35, %v1258_v2  ;;  %v1266_v24 = vmul.f32 %v3585_v16, %v5049_v50 }
 0x73f   : > { %v3587_v23 = vpop.eup %3586  ;;  %v1550_v29 = vpop.xlane.xlu1 %1549 }
 0x740   : > { %3600 = vrcp.f32 %v1550_v29  ;;  %3303 = vrot.lane.b32.xlu1 %v3302_v11, %s3725_s30  ;;  %v1267_v9 = vmul.f32 %v3587_v23, %v5050_v42  ;;  %v5062_v11 = vld [vmem:[#allocation25_spill] sm:$0xff]  ;;  %v5063_v29 = vld [vmem:[#allocation27_spill] sm:$0xff] }
 0x741   : > { %v3589_v63 = vpop.eup %3588  ;;  %v1552_v21 = vpop.xlane.xlu0 %1551 }
 0x742   : > { %3602 = vrcp.f32 %v1552_v21  ;;  %v3307_v55 = vpack.i.bf16 %v1267_v9, %v1266_v24  ;;  %v1706_v48 = vmul.f32 %v3589_v63, %v4531_v54  ;;  %v5064_v63 = vld [vmem:[#allocation33_spill] sm:$0xff] }
 0x743   : > { %v3591_v56 = vpop.eup %3590  ;;  %v1088_v51 = vpop.xlane.xlu1 %1087 }
 0x744   : > { %3604 = vrcp.f32 %v1088_v51  ;;  %3308 = vrot.lane.b32.xlu1 %v3307_v55, %s3725_s30  ;;  %v1707_v34 = vmul.f32 %v3591_v56, %v5051_v33  ;;  %v5065_v55 = vld [vmem:[#allocation35_spill] sm:$0xff] }
 0x745   : > { %v3593_v25 = vpop.eup %3592  ;;  %v1090_v57 = vpop.xlane.xlu0 %1089 }
 0x746   : > { %3606 = vrcp.f32 %v1090_v57  ;;  %v3312_v17 = vpack.i.bf16 %v1707_v34, %v1706_v48  ;;  %v1714_v3 = vmul.f32 %v3593_v25, %v5052_v12  ;;  %v5066_v34 = vld [vmem:[#allocation41_spill] sm:$0xff]  ;;  %v5067_v57 = vld [vmem:[#allocation43_spill] sm:$0xff] }
 0x747   : > { %v3595_v1 = vpop.eup %3594  ;;  %v1104_v4 = vpop.xlane.xlu1 %1103 }
 0x748   : > { %3608 = vrcp.f32 %v1104_v4  ;;  %3313 = vrot.lane.b32.xlu0 %v3312_v17, %s3724_s29  ;;  %v1715_v8 = vmul.f32 %v3595_v1, %v5053_v14  ;;  %v3436_v1 = vld [vmem:[%s4984_s3 + $0x38] sm:$0xff]   ;;  %v3437_v4 = vld [vmem:[%s4984_s3 + $0x30] sm:$0xff]  }
 0x749   : > { %v3597_v19 = vpop.eup %3596  ;;  %v1106_v36 = vpop.xlane.xlu0 %1105  ;;  %3201 = vmatprep.subr.bf16.mxu0 %v3436_v1  ;;  %3233 = vmatprep.subr.bf16.mxu1 %v3436_v1 }
 0x74a   : > { %3610 = vrcp.f32 %v1106_v36  ;;  %v3317_v13 = vpack.i.bf16 %v1715_v8, %v1714_v3  ;;  %v1708_v53 = vmul.f32 %v3597_v19, %v5054_v5  ;;  %3202 = vmatpush3.bf16.msra.mxu0 %v3436_v1  ;;  %3241 = vmatpush3.bf16.msra.mxu1 %v3436_v1  ;;  %v5068_v8 = vld [vmem:[#allocation49_spill] sm:$0xff]  ;;  %v5069_v36 = vld [vmem:[#allocation51_spill] sm:$0xff]  ;;  %v3439_v5 = vld [vmem:[%s4984_s3 + $0x20] sm:$0xff]  }
 0x74b   : > { %v3599_v54 = vpop.eup %3598  ;;  %v1092_v37 = vpop.xlane.xlu1 %1091  ;;  %3203 = vmatprep.subr.bf16.mxu0 %v3437_v4  ;;  %3234 = vmatprep.subr.bf16.mxu1 %v3437_v4  ;;  %v5071_v1 = vld [vmem:[#allocation40_spill] sm:$0xff] }
 0x74c   : > { %3612 = vrcp.f32 %v1092_v37  ;;  %3318 = vrot.lane.b32.xlu1 %v3317_v13, %s3724_s29  ;;  %v1709_v27 = vmul.f32 %v3599_v54, %v5055_v38  ;;  %v3438_v54 = vld [vmem:[%s4984_s3 + $0x28] sm:$0xff]   ;;  %v3441_v38 = vld [vmem:[%s4984_s3 + $0x10] sm:$0xff]  }
 0x74d   : > { %v3601_v47 = vpop.eup %3600  ;;  %v1094_v44 = vpop.xlane.xlu0 %1093 }
 0x74e   : > { %3614 = vrcp.f32 %v1094_v44  ;;  %v3322_v41 = vpack.i.bf16 %v1709_v27, %v1708_v53  ;;  %v1716_v22 = vmul.f32 %v3601_v47, %v5056_v10  ;;  %3204 = vmatpush3.bf16.msra.mxu0 %v3437_v4  ;;  %3242 = vmatpush3.bf16.msra.mxu1 %v3437_v4  ;;  %v3440_v53 = vld [vmem:[%s4984_s3 + $0x18] sm:$0xff]  }
 0x74f   : > { %v3603_v39 = vpop.eup %3602  ;;  %v1108_v31 = vpop.xlane.xlu1 %1107  ;;  %3205 = vmatprep.subr.bf16.mxu0 %v3438_v54  ;;  %3235 = vmatprep.subr.bf16.mxu1 %v3438_v54 }
 0x750   : > { %3616 = vrcp.f32 %v1108_v31  ;;  %3323 = vrot.lane.b32.xlu0 %v3322_v41, %s3724_s29  ;;  %v1717_v52 = vmul.f32 %v3603_v39, %v5057_v28 }
 0x751   : > { %v3605_v43 = vpop.eup %3604  ;;  %v1110_v61 = vpop.xlane.xlu0 %1109 }
 0x752   : > { %3618 = vrcp.f32 %v1110_v61  ;;  %v3327_v26 = vpack.i.bf16 %v1717_v52, %v1716_v22  ;;  %v1260_v0 = vmul.f32 %v3605_v43, %v5058_v20  ;;  %3206 = vmatpush3.bf16.msra.mxu0 %v3438_v54  ;;  %3243 = vmatpush3.bf16.msra.mxu1 %v3438_v54 }
 0x753   : > { %v3607_v32 = vpop.eup %3606  ;;  %v1538_v59 = vpop.xlane.xlu1 %1537  ;;  %3207 = vmatprep.subr.bf16.mxu0 %v3439_v5  ;;  %3236 = vmatprep.subr.bf16.mxu1 %v3439_v5 }
 0x754   : > { %3620 = vrcp.f32 %v1538_v59  ;;  %3328 = vrot.lane.b32.xlu1 %v3327_v26, %s3724_s29  ;;  %v1261_v62 = vmul.f32 %v3607_v32, %v5059_v7 }
 0x755   : > { %v3609_v18 = vpop.eup %3608  ;;  %v1540_v45 = vpop.xlane.xlu0 %1539 }
 0x756   : > { %3622 = vrcp.f32 %v1540_v45  ;;  %v3332_v6 = vpack.i.bf16 %v1261_v62, %v1260_v0  ;;  %v1268_v46 = vmul.f32 %v3609_v18, %v5060_v40  ;;  %3208 = vmatpush3.bf16.msra.mxu0 %v3439_v5  ;;  %3244 = vmatpush3.bf16.msra.mxu1 %v3439_v5 }
 0x757   : > { %v3611_v58 = vpop.eup %3610  ;;  %v1554_v30 = vpop.xlane.xlu1 %1553  ;;  %3209 = vmatprep.subr.bf16.mxu0 %v3440_v53  ;;  %3237 = vmatprep.subr.bf16.mxu1 %v3440_v53 }
 0x758   : > { %3624 = vrcp.f32 %v1554_v30  ;;  %3333 = vrot.lane.b32.xlu0 %v3332_v6, %s3725_s30  ;;  %v1269_v2 = vmul.f32 %v3611_v58, %v5061_v49  ;;  %v3442_v30 = vld [vmem:[%s4984_s3 + $0x8] sm:$0xff]  }
 0x759   : > { %v3613_v60 = vpop.eup %3612  ;;  %v1556_v35 = vpop.xlane.xlu0 %1555 }
 0x75a   : > { %3626 = vrcp.f32 %v1556_v35  ;;  %v3337_v16 = vpack.i.bf16 %v1269_v2, %v1268_v46  ;;  %v1262_v23 = vmul.f32 %v3613_v60, %v5062_v11  ;;  %3210 = vmatpush3.bf16.msra.mxu0 %v3440_v53  ;;  %3245 = vmatpush3.bf16.msra.mxu1 %v3440_v53  ;;  %v3443_v46 = vld [vmem:[%s4984_s3] sm:$0xff]  }
 0x75b   : > { %v3615_v15 = vpop.eup %3614  ;;  %v1542_v27 = vpop.xlane.xlu1 %1541  ;;  %3211 = vmatprep.subr.bf16.mxu0 %v3441_v38  ;;  %3238 = vmatprep.subr.bf16.mxu1 %v3441_v38 }
 0x75c   : > { %3338 = vrot.lane.b32.xlu1 %v3337_v16, %s3725_s30  ;;  %v1263_v50 = vmul.f32 %v3615_v15, %v5063_v29 }
 0x75d   : > { %v3617_v24 = vpop.eup %3616  ;;  %v1544_v47 = vpop.xlane.xlu0 %1543 }
 0x75e   : > { %v3342_v42 = vpack.i.bf16 %v1263_v50, %v1262_v23  ;;  %v1270_v21 = vmul.f32 %v3617_v24, %v5064_v63  ;;  %3212 = vmatpush3.bf16.msra.mxu0 %v3441_v38  ;;  %3246 = vmatpush3.bf16.msra.mxu1 %v3441_v38 }
 0x75f   : > { %v3619_v9 = vpop.eup %3618  ;;  %v4737_v44 = vpop.xlane.xlu1 %1557  ;;  %3213 = vmatprep.subr.bf16.mxu0 %v3442_v30  ;;  %3239 = vmatprep.subr.bf16.mxu1 %v3442_v30 }
 0x760   : > { %3343 = vrot.lane.b32.xlu0 %v3342_v42, %s3725_s30  ;;  %v1271_v56 = vmul.f32 %v3619_v9, %v5065_v55 }
 0x761   : > { %v3621_v51 = vpop.eup %3620  ;;  %v1560_v41 = vpop.xlane.xlu0 %1559 }
 0x762   : > { %v3347_v48 = vpack.i.bf16 %v1271_v56, %v1270_v21  ;;  %v1710_v25 = vmul.f32 %v3621_v51, %v5066_v34  ;;  %3214 = vmatpush3.bf16.msra.mxu0 %v3442_v30  ;;  %3247 = vmatpush3.bf16.msra.mxu1 %v3442_v30 }
 0x763   : > { %v3623_v33 = vpop.eup %3622  ;;  %v4739_v39 = vpop.xlane.xlu1 %621  ;;  %3215 = vmatprep.subr.bf16.mxu0 %v3443_v46  ;;  %3240 = vmatprep.subr.bf16.mxu1 %v3443_v46 }
 0x764   : > { %3348 = vrot.lane.b32.xlu1 %v3347_v48, %s3725_s30  ;;  %v1711_v17 = vmul.f32 %v3623_v33, %v5067_v57 }
 0x765   : > { %v3625_v12 = vpop.eup %3624  ;;  %v4741_v31 = vpop.xlane.xlu0 %623 }
 0x766   : > { %v3352_v3 = vpack.i.bf16 %v1711_v17, %v1710_v25  ;;  %v1718_v19 = vmul.f32 %v3625_v12, %v5068_v8  ;;  %3216 = vmatpush3.bf16.msra.mxu0 %v3443_v46  ;;  %3248 = vmatpush3.bf16.msra.mxu1 %v3443_v46  ;;  %v5070_v25 = vld [vmem:[#allocation42_spill] sm:$0xff] }
 0x767   : > { %v3627_v14 = vpop.eup %3626  ;;  %v4743_v10 = vpop.xlane.xlu1 %637 }
 0x768   : > { %3353 = vrot.lane.b32.xlu0 %v3352_v3, %s3724_s29  ;;  %v1719_v13 = vmul.f32 %v3627_v14, %v5069_v36 }
 0x769   : > { %v4745_v22 = vpop.xlane.xlu0 %639 }
 0x76a   : > { %v3357_v37 = vpack.i.bf16 %v1719_v13, %v1718_v19 }
 0x76b   : > { %v4747_v28 = vpop.xlane.xlu1 %625 }
 0x76c   : > { %3358 = vrot.lane.b32.xlu1 %v3357_v37, %s3724_s29 }
 0x76d   : > { %v4749_v52 = vpop.xlane.xlu0 %627 }
 0x76f   : > { %v4751_v43 = vpop.xlane.xlu1 %641 }
 0x771   : > { %v4753_v61 = vpop.xlane.xlu0 %643 }
 0x773   : > { %v4755_v26 = vpop.xlane.xlu1 %629 }
 0x775   : > { %v1986_v32 = vpop.xlane.xlu0 %1985 }
 0x776   : > { %3628 = vrcp.f32 %v1986_v32 }
 0x777   : > { %v1984_v59 = vpop.xlane.xlu1 %1983 }
 0x778   : > { %3630 = vrcp.f32 %v1984_v59 }
 0x779   : > { %v1982_v20 = vpop.xlane.xlu0 %1981 }
 0x77a   : > { %3632 = vrcp.f32 %v1982_v20 }
 0x77b   : > { %v1980_v0 = vpop.xlane.xlu1 %1979  ;;  %3634 = vrcp.f32 %v1544_v47 }
 0x77c   : > { %3636 = vrcp.f32 %v1980_v0 }
 0x77d   : > { %v1994_v7 = vpop.xlane.xlu0 %1993  ;;  %3638 = vrcp.f32 %v1542_v27 }
 0x77f   : > { %v1992_v62 = vpop.xlane.xlu1 %1991 }
 0x781   : > { %v1990_v18 = vpop.xlane.xlu0 %1989 }
 0x782   : > { %3640 = vrcp.f32 %v1990_v18 }
 0x783   : > { %v1988_v45 = vpop.xlane.xlu1 %1987  ;;  %v3629_v60 = vpop.eup %3628 }
 0x784   : > { %3642 = vrcp.f32 %v1988_v45 }
 0x785   : > { %v2002_v6 = vpop.xlane.xlu0 %2001  ;;  %v3631_v35 = vpop.eup %3630  ;;  %3644 = vrcp.f32 %v1994_v7 }
 0x786   : > { %3646 = vrcp.f32 %v1992_v62 }
 0x787   : > { %v2000_v58 = vpop.xlane.xlu1 %1999  ;;  %v3633_v29 = vpop.eup %3632  ;;  %3648 = vrcp.f32 %v2002_v6 }
 0x788   : > { %v3635_v24 = vpop.eup %3634  ;;  %3650 = vrcp.f32 %v2000_v58 }
 0x789   : > { %v1998_v49 = vpop.xlane.xlu0 %1997  ;;  %v3637_v63 = vpop.eup %3636  ;;  %v1713_v57 = vmul.f32 %v3635_v24, %v5070_v25 }
 0x78a   : > { %3652 = vrcp.f32 %v1998_v49  ;;  %v3639_v51 = vpop.eup %3638 }
 0x78b   : > { %v1996_v16 = vpop.xlane.xlu1 %1995  ;;  %3654 = vrcp.f32 %v1560_v41  ;;  %v1712_v4 = vmul.f32 %v3639_v51, %v5071_v1 }
 0x78c   : > { %3656 = vrcp.f32 %v1996_v16 }
 0x78d   : > { %v2010_v21 = vpop.xlane.xlu0 %2009  ;;  %3658 = vrcp.f32 %v4737_v44  ;;  %v3372_v19 = vpack.i.bf16 %v1713_v57, %v1712_v4 }
 0x78f   : > { %v2008_v48 = vpop.xlane.xlu1 %2007  ;;  %v3641_v12 = vpop.eup %3640 }
 0x791   : > { %v2006_v3 = vpop.xlane.xlu0 %2005  ;;  %v3643_v36 = vpop.eup %3642 }
 0x792   : > { %v3645_v37 = vpop.eup %3644  ;;  %3660 = vrcp.f32 %v2006_v3 }
 0x793   : > { %v2004_v13 = vpop.xlane.xlu1 %2003  ;;  %v3647_v53 = vpop.eup %3646 }
 0x794   : > { %v3649_v27 = vpop.eup %3648  ;;  %3662 = vrcp.f32 %v2004_v13 }
 0x795   : > { %v3651_v41 = vpop.eup %3650  ;;  %3664 = vrcp.f32 %v2010_v21 }
 0x796   : > { %3666 = vrcp.f32 %v2008_v48 }
 0x797   : > { %v3653_v7 = vpop.eup %3652  ;;  %v4780_v57 = vpop.xlane.xlu1 %645  ;;  %3668 = vrcp.f32 %v4747_v28 }
 0x798   : > { %v3655_v18 = vpop.eup %3654  ;;  %3670 = vrcp.f32 %v4749_v52 }
 0x799   : > { %v3657_v30 = vpop.eup %3656  ;;  %3672 = vrcp.f32 %v4739_v39 }
 0x79a   : > { %v3659_v49 = vpop.eup %3658  ;;  %3674 = vrcp.f32 %v4741_v31 }
 0x79b   : > { %v634_v1 = vpop.xlane.xlu1 %633  ;;  %3676 = vrcp.f32 %v4743_v10 }
 0x79c   : > { %3678 = vrcp.f32 %v4745_v22 }
 0x79d   : > { %3680 = vrcp.f32 %v4751_v43 }
 0x79e   : > { %3682 = vrcp.f32 %v4753_v61 }
 0x79f   : > { %v4786_v3 = vpop.xlane.xlu1 %649  ;;  %3684 = vrcp.f32 %v4755_v26  ;;  %v5074_v26 = vld [vmem:[#allocation5_spill] sm:$0xff] }
 0x7bb   : > { %v3187_v40 = vpop.f32.mrf.mxu0 }
 0x7bc   : > { %v2158_v11 = vmul.f32 %v3631_v35, %v3187_v40  ;;  %v5072_v35 = vld [vmem:[#allocation50_spill] sm:$0xff] }
 0x7bd   : > { %v2077_v2 = vpop.f32.mrf.mxu0  ;;  %v1721_v16 = vmul.f32 %v3655_v18, %v5072_v35  ;;  %v5077_v35 = vld [vmem:[#allocation8_spill] sm:$0xff] }
 0x7be   : > { %v2156_v56 = vmul.f32 %v3637_v63, %v2077_v2 }
 0x7bf   : > { %v3188_v15 = vpop.f32.mrf.mxu0 }
 0x7c0   : > { %v2159_v23 = vmul.f32 %v3629_v60, %v3188_v15 }
 0x7c1   : > { %v2080_v50 = vpop.f32.mrf.mxu0 }
 0x7c2   : > { %v3362_v42 = vpack.i.bf16 %v2159_v23, %v2158_v11  ;;  %v2157_v9 = vmul.f32 %v3633_v29, %v2080_v50  ;;  %v5073_v11 = vld [vmem:[#allocation48_spill] sm:$0xff]  ;;  %v3661_v29 = vpop.eup %3660 }
 0x7c3   : > { %v3191_v55 = vpop.f32.mrf.mxu0  ;;  %v1720_v23 = vmul.f32 %v3659_v49, %v5073_v11 }
 0x7c4   : > { %3363 = vrot.lane.b32.xlu0 %v3362_v42, %s3723_s25  ;;  %v3367_v34 = vpack.i.bf16 %v2157_v9, %v2156_v56  ;;  %v2162_v59 = vmul.f32 %v3647_v53, %v3191_v55  ;;  %v3663_v9 = vpop.eup %3662 }
 0x7c5   : > { %v2093_v33 = vpop.f32.mrf.mxu0  ;;  %v3387_v42 = vpack.i.bf16 %v1721_v16, %v1720_v23  ;;  %v3665_v21 = vpop.eup %3664 }
 0x7c6   : > { %v2160_v5 = vmul.f32 %v3643_v36, %v2093_v33  ;;  %v3667_v51 = vpop.eup %3666 }
 0x7c7   : > { %v3192_v17 = vpop.f32.mrf.mxu0  ;;  %v3669_v39 = vpop.eup %3668 }
 0x7c8   : > { %3368 = vrot.lane.b32.xlu0 %v3367_v34, %s3723_s25  ;;  %v2163_v47 = vmul.f32 %v3645_v37, %v3192_v17  ;;  %v632_v34 = vpop.xlane.xlu0 %631  ;;  %v3671_v31 = vpop.eup %3670 }
 0x7c9   : > { %v2096_v14 = vpop.f32.mrf.mxu0  ;;  %3686 = vrcp.f32 %v632_v34  ;;  %v3673_v43 = vpop.eup %3672 }
 0x7ca   : > { %v2161_v8 = vmul.f32 %v3641_v12, %v2096_v14  ;;  %v3402_v45 = vpack.i.bf16 %v2163_v47, %v2162_v59  ;;  %3688 = vrcp.f32 %v634_v1  ;;  %v3675_v53 = vpop.eup %3674 }
 0x7cb   : > { %v3195_v54 = vpop.f32.mrf.mxu0  ;;  %v807_v16 = vmul.f32 %v3675_v53, %v5077_v35 }
 0x7cc   : > { %3373 = vrot.lane.b32.xlu0 %v3372_v19, %s3724_s29  ;;  %v3392_v44 = vpack.i.bf16 %v2161_v8, %v2160_v5  ;;  %v2166_v20 = vmul.f32 %v3651_v41, %v3195_v54  ;;  %v4778_v25 = vpop.xlane.xlu0 %647  ;;  %v3294_v8 = vpop.permute.xlu1 %3293 }
 0x7cd   : > { %v2109_v38 = vpop.f32.mrf.mxu0  ;;  %v3296_v41 = vunpack.i.h.bf16 %v3294_v8 }
 0x7ce   : > { %v2164_v46 = vmul.f32 %v3657_v30, %v2109_v38  ;;  %v808_v38 = vmul.f32 %v3669_v39, %v5074_v26  ;;  %v5083_v26 = vld [vmem:[#allocation12_spill] sm:$0xff] }
 0x7cf   : > { %v3196_v32 = vpop.f32.mrf.mxu0 }
 0x7d0   : > { %v2167_v0 = vmul.f32 %v3649_v27, %v3196_v32  ;;  %3393 = vrot.lane.b32.xlu0 %v3392_v44, %s3723_s25  ;;  %v636_v17 = vpop.xlane.xlu0 %635  ;;  %v3304_v36 = vpop.permute.xlu1 %3303  ;;  %v5075_v27 = vld [vmem:[#allocation7_spill] sm:$0xff]  ;;  %v3295_v32 = vunpack.i.l.bf16 %v3294_v8 }
 0x7d1   : > { %v2112_v62 = vpop.f32.mrf.mxu0  ;;  %3690 = vrcp.f32 %v636_v17  ;;  %v3306_v54 = vunpack.i.h.bf16 %v3304_v36  ;;  %v3305_v37 = vunpack.i.l.bf16 %v3304_v36  ;;  %v809_v47 = vmul.f32 %v3671_v31, %v5075_v27  ;;  %v3677_v44 = vpop.eup %3676  ;;  %v5080_v17 = vld [vmem:[#allocation13_spill] sm:$0xff] }
 0x7d2   : > { %v3377_v6 = vpack.i.bf16 %v2167_v0, %v2166_v20  ;;  %v2165_v58 = vmul.f32 %v3653_v7, %v2112_v62  ;;  %v3679_v0 = vpop.eup %3678  ;;  %3692 = vrcp.f32 %v4780_v57  ;;  %v5082_v57 = vld [vmem:[#allocation10_spill] sm:$0xff] }
 0x7d3   : > { %v3199_v40 = vpop.f32.mrf.mxu0  ;;  %v2367_v7 = vsel %vm395_vm0, %v809_v47, %v3306_v54  ;;  %v2366_v62 = vsel %vm395_vm0, %v808_v38, %v3305_v37  ;;  %3694 = vrcp.f32 %v4778_v25  ;;  %v5081_v54 = vld [vmem:[#allocation15_spill] sm:$0xff] }
 0x7d4   : > { %3403 = vrot.lane.b32.xlu0 %v3402_v45, %s3723_s25  ;;  %3378 = vrot.lane.b32.xlu1 %v3377_v6, %s3723_s25  ;;  %v3382_v60 = vpack.i.bf16 %v2165_v58, %v2164_v46  ;;  %v2170_v48 = vmul.f32 %v3667_v51, %v3199_v40  ;;  %v4782_v4 = vpop.xlane.xlu0 %651  ;;  %v4801_v28 = vpop.permute.xlu1 %3308  ;;  %3696 = vrcp.f32 %v4786_v3  ;;  %v5084_v47 = vld [vmem:[#allocation11_spill] sm:$0xff] }
 0x7d5   : > { %v2125_v2 = vpop.f32.mrf.mxu0  ;;  %v3681_v6 = vpop.eup %3680  ;;  %v3311_v36 = vunpack.i.h.bf16 %v4801_v28  ;;  %3698 = vrcp.f32 %v4782_v4 }
 0x7d6   : > { %v2168_v63 = vmul.f32 %v3663_v9, %v2125_v2  ;;  %v3683_v49 = vpop.eup %3682  ;;  %v5076_v2 = vld [vmem:[#allocation6_spill] sm:$0xff]  ;;  %v816_v1 = vmul.f32 %v3681_v6, %v5080_v17 }
 0x7d7   : > { %v3200_v15 = vpop.f32.mrf.mxu0  ;;  %v3685_v23 = vpop.eup %3684  ;;  %v817_v37 = vmul.f32 %v3683_v49, %v5081_v54 }
 0x7d8   : > { %3383 = vrot.lane.b32.xlu1 %v3382_v60, %s3723_s25  ;;  %v2171_v55 = vmul.f32 %v3665_v21, %v3200_v15  ;;  %v4784_v12 = vpop.permute.xlu0 %3298  ;;  %v4805_v10 = vpop.permute.xlu1 %3318  ;;  %v806_v60 = vmul.f32 %v3673_v43, %v5076_v2  ;;  %v810_v43 = vmul.f32 %v3685_v23, %v5082_v57 }
 0x7d9   : > { %v2128_v50 = vpop.f32.mrf.mxu0  ;;  %v2375_v4 = vsel %vm395_vm0, %v817_v37, %v3311_v36  ;;  %v3321_v35 = vunpack.i.h.bf16 %v4805_v10 }
 0x7da   : > { %v2169_v24 = vmul.f32 %v3661_v29, %v2128_v50  ;;  %v3407_v33 = vpack.i.bf16 %v2171_v55, %v2170_v48  ;;  %v5078_v29 = vld [vmem:[#allocation16_spill] sm:$0xff]  ;;  %v3687_v55 = vpop.eup %3686  ;;  %v2364_v51 = vsel %vm395_vm0, %v806_v60, %v3295_v32 }
 0x7db   : > { %v4824_v50 = vmul.f32 %v3679_v0, %v5078_v29  ;;  %v3689_v34 = vpop.eup %3688  ;;  %v811_v25 = vmul.f32 %v3687_v55, %v5083_v26  ;;  %v3301_v0 = vunpack.i.h.bf16 %v4784_v12 }
 0x7dc   : > { %3388 = vrot.lane.b32.xlu1 %v3387_v42, %s3724_s29  ;;  %v3397_v56 = vpack.i.bf16 %v2169_v24, %v2168_v63  ;;  %v4788_v14 = vpop.permute.xlu0 %3313  ;;  %v4811_v59 = vpop.permute.xlu1 %3328  ;;  %v5079_v24 = vld [vmem:[#allocation14_spill] sm:$0xff] }
 0x7dd   : > { %v3316_v58 = vunpack.i.h.bf16 %v4788_v14  ;;  %v3315_v30 = vunpack.i.l.bf16 %v4788_v14  ;;  %v4827_v42 = vmul.f32 %v3677_v44, %v5079_v24  ;;  %v2373_v57 = vsel %vm395_vm0, %v4824_v50, %v3301_v0 }
 0x7df   : > { %v2381_v14 = vsel %vm2380_vm1, %v2364_v51, %v3315_v30 }
 0x7e0   : > { %3398 = vrot.lane.b32.xlu1 %v3397_v56, %s3723_s25  ;;  %v3324_v19 = vpop.permute.xlu0 %3323  ;;  %v4829_v9 = vpop.permute.xlu1 %3338  ;;  %v2365_v56 = vsel %vm395_vm0, %v807_v16, %v3296_v41  ;;  %v5085_v41 = vld [vmem:[#allocation9_spill] sm:$0xff] }
 0x7e1   : > { %v3326_v5 = vunpack.i.h.bf16 %v3324_v19  ;;  %v3325_v61 = vunpack.i.l.bf16 %v3324_v19  ;;  %v2382_v8 = vsel %vm2380_vm1, %v2365_v56, %v3316_v58  ;;  %v3691_v19 = vpop.eup %3690  ;;  %v812_v3 = vmul.f32 %v3689_v34, %v5085_v41 }
 0x7e2   : > { %v813_v44 = vmul.f32 %v3691_v19, %v5084_v47  ;;  %v3340_v41 = vunpack.i.l.bf16 %v4829_v9 }
 0x7e3   : > { %v2383_v40 = vsel %vm2380_vm1, %v2366_v62, %v3325_v61  ;;  %v2384_v46 = vsel %vm2380_vm1, %v2367_v7, %v3326_v5  ;;  %v3300_v7 = vunpack.i.l.bf16 %v4784_v12  ;;  %v3310_v62 = vunpack.i.l.bf16 %v4801_v28 }
 0x7e4   : > { %3408 = vrot.lane.b32.xlu1 %v3407_v33, %s3723_s25  ;;  %v4796_v13 = vpop.permute.xlu0 %3333  ;;  %v4844_v5 = vpop.permute.xlu1 %3348 }
 0x7e5   : > { %v3336_v38 = vunpack.i.h.bf16 %v4796_v13  ;;  %v3335_v27 = vunpack.i.l.bf16 %v4796_v13  ;;  %v3331_v13 = vunpack.i.h.bf16 %v4811_v59 }
 0x7e7   : > { %v2369_v30 = vsel %vm395_vm0, %v811_v25, %v3336_v38  ;;  %v2368_v12 = vsel %vm395_vm0, %v810_v43, %v3335_v27  ;;  %v2372_v43 = vsel %vm395_vm0, %v4827_v42, %v3300_v7  ;;  %v2390_v25 = vsel %vm2380_vm1, %v2373_v57, %v3321_v35 }
 0x7e8   : > { %v4803_v52 = vpop.permute.xlu0 %3343  ;;  %v4862_v58 = vpop.permute.xlu1 %3358 }
 0x7e9   : > { %v3345_v6 = vunpack.i.l.bf16 %v4803_v52  ;;  %v3361_v7 = vunpack.i.h.bf16 %v4862_v58 }
 0x7eb   : > { %v2370_v23 = vsel %vm395_vm0, %v812_v3, %v3345_v6 }
 0x7ec   : > { %v4807_v22 = vpop.permute.xlu0 %3353 }
 0x7ed   : > { %v3356_v32 = vunpack.i.h.bf16 %v4807_v22 }
 0x7ef   : > { %v2386_v28 = vsel %vm2380_vm1, %v2369_v30, %v3356_v32  ;;  %v5086_v32 = vld [vmem:[#allocation18_spill] sm:$0xff] }
 0x836   : > { %v3364_v20 = vpop.permute.xlu0 %3363 }
 0x837   : > { %v3366_v18 = vunpack.i.h.bf16 %v3364_v20  ;;  %v3365_v45 = vunpack.i.l.bf16 %v3364_v20  ;;  %v3355_v20 = vunpack.i.l.bf16 %v4807_v22 }
 0x839   : > { %v2400_v15 = vsel %vm2397_vm2, %v2383_v40, %v3365_v45  ;;  %v2401_v11 = vsel %vm2397_vm2, %v2384_v46, %v3366_v18  ;;  %v3330_v18 = vunpack.i.l.bf16 %v4811_v59  ;;  %v3346_v45 = vunpack.i.h.bf16 %v4803_v52 }
 0x83a   : > { %v2415_v63 = vpack.c.bf16 %v2401_v11, %v2400_v15  ;;  %v3369_v21 = vpop.permute.xlu0 %3368  ;;  %v2385_v49 = vsel %vm2380_vm1, %v2368_v12, %v3355_v20  ;;  %v2374_v59 = vsel %vm395_vm0, %v816_v1, %v3310_v62  ;;  %v3320_v15 = vunpack.i.l.bf16 %v4805_v10  ;;  %v3693_v10 = vpop.eup %3692  ;;  %v5087_v20 = vld [vmem:[#allocation20_spill] sm:$0xff] }
 0x83b   : > { %v3371_v48 = vunpack.i.h.bf16 %v3369_v21  ;;  %v3370_v33 = vunpack.i.l.bf16 %v3369_v21  ;;  %v2371_v11 = vsel %vm395_vm0, %v813_v44, %v3346_v45  ;;  %v3695_v36 = vpop.eup %3694  ;;  %v3341_v44 = vunpack.i.h.bf16 %v4829_v9 }
 0x83c   : > { %v3697_v37 = vpop.eup %3696  ;;  %v2389_v38 = vsel %vm2380_vm1, %v2372_v43, %v3320_v15  ;;  %v818_v42 = vmul.f32 %v3693_v10, %v5086_v32  ;;  %v819_v0 = vmul.f32 %v3695_v36, %v5087_v20  ;;  %v3351_v45 = vunpack.i.h.bf16 %v4844_v5  ;;  %v2596_v43 = vld [vmem:[%s4917_s26 + $0x30] sm:$0xff]  ;;  %v2595_v20 = vld [vmem:[%s4917_s26 + $0x28] sm:$0xff] }
 0x83d   : > { %v2398_v39 = vsel %vm2397_vm2, %v2381_v14, %v3370_v33  ;;  %v2399_v31 = vsel %vm2397_vm2, %v2382_v8, %v3371_v48  ;;  %v2391_v48 = vsel %vm2380_vm1, %v2374_v59, %v3330_v18  ;;  %v2392_v33 = vsel %vm2380_vm1, %v2375_v4, %v3331_v13  ;;  %v3699_v26 = vpop.eup %3698 }
 0x83e   : > { %v3374_v61 = vpop.permute.xlu0 %3373  ;;  %v2414_v53 = vpack.c.bf16 %v2399_v31, %v2398_v39  ;;  %v3360_v4 = vunpack.i.l.bf16 %v4862_v58  ;;  %v2377_v62 = vsel %vm395_vm0, %v819_v0, %v3341_v44  ;;  %v2376_v13 = vsel %vm395_vm0, %v818_v42, %v3340_v41  ;;  %v5088_v58 = vld [vmem:[#allocation17_spill] sm:$0xff] }
 0x83f   : > { %v3376_v2 = vunpack.i.h.bf16 %v3374_v61  ;;  %v3375_v60 = vunpack.i.l.bf16 %v3374_v61  ;;  %v3350_v9 = vunpack.i.l.bf16 %v4844_v5  ;;  %v2394_v12 = vsel %vm2380_vm1, %v2377_v62, %v3361_v7  ;;  %v2598_v62 = vld [vmem:[%s4917_s26 + $0x40] sm:$0xff] }
 0x840   : > { %3217 = vmatprep.mubr.bf16.mxu0 %v2414_v53  ;;  %v2393_v30 = vsel %vm2380_vm1, %v2376_v13, %v3360_v4 }
 0x841   : > { %3218 = vmatmul.mubr.bf16.vlgmr.msra.gmra.mxu0 %v2415_v63  ;;  %v2388_v34 = vsel %vm2380_vm1, %v2371_v11, %v3376_v2  ;;  %v2387_v17 = vsel %vm2380_vm1, %v2370_v23, %v3375_v60 }
 0x842   : > { %v3394_v22 = vpop.permute.xlu0 %3393 }
 0x843   : > { %v3396_v40 = vunpack.i.h.bf16 %v3394_v22  ;;  %v3395_v46 = vunpack.i.l.bf16 %v3394_v22 }
 0x845   : > { %v2402_v52 = vsel %vm2397_vm2, %v2385_v49, %v3395_v46  ;;  %v2403_v16 = vsel %vm2397_vm2, %v2386_v28, %v3396_v40  ;;  %v820_v28 = vmul.f32 %v3697_v37, %v5088_v58  ;;  %v5089_v49 = vld [vmem:[#allocation19_spill] sm:$0xff] }
 0x846   : > { %v3404_v29 = vpop.permute.xlu0 %3403  ;;  %v3379_v24 = vpop.permute.xlu1 %3378  ;;  %v2416_v63 = vpack.c.bf16 %v2403_v16, %v2402_v52  ;;  %v821_v2 = vmul.f32 %v3699_v26, %v5089_v49  ;;  %v2594_v26 = vld [vmem:[%s4917_s26 + $0x20] sm:$0xff] }
 0x847   : > { %v3406_v21 = vunpack.i.h.bf16 %v3404_v29  ;;  %v3405_v55 = vunpack.i.l.bf16 %v3404_v29  ;;  %v3381_v56 = vunpack.i.h.bf16 %v3379_v24  ;;  %v3380_v51 = vunpack.i.l.bf16 %v3379_v24 }
 0x848   : > { %3221 = vmatprep.mubr.bf16.mxu0 %v2416_v63  ;;  %v2379_v5 = vsel %vm395_vm0, %v821_v2, %v3351_v45  ;;  %v2378_v16 = vsel %vm395_vm0, %v820_v28, %v3350_v9  ;;  %v2604_v2 = vld [vmem:[%s4917_s26 + $0x70] sm:$0xff] }
 0x849   : > { %v2408_v1 = vsel %vm2397_vm2, %v2391_v48, %v3380_v51  ;;  %v2409_v14 = vsel %vm2397_vm2, %v2392_v33, %v3381_v56  ;;  %v2404_v8 = vsel %vm2397_vm2, %v2387_v17, %v3405_v55  ;;  %v2405_v19 = vsel %vm2397_vm2, %v2388_v34, %v3406_v21  ;;  %v4922_v55 = vld [vmem:[%s4985_s4] ss:$0 sm:$0xff]  ;;  %v2592_v51 = vld [vmem:[%s4917_s26 + $0x10] sm:$0xff] }
 0x84a   : > { %v2419_v39 = vpack.c.bf16 %v2409_v14, %v2408_v1  ;;  %v3384_v31 = vpop.permute.xlu1 %3383  ;;  %v2417_v54 = vpack.c.bf16 %v2405_v19, %v2404_v8  ;;  %v2590_v34 = vld [vmem:[%s4917_s26] sm:$0xff]  ;;  %v2593_v14 = vld [vmem:[%s4917_s26 + $0x18] sm:$0xff] }
 0x84b   : > { %v3386_v61 = vunpack.i.h.bf16 %v3384_v31  ;;  %v3385_v53 = vunpack.i.l.bf16 %v3384_v31 }
 0x84c   : > { %3222 = vmatmul.mubr.bf16.gmra.mxu0 %v2417_v54 }
 0x84d   : > { %v2406_v27 = vsel %vm2397_vm2, %v2389_v38, %v3385_v53  ;;  %v2407_v47 = vsel %vm2397_vm2, %v2390_v25, %v3386_v61 }
 0x84e   : > { %v3389_v50 = vpop.permute.xlu1 %3388  ;;  %v2418_v3 = vpack.c.bf16 %v2407_v47, %v2406_v27  ;;  %v2597_v47 = vld [vmem:[%s4917_s26 + $0x38] sm:$0xff] }
 0x84f   : > { %v3391_v40 = vunpack.i.h.bf16 %v3389_v50  ;;  %v3390_v46 = vunpack.i.l.bf16 %v3389_v50 }
 0x850   : > { %3225 = vmatprep.mubr.bf16.mxu1 %v2418_v3  ;;  %v2600_v3 = vld [vmem:[%s4917_s26 + $0x50] sm:$0xff] }
 0x851   : > { %3226 = vmatmul.mubr.bf16.vlgmr.msra.gmra.mxu1 %v2419_v39  ;;  %v2395_v23 = vsel %vm2380_vm1, %v2378_v16, %v3390_v46  ;;  %v2396_v29 = vsel %vm2380_vm1, %v2379_v5, %v3391_v40  ;;  %v2591_v39 = vld [vmem:[%s4917_s26 + $0x8] sm:$0xff] }
 0x852   : > { %v3399_v18 = vpop.permute.xlu1 %3398  ;;  %v2599_v40 = vld [vmem:[%s4917_s26 + $0x48] sm:$0xff] }
 0x853   : > { %v3401_v6 = vunpack.i.h.bf16 %v3399_v18  ;;  %v3400_v22 = vunpack.i.l.bf16 %v3399_v18 }
 0x855   : > { %v2410_v60 = vsel %vm2397_vm2, %v2393_v30, %v3400_v22  ;;  %v2411_v59 = vsel %vm2397_vm2, %v2394_v12, %v3401_v6  ;;  %v2601_v6 = vld [vmem:[%s4917_s26 + $0x58] sm:$0xff] }
 0x856   : > { %v3409_v35 = vpop.permute.xlu1 %3408  ;;  %v2420_v52 = vpack.c.bf16 %v2411_v59, %v2410_v60 }
 0x857   : > { %v3411_v15 = vunpack.i.h.bf16 %v3409_v35  ;;  %v3410_v11 = vunpack.i.l.bf16 %v3409_v35  ;;  %v2602_v35 = vld [vmem:[%s4917_s26 + $0x60] sm:$0xff] }
 0x858   : > { %3229 = vmatprep.mubr.bf16.mxu1 %v2420_v52 }
 0x859   : > { %v2412_v24 = vsel %vm2397_vm2, %v2395_v23, %v3410_v11  ;;  %v2413_v63 = vsel %vm2397_vm2, %v2396_v29, %v3411_v15  ;;  %v2605_v15 = vld [vmem:[%s4917_s26 + $0x78] sm:$0xff] }
 0x85a   : > { %v2421_v21 = vpack.c.bf16 %v2413_v63, %v2412_v24  ;;  %v2603_v24 = vld [vmem:[%s4917_s26 + $0x68] sm:$0xff] }
 0x85c   : > { %3230 = vmatmul.mubr.bf16.gmra.mxu1 %v2421_v21 }
 0x901   : > { %v3219_v56 = vpop.f32.mrf.mxu0 }
 0x902   : > { %v2536_v48 = vadd.f32 %v3219_v56, %v4922_v55 }
 0x903   : > { %v2527_v33 = vpop.f32.mrf.mxu0 }
 0x904   : > { %v2608_v17 = vadd.f32 %v2592_v51, %v2536_v48  ;;  %v2528_v10 = vadd.f32 %v4922_v55, %v2527_v33 }
 0x905   : > { %v3220_v1 = vpop.f32.mrf.mxu0 }
 0x906   : > { %2624 = vst [vmem:[%s4930_s6 + $0x10] sm:$0xff] %v2608_v17  ;;  %v2606_v8 = vadd.f32 %v2590_v34, %v2528_v10  ;;  %v2539_v19 = vadd.f32 %v3220_v1, %v4922_v55 }
 0x907   : > { %v2530_v36 = vpop.f32.mrf.mxu0 }
 0x908   : > { %2622 = vst [vmem:[%s4930_s6] sm:$0xff] %v2606_v8  ;;  %v2609_v31 = vadd.f32 %v2593_v14, %v2539_v19  ;;  %v2531_v54 = vadd.f32 %v4922_v55, %v2530_v36 }
 0x90a   : > { %2625 = vst [vmem:[%s4930_s6 + $0x18] sm:$0xff] %v2609_v31  ;;  %v2607_v37 = vadd.f32 %v2591_v39, %v2531_v54 }
 0x90c   : > { %2623 = vst [vmem:[%s4930_s6 + $0x8] sm:$0xff] %v2607_v37  ;;  %v3223_v57 = vpop.f32.mrf.mxu0 }
 0x90d   : > { %v2552_v61 = vadd.f32 %v3223_v57, %v4922_v55 }
 0x90e   : > { %v2543_v53 = vpop.f32.mrf.mxu0 }
 0x90f   : > { %v2612_v25 = vadd.f32 %v2596_v43, %v2552_v61  ;;  %v2544_v38 = vadd.f32 %v4922_v55, %v2543_v53 }
 0x910   : > { %v3224_v27 = vpop.f32.mrf.mxu0 }
 0x911   : > { %2628 = vst [vmem:[%s4930_s6 + $0x30] sm:$0xff] %v2612_v25  ;;  %v2610_v44 = vadd.f32 %v2594_v26, %v2544_v38  ;;  %v2555_v41 = vadd.f32 %v3224_v27, %v4922_v55  ;;  %v3227_v50 = vpop.f32.mrf.mxu1 }
 0x912   : > { %v2568_v32 = vadd.f32 %v3227_v50, %v4922_v55  ;;  %v2546_v42 = vpop.f32.mrf.mxu0 }
 0x913   : > { %2626 = vst [vmem:[%s4930_s6 + $0x20] sm:$0xff] %v2610_v44  ;;  %v2613_v0 = vadd.f32 %v2597_v47, %v2555_v41  ;;  %v2547_v7 = vadd.f32 %v4922_v55, %v2546_v42  ;;  %v2559_v4 = vpop.f32.mrf.mxu1 }
 0x914   : > { %v2616_v13 = vadd.f32 %v2600_v3, %v2568_v32  ;;  %v2560_v18 = vadd.f32 %v4922_v55, %v2559_v4 }
 0x915   : > { %2629 = vst [vmem:[%s4930_s6 + $0x38] sm:$0xff] %v2613_v0  ;;  %v2611_v45 = vadd.f32 %v2595_v20, %v2547_v7  ;;  %v3228_v9 = vpop.f32.mrf.mxu1 }
 0x916   : > { %2632 = vst [vmem:[%s4930_s6 + $0x50] sm:$0xff] %v2616_v13  ;;  %v2614_v22 = vadd.f32 %v2598_v62, %v2560_v18  ;;  %v2571_v30 = vadd.f32 %v3228_v9, %v4922_v55 }
 0x917   : > { %2627 = vst [vmem:[%s4930_s6 + $0x28] sm:$0xff] %v2611_v45  ;;  %v2562_v12 = vpop.f32.mrf.mxu1 }
 0x918   : > { %2630 = vst [vmem:[%s4930_s6 + $0x40] sm:$0xff] %v2614_v22  ;;  %v2617_v46 = vadd.f32 %v2601_v6, %v2571_v30  ;;  %v2563_v58 = vadd.f32 %v4922_v55, %v2562_v12 }
 0x91a   : > { %2633 = vst [vmem:[%s4930_s6 + $0x58] sm:$0xff] %v2617_v46  ;;  %v2615_v28 = vadd.f32 %v2599_v40, %v2563_v58 }
 0x91c   : > { %2631 = vst [vmem:[%s4930_s6 + $0x48] sm:$0xff] %v2615_v28  ;;  %v3231_v49 = vpop.f32.mrf.mxu1 }
 0x91d   : > { %v2584_v60 = vadd.f32 %v3231_v49, %v4922_v55 }
 0x91e   : > { %v2575_v59 = vpop.f32.mrf.mxu1 }
 0x91f   : > { %v2620_v52 = vadd.f32 %v2604_v2, %v2584_v60  ;;  %v2576_v5 = vadd.f32 %v4922_v55, %v2575_v59 }
 0x920   : > { %v3232_v16 = vpop.f32.mrf.mxu1 }
 0x921   : > { %2636 = vst [vmem:[%s4930_s6 + $0x70] sm:$0xff] %v2620_v52  ;;  %v2618_v11 = vadd.f32 %v2602_v35, %v2576_v5  ;;  %v2587_v23 = vadd.f32 %v3232_v16, %v4922_v55 }
 0x922   : > { %v2578_v29 = vpop.f32.mrf.mxu1 }
 0x923   : > { %2634 = vst [vmem:[%s4930_s6 + $0x60] sm:$0xff] %v2618_v11  ;;  %v2621_v63 = vadd.f32 %v2605_v15, %v2587_v23  ;;  %v2579_v21 = vadd.f32 %v4922_v55, %v2578_v29 }
 0x925   : > { %2637 = vst [vmem:[%s4930_s6 + $0x78] sm:$0xff] %v2621_v63  ;;  %v2619_v56 = vadd.f32 %v2603_v24, %v2579_v21 }
 0x927   : > { %2635 = vst [vmem:[%s4930_s6 + $0x68] sm:$0xff] %v2619_v56 }
 0x928 PF: > { %s15_s18 = sadd.s32 1, %s3721_s18  }
 0x929   : > { %p12_p4 = scmp.ge.s32.totalorder %s15_s18, 4  }
 0x92b   :  { %14 = sbr.rel (!%p12_p4) target bundleno = 1 (0x1), region = 76 }

</bundles_post_ra>
